<compile_context>
chip_gen: v5e
topology: v5e:2x2
jax: 0.10.0
libtpu: 0.0.40
codegen_flags: <defaults>
</compile_context>

<pallas_src>
import functools

import jax
import jax.numpy as jnp
from jax.experimental import pallas as pl
from jax.experimental.pallas import tpu as pltpu


def mil_fc_kernel(h_ref, w1_ref, b1_ref, w2t_ref, b2_ref, wdiff_ref, top_ref,
                  best_score, best_logits, *, n_instances):
    i = pl.program_id(0)
    tn = h_ref.shape[0]

    @pl.when(i == 0)
    def _init():
        best_score[...] = jnp.full_like(best_score, -jnp.inf)
        best_logits[...] = jnp.zeros_like(best_logits)

    # ---- Linear(D_in -> H) + ReLU : cast f32->bf16 post-DMA, f32 MXU acc ----
    h_bf16 = h_ref[...].astype(jnp.bfloat16)                   # (tn, D_in)
    z = jnp.dot(h_bf16, w1_ref[...], preferred_element_type=jnp.float32)
    a = jnp.maximum(z + b1_ref[...], 0.0)                      # (tn, H) f32

    # ---- per-row selection score (softmax elided) ----
    # score_n = logits[n,1] - logits[n,0] - (b2[1]-b2[0]); the constant bias
    # difference shifts all rows equally, so argmax is unaffected.
    score = jnp.sum(a * wdiff_ref[...], axis=1, keepdims=True)  # (tn, 1)

    # Mask padded rows of a partial last tile BEFORE any selection
    # (stale double-buffer garbage must never win or propagate).
    row_ids = jax.lax.broadcasted_iota(jnp.int32, (tn, 1), 0)
    valid = (i * tn + row_ids) < n_instances
    score = jnp.where(valid, score, -jnp.inf)

    tile_max = jnp.max(score, axis=0, keepdims=True)             # (1, 1)
    # first row attaining the tile max (first-occurrence tie-break)
    tile_arg = jnp.min(jnp.where(score >= tile_max, row_ids, tn),
                       axis=0, keepdims=True)                    # (1, 1)
    sel = row_ids == tile_arg                                    # (tn, 1) one-hot

    # ---- recover full (1, 2) logits only for the winning row ----
    a_win = jnp.sum(jnp.where(sel, a, 0.0), axis=0, keepdims=True)   # (1, H)
    tile_logits = (jnp.dot(a_win, w2t_ref[...],
                           preferred_element_type=jnp.float32)
                   + b2_ref[...])                                    # (1, 2)

    better = tile_max > best_score[...]          # strict >: earliest tile wins ties
    best_score[...] = jnp.where(better, tile_max, best_score[...])
    best_logits[...] = jnp.where(better, tile_logits, best_logits[...])

    @pl.when(i == pl.num_programs(0) - 1)
    def _finalize():
        top_ref[...] = best_logits[...]


def prepare_params(w1, b1, w2, b2):
    """Pack PyTorch-layout nn.Linear params for the kernel, once (outside jit).

    w1: (H, D_in), b1: (H,), w2: (C, H), b2: (C,)   [PyTorch layout]
    Returns (w1_bf16 (D_in,H), b1 (1,H), w2t (H,C), b2 (1,C), wdiff (1,H)).
    """
    w1_f32 = jnp.asarray(w1, jnp.float32)
    w2_f32 = jnp.asarray(w2, jnp.float32)
    w1_k = w1_f32.T.astype(jnp.bfloat16)                         # (D_in, H) bf16
    b1_k = jnp.asarray(b1, jnp.float32).reshape(1, -1)           # (1, H)
    w2t_k = w2_f32.T                                             # (H, C)
    b2_k = jnp.asarray(b2, jnp.float32).reshape(1, -1)           # (1, C)
    wdiff_k = (w2_f32[1] - w2_f32[0]).reshape(1, -1)             # (1, H)
    return w1_k, b1_k, w2t_k, b2_k, wdiff_k


@functools.partial(jax.jit, static_argnames=("instance_tile",))
def mil_fc_forward(h, params, instance_tile=512):
    """Forward pass of MIL_fc (top_k == 1). Returns (top_instance, {})."""
    w1, b1, w2t, b2, wdiff = params
    if h.ndim == 3:                      # mirrors `h = h.squeeze()` for 3-D input
        h = jnp.squeeze(h)
    n, d_in = h.shape
    hidden = w1.shape[1]
    n_classes = w2t.shape[1]
    assert n_classes == 2, "MIL_fc requires n_classes == 2"
    assert w1.shape == (d_in, hidden)

    # Tile over instances; small bags collapse to a single grid step.
    instance_tile = max(8, (instance_tile // 8) * 8)
    tn = n if n <= instance_tile else instance_tile
    grid = (pl.cdiv(n, tn),)

    # Only raise the scoped-VMEM limit when the tile actually needs it
    # (cap at 64 MiB = v7x physical; v5e/v6e have 128 MiB).
    itemsize = h.dtype.itemsize
    vmem_bytes = (2 * tn * d_in * itemsize            # double-buffered h tiles
                  + 2 * d_in * hidden * 2             # resident bf16 w1 (x2 bufs)
                  + tn * (d_in + 2 * hidden) * 4      # in-kernel temps (cast, z, a)
                  + 4 * hidden * 4 * 4                # small resident params
                  + (2 << 20))                        # headroom
    vmem_limit = None if vmem_bytes <= (32 << 20) else min(vmem_bytes, 64 << 20)

    cost = pl.CostEstimate(
        flops=2 * n * d_in * hidden + 4 * n * hidden + 4 * hidden,
        transcendentals=0,
        bytes_accessed=(n * d_in * itemsize + d_in * hidden * 2
                        + (3 * hidden + 2 * n_classes) * 4 + n_classes * 4),
    )

    kernel = functools.partial(mil_fc_kernel, n_instances=n)
    const = lambda i: (0, 0)             # weights stay VMEM-resident across steps

    top_instance = pl.pallas_call(
        kernel,
        out_shape=jax.ShapeDtypeStruct((1, n_classes), jnp.float32),
        grid_spec=pltpu.PrefetchScalarGridSpec(
            num_scalar_prefetch=0,
            grid=grid,
            in_specs=[
                pl.BlockSpec((tn, d_in), lambda i: (i, 0)),       # h (f32), pipelined
                pl.BlockSpec((d_in, hidden), const),              # w1 (bf16), resident
                pl.BlockSpec((1, hidden), const),                 # b1, resident
                pl.BlockSpec((hidden, n_classes), const),         # w2^T, resident
                pl.BlockSpec((1, n_classes), const),              # b2, resident
                pl.BlockSpec((1, hidden), const),                 # w2[1]-w2[0], resident
            ],
            out_specs=pl.BlockSpec((1, n_classes), lambda i: (0, 0)),
            scratch_shapes=[
                pltpu.VMEM((1, 1), jnp.float32),                  # running best score
                pltpu.VMEM((1, n_classes), jnp.float32),          # running best logits
            ],
        ),
        compiler_params=pltpu.CompilerParams(
            dimension_semantics=("arbitrary",),     # sequential top-1 reduction
            vmem_limit_bytes=vmem_limit,
        ),
        cost_estimate=cost,
    )(h, w1, b1, w2t, b2, wdiff)

    results_dict = {}
    return top_instance, results_dict


def init_params(key, d_in, hidden, n_classes):
    """Deterministic synthetic init in PyTorch nn.Linear layout (W: out x in)."""
    k1, k2 = jax.random.split(key)
    w1 = jax.random.normal(k1, (hidden, d_in), jnp.float32) * (2.0 / (d_in + hidden)) ** 0.5
    b1 = jnp.zeros((hidden,), jnp.float32)
    w2 = jax.random.normal(k2, (n_classes, hidden), jnp.float32) * (2.0 / (hidden + n_classes)) ** 0.5
    b2 = jnp.zeros((n_classes,), jnp.float32)
    return w1, b1, w2, b2


def reference_forward(h, w1, b1, w2, b2, *, bf16_inputs=True):
    """Pure-JAX reference.  bf16_inputs=True mirrors the kernel's precision
    (bf16 h/w1 into an f32-accumulating matmul); everything after is f32."""
    if h.ndim == 3:
        h = jnp.squeeze(h)
    if bf16_inputs:
        z = jnp.dot(h.astype(jnp.bfloat16), w1.T.astype(jnp.bfloat16),
                    preferred_element_type=jnp.float32)
    else:
        z = h @ w1.T
    a = jnp.maximum(z + b1[None, :], 0.0)
    logits = a @ w2.T + b2[None, :]
    probs = jax.nn.softmax(logits, axis=1)
    idx = jnp.argmax(probs[:, 1])
    return logits[idx][None, :]


if __name__ == "__main__":
    # MIL_fc(size='small') -> sizes [1024, 512], n_classes=2, top_k=1.
    N, D_IN, HIDDEN, N_CLASSES = 200, 1024, 512, 2

    key = jax.random.PRNGKey(0)
    kh, kp = jax.random.split(key)
    h = jax.random.normal(kh, (N, D_IN), jnp.float32)     # one bag of instance features
    w1, b1, w2, b2 = init_params(kp, D_IN, HIDDEN, N_CLASSES)
    params = prepare_params(w1, b1, w2, b2)               # one-time bf16 pack of w1

    ref = reference_forward(h, w1, b1, w2, b2, bf16_inputs=True)

    # Default tile: the whole bag is a single grid step (no carry, no masking).
    top1, rd1 = mil_fc_forward(h, params)
    top1 = jax.block_until_ready(top1)
    assert top1.shape == (1, N_CLASSES)
    assert rd1 == {}
    assert jnp.allclose(top1, ref, atol=1e-3, rtol=1e-3), (top1, ref)

    # Small tile: 4 grid steps with a masked partial last tile (exercises the
    # cross-tile best-score carry and padded-row masking).
    top2, rd2 = mil_fc_forward(h, params, instance_tile=64)
    top2 = jax.block_until_ready(top2)
    assert jnp.allclose(top2, ref, atol=1e-3, rtol=1e-3), (top2, ref)

    print("KERNEL_OK")
</pallas_src>

<mosaic_0001>
module attributes {stable_mosaic.version = 11 : i64} {
  func.func @mil_fc_kernel(%arg0: i32, %arg1: memref<200x1024xf32, #tpu.memory_space<vmem>>, %arg2: memref<1024x512xbf16, #tpu.memory_space<vmem>>, %arg3: memref<1x512xf32, #tpu.memory_space<vmem>>, %arg4: memref<512x2xf32, #tpu.memory_space<vmem>>, %arg5: memref<1x2xf32, #tpu.memory_space<vmem>>, %arg6: memref<1x512xf32, #tpu.memory_space<vmem>>, %arg7: memref<1x2xf32, #tpu.memory_space<vmem>>, %arg8: memref<1x1xf32, #tpu.memory_space<vmem>>, %arg9: memref<1x2xf32, #tpu.memory_space<vmem>>) attributes {dimension_semantics = [#tpu.dimension_semantics<arbitrary>], iteration_bounds = array<i64: 1>, scalar_prefetch = 0 : i64, scratch_operands = 2 : i64, tpu.core_type = #tpu.core_type<tc>, window_params = [{transform_indices = @transform_0, window_bounds = array<i64: 200, 1024>}, {pipeline_mode = #tpu.pipeline_mode<synchronous>, transform_indices = @transform_1, window_bounds = array<i64: 1024, 512>}, {pipeline_mode = #tpu.pipeline_mode<synchronous>, transform_indices = @transform_2, window_bounds = array<i64: 1, 512>}, {pipeline_mode = #tpu.pipeline_mode<synchronous>, transform_indices = @transform_3, window_bounds = array<i64: 512, 2>}, {pipeline_mode = #tpu.pipeline_mode<synchronous>, transform_indices = @transform_4, window_bounds = array<i64: 1, 2>}, {pipeline_mode = #tpu.pipeline_mode<synchronous>, transform_indices = @transform_5, window_bounds = array<i64: 1, 512>}, {pipeline_mode = #tpu.pipeline_mode<synchronous>, transform_indices = @transform_6, window_bounds = array<i64: 1, 2>}]} {
    %c0_i32 = arith.constant 0 : i32
    %0 = arith.cmpi eq, %arg0, %c0_i32 : i32
    %1 = arith.extui %0 : i1 to i32
    %c0_i32_0 = arith.constant 0 : i32
    %2 = arith.cmpi ne, %1, %c0_i32_0 : i32
    scf.if %2 {
      %cst_34 = arith.constant 0xFF800000 : f32
      %58 = vector.broadcast %cst_34 : f32 to vector<1x1xf32>
      %c0_35 = arith.constant 0 : index
      %c0_36 = arith.constant 0 : index
      %59 = vector.load %arg8[%c0_35, %c0_36] : memref<1x1xf32, #tpu.memory_space<vmem>>, vector<1x1xf32>
      tpu.vector_store %arg8[%c0_35, %c0_36], %58 {strides = array<i32>} : memref<1x1xf32, #tpu.memory_space<vmem>>, vector<1x1xf32>,
      %cst_37 = arith.constant 0.000000e+00 : f32
      %60 = vector.broadcast %cst_37 : f32 to vector<1x2xf32>
      %c0_38 = arith.constant 0 : index
      %c0_39 = arith.constant 0 : index
      %61 = vector.load %arg9[%c0_38, %c0_39] : memref<1x2xf32, #tpu.memory_space<vmem>>, vector<1x2xf32>
      tpu.vector_store %arg9[%c0_38, %c0_39], %60 {strides = array<i32>} : memref<1x2xf32, #tpu.memory_space<vmem>>, vector<1x2xf32>,
    } else {
    }
    %c0 = arith.constant 0 : index
    %c0_1 = arith.constant 0 : index
    %3 = vector.load %arg1[%c0, %c0_1] : memref<200x1024xf32, #tpu.memory_space<vmem>>, vector<200x1024xf32>
    %4 = arith.truncf %3 : vector<200x1024xf32> to vector<200x1024xbf16>
    %c0_2 = arith.constant 0 : index
    %c0_3 = arith.constant 0 : index
    %5 = vector.load %arg2[%c0_2, %c0_3] : memref<1024x512xbf16, #tpu.memory_space<vmem>>, vector<1024x512xbf16>
    %cst = arith.constant dense<0.000000e+00> : vector<200x512xf32>
    %6 = tpu.matmul %4, %5, %cst {dimension_numbers = #tpu.dot_dimension_numbers<[1], [0], [0], [1], [0, 0, 1, 1], [], []>} : vector<200x1024xbf16>, vector<1024x512xbf16>, vector<200x512xf32> -> vector<200x512xf32>
    %c0_4 = arith.constant 0 : index
    %c0_5 = arith.constant 0 : index
    %7 = vector.load %arg3[%c0_4, %c0_5] : memref<1x512xf32, #tpu.memory_space<vmem>>, vector<1x512xf32>
    %8 = vector.broadcast %7 : vector<1x512xf32> to vector<200x512xf32>
    %9 = arith.addf %6, %8 : vector<200x512xf32>
    %cst_6 = arith.constant 0.000000e+00 : f32
    %10 = vector.broadcast %cst_6 : f32 to vector<200x512xf32>
    %11 = arith.maximumf %9, %10 : vector<200x512xf32>
    %c0_7 = arith.constant 0 : index
    %c0_8 = arith.constant 0 : index
    %12 = vector.load %arg6[%c0_7, %c0_8] : memref<1x512xf32, #tpu.memory_space<vmem>>, vector<1x512xf32>
    %13 = vector.broadcast %12 : vector<1x512xf32> to vector<200x512xf32>
    %14 = arith.mulf %11, %13 : vector<200x512xf32>
    %cst_9 = arith.constant dense<0.000000e+00> : vector<200xf32>
    %15 = vector.multi_reduction <add>, %14, %cst_9 [1] : vector<200x512xf32> to vector<200xf32>
    %16 = vector.shape_cast %15 : vector<200xf32> to vector<200x1xf32>
    %17 = tpu.iota {dimensions = array<i32: 0>} : vector<200x1xi32>
    %c200_i32 = arith.constant 200 : i32
    %18 = arith.muli %arg0, %c200_i32 : i32
    %19 = vector.broadcast %18 : i32 to vector<200x1xi32>
    %20 = arith.addi %19, %17 : vector<200x1xi32>
    %c200_i32_10 = arith.constant 200 : i32
    %21 = vector.broadcast %c200_i32_10 : i32 to vector<200x1xi32>
    %22 = arith.cmpi slt, %20, %21 : vector<200x1xi32>
    %cst_11 = arith.constant 0xFF800000 : f32
    %23 = vector.broadcast %cst_11 : f32 to vector<200x1xf32>
    %24 = arith.select %22, %16, %23 : vector<200x1xi1>, vector<200x1xf32>
    %cst_12 = arith.constant dense<0xFF800000> : vector<1xf32>
    %25 = vector.multi_reduction <maximumf>, %24, %cst_12 [0] : vector<200x1xf32> to vector<1xf32>
    %26 = vector.shape_cast %25 : vector<1xf32> to vector<1x1xf32>
    %27 = vector.broadcast %26 : vector<1x1xf32> to vector<200x1xf32>
    %28 = arith.cmpf oge, %24, %27 : vector<200x1xf32>
    %c200_i32_13 = arith.constant 200 : i32
    %29 = vector.broadcast %c200_i32_13 : i32 to vector<200x1xi32>
    %30 = arith.select %28, %17, %29 : vector<200x1xi1>, vector<200x1xi32>
    %cst_14 = arith.constant dense<2147483647> : vector<1xi32>
    %31 = vector.multi_reduction <minsi>, %30, %cst_14 [0] : vector<200x1xi32> to vector<1xi32>
    %32 = vector.shape_cast %31 : vector<1xi32> to vector<1x1xi32>
    %33 = vector.broadcast %32 : vector<1x1xi32> to vector<200x1xi32>
    %34 = arith.cmpi eq, %17, %33 : vector<200x1xi32>
    %cst_15 = arith.constant 0.000000e+00 : f32
    %35 = vector.shape_cast %34 : vector<200x1xi1> to vector<200x1xi1>
    %36 = vector.broadcast %35 : vector<200x1xi1> to vector<200x512xi1>
    %37 = vector.broadcast %cst_15 : f32 to vector<200x512xf32>
    %38 = arith.select %36, %11, %37 : vector<200x512xi1>, vector<200x512xf32>
    %cst_16 = arith.constant dense<0.000000e+00> : vector<512xf32>
    %39 = vector.multi_reduction <add>, %38, %cst_16 [0] : vector<200x512xf32> to vector<512xf32>
    %40 = vector.shape_cast %39 : vector<512xf32> to vector<1x512xf32>
    %c0_17 = arith.constant 0 : index
    %c0_18 = arith.constant 0 : index
    %41 = vector.load %arg4[%c0_17, %c0_18] : memref<512x2xf32, #tpu.memory_space<vmem>>, vector<512x2xf32>
    %cst_19 = arith.constant dense<0.000000e+00> : vector<1x2xf32>
    %42 = tpu.matmul %40, %41, %cst_19 {dimension_numbers = #tpu.dot_dimension_numbers<[1], [0], [0], [1], [0, 0, 1, 1], [], []>} : vector<1x512xf32>, vector<512x2xf32>, vector<1x2xf32> -> vector<1x2xf32>
    %c0_20 = arith.constant 0 : index
    %c0_21 = arith.constant 0 : index
    %43 = vector.load %arg5[%c0_20, %c0_21] : memref<1x2xf32, #tpu.memory_space<vmem>>, vector<1x2xf32>
    %44 = arith.addf %42, %43 : vector<1x2xf32>
    %c0_22 = arith.constant 0 : index
    %c0_23 = arith.constant 0 : index
    %45 = vector.load %arg8[%c0_22, %c0_23] : memref<1x1xf32, #tpu.memory_space<vmem>>, vector<1x1xf32>
    %46 = arith.cmpf ogt, %26, %45 : vector<1x1xf32>
    %c0_24 = arith.constant 0 : index
    %c0_25 = arith.constant 0 : index
    %47 = vector.load %arg8[%c0_24, %c0_25] : memref<1x1xf32, #tpu.memory_space<vmem>>, vector<1x1xf32>
    %48 = arith.select %46, %26, %47 : vector<1x1xi1>, vector<1x1xf32>
    %c0_26 = arith.constant 0 : index
    %c0_27 = arith.constant 0 : index
    %49 = vector.load %arg8[%c0_26, %c0_27] : memref<1x1xf32, #tpu.memory_space<vmem>>, vector<1x1xf32>
    tpu.vector_store %arg8[%c0_26, %c0_27], %48 {strides = array<i32>} : memref<1x1xf32, #tpu.memory_space<vmem>>, vector<1x1xf32>,
    %c0_28 = arith.constant 0 : index
    %c0_29 = arith.constant 0 : index
    %50 = vector.load %arg9[%c0_28, %c0_29] : memref<1x2xf32, #tpu.memory_space<vmem>>, vector<1x2xf32>
    %51 = vector.shape_cast %46 : vector<1x1xi1> to vector<1x1xi1>
    %52 = vector.broadcast %51 : vector<1x1xi1> to vector<1x2xi1>
    %53 = arith.select %52, %44, %50 : vector<1x2xi1>, vector<1x2xf32>
    %c0_30 = arith.constant 0 : index
    %c0_31 = arith.constant 0 : index
    %54 = vector.load %arg9[%c0_30, %c0_31] : memref<1x2xf32, #tpu.memory_space<vmem>>, vector<1x2xf32>
    tpu.vector_store %arg9[%c0_30, %c0_31], %53 {strides = array<i32>} : memref<1x2xf32, #tpu.memory_space<vmem>>, vector<1x2xf32>,
    %c0_i32_32 = arith.constant 0 : i32
    %55 = arith.cmpi eq, %arg0, %c0_i32_32 : i32
    %56 = arith.extui %55 : i1 to i32
    %c0_i32_33 = arith.constant 0 : i32
    %57 = arith.cmpi ne, %56, %c0_i32_33 : i32
    scf.if %57 {
      %c0_34 = arith.constant 0 : index
      %c0_35 = arith.constant 0 : index
      %58 = vector.load %arg9[%c0_34, %c0_35] : memref<1x2xf32, #tpu.memory_space<vmem>>, vector<1x2xf32>
      %c0_36 = arith.constant 0 : index
      %c0_37 = arith.constant 0 : index
      %59 = vector.load %arg7[%c0_36, %c0_37] : memref<1x2xf32, #tpu.memory_space<vmem>>, vector<1x2xf32>
      tpu.vector_store %arg7[%c0_36, %c0_37], %58 {strides = array<i32>} : memref<1x2xf32, #tpu.memory_space<vmem>>, vector<1x2xf32>,
    } else {
    }
    return
  }
  func.func @transform_0(%arg0: i32) -> (i32, i32) {
    %c0_i32 = arith.constant 0 : i32
    %c0_i32_0 = arith.constant 0 : i32
    return %arg0, %c0_i32 : i32, i32
  }
  func.func @transform_1(%arg0: i32) -> (i32, i32) {
    %c0_i32 = arith.constant 0 : i32
    %c0_i32_0 = arith.constant 0 : i32
    %c0_i32_1 = arith.constant 0 : i32
    return %c0_i32, %c0_i32_0 : i32, i32
  }
  func.func @transform_2(%arg0: i32) -> (i32, i32) {
    %c0_i32 = arith.constant 0 : i32
    %c0_i32_0 = arith.constant 0 : i32
    %c0_i32_1 = arith.constant 0 : i32
    return %c0_i32, %c0_i32_0 : i32, i32
  }
  func.func @transform_3(%arg0: i32) -> (i32, i32) {
    %c0_i32 = arith.constant 0 : i32
    %c0_i32_0 = arith.constant 0 : i32
    %c0_i32_1 = arith.constant 0 : i32
    return %c0_i32, %c0_i32_0 : i32, i32
  }
  func.func @transform_4(%arg0: i32) -> (i32, i32) {
    %c0_i32 = arith.constant 0 : i32
    %c0_i32_0 = arith.constant 0 : i32
    %c0_i32_1 = arith.constant 0 : i32
    return %c0_i32, %c0_i32_0 : i32, i32
  }
  func.func @transform_5(%arg0: i32) -> (i32, i32) {
    %c0_i32 = arith.constant 0 : i32
    %c0_i32_0 = arith.constant 0 : i32
    %c0_i32_1 = arith.constant 0 : i32
    return %c0_i32, %c0_i32_0 : i32, i32
  }
  func.func @transform_6(%arg0: i32) -> (i32, i32) {
    %c0_i32 = arith.constant 0 : i32
    %c0_i32_0 = arith.constant 0 : i32
    %c0_i32_1 = arith.constant 0 : i32
    return %c0_i32, %c0_i32_0 : i32, i32
  }
}

</mosaic_0001>

<bundles_post_ra>
// kernel: mil_fc_forward.1
= control target key start
LH: loop header
LB: loop body
LE: loop exit
PB: predicated region body
PF: predicated region fallthrough
CT: control target
= control target key end

     0   :  { %11 = vsyncpa [#allocation5], 0  ;;  %s9416_s0 = inlined_call_operand.hbm [shape: f32[200,1024], index: 0, kind: input, shape index: {}]   ;;  %s9417_s1 = inlined_call_operand.hbm [shape: bf16[1024,512], index: 1, kind: input, shape index: {}]   ;;  %s9418_s2 = inlined_call_operand.vmem [shape: f32[1,512], index: 2, kind: input, shape index: {}]   ;;  %s9419_s3 = inlined_call_operand.vmem [shape: f32[512,2], index: 3, kind: input, shape index: {}]   ;;  %s9420_s4 = inlined_call_operand.vmem [shape: f32[1,2], index: 4, kind: input, shape index: {}]   ;;  %s9421_s5 = inlined_call_operand.vmem [shape: f32[1,512], index: 5, kind: input, shape index: {}]   ;;  %s9422_s6 = inlined_call_operand.hbm [shape: f32[1,2], index: 6, kind: output, shape index: {}]  }
   0x1   :  { %12 = vsyncpa [#allocation8], 0 }
   0x2   :  { %13 = vsyncpa [#allocation6], 0  ;;  %s18_s23 = sshll.u32 %s9416_s0, 4  ;;  %s6676_s24 = smov [#allocation4]   ;;  %s19_s23 = int_to_ptr.hbm [resolvable:$true] %s18_s23 }
   0x3   :  { %s20_s25 = sshll.u32 %s6676_s24, 4  ;;  %s31_s28 = sshll.u32 %s9417_s1, 4  ;;  %s21_s25 = int_to_ptr.vmem [resolvable:$true] %s20_s25  ;;  %s32_s28 = int_to_ptr.hbm [resolvable:$true] %s31_s28 }
   0x4   :  { %s6677_s29 = smov 1024   ;;  %s6678_s30 = smov 64  }
   0x5   :  { %26 = dma.hbm_to_vmem [thread:$0]  %s19_s23, 25600, %s21_s25, [#allocation5], %s6677_s29, %s6677_s29, %s6678_s30  }
   0x6   :  { %s6679_s7 = smov [#allocation7]   ;;  %s6680_s9 = smov 256  }
   0x7   :  { %s33_s8 = sshll.u32 %s6679_s7, 4  ;;  %s6681_s10 = smov 16   ;;  %s34_s8 = int_to_ptr.vmem [resolvable:$true] %s33_s8 }
   0x8   :  { %39 = dma.hbm_to_vmem [thread:$0]  %s32_s28, 32768, %s34_s8, [#allocation8], %s6680_s9, %s6680_s9, %s6681_s10  }
   0x9   :  { %6670 = dma.done.wait [#allocation5], 25600  }
   0xa   :  { %6671 = vsyncadd [#allocation5], 4294941696 }
   0xb   :  { %6672 = dma.done.wait [#allocation8], 32768  }
   0xc   :  { %6673 = vsyncadd [#allocation8], 4294934528  ;;  %v5417_v0 = vld [vmem:[#allocation7 + $0xe0] sm:$0xf]  ;;  %v6357_v1 = vld [vmem:[#allocation7 + $0xec] sm:$0xf0] }
   0xd   :  { %v5545_v2 = vld [vmem:[#allocation7 + $0x1e0] sm:$0xf]  ;;  %v5418_v3 = vor.u32 %v6357_v1, %v5417_v0  ;;  %v6389_v4 = vld [vmem:[#allocation7 + $0x1ec] sm:$0xf0]  ;;  %vm9822_vm0 = vcmask 0   ;;  %s6685_s10 = smov [#allocation9]  }
   0xe   :  { %v5673_v5 = vld [vmem:[#allocation7 + $0x2e0] sm:$0xf]  ;;  %v6421_v6 = vld [vmem:[#allocation7 + $0x2ec] sm:$0xf0]  ;;  %v5546_v7 = vor.u32 %v6389_v4, %v5545_v2  ;;  %s5290_s0 = sshll.u32 %s6685_s10, 4  ;;  %s5291_s0 = int_to_ptr.vmem [resolvable:$true] %s5290_s0 }
   0xf   :  { %v5674_v8 = vor.u32 %v6421_v6, %v5673_v5  ;;  %v5801_v9 = vld [vmem:[#allocation7 + $0x3e0] sm:$0xf]  ;;  %v6453_v10 = vld [vmem:[#allocation7 + $0x3ec] sm:$0xf0]  ;;  %1914 = vmatpush.bf16.msra.mxu0 %v5418_v3 }
  0x10   :  { %v5401_v11 = vld [vmem:[#allocation7 + $0xc0] sm:$0xf]  ;;  %v5802_v12 = vor.u32 %v6453_v10, %v5801_v9  ;;  %v6353_v13 = vld [vmem:[#allocation7 + $0xcc] sm:$0xf0]  ;;  %1987 = vmatpush.bf16.msra.mxu1 %v5546_v7 }
  0x11   :  { %v5529_v14 = vld [vmem:[#allocation7 + $0x1c0] sm:$0xf]  ;;  %v6385_v15 = vld [vmem:[#allocation7 + $0x1cc] sm:$0xf0]  ;;  %2060 = vmatpush.bf16.msra.mxu2 %v5674_v8  ;;  %v5402_v16 = vor.u32 %v6353_v13, %v5401_v11 }
  0x12   :  { %v5530_v17 = vor.u32 %v6385_v15, %v5529_v14  ;;  %v5657_v18 = vld [vmem:[#allocation7 + $0x2c0] sm:$0xf]  ;;  %v6417_v19 = vld [vmem:[#allocation7 + $0x2cc] sm:$0xf0]  ;;  %2133 = vmatpush.bf16.msra.mxu3 %v5802_v12 }
  0x13   :  { %v5785_v20 = vld [vmem:[#allocation7 + $0x3c0] sm:$0xf]  ;;  %v5658_v21 = vor.u32 %v6417_v19, %v5657_v18  ;;  %v6449_v22 = vld [vmem:[#allocation7 + $0x3cc] sm:$0xf0]  ;;  %1915 = vmatpush.bf16.msra.mxu0 %v5402_v16 }
  0x14   :  { %v5385_v23 = vld [vmem:[#allocation7 + $0xa0] sm:$0xf]  ;;  %v6349_v24 = vld [vmem:[#allocation7 + $0xac] sm:$0xf0]  ;;  %v5786_v25 = vor.u32 %v6449_v22, %v5785_v20  ;;  %1988 = vmatpush.bf16.msra.mxu1 %v5530_v17 }
  0x15   :  { %v5513_v26 = vld [vmem:[#allocation7 + $0x1a0] sm:$0xf]  ;;  %v6381_v27 = vld [vmem:[#allocation7 + $0x1ac] sm:$0xf0]  ;;  %v5386_v29 = vor.u32 %v6349_v24, %v5385_v23  ;;  %2061 = vmatpush.bf16.msra.mxu2 %v5658_v21 }
  0x16   :  { %v5641_v28 = vld [vmem:[#allocation7 + $0x2a0] sm:$0xf]  ;;  %v6413_v30 = vld [vmem:[#allocation7 + $0x2ac] sm:$0xf0]  ;;  %v5514_v33 = vor.u32 %v6381_v27, %v5513_v26  ;;  %2134 = vmatpush.bf16.msra.mxu3 %v5786_v25 }
  0x17   :  { %v5769_v31 = vld [vmem:[#allocation7 + $0x3a0] sm:$0xf]  ;;  %v6445_v32 = vld [vmem:[#allocation7 + $0x3ac] sm:$0xf0]  ;;  %v5642_v34 = vor.u32 %v6413_v30, %v5641_v28  ;;  %1916 = vmatpush.bf16.msra.mxu0 %v5386_v29  ;;  %v65_v30 = vld [vmem:[#allocation4 + $0x8] sm:$0xff] }
  0x18   :  { %v5369_v35 = vld [vmem:[#allocation7 + $0x80] sm:$0xf]  ;;  %v6345_v36 = vld [vmem:[#allocation7 + $0x8c] sm:$0xf0]  ;;  %v5770_v38 = vor.u32 %v6445_v32, %v5769_v31  ;;  %1989 = vmatpush.bf16.msra.mxu1 %v5514_v33  ;;  %v73_v31 = vld [vmem:[#allocation4 + $0x48] sm:$0xff] }
  0x19   :  { %v5497_v37 = vld [vmem:[#allocation7 + $0x180] sm:$0xf]  ;;  %v6377_v39 = vld [vmem:[#allocation7 + $0x18c] sm:$0xf0]  ;;  %v5370_v44 = vor.u32 %v6345_v36, %v5369_v35  ;;  %2062 = vmatpush.bf16.msra.mxu2 %v5642_v34 }
  0x1a   :  { %v5625_v40 = vld [vmem:[#allocation7 + $0x280] sm:$0xf]  ;;  %v6409_v41 = vld [vmem:[#allocation7 + $0x28c] sm:$0xf0]  ;;  %v5498_v45 = vor.u32 %v6377_v39, %v5497_v37  ;;  %2135 = vmatpush.bf16.msra.mxu3 %v5770_v38 }
  0x1b   :  { %v5753_v42 = vld [vmem:[#allocation7 + $0x380] sm:$0xf]  ;;  %v6441_v43 = vld [vmem:[#allocation7 + $0x38c] sm:$0xf0]  ;;  %v5626_v46 = vor.u32 %v6409_v41, %v5625_v40  ;;  %1917 = vmatpush.bf16.msra.mxu0 %v5370_v44  ;;  %v67_v41 = vld [vmem:[#allocation4 + $0x18] sm:$0xff] }
  0x1c   :  { %v5353_v47 = vld [vmem:[#allocation7 + $0x60] sm:$0xf]  ;;  %v6341_v48 = vld [vmem:[#allocation7 + $0x6c] sm:$0xf0]  ;;  %v5754_v50 = vor.u32 %v6441_v43, %v5753_v42  ;;  %1990 = vmatpush.bf16.msra.mxu1 %v5498_v45  ;;  %v75_v42 = vld [vmem:[#allocation4 + $0x58] sm:$0xff] }
  0x1d   :  { %v5481_v49 = vld [vmem:[#allocation7 + $0x160] sm:$0xf]  ;;  %v6373_v51 = vld [vmem:[#allocation7 + $0x16c] sm:$0xf0]  ;;  %v5354_v56 = vor.u32 %v6341_v48, %v5353_v47  ;;  %2063 = vmatpush.bf16.msra.mxu2 %v5626_v46 }
  0x1e   :  { %v5609_v52 = vld [vmem:[#allocation7 + $0x260] sm:$0xf]  ;;  %v6405_v53 = vld [vmem:[#allocation7 + $0x26c] sm:$0xf0]  ;;  %v5482_v57 = vor.u32 %v6373_v51, %v5481_v49  ;;  %2136 = vmatpush.bf16.msra.mxu3 %v5754_v50 }
  0x1f   :  { %v5737_v54 = vld [vmem:[#allocation7 + $0x360] sm:$0xf]  ;;  %v6437_v55 = vld [vmem:[#allocation7 + $0x36c] sm:$0xf0]  ;;  %v5610_v58 = vor.u32 %v6405_v53, %v5609_v52  ;;  %1918 = vmatpush.bf16.msra.mxu0 %v5354_v56  ;;  %v6729_v53 = vpack.c.bf16 %v73_v31, %v65_v30  ;;  %v97_v30 = vld [vmem:[#allocation4 + $0x108] sm:$0xff] }
  0x20   :  { %v5337_v59 = vld [vmem:[#allocation7 + $0x40] sm:$0xf]  ;;  %v6337_v60 = vld [vmem:[#allocation7 + $0x4c] sm:$0xf0]  ;;  %v5738_v62 = vor.u32 %v6437_v55, %v5737_v54  ;;  %1991 = vmatpush.bf16.msra.mxu1 %v5482_v57  ;;  %v6733_v57 = vpack.c.bf16 %v75_v42, %v67_v41  ;;  %v105_v31 = vld [vmem:[#allocation4 + $0x148] sm:$0xff] }
  0x21   :  { %v5465_v61 = vld [vmem:[#allocation7 + $0x140] sm:$0xf]  ;;  %v6369_v63 = vld [vmem:[#allocation7 + $0x14c] sm:$0xf0]  ;;  %v5338_v4 = vor.u32 %v6337_v60, %v5337_v59  ;;  %2064 = vmatpush.bf16.msra.mxu2 %v5610_v58 }
  0x22   :  { %v5593_v0 = vld [vmem:[#allocation7 + $0x240] sm:$0xf]  ;;  %v6401_v1 = vld [vmem:[#allocation7 + $0x24c] sm:$0xf0]  ;;  %v5466_v5 = vor.u32 %v6369_v63, %v5465_v61  ;;  %2137 = vmatpush.bf16.msra.mxu3 %v5738_v62 }
  0x23   :  { %v5721_v2 = vld [vmem:[#allocation7 + $0x340] sm:$0xf]  ;;  %v6433_v3 = vld [vmem:[#allocation7 + $0x34c] sm:$0xf0]  ;;  %v5594_v6 = vor.u32 %v6401_v1, %v5593_v0  ;;  %1919 = vmatpush.bf16.msra.mxu0 %v5338_v4 }
  0x24   :  { %v5321_v7 = vld [vmem:[#allocation7 + $0x20] sm:$0xf]  ;;  %v6333_v8 = vld [vmem:[#allocation7 + $0x2c] sm:$0xf0]  ;;  %v5722_v10 = vor.u32 %v6433_v3, %v5721_v2  ;;  %1992 = vmatpush.bf16.msra.mxu1 %v5466_v5 }
  0x25   :  { %v5449_v9 = vld [vmem:[#allocation7 + $0x120] sm:$0xf]  ;;  %v6365_v11 = vld [vmem:[#allocation7 + $0x12c] sm:$0xf0]  ;;  %v5322_v17 = vor.u32 %v6333_v8, %v5321_v7  ;;  %2065 = vmatpush.bf16.msra.mxu2 %v5594_v6  ;;  %v81_v6 = vld [vmem:[#allocation4 + $0x88] sm:$0xff] }
  0x26   :  { %v5577_v12 = vld [vmem:[#allocation7 + $0x220] sm:$0xf]  ;;  %v6397_v13 = vld [vmem:[#allocation7 + $0x22c] sm:$0xf0]  ;;  %v5450_v21 = vor.u32 %v6365_v11, %v5449_v9  ;;  %2138 = vmatpush.bf16.msra.mxu3 %v5722_v10  ;;  %v89_v7 = vld [vmem:[#allocation4 + $0xc8] sm:$0xff] }
  0x27   :  { %v5705_v14 = vld [vmem:[#allocation7 + $0x320] sm:$0xf]  ;;  %v6429_v15 = vld [vmem:[#allocation7 + $0x32c] sm:$0xf0]  ;;  %v5578_v22 = vor.u32 %v6397_v13, %v5577_v12  ;;  %1920 = vmatpush.bf16.msra.mxu0 %v5322_v17  ;;  %v83_v10 = vld [vmem:[#allocation4 + $0x98] sm:$0xff]  ;;  %v6741_v13 = vpack.c.bf16 %v89_v7, %v81_v6 }
  0x28   :  { %v5305_v16 = vld [vmem:[#allocation7] sm:$0xf]  ;;  %v6329_v18 = vld [vmem:[#allocation7 + $0xc] sm:$0xf0]  ;;  %v5706_v26 = vor.u32 %v6429_v15, %v5705_v14  ;;  %1993 = vmatpush.bf16.msra.mxu1 %v5450_v21  ;;  %v91_v11 = vld [vmem:[#allocation4 + $0xd8] sm:$0xff] }
  0x29   :  { %v5433_v19 = vld [vmem:[#allocation7 + $0x100] sm:$0xf]  ;;  %v6361_v20 = vld [vmem:[#allocation7 + $0x10c] sm:$0xf0]  ;;  %v5306_v34 = vor.u32 %v6329_v18, %v5305_v16  ;;  %2066 = vmatpush.bf16.msra.mxu2 %v5578_v22  ;;  %v6745_v15 = vpack.c.bf16 %v91_v11, %v83_v10  ;;  %v129_v6 = vld [vmem:[#allocation4 + $0x208] sm:$0xff] }
  0x2a   :  { %v5561_v23 = vld [vmem:[#allocation7 + $0x200] sm:$0xf]  ;;  %v6393_v24 = vld [vmem:[#allocation7 + $0x20c] sm:$0xf0]  ;;  %v5434_v38 = vor.u32 %v6361_v20, %v5433_v19  ;;  %2139 = vmatpush.bf16.msra.mxu3 %v5706_v26  ;;  %v137_v7 = vld [vmem:[#allocation4 + $0x248] sm:$0xff] }
  0x2b   :  { %v5689_v25 = vld [vmem:[#allocation7 + $0x300] sm:$0xf]  ;;  %v6425_v27 = vld [vmem:[#allocation7 + $0x30c] sm:$0xf0]  ;;  %v5562_v39 = vor.u32 %v6393_v24, %v5561_v23  ;;  %1921 = vmatpush.bf16.msra.mxu0 %v5306_v34  ;;  %v99_v34 = vld [vmem:[#allocation4 + $0x118] sm:$0xff] }
  0x2c   :  { %v64_v28 = vld [vmem:[#allocation4] sm:$0xff]  ;;  %v6549_v33 = vld [vmem:[#allocation7 + $0x6ec] sm:$0xf0]  ;;  %v5690_v43 = vor.u32 %v6425_v27, %v5689_v25  ;;  %1994 = vmatpush.bf16.msra.mxu1 %v5434_v38  ;;  %v131_v10 = vld [vmem:[#allocation4 + $0x218] sm:$0xff] }
  0x2d   :  { %v72_v29 = vld [vmem:[#allocation4 + $0x40] sm:$0xff]  ;;  %v66_v35 = vld [vmem:[#allocation4 + $0x10] sm:$0xff]  ;;  %2067 = vmatpush.bf16.msra.mxu2 %v5562_v39  ;;  %v139_v11 = vld [vmem:[#allocation4 + $0x258] sm:$0xff] }
  0x2e   :  { %v6185_v32 = vld [vmem:[#allocation7 + $0x6e0] sm:$0xf]  ;;  %v6581_v37 = vld [vmem:[#allocation7 + $0x7ec] sm:$0xf0]  ;;  %v6727_v48 = vpack.c.bf16 %v72_v29, %v64_v28  ;;  %2140 = vmatpush.bf16.msra.mxu3 %v5690_v43 }
  0x2f   :  { %v6313_v36 = vld [vmem:[#allocation7 + $0x7e0] sm:$0xf]  ;;  %v74_v40 = vld [vmem:[#allocation4 + $0x50] sm:$0xff]  ;;  %v6186_v44 = vor.u32 %v6549_v33, %v6185_v32  ;;  %1995 = vmatmul.bf16.vlgmr.msra.gmra.mxu1 %v6729_v53 }
  0x30   :  { %v5929_v45 = vld [vmem:[#allocation7 + $0x4e0] sm:$0xf]  ;;  %v6485_v46 = vld [vmem:[#allocation7 + $0x4ec] sm:$0xf0]  ;;  %v6314_v49 = vor.u32 %v6581_v37, %v6313_v36  ;;  %v6731_v54 = vpack.c.bf16 %v74_v40, %v66_v35  ;;  %1922 = vmatmul.bf16.vlgmr.msra.gmra.mxu0 %v6727_v48  ;;  %v107_v35 = vld [vmem:[#allocation4 + $0x158] sm:$0xff]  ;;  %v6753_v37 = vpack.c.bf16 %v105_v31, %v97_v30 }
  0x31   :  { %v6057_v47 = vld [vmem:[#allocation7 + $0x5e0] sm:$0xf]  ;;  %v6517_v50 = vld [vmem:[#allocation7 + $0x5ec] sm:$0xf0]  ;;  %v5930_v58 = vor.u32 %v6485_v46, %v5929_v45  ;;  %2352 = vmatpush.bf16.msrb.mxu2 %v6186_v44  ;;  %2141 = vmatmul.bf16.vlgmr.msra.gmra.mxu3 %v6733_v57  ;;  %v6757_v39 = vpack.c.bf16 %v107_v35, %v99_v34  ;;  %v113_v45 = vld [vmem:[#allocation4 + $0x188] sm:$0xff] }
  0x32   :  { %v6169_v51 = vld [vmem:[#allocation7 + $0x6c0] sm:$0xf]  ;;  %v6545_v52 = vld [vmem:[#allocation7 + $0x6cc] sm:$0xf0]  ;;  %v6058_v59 = vor.u32 %v6517_v50, %v6057_v47  ;;  %2425 = vmatpush.bf16.msrb.mxu3 %v6314_v49  ;;  %2068 = vmatmul.bf16.vlgmr.msra.gmra.mxu2 %v6731_v54  ;;  %v121_v46 = vld [vmem:[#allocation4 + $0x1c8] sm:$0xff] }
  0x33   :  { %v6297_v55 = vld [vmem:[#allocation7 + $0x7c0] sm:$0xf]  ;;  %v6577_v56 = vld [vmem:[#allocation7 + $0x7cc] sm:$0xf0]  ;;  %v6170_v60 = vor.u32 %v6545_v52, %v6169_v51  ;;  %2206 = vmatpush.bf16.msrb.mxu0 %v5930_v58  ;;  %v115_v50 = vld [vmem:[#allocation4 + $0x198] sm:$0xff] }
  0x34   :  { %v5913_v61 = vld [vmem:[#allocation7 + $0x4c0] sm:$0xf]  ;;  %v6481_v62 = vld [vmem:[#allocation7 + $0x4cc] sm:$0xf0]  ;;  %v6298_v63 = vor.u32 %v6577_v56, %v6297_v55  ;;  %2279 = vmatpush.bf16.msrb.mxu1 %v6058_v59  ;;  %v123_v51 = vld [vmem:[#allocation4 + $0x1d8] sm:$0xff]  ;;  %v6765_v55 = vpack.c.bf16 %v121_v46, %v113_v45 }
  0x35   :  { %v6041_v0 = vld [vmem:[#allocation7 + $0x5c0] sm:$0xf]  ;;  %v6513_v1 = vld [vmem:[#allocation7 + $0x5cc] sm:$0xf0]  ;;  %v5914_v2 = vor.u32 %v6481_v62, %v5913_v61  ;;  %2353 = vmatpush.bf16.msrb.mxu2 %v6170_v60  ;;  %v6769_v58 = vpack.c.bf16 %v123_v51, %v115_v50  ;;  %v145_v34 = vld [vmem:[#allocation4 + $0x288] sm:$0xff] }
  0x36   :  { %v6042_v3 = vor.u32 %v6513_v1, %v6041_v0  ;;  %2426 = vmatpush.bf16.msrb.mxu3 %v6298_v63  ;;  %v80_v4 = vld [vmem:[#allocation4 + $0x80] sm:$0xff]  ;;  %v82_v8 = vld [vmem:[#allocation4 + $0x90] sm:$0xff]  ;;  %9838 = vst [vmem:[#allocation14_spill] sm:$0xff] %v6765_v55  ;;  %v153_v35 = vld [vmem:[#allocation4 + $0x2c8] sm:$0xff] }
  0x37   :  { %2207 = vmatpush.bf16.msrb.mxu0 %v5914_v2  ;;  %v88_v5 = vld [vmem:[#allocation4 + $0xc0] sm:$0xff]  ;;  %v90_v9 = vld [vmem:[#allocation4 + $0xd0] sm:$0xff]  ;;  %9840 = vst [vmem:[#allocation16_spill] sm:$0xff] %v6769_v58  ;;  %v6789_v45 = vpack.c.bf16 %v153_v35, %v145_v34  ;;  %v161_v51 = vld [vmem:[#allocation4 + $0x308] sm:$0xff] }
  0x38   :  { %2280 = vmatpush.bf16.msrb.mxu1 %v6042_v3  ;;  %v6739_v12 = vpack.c.bf16 %v88_v5, %v80_v4  ;;  %v6743_v14 = vpack.c.bf16 %v90_v9, %v82_v8  ;;  %v6153_v16 = vld [vmem:[#allocation7 + $0x6a0] sm:$0xf]  ;;  %v6541_v17 = vld [vmem:[#allocation7 + $0x6ac] sm:$0xf0] }
  0x39   :  { %v5897_v18 = vld [vmem:[#allocation7 + $0x4a0] sm:$0xf]  ;;  %v6154_v19 = vor.u32 %v6541_v17, %v6153_v16  ;;  %v6477_v20 = vld [vmem:[#allocation7 + $0x4ac] sm:$0xf0]  ;;  %v6777_v17 = vpack.c.bf16 %v137_v7, %v129_v6  ;;  %9846 = vst [vmem:[#allocation22_spill] sm:$0xff] %v6789_v45 }
  0x3a   :  { %v6281_v21 = vld [vmem:[#allocation7 + $0x7a0] sm:$0xf]  ;;  %v6573_v22 = vld [vmem:[#allocation7 + $0x7ac] sm:$0xf0]  ;;  %v5898_v23 = vor.u32 %v6477_v20, %v5897_v18 }
  0x3b   :  { %v6282_v24 = vor.u32 %v6573_v22, %v6281_v21  ;;  %v6025_v25 = vld [vmem:[#allocation7 + $0x5a0] sm:$0xf]  ;;  %v6509_v26 = vld [vmem:[#allocation7 + $0x5ac] sm:$0xf0]  ;;  %2354 = vmatpush.bf16.msrb.mxu2 %v6154_v19  ;;  %9842 = vst [vmem:[#allocation18_spill] sm:$0xff] %v6777_v17  ;;  %v6781_v19 = vpack.c.bf16 %v139_v11, %v131_v10 }
  0x3c   :  { %v6026_v27 = vor.u32 %v6509_v26, %v6025_v25  ;;  %2208 = vmatpush.bf16.msrb.mxu0 %v5898_v23  ;;  %v96_v28 = vld [vmem:[#allocation4 + $0x100] sm:$0xff]  ;;  %v98_v32 = vld [vmem:[#allocation4 + $0x110] sm:$0xff] }
  0x3d   :  { %2427 = vmatpush.bf16.msrb.mxu3 %v6282_v24  ;;  %v104_v29 = vld [vmem:[#allocation4 + $0x140] sm:$0xff]  ;;  %v106_v33 = vld [vmem:[#allocation4 + $0x150] sm:$0xff]  ;;  %9844 = vst [vmem:[#allocation20_spill] sm:$0xff] %v6781_v19 }
  0x3e   :  { %2281 = vmatpush.bf16.msrb.mxu1 %v6026_v27  ;;  %v6751_v36 = vpack.c.bf16 %v104_v29, %v96_v28  ;;  %v6755_v38 = vpack.c.bf16 %v106_v33, %v98_v32  ;;  %v6137_v40 = vld [vmem:[#allocation7 + $0x680] sm:$0xf]  ;;  %v6537_v41 = vld [vmem:[#allocation7 + $0x68c] sm:$0xf0] }
  0x3f   :  { %2000 = vmatmul.bf16.gmra.mxu1 %v6741_v13  ;;  %v6138_v42 = vor.u32 %v6537_v41, %v6137_v40  ;;  %v112_v43 = vld [vmem:[#allocation4 + $0x180] sm:$0xff]  ;;  %v114_v47 = vld [vmem:[#allocation4 + $0x190] sm:$0xff] }
  0x40   :  { %1927 = vmatmul.bf16.gmra.mxu0 %v6739_v12  ;;  %v120_v44 = vld [vmem:[#allocation4 + $0x1c0] sm:$0xff]  ;;  %v122_v49 = vld [vmem:[#allocation4 + $0x1d0] sm:$0xff] }
  0x41   :  { %2146 = vmatmul.bf16.gmra.mxu3 %v6745_v15  ;;  %2355 = vmatpush.bf16.msrb.mxu2 %v6138_v42  ;;  %v6763_v52 = vpack.c.bf16 %v120_v44, %v112_v43  ;;  %v6767_v56 = vpack.c.bf16 %v122_v49, %v114_v47  ;;  %v5881_v59 = vld [vmem:[#allocation7 + $0x480] sm:$0xf]  ;;  %v6473_v60 = vld [vmem:[#allocation7 + $0x48c] sm:$0xf0]  ;;  %v147_v42 = vld [vmem:[#allocation4 + $0x298] sm:$0xff] }
  0x42   :  { %2073 = vmatmul.bf16.gmra.mxu2 %v6743_v14  ;;  %v6265_v61 = vld [vmem:[#allocation7 + $0x780] sm:$0xf]  ;;  %v5882_v62 = vor.u32 %v6473_v60, %v5881_v59  ;;  %v6569_v63 = vld [vmem:[#allocation7 + $0x78c] sm:$0xf0]  ;;  %v155_v43 = vld [vmem:[#allocation4 + $0x2d8] sm:$0xff] }
  0x43   :  { %9837 = vst [vmem:[#allocation13_spill] sm:$0xff] %v6763_v52  ;;  %v6009_v0 = vld [vmem:[#allocation7 + $0x580] sm:$0xf]  ;;  %v6505_v1 = vld [vmem:[#allocation7 + $0x58c] sm:$0xf0]  ;;  %v6266_v2 = vor.u32 %v6569_v63, %v6265_v61  ;;  %v6793_v47 = vpack.c.bf16 %v155_v43, %v147_v42  ;;  %v169_v59 = vld [vmem:[#allocation4 + $0x348] sm:$0xff] }
  0x44   :  { %9839 = vst [vmem:[#allocation15_spill] sm:$0xff] %v6767_v56  ;;  %v6010_v3 = vor.u32 %v6505_v1, %v6009_v0  ;;  %2209 = vmatpush.bf16.msrb.mxu0 %v5882_v62  ;;  %v128_v4 = vld [vmem:[#allocation4 + $0x200] sm:$0xff]  ;;  %v130_v8 = vld [vmem:[#allocation4 + $0x210] sm:$0xff]  ;;  %v163_v62 = vld [vmem:[#allocation4 + $0x318] sm:$0xff]  ;;  %v6801_v1 = vpack.c.bf16 %v169_v59, %v161_v51 }
  0x45   :  { %2428 = vmatpush.bf16.msrb.mxu3 %v6266_v2  ;;  %v136_v5 = vld [vmem:[#allocation4 + $0x240] sm:$0xff]  ;;  %v138_v9 = vld [vmem:[#allocation4 + $0x250] sm:$0xff]  ;;  %9848 = vst [vmem:[#allocation24_spill] sm:$0xff] %v6793_v47  ;;  %v171_v63 = vld [vmem:[#allocation4 + $0x358] sm:$0xff] }
  0x46   :  { %2282 = vmatpush.bf16.msrb.mxu1 %v6010_v3  ;;  %v6775_v16 = vpack.c.bf16 %v136_v5, %v128_v4  ;;  %v6779_v18 = vpack.c.bf16 %v138_v9, %v130_v8  ;;  %v6121_v20 = vld [vmem:[#allocation7 + $0x660] sm:$0xf]  ;;  %v6533_v21 = vld [vmem:[#allocation7 + $0x66c] sm:$0xf0]  ;;  %9850 = vst [vmem:[#allocation26_spill] sm:$0xff] %v6801_v1  ;;  %v6805_v3 = vpack.c.bf16 %v171_v63, %v163_v62  ;;  %v193_v43 = vld [vmem:[#allocation4 + $0x408] sm:$0xff] }
  0x47   :  { %v5865_v22 = vld [vmem:[#allocation7 + $0x460] sm:$0xf]  ;;  %v6122_v23 = vor.u32 %v6533_v21, %v6121_v20  ;;  %v6469_v24 = vld [vmem:[#allocation7 + $0x46c] sm:$0xf0] }
  0x48   :  { %9841 = vst [vmem:[#allocation17_spill] sm:$0xff] %v6775_v16  ;;  %v6249_v25 = vld [vmem:[#allocation7 + $0x760] sm:$0xf]  ;;  %v6565_v26 = vld [vmem:[#allocation7 + $0x76c] sm:$0xf0]  ;;  %v5866_v27 = vor.u32 %v6469_v24, %v5865_v22  ;;  %v177_v24 = vld [vmem:[#allocation4 + $0x388] sm:$0xff] }
  0x49   :  { %9843 = vst [vmem:[#allocation19_spill] sm:$0xff] %v6779_v18  ;;  %v6250_v28 = vor.u32 %v6565_v26, %v6249_v25  ;;  %v5993_v29 = vld [vmem:[#allocation7 + $0x560] sm:$0xf]  ;;  %v6501_v30 = vld [vmem:[#allocation7 + $0x56c] sm:$0xf0]  ;;  %2356 = vmatpush.bf16.msrb.mxu2 %v6122_v23 }
  0x4a   :  { %v5994_v31 = vor.u32 %v6501_v30, %v5993_v29  ;;  %2210 = vmatpush.bf16.msrb.mxu0 %v5866_v27  ;;  %v144_v32 = vld [vmem:[#allocation4 + $0x280] sm:$0xff]  ;;  %v146_v40 = vld [vmem:[#allocation4 + $0x290] sm:$0xff]  ;;  %9852 = vst [vmem:[#allocation28_spill] sm:$0xff] %v6805_v3  ;;  %v185_v27 = vld [vmem:[#allocation4 + $0x3c8] sm:$0xff] }
  0x4b   :  { %2429 = vmatpush.bf16.msrb.mxu3 %v6250_v28  ;;  %v152_v33 = vld [vmem:[#allocation4 + $0x2c0] sm:$0xff]  ;;  %v154_v41 = vld [vmem:[#allocation4 + $0x2d0] sm:$0xff]  ;;  %v179_v30 = vld [vmem:[#allocation4 + $0x398] sm:$0xff] }
  0x4c   :  { %2283 = vmatpush.bf16.msrb.mxu1 %v5994_v31  ;;  %v6787_v44 = vpack.c.bf16 %v152_v33, %v144_v32  ;;  %v6791_v46 = vpack.c.bf16 %v154_v41, %v146_v40  ;;  %v160_v49 = vld [vmem:[#allocation4 + $0x300] sm:$0xff]  ;;  %v162_v60 = vld [vmem:[#allocation4 + $0x310] sm:$0xff]  ;;  %v187_v31 = vld [vmem:[#allocation4 + $0x3d8] sm:$0xff]  ;;  %v6813_v33 = vpack.c.bf16 %v185_v27, %v177_v24 }
  0x4d   :  { %v168_v50 = vld [vmem:[#allocation4 + $0x340] sm:$0xff]  ;;  %v170_v61 = vld [vmem:[#allocation4 + $0x350] sm:$0xff]  ;;  %v6817_v35 = vpack.c.bf16 %v187_v31, %v179_v30 }
  0x4e   :  { %9845 = vst [vmem:[#allocation21_spill] sm:$0xff] %v6787_v44  ;;  %v6799_v0 = vpack.c.bf16 %v168_v50, %v160_v49  ;;  %v6803_v2 = vpack.c.bf16 %v170_v61, %v162_v60  ;;  %v6105_v4 = vld [vmem:[#allocation7 + $0x640] sm:$0xf]  ;;  %v6529_v5 = vld [vmem:[#allocation7 + $0x64c] sm:$0xf0]  ;;  %v201_v50 = vld [vmem:[#allocation4 + $0x448] sm:$0xff] }
  0x4f   :  { %2005 = vmatmul.bf16.gmra.mxu1 %v6753_v37  ;;  %9847 = vst [vmem:[#allocation23_spill] sm:$0xff] %v6791_v46  ;;  %v6106_v6 = vor.u32 %v6529_v5, %v6105_v4  ;;  %v5849_v7 = vld [vmem:[#allocation7 + $0x440] sm:$0xf]  ;;  %v6465_v8 = vld [vmem:[#allocation7 + $0x44c] sm:$0xf0]  ;;  %v195_v60 = vld [vmem:[#allocation4 + $0x418] sm:$0xff]  ;;  %v6830_v4 = vpack.c.bf16 %v201_v50, %v193_v43 }
  0x50   :  { %1932 = vmatmul.bf16.gmra.mxu0 %v6751_v36  ;;  %9849 = vst [vmem:[#allocation25_spill] sm:$0xff] %v6799_v0  ;;  %v6233_v9 = vld [vmem:[#allocation7 + $0x740] sm:$0xf]  ;;  %v5850_v10 = vor.u32 %v6465_v8, %v5849_v7  ;;  %v6561_v11 = vld [vmem:[#allocation7 + $0x74c] sm:$0xf0]  ;;  %v203_v61 = vld [vmem:[#allocation4 + $0x458] sm:$0xff] }
  0x51   :  { %2151 = vmatmul.bf16.gmra.mxu3 %v6757_v39  ;;  %9851 = vst [vmem:[#allocation27_spill] sm:$0xff] %v6803_v2  ;;  %2357 = vmatpush.bf16.msrb.mxu2 %v6106_v6  ;;  %v5977_v20 = vld [vmem:[#allocation7 + $0x540] sm:$0xf]  ;;  %v6497_v21 = vld [vmem:[#allocation7 + $0x54c] sm:$0xf0]  ;;  %v6234_v25 = vor.u32 %v6561_v11, %v6233_v9  ;;  %v6835_v8 = vpack.c.bf16 %v203_v61, %v195_v60  ;;  %v209_v61 = vld [vmem:[#allocation4 + $0x488] sm:$0xff] }
  0x52   :  { %2078 = vmatmul.bf16.gmra.mxu2 %v6755_v38  ;;  %v176_v22 = vld [vmem:[#allocation4 + $0x380] sm:$0xff]  ;;  %v5978_v26 = vor.u32 %v6497_v21, %v5977_v20  ;;  %v178_v28 = vld [vmem:[#allocation4 + $0x390] sm:$0xff]  ;;  %2211 = vmatpush.bf16.msrb.mxu0 %v5850_v10  ;;  %9854 = vst [vmem:[#allocation30_spill] sm:$0xff] %v6813_v33 }
  0x53   :  { %v184_v23 = vld [vmem:[#allocation4 + $0x3c0] sm:$0xff]  ;;  %v186_v29 = vld [vmem:[#allocation4 + $0x3d0] sm:$0xff]  ;;  %2430 = vmatpush.bf16.msrb.mxu3 %v6234_v25  ;;  %9856 = vst [vmem:[#allocation32_spill] sm:$0xff] %v6817_v35 }
  0x54   :  { %2284 = vmatpush.bf16.msrb.mxu1 %v5978_v26  ;;  %v6811_v32 = vpack.c.bf16 %v184_v23, %v176_v22  ;;  %v6815_v34 = vpack.c.bf16 %v186_v29, %v178_v28  ;;  %v624_v40 = vld [vmem:[%s9418_s2] sm:$0xf]  ;;  %v194_v51 = vld [vmem:[#allocation4 + $0x410] sm:$0xff]  ;;  %9858 = vst [vmem:[#allocation34_spill] sm:$0xff] %v6830_v4 }
  0x55   :  { %v192_v41 = vld [vmem:[#allocation4 + $0x400] sm:$0xff]  ;;  %v6826_v49 = vperm.slane %v624_v40, 0  ;;  %v202_v59 = vld [vmem:[#allocation4 + $0x450] sm:$0xff]  ;;  %9860 = vst [vmem:[#allocation36_spill] sm:$0xff] %v6835_v8 }
  0x56   :  { %9853 = vst [vmem:[#allocation29_spill] sm:$0xff] %v6811_v32  ;;  %v200_v42 = vld [vmem:[#allocation4 + $0x440] sm:$0xff]  ;;  %v6832_v5 = vpack.c.bf16 %v202_v59, %v194_v51  ;;  %v6525_v10 = vld [vmem:[#allocation7 + $0x62c] sm:$0xf0] }
  0x57   :  { %9855 = vst [vmem:[#allocation31_spill] sm:$0xff] %v6815_v34  ;;  %v6828_v62 = vpack.c.bf16 %v200_v42, %v192_v41  ;;  %v6089_v9 = vld [vmem:[#allocation7 + $0x620] sm:$0xf]  ;;  %v6461_v22 = vld [vmem:[#allocation7 + $0x42c] sm:$0xf0] }
  0x58   :  { %9859 = vst [vmem:[#allocation35_spill] sm:$0xff] %v6832_v5  ;;  %v6090_v20 = vor.u32 %v6525_v10, %v6089_v9  ;;  %v5833_v21 = vld [vmem:[#allocation7 + $0x420] sm:$0xf]  ;;  %v6557_v25 = vld [vmem:[#allocation7 + $0x72c] sm:$0xf0]  ;;  %v211_v9 = vld [vmem:[#allocation4 + $0x498] sm:$0xff] }
  0x59   :  { %9857 = vst [vmem:[#allocation33_spill] sm:$0xff] %v6828_v62  ;;  %v6217_v23 = vld [vmem:[#allocation7 + $0x720] sm:$0xf]  ;;  %v5834_v24 = vor.u32 %v6461_v22, %v5833_v21  ;;  %v6493_v29 = vld [vmem:[#allocation7 + $0x52c] sm:$0xf0]  ;;  %v219_v10 = vld [vmem:[#allocation4 + $0x4d8] sm:$0xff] }
  0x5a   :  { %2358 = vmatpush.bf16.msrb.mxu2 %v6090_v20  ;;  %v6218_v26 = vor.u32 %v6557_v25, %v6217_v23  ;;  %v5961_v27 = vld [vmem:[#allocation7 + $0x520] sm:$0xf] }
  0x5b   :  { %2212 = vmatpush.bf16.msrb.mxu0 %v5834_v24  ;;  %v5962_v41 = vor.u32 %v6493_v29, %v5961_v27  ;;  %v208_v59 = vld [vmem:[#allocation4 + $0x480] sm:$0xff] }
  0x5c   :  { %2431 = vmatpush.bf16.msrb.mxu3 %v6218_v26  ;;  %v216_v60 = vld [vmem:[#allocation4 + $0x4c0] sm:$0xff] }
  0x5d   :  { %2285 = vmatpush.bf16.msrb.mxu1 %v5962_v41 }
  0x5f   :  { %2010 = vmatmul.bf16.gmra.mxu1 %v6765_v55 }
  0x60   :  { %1937 = vmatmul.bf16.gmra.mxu0 %v6763_v52 }
  0x61   :  { %2156 = vmatmul.bf16.gmra.mxu3 %v6769_v58 }
  0x62   :  { %2083 = vmatmul.bf16.gmra.mxu2 %v6767_v56 }
  0x6f   :  { %2015 = vmatmul.bf16.gmra.mxu1 %v6777_v17 }
  0x70   :  { %1942 = vmatmul.bf16.gmra.mxu0 %v6775_v16 }
  0x71   :  { %2161 = vmatmul.bf16.gmra.mxu3 %v6781_v19 }
  0x72   :  { %2088 = vmatmul.bf16.gmra.mxu2 %v6779_v18 }
  0x7f   :  { %2020 = vmatmul.bf16.gmra.mxu1 %v6789_v45 }
  0x80   :  { %1947 = vmatmul.bf16.gmra.mxu0 %v6787_v44 }
  0x81   :  { %2166 = vmatmul.bf16.gmra.mxu3 %v6793_v47 }
  0x82   :  { %2093 = vmatmul.bf16.gmra.mxu2 %v6791_v46  ;;  %v159_v46 = vld [vmem:[#allocation4 + $0x2f8] sm:$0xff] }
  0x8f   :  { %2025 = vmatmul.bf16.gmra.mxu1 %v6801_v1 }
  0x90   :  { %1952 = vmatmul.bf16.gmra.mxu0 %v6799_v0 }
  0x91   :  { %2171 = vmatmul.bf16.gmra.mxu3 %v6805_v3  ;;  %v111_v3 = vld [vmem:[#allocation4 + $0x178] sm:$0xff] }
  0x92   :  { %2098 = vmatmul.bf16.gmra.mxu2 %v6803_v2 }
  0x9f   :  { %2030 = vmatmul.bf16.gmra.mxu1 %v6813_v33  ;;  %v102_v33 = vld [vmem:[#allocation4 + $0x130] sm:$0xff] }
  0xa0   :  { %1957 = vmatmul.bf16.gmra.mxu0 %v6811_v32  ;;  %v103_v32 = vld [vmem:[#allocation4 + $0x138] sm:$0xff] }
  0xa1   :  { %2176 = vmatmul.bf16.gmra.mxu3 %v6817_v35  ;;  %v5403_v35 = vld [vmem:[#allocation7 + $0xd0] sm:$0xf0] }
  0xa2   :  { %2103 = vmatmul.bf16.gmra.mxu2 %v6815_v34 }
  0xac   :  { %v1996_v7 = vpop.f32.mrf.mxu1 }
  0xad   :  { %v1923_v63 = vpop.f32.mrf.mxu0 }
  0xae   :  { %v1924_v6 = vadd.f32 %v1923_v63, %v6826_v49  ;;  %v217_v63 = vld [vmem:[#allocation4 + $0x4c8] sm:$0xff] }
  0xaf   :  { %2035 = vmatmul.bf16.gmra.mxu1 %v6830_v4  ;;  %v6846_v24 = vpack.c.bf16 %v217_v63, %v209_v61  ;;  %v232_v61 = vld [vmem:[#allocation4 + $0x540] sm:$0xff] }
  0xb0   :  { %v1997_v11 = vadd.f32 %v1996_v7, %v1924_v6  ;;  %1962 = vmatmul.bf16.gmra.mxu0 %v6828_v62  ;;  %v210_v6 = vld [vmem:[#allocation4 + $0x490] sm:$0xff]  ;;  %v6351_v62 = vld [vmem:[#allocation7 + $0xc4] sm:$0xf] }
  0xb1   :  { %2181 = vmatmul.bf16.gmra.mxu3 %v6835_v8  ;;  %v218_v7 = vld [vmem:[#allocation4 + $0x4d0] sm:$0xff]  ;;  %9862 = vst [vmem:[#allocation38_spill] sm:$0xff] %v6846_v24 }
  0xb2   :  { %2108 = vmatmul.bf16.gmra.mxu2 %v6832_v5  ;;  %v6848_v25 = vpack.c.bf16 %v218_v7, %v210_v6  ;;  %v225_v6 = vld [vmem:[#allocation4 + $0x508] sm:$0xff] }
  0xb3   :  { %v233_v7 = vld [vmem:[#allocation4 + $0x548] sm:$0xff] }
  0xb4   :  { %v2142_v31 = vpop.f32.mrf.mxu3  ;;  %v1998_v43 = vpop.f32.mrf.mxu1  ;;  %9863 = vst [vmem:[#allocation39_spill] sm:$0xff] %v6848_v25 }
  0xb5   :  { %v2069_v28 = vpop.f32.mrf.mxu2  ;;  %v1925_v40 = vpop.f32.mrf.mxu0 }
  0xb6   :  { %v2070_v30 = vadd.f32 %v2069_v28, %v1997_v11  ;;  %v1926_v42 = vadd.f32 %v1925_v40, %v6826_v49  ;;  %v6844_v11 = vpack.c.bf16 %v216_v60, %v208_v59  ;;  %v6851_v28 = vpack.c.bf16 %v219_v10, %v211_v9  ;;  %v224_v60 = vld [vmem:[#allocation4 + $0x500] sm:$0xff]  ;;  %v226_v9 = vld [vmem:[#allocation4 + $0x510] sm:$0xff] }
  0xb7   :  { %v6073_v10 = vld [vmem:[#allocation7 + $0x600] sm:$0xf] }
  0xb8   :  { %v6842_v50 = vadd.f32 %v2142_v31, %v2070_v30  ;;  %v1999_v51 = vadd.f32 %v1998_v43, %v1926_v42  ;;  %9861 = vst [vmem:[#allocation37_spill] sm:$0xff] %v6844_v11 }
  0xb9   :  { %9864 = vst [vmem:[#allocation40_spill] sm:$0xff] %v6851_v28 }
  0xbc   :  { %v2144_v22 = vpop.f32.mrf.mxu3  ;;  %v2001_v27 = vpop.f32.mrf.mxu1 }
  0xbd   :  { %v2071_v20 = vpop.f32.mrf.mxu2  ;;  %v1928_v23 = vpop.f32.mrf.mxu0 }
  0xbe   :  { %v2072_v21 = vadd.f32 %v2071_v20, %v1999_v51  ;;  %v1929_v26 = vadd.f32 %v1928_v23, %v6826_v49  ;;  %v6521_v20 = vld [vmem:[#allocation7 + $0x60c] sm:$0xf0] }
  0xbf   :  { %2040 = vmatmul.bf16.gmra.mxu1 %v6846_v24  ;;  %v6457_v23 = vld [vmem:[#allocation7 + $0x40c] sm:$0xf0] }
  0xc0   :  { %v6853_v29 = vadd.f32 %v2144_v22, %v2072_v21  ;;  %v2002_v30 = vadd.f32 %v2001_v27, %v1929_v26  ;;  %1967 = vmatmul.bf16.gmra.mxu0 %v6844_v11  ;;  %v5817_v21 = vld [vmem:[#allocation7 + $0x400] sm:$0xf]  ;;  %v6074_v22 = vor.u32 %v6521_v20, %v6073_v10  ;;  %v6553_v27 = vld [vmem:[#allocation7 + $0x70c] sm:$0xf0]  ;;  %v6864_v20 = vpack.c.bf16 %v233_v7, %v225_v6 }
  0xc1   :  { %2186 = vmatmul.bf16.gmra.mxu3 %v6851_v28  ;;  %v6201_v26 = vld [vmem:[#allocation7 + $0x700] sm:$0xf] }
  0xc2   :  { %2113 = vmatmul.bf16.gmra.mxu2 %v6848_v25  ;;  %v6202_v28 = vor.u32 %v6553_v27, %v6201_v26  ;;  %v6489_v25 = vld [vmem:[#allocation7 + $0x50c] sm:$0xf0]  ;;  %9866 = vst [vmem:[#allocation42_spill] sm:$0xff] %v6864_v20  ;;  %v241_v27 = vld [vmem:[#allocation4 + $0x588] sm:$0xff] }
  0xc3   :  { %2359 = vmatpush.bf16.msrb.mxu2 %v6074_v22 }
  0xc4   :  { %v2147_v41 = vpop.f32.mrf.mxu3  ;;  %v2003_v51 = vpop.f32.mrf.mxu1  ;;  %2432 = vmatpush.bf16.msrb.mxu3 %v6202_v28 }
  0xc5   :  { %v2074_v31 = vpop.f32.mrf.mxu2  ;;  %v1930_v42 = vpop.f32.mrf.mxu0 }
  0xc6   :  { %v2075_v40 = vadd.f32 %v2074_v31, %v2002_v30  ;;  %v1931_v43 = vadd.f32 %v1930_v42, %v6826_v49  ;;  %v234_v30 = vld [vmem:[#allocation4 + $0x550] sm:$0xff]  ;;  %v5818_v31 = vor.u32 %v6457_v23, %v5817_v21  ;;  %v5945_v42 = vld [vmem:[#allocation7 + $0x500] sm:$0xf] }
  0xc7   :  { %v5946_v24 = vor.u32 %v6489_v25, %v5945_v42  ;;  %v6866_v5 = vpack.c.bf16 %v234_v30, %v226_v9  ;;  %v248_v9 = vld [vmem:[#allocation4 + $0x5c0] sm:$0xff]  ;;  %v249_v30 = vld [vmem:[#allocation4 + $0x5c8] sm:$0xff]  ;;  %v250_v42 = vld [vmem:[#allocation4 + $0x5d0] sm:$0xff] }
  0xc8   :  { %v6860_v59 = vadd.f32 %v2147_v41, %v2075_v40  ;;  %v2004_v63 = vadd.f32 %v2003_v51, %v1931_v43  ;;  %v227_v40 = vld [vmem:[#allocation4 + $0x518] sm:$0xff]  ;;  %v6862_v51 = vpack.c.bf16 %v232_v61, %v224_v60  ;;  %2213 = vmatpush.bf16.msrb.mxu0 %v5818_v31  ;;  %v242_v31 = vld [vmem:[#allocation4 + $0x590] sm:$0xff] }
  0xc9   :  { %v235_v41 = vld [vmem:[#allocation4 + $0x558] sm:$0xff]  ;;  %9867 = vst [vmem:[#allocation43_spill] sm:$0xff] %v6866_v5  ;;  %2286 = vmatpush.bf16.msrb.mxu1 %v5946_v24 }
  0xca   :  { %9865 = vst [vmem:[#allocation41_spill] sm:$0xff] %v6862_v51  ;;  %v6869_v26 = vpack.c.bf16 %v235_v41, %v227_v40  ;;  %v243_v40 = vld [vmem:[#allocation4 + $0x598] sm:$0xff] }
  0xcb   :  { %v251_v41 = vld [vmem:[#allocation4 + $0x5d8] sm:$0xff] }
  0xcc   :  { %v2149_v8 = vpop.f32.mrf.mxu3  ;;  %v2006_v23 = vpop.f32.mrf.mxu1  ;;  %9868 = vst [vmem:[#allocation44_spill] sm:$0xff] %v6869_v26 }
  0xcd   :  { %v2076_v43 = vpop.f32.mrf.mxu2  ;;  %v1933_v10 = vpop.f32.mrf.mxu0 }
  0xce   :  { %v2077_v11 = vadd.f32 %v2076_v43, %v2004_v63  ;;  %v1934_v21 = vadd.f32 %v1933_v10, %v6826_v49 }
  0xcf   :  { %2045 = vmatmul.bf16.gmra.mxu1 %v6864_v20  ;;  %v258_v20 = vld [vmem:[#allocation4 + $0x610] sm:$0xff] }
  0xd0   :  { %v6871_v22 = vadd.f32 %v2149_v8, %v2077_v11  ;;  %v2007_v25 = vadd.f32 %v2006_v23, %v1934_v21  ;;  %1972 = vmatmul.bf16.gmra.mxu0 %v6862_v51  ;;  %v240_v11 = vld [vmem:[#allocation4 + $0x580] sm:$0xff] }
  0xd1   :  { %2191 = vmatmul.bf16.gmra.mxu3 %v6869_v26  ;;  %v6880_v10 = vpack.c.bf16 %v248_v9, %v240_v11  ;;  %v5675_v11 = vld [vmem:[#allocation7 + $0x2f0] sm:$0xf0]  ;;  %v6355_v9 = vld [vmem:[#allocation7 + $0xe4] sm:$0xf] }
  0xd2   :  { %2118 = vmatmul.bf16.gmra.mxu2 %v6866_v5  ;;  %v257_v5 = vld [vmem:[#allocation4 + $0x608] sm:$0xff] }
  0xd3   :  { %9869 = vst [vmem:[#allocation45_spill] sm:$0xff] %v6880_v10 }
  0xd4   :  { %v2152_v61 = vpop.f32.mrf.mxu3  ;;  %v2008_v6 = vpop.f32.mrf.mxu1 }
  0xd5   :  { %v2079_v28 = vpop.f32.mrf.mxu2  ;;  %v1935_v24 = vpop.f32.mrf.mxu0 }
  0xd6   :  { %v2080_v60 = vadd.f32 %v2079_v28, %v2007_v25  ;;  %v1936_v63 = vadd.f32 %v1935_v24, %v6826_v49  ;;  %v6882_v28 = vpack.c.bf16 %v249_v30, %v241_v27  ;;  %v6884_v24 = vpack.c.bf16 %v250_v42, %v242_v31  ;;  %v5419_v30 = vld [vmem:[#allocation7 + $0xf0] sm:$0xf0]  ;;  %v6451_v31 = vld [vmem:[#allocation7 + $0x3e4] sm:$0xf] }
  0xd7   :  { %v5803_v42 = vld [vmem:[#allocation7 + $0x3f0] sm:$0xf0] }
  0xd8   :  { %v6878_v7 = vadd.f32 %v2152_v61, %v2080_v60  ;;  %v2009_v8 = vadd.f32 %v2008_v6, %v1936_v63  ;;  %9870 = vst [vmem:[#allocation46_spill] sm:$0xff] %v6882_v28  ;;  %v6887_v63 = vpack.c.bf16 %v251_v41, %v243_v40  ;;  %v5422_v41 = vor.u32 %v6355_v9, %v5419_v30  ;;  %v259_v9 = vld [vmem:[#allocation4 + $0x618] sm:$0xff] }
  0xd9   :  { %9871 = vst [vmem:[#allocation47_spill] sm:$0xff] %v6884_v24 }
  0xda   :  { %9872 = vst [vmem:[#allocation48_spill] sm:$0xff] %v6887_v63  ;;  %2498 = vmatpush.bf16.msra.mxu0 %v5422_v41  ;;  %v6902_v41 = vpack.c.bf16 %v258_v20, %v258_v20 }
  0xdc   :  { %v2154_v23 = vpop.f32.mrf.mxu3  ;;  %v2011_v61 = vpop.f32.mrf.mxu1  ;;  %9875 = vst [vmem:[#allocation51_spill] sm:$0xff] %v6902_v41 }
  0xdd   :  { %v2081_v43 = vpop.f32.mrf.mxu2  ;;  %v1938_v25 = vpop.f32.mrf.mxu0 }
  0xde   :  { %v2082_v21 = vadd.f32 %v2081_v43, %v2009_v8  ;;  %v1939_v60 = vadd.f32 %v1938_v25, %v6826_v49  ;;  %v6419_v8 = vld [vmem:[#allocation7 + $0x2e4] sm:$0xf]  ;;  %v5806_v43 = vor.u32 %v6451_v31, %v5803_v42 }
  0xdf   :  { %2050 = vmatmul.bf16.gmra.mxu1 %v6882_v28  ;;  %v5678_v27 = vor.u32 %v6419_v8, %v5675_v11  ;;  %v5547_v28 = vld [vmem:[#allocation7 + $0x1f0] sm:$0xf0] }
  0xe0   :  { %v6889_v6 = vadd.f32 %v2154_v23, %v2082_v21  ;;  %v2012_v26 = vadd.f32 %v2011_v61, %v1939_v60  ;;  %1977 = vmatmul.bf16.gmra.mxu0 %v6880_v10  ;;  %2717 = vmatpush.bf16.msra.mxu3 %v5806_v43  ;;  %v256_v10 = vld [vmem:[#allocation4 + $0x600] sm:$0xff] }
  0xe1   :  { %2196 = vmatmul.bf16.gmra.mxu3 %v6887_v63  ;;  %2644 = vmatpush.bf16.msra.mxu2 %v5678_v27  ;;  %v6898_v30 = vpack.c.bf16 %v256_v10, %v256_v10 }
  0xe2   :  { %2123 = vmatmul.bf16.gmra.mxu2 %v6884_v24  ;;  %v6387_v24 = vld [vmem:[#allocation7 + $0x1e4] sm:$0xf] }
  0xe3   :  { %v5550_v11 = vor.u32 %v6387_v24, %v5547_v28  ;;  %9873 = vst [vmem:[#allocation49_spill] sm:$0xff] %v6898_v30 }
  0xe4   :  { %v2157_v23 = vpop.f32.mrf.mxu3  ;;  %v2013_v61 = vpop.f32.mrf.mxu1 }
  0xe5   :  { %v2084_v40 = vpop.f32.mrf.mxu2  ;;  %v1940_v25 = vpop.f32.mrf.mxu0  ;;  %2571 = vmatpush.bf16.msra.mxu1 %v5550_v11 }
  0xe6   :  { %v2085_v21 = vadd.f32 %v2084_v40, %v2012_v26  ;;  %v1941_v60 = vadd.f32 %v1940_v25, %v6826_v49  ;;  %v6900_v40 = vpack.c.bf16 %v257_v5, %v257_v5 }
  0xe8   :  { %v6896_v63 = vadd.f32 %v2157_v23, %v2085_v21  ;;  %v2014_v8 = vadd.f32 %v2013_v61, %v1941_v60  ;;  %9874 = vst [vmem:[#allocation50_spill] sm:$0xff] %v6900_v40  ;;  %v6905_v23 = vpack.c.bf16 %v259_v9, %v259_v9  ;;  %v6415_v9 = vld [vmem:[#allocation7 + $0x2c4] sm:$0xf] }
  0xea   :  { %9876 = vst [vmem:[#allocation52_spill] sm:$0xff] %v6905_v23 }
  0xec   :  { %v2159_v31 = vpop.f32.mrf.mxu3  ;;  %v2016_v21 = vpop.f32.mrf.mxu1 }
  0xed   :  { %v2086_v26 = vpop.f32.mrf.mxu2  ;;  %v1943_v42 = vpop.f32.mrf.mxu0 }
  0xee   :  { %v2087_v27 = vadd.f32 %v2086_v26, %v2014_v8  ;;  %v1944_v43 = vadd.f32 %v1943_v42, %v6826_v49  ;;  %v5659_v26 = vld [vmem:[#allocation7 + $0x2d0] sm:$0xf0]  ;;  %v69_v42 = vld [vmem:[#allocation4 + $0x28] sm:$0xff] }
  0xef   :  { %2055 = vmatmul.bf16.gmra.mxu1 %v6900_v40  ;;  %v78_v40 = vld [vmem:[#allocation4 + $0x70] sm:$0xff] }
  0xf0   :  { %v6907_v28 = vadd.f32 %v2159_v31, %v2087_v27  ;;  %v2017_v24 = vadd.f32 %v2016_v21, %v1944_v43  ;;  %1982 = vmatmul.bf16.gmra.mxu0 %v6898_v30  ;;  %v68_v27 = vld [vmem:[#allocation4 + $0x20] sm:$0xff]  ;;  %v5662_v43 = vor.u32 %v6415_v9, %v5659_v26  ;;  %v77_v21 = vld [vmem:[#allocation4 + $0x68] sm:$0xff]  ;;  %v79_v30 = vld [vmem:[#allocation4 + $0x78] sm:$0xff] }
  0xf1   :  { %2201 = vmatmul.bf16.gmra.mxu3 %v6905_v23  ;;  %v76_v31 = vld [vmem:[#allocation4 + $0x60] sm:$0xff]  ;;  %v71_v23 = vld [vmem:[#allocation4 + $0x38] sm:$0xff] }
  0xf2   :  { %2128 = vmatmul.bf16.gmra.mxu2 %v6902_v41  ;;  %v70_v41 = vld [vmem:[#allocation4 + $0x30] sm:$0xff]  ;;  %v6923_v9 = vpack.c.bf16 %v79_v30, %v71_v23 }
  0xf3   :  { %2645 = vmatpush.bf16.msra.mxu2 %v5662_v43  ;;  %v6447_v43 = vld [vmem:[#allocation7 + $0x3c4] sm:$0xf] }
  0xf4   :  { %v2162_v20 = vpop.f32.mrf.mxu3  ;;  %v2018_v61 = vpop.f32.mrf.mxu1  ;;  %9880 = vst [vmem:[#allocation56_spill] sm:$0xff] %v6923_v9 }
  0xf5   :  { %v2089_v5 = vpop.f32.mrf.mxu2  ;;  %v1945_v25 = vpop.f32.mrf.mxu0 }
  0xf6   :  { %v2090_v10 = vadd.f32 %v2089_v5, %v2017_v24  ;;  %v1946_v60 = vadd.f32 %v1945_v25, %v6826_v49  ;;  %v6916_v5 = vpack.c.bf16 %v76_v31, %v68_v27  ;;  %v5787_v27 = vld [vmem:[#allocation7 + $0x3d0] sm:$0xf0]  ;;  %v6383_v31 = vld [vmem:[#allocation7 + $0x1c4] sm:$0xf] }
  0xf8   :  { %v6914_v8 = vadd.f32 %v2162_v20, %v2090_v10  ;;  %v2019_v11 = vadd.f32 %v2018_v61, %v1946_v60  ;;  %9877 = vst [vmem:[#allocation53_spill] sm:$0xff] %v6916_v5  ;;  %v6918_v20 = vpack.c.bf16 %v77_v21, %v69_v42  ;;  %v6920_v60 = vpack.c.bf16 %v78_v40, %v70_v41  ;;  %v5531_v42 = vld [vmem:[#allocation7 + $0x1d0] sm:$0xf0] }
  0xf9   :  { %v5790_v40 = vor.u32 %v6447_v43, %v5787_v27  ;;  %v5534_v41 = vor.u32 %v6383_v31, %v5531_v42  ;;  %v93_v43 = vld [vmem:[#allocation4 + $0xe8] sm:$0xff]  ;;  %v86_v27 = vld [vmem:[#allocation4 + $0xb0] sm:$0xff]  ;;  %v87_v42 = vld [vmem:[#allocation4 + $0xb8] sm:$0xff] }
  0xfa   :  { %9878 = vst [vmem:[#allocation54_spill] sm:$0xff] %v6918_v20  ;;  %v94_v31 = vld [vmem:[#allocation4 + $0xf0] sm:$0xff] }
  0xfb   :  { %9879 = vst [vmem:[#allocation55_spill] sm:$0xff] %v6920_v60  ;;  %2718 = vmatpush.bf16.msra.mxu3 %v5790_v40  ;;  %2572 = vmatpush.bf16.msra.mxu1 %v5534_v41 }
  0xfc   :  { %v2164_v51 = vpop.f32.mrf.mxu3  ;;  %v2021_v4 = vpop.f32.mrf.mxu1 }
  0xfd   :  { %v2091_v24 = vpop.f32.mrf.mxu2  ;;  %v1948_v10 = vpop.f32.mrf.mxu0 }
  0xfe   :  { %v2092_v25 = vadd.f32 %v2091_v24, %v2019_v11  ;;  %v1949_v61 = vadd.f32 %v1948_v10, %v6826_v49  ;;  %v5406_v11 = vor.u32 %v6351_v62, %v5403_v35  ;;  %v92_v10 = vld [vmem:[#allocation4 + $0xe0] sm:$0xff] }
  0xff   :  { %2287 = vmatmul.bf16.vlgmr.msrb.gmra.mxu1 %v6918_v20 }
 0x100   :  { %v6925_v26 = vadd.f32 %v2164_v51, %v2092_v25  ;;  %v2022_v34 = vadd.f32 %v2021_v4, %v1949_v61  ;;  %2214 = vmatmul.bf16.vlgmr.msrb.gmra.mxu0 %v6916_v5  ;;  %v84_v25 = vld [vmem:[#allocation4 + $0xa0] sm:$0xff]  ;;  %v85_v61 = vld [vmem:[#allocation4 + $0xa8] sm:$0xff] }
 0x101   :  { %2433 = vmatmul.bf16.vlgmr.msrb.gmra.mxu3 %v6923_v9  ;;  %2499 = vmatpush.bf16.msra.mxu0 %v5406_v11  ;;  %v95_v11 = vld [vmem:[#allocation4 + $0xf8] sm:$0xff]  ;;  %v6934_v41 = vpack.c.bf16 %v92_v10, %v84_v25  ;;  %v109_v5 = vld [vmem:[#allocation4 + $0x168] sm:$0xff] }
 0x102   :  { %2360 = vmatmul.bf16.vlgmr.msrb.gmra.mxu2 %v6920_v60  ;;  %v6936_v60 = vpack.c.bf16 %v93_v43, %v85_v61 }
 0x103   :  { %9881 = vst [vmem:[#allocation57_spill] sm:$0xff] %v6934_v41 }
 0x104   :  { %v2167_v4 = vpop.f32.mrf.mxu3  ;;  %v2023_v62 = vpop.f32.mrf.mxu1  ;;  %9882 = vst [vmem:[#allocation58_spill] sm:$0xff] %v6936_v60 }
 0x105   :  { %v2094_v51 = vpop.f32.mrf.mxu2  ;;  %v1950_v23 = vpop.f32.mrf.mxu0 }
 0x106   :  { %v2095_v30 = vadd.f32 %v2094_v51, %v2022_v34  ;;  %v1951_v35 = vadd.f32 %v1950_v23, %v6826_v49  ;;  %v6938_v23 = vpack.c.bf16 %v94_v31, %v86_v27  ;;  %v100_v31 = vld [vmem:[#allocation4 + $0x120] sm:$0xff] }
 0x108   :  { %v6932_v21 = vadd.f32 %v2167_v4, %v2095_v30  ;;  %v2024_v24 = vadd.f32 %v2023_v62, %v1951_v35  ;;  %9883 = vst [vmem:[#allocation59_spill] sm:$0xff] %v6938_v23  ;;  %v6941_v35 = vpack.c.bf16 %v95_v11, %v87_v42  ;;  %v108_v42 = vld [vmem:[#allocation4 + $0x160] sm:$0xff] }
 0x109   :  { %v6411_v11 = vld [vmem:[#allocation7 + $0x2a4] sm:$0xf] }
 0x10a   :  { %9884 = vst [vmem:[#allocation60_spill] sm:$0xff] %v6941_v35 }
 0x10c   :  { %v2169_v51 = vpop.f32.mrf.mxu3  ;;  %v2026_v4 = vpop.f32.mrf.mxu1 }
 0x10d   :  { %v2096_v40 = vpop.f32.mrf.mxu2  ;;  %v1953_v9 = vpop.f32.mrf.mxu0 }
 0x10e   :  { %v2097_v34 = vadd.f32 %v2096_v40, %v2024_v24  ;;  %v1954_v30 = vadd.f32 %v1953_v9, %v6826_v49  ;;  %v5643_v40 = vld [vmem:[#allocation7 + $0x2b0] sm:$0xf0] }
 0x10f   :  { %2292 = vmatmul.bf16.gmra.mxu1 %v6936_v60  ;;  %v6443_v60 = vld [vmem:[#allocation7 + $0x3a4] sm:$0xf] }
 0x110   :  { %v6943_v62 = vadd.f32 %v2169_v51, %v2097_v34  ;;  %v2027_v20 = vadd.f32 %v2026_v4, %v1954_v30  ;;  %2219 = vmatmul.bf16.gmra.mxu0 %v6934_v41  ;;  %v101_v51 = vld [vmem:[#allocation4 + $0x128] sm:$0xff]  ;;  %v5646_v30 = vor.u32 %v6411_v11, %v5643_v40  ;;  %v6347_v4 = vld [vmem:[#allocation7 + $0xa4] sm:$0xf]  ;;  %v5771_v41 = vld [vmem:[#allocation7 + $0x3b0] sm:$0xf0] }
 0x111   :  { %2438 = vmatmul.bf16.gmra.mxu3 %v6941_v35  ;;  %v6954_v40 = vpack.c.bf16 %v109_v5, %v101_v51  ;;  %v116_v51 = vld [vmem:[#allocation4 + $0x1a0] sm:$0xff] }
 0x112   :  { %2365 = vmatmul.bf16.gmra.mxu2 %v6938_v23  ;;  %v5387_v23 = vld [vmem:[#allocation7 + $0xb0] sm:$0xf0] }
 0x113   :  { %v5390_v35 = vor.u32 %v6347_v4, %v5387_v23  ;;  %2646 = vmatpush.bf16.msra.mxu2 %v5646_v30  ;;  %9886 = vst [vmem:[#allocation62_spill] sm:$0xff] %v6954_v40 }
 0x114   :  { %v2172_v10 = vpop.f32.mrf.mxu3  ;;  %v2028_v43 = vpop.f32.mrf.mxu1 }
 0x115   :  { %v2099_v24 = vpop.f32.mrf.mxu2  ;;  %v1955_v61 = vpop.f32.mrf.mxu0  ;;  %2500 = vmatpush.bf16.msra.mxu0 %v5390_v35 }
 0x116   :  { %v2100_v25 = vadd.f32 %v2099_v24, %v2027_v20  ;;  %v1956_v9 = vadd.f32 %v1955_v61, %v6826_v49  ;;  %v6379_v20 = vld [vmem:[#allocation7 + $0x1a4] sm:$0xf]  ;;  %v5515_v24 = vld [vmem:[#allocation7 + $0x1b0] sm:$0xf0] }
 0x117   :  { %v110_v61 = vld [vmem:[#allocation4 + $0x170] sm:$0xff] }
 0x118   :  { %v6950_v27 = vadd.f32 %v2172_v10, %v2100_v25  ;;  %v2029_v34 = vadd.f32 %v2028_v43, %v1956_v9  ;;  %v5774_v25 = vor.u32 %v6443_v60, %v5771_v41  ;;  %v5518_v10 = vor.u32 %v6379_v20, %v5515_v24  ;;  %v117_v20 = vld [vmem:[#allocation4 + $0x1a8] sm:$0xff] }
 0x119   :  { %v6952_v9 = vpack.c.bf16 %v108_v42, %v100_v31  ;;  %v6956_v4 = vpack.c.bf16 %v110_v61, %v102_v33  ;;  %v6959_v60 = vpack.c.bf16 %v111_v3, %v103_v32  ;;  %v125_v24 = vld [vmem:[#allocation4 + $0x1e8] sm:$0xff]  ;;  %v118_v61 = vld [vmem:[#allocation4 + $0x1b0] sm:$0xff] }
 0x11a   :  { %2719 = vmatpush.bf16.msra.mxu3 %v5774_v25  ;;  %2573 = vmatpush.bf16.msra.mxu1 %v5518_v10  ;;  %v126_v25 = vld [vmem:[#allocation4 + $0x1f0] sm:$0xff]  ;;  %v119_v10 = vld [vmem:[#allocation4 + $0x1b8] sm:$0xff] }
 0x11b   :  { %9885 = vst [vmem:[#allocation61_spill] sm:$0xff] %v6952_v9 }
 0x11c   :  { %v2174_v11 = vpop.f32.mrf.mxu3  ;;  %9887 = vst [vmem:[#allocation63_spill] sm:$0xff] %v6956_v4  ;;  %v2031_v30 = vpop.f32.mrf.mxu1 }
 0x11d   :  { %v2101_v2 = vpop.f32.mrf.mxu2  ;;  %v1958_v23 = vpop.f32.mrf.mxu0  ;;  %9888 = vst [vmem:[#allocation64_spill] sm:$0xff] %v6959_v60 }
 0x11e   :  { %v2102_v43 = vadd.f32 %v2101_v2, %v2029_v34  ;;  %v1959_v1 = vadd.f32 %v1958_v23, %v6826_v49 }
 0x11f   :  { %2297 = vmatmul.bf16.gmra.mxu1 %v6954_v40  ;;  %v6407_v40 = vld [vmem:[#allocation7 + $0x284] sm:$0xf] }
 0x120   :  { %v6961_v41 = vadd.f32 %v2174_v11, %v2102_v43  ;;  %v2032_v35 = vadd.f32 %v2031_v30, %v1959_v1  ;;  %2224 = vmatmul.bf16.gmra.mxu0 %v6952_v9  ;;  %v124_v1 = vld [vmem:[#allocation4 + $0x1e0] sm:$0xff]  ;;  %v127_v43 = vld [vmem:[#allocation4 + $0x1f8] sm:$0xff] }
 0x121   :  { %2443 = vmatmul.bf16.gmra.mxu3 %v6959_v60  ;;  %v6970_v23 = vpack.c.bf16 %v124_v1, %v116_v51  ;;  %v6972_v60 = vpack.c.bf16 %v125_v24, %v117_v20  ;;  %v5627_v51 = vld [vmem:[#allocation7 + $0x290] sm:$0xf0]  ;;  %v6343_v1 = vld [vmem:[#allocation7 + $0x84] sm:$0xf] }
 0x122   :  { %2370 = vmatmul.bf16.gmra.mxu2 %v6956_v4  ;;  %v5371_v20 = vld [vmem:[#allocation7 + $0x90] sm:$0xf0] }
 0x123   :  { %9889 = vst [vmem:[#allocation65_spill] sm:$0xff] %v6970_v23  ;;  %v5374_v24 = vor.u32 %v6343_v1, %v5371_v20  ;;  %v132_v1 = vld [vmem:[#allocation4 + $0x220] sm:$0xff] }
 0x124   :  { %v2177_v33 = vpop.f32.mrf.mxu3  ;;  %v2033_v34 = vpop.f32.mrf.mxu1  ;;  %9890 = vst [vmem:[#allocation66_spill] sm:$0xff] %v6972_v60  ;;  %v140_v20 = vld [vmem:[#allocation4 + $0x260] sm:$0xff] }
 0x125   :  { %v2104_v2 = vpop.f32.mrf.mxu2  ;;  %v1960_v31 = vpop.f32.mrf.mxu0  ;;  %2501 = vmatpush.bf16.msra.mxu0 %v5374_v24  ;;  %v6988_v9 = vpack.c.bf16 %v140_v20, %v132_v1 }
 0x126   :  { %v2105_v5 = vadd.f32 %v2104_v2, %v2032_v35  ;;  %v1961_v42 = vadd.f32 %v1960_v31, %v6826_v49  ;;  %v6974_v31 = vpack.c.bf16 %v126_v25, %v118_v61  ;;  %v6439_v61 = vld [vmem:[#allocation7 + $0x384] sm:$0xf]  ;;  %v5755_v25 = vld [vmem:[#allocation7 + $0x390] sm:$0xf0] }
 0x127   :  { %9893 = vst [vmem:[#allocation69_spill] sm:$0xff] %v6988_v9 }
 0x128   :  { %v6968_v3 = vadd.f32 %v2177_v33, %v2105_v5  ;;  %v2034_v32 = vadd.f32 %v2033_v34, %v1961_v42  ;;  %9891 = vst [vmem:[#allocation67_spill] sm:$0xff] %v6974_v31  ;;  %v6977_v42 = vpack.c.bf16 %v127_v43, %v119_v10  ;;  %v6375_v10 = vld [vmem:[#allocation7 + $0x184] sm:$0xf] }
 0x12a   :  { %9892 = vst [vmem:[#allocation68_spill] sm:$0xff] %v6977_v42 }
 0x12c   :  { %v2179_v35 = vpop.f32.mrf.mxu3  ;;  %v2036_v33 = vpop.f32.mrf.mxu1 }
 0x12d   :  { %v2106_v11 = vpop.f32.mrf.mxu2  ;;  %v1963_v2 = vpop.f32.mrf.mxu0 }
 0x12e   :  { %v2107_v30 = vadd.f32 %v2106_v11, %v2034_v32  ;;  %v1964_v5 = vadd.f32 %v1963_v2, %v6826_v49  ;;  %v5630_v32 = vor.u32 %v6407_v40, %v5627_v51  ;;  %v5758_v11 = vor.u32 %v6439_v61, %v5755_v25  ;;  %v142_v61 = vld [vmem:[#allocation4 + $0x270] sm:$0xff]  ;;  %v135_v25 = vld [vmem:[#allocation4 + $0x238] sm:$0xff] }
 0x12f   :  { %2302 = vmatmul.bf16.gmra.mxu1 %v6972_v60  ;;  %v141_v60 = vld [vmem:[#allocation4 + $0x268] sm:$0xff] }
 0x130   :  { %v6979_v34 = vadd.f32 %v2179_v35, %v2107_v30  ;;  %v2037_v4 = vadd.f32 %v2036_v33, %v1964_v5  ;;  %2229 = vmatmul.bf16.gmra.mxu0 %v6970_v23  ;;  %2647 = vmatpush.bf16.msra.mxu2 %v5630_v32  ;;  %v5499_v30 = vld [vmem:[#allocation7 + $0x190] sm:$0xf0] }
 0x131   :  { %2448 = vmatmul.bf16.gmra.mxu3 %v6977_v42  ;;  %v5502_v33 = vor.u32 %v6375_v10, %v5499_v30  ;;  %v133_v42 = vld [vmem:[#allocation4 + $0x228] sm:$0xff]  ;;  %v134_v23 = vld [vmem:[#allocation4 + $0x230] sm:$0xff] }
 0x132   :  { %2375 = vmatmul.bf16.gmra.mxu2 %v6974_v31  ;;  %2720 = vmatpush.bf16.msra.mxu3 %v5758_v11  ;;  %v6992_v11 = vpack.c.bf16 %v142_v61, %v134_v23 }
 0x133   :  { %2574 = vmatpush.bf16.msra.mxu1 %v5502_v33 }
 0x134   :  { %v2182_v2 = vpop.f32.mrf.mxu3  ;;  %v2038_v40 = vpop.f32.mrf.mxu1  ;;  %9895 = vst [vmem:[#allocation71_spill] sm:$0xff] %v6992_v11 }
 0x135   :  { %v2109_v43 = vpop.f32.mrf.mxu2  ;;  %v1965_v5 = vpop.f32.mrf.mxu0 }
 0x136   :  { %v2110_v35 = vadd.f32 %v2109_v43, %v2037_v4  ;;  %v1966_v31 = vadd.f32 %v1965_v5, %v6826_v49  ;;  %v143_v4 = vld [vmem:[#allocation4 + $0x278] sm:$0xff]  ;;  %v6990_v5 = vpack.c.bf16 %v141_v60, %v133_v42 }
 0x138   :  { %v6986_v51 = vadd.f32 %v2182_v2, %v2110_v35  ;;  %v2039_v32 = vadd.f32 %v2038_v40, %v1966_v31  ;;  %9894 = vst [vmem:[#allocation70_spill] sm:$0xff] %v6990_v5  ;;  %v6995_v2 = vpack.c.bf16 %v143_v4, %v135_v25  ;;  %v148_v25 = vld [vmem:[#allocation4 + $0x2a0] sm:$0xff] }
 0x139   :  { %v156_v4 = vld [vmem:[#allocation4 + $0x2e0] sm:$0xff] }
 0x13a   :  { %9896 = vst [vmem:[#allocation72_spill] sm:$0xff] %v6995_v2 }
 0x13c   :  { %v2184_v10 = vpop.f32.mrf.mxu3  ;;  %v2041_v35 = vpop.f32.mrf.mxu1 }
 0x13d   :  { %v2111_v43 = vpop.f32.mrf.mxu2  ;;  %v1968_v30 = vpop.f32.mrf.mxu0 }
 0x13e   :  { %v2112_v24 = vadd.f32 %v2111_v43, %v2039_v32  ;;  %v1969_v31 = vadd.f32 %v1968_v30, %v6826_v49  ;;  %v5611_v30 = vld [vmem:[#allocation7 + $0x270] sm:$0xf0] }
 0x13f   :  { %2307 = vmatmul.bf16.gmra.mxu1 %v6990_v5  ;;  %v6435_v5 = vld [vmem:[#allocation7 + $0x364] sm:$0xf] }
 0x140   :  { %v6997_v33 = vadd.f32 %v2184_v10, %v2112_v24  ;;  %v2042_v40 = vadd.f32 %v2041_v35, %v1969_v31  ;;  %2234 = vmatmul.bf16.gmra.mxu0 %v6988_v9  ;;  %v149_v24 = vld [vmem:[#allocation4 + $0x2a8] sm:$0xff]  ;;  %v6403_v10 = vld [vmem:[#allocation7 + $0x264] sm:$0xf] }
 0x141   :  { %2453 = vmatmul.bf16.gmra.mxu3 %v6995_v2  ;;  %v6339_v31 = vld [vmem:[#allocation7 + $0x64] sm:$0xf]  ;;  %v5614_v35 = vor.u32 %v6403_v10, %v5611_v30  ;;  %v5739_v2 = vld [vmem:[#allocation7 + $0x370] sm:$0xf0]  ;;  %v157_v9 = vld [vmem:[#allocation4 + $0x2e8] sm:$0xff] }
 0x142   :  { %2380 = vmatmul.bf16.gmra.mxu2 %v6992_v11  ;;  %v5355_v11 = vld [vmem:[#allocation7 + $0x70] sm:$0xf0]  ;;  %v5742_v47 = vor.u32 %v6435_v5, %v5739_v2  ;;  %v7008_v10 = vpack.c.bf16 %v157_v9, %v149_v24  ;;  %v6371_v2 = vld [vmem:[#allocation7 + $0x164] sm:$0xf] }
 0x143   :  { %v5358_v0 = vor.u32 %v6339_v31, %v5355_v11  ;;  %2648 = vmatpush.bf16.msra.mxu2 %v5614_v35  ;;  %v5483_v31 = vld [vmem:[#allocation7 + $0x170] sm:$0xf0]  ;;  %v172_v35 = vld [vmem:[#allocation4 + $0x360] sm:$0xff] }
 0x144   :  { %v2187_v23 = vpop.f32.mrf.mxu3  ;;  %v2043_v20 = vpop.f32.mrf.mxu1  ;;  %2721 = vmatpush.bf16.msra.mxu3 %v5742_v47  ;;  %9898 = vst [vmem:[#allocation74_spill] sm:$0xff] %v7008_v10  ;;  %v5486_v47 = vor.u32 %v6371_v2, %v5483_v31 }
 0x145   :  { %v2114_v60 = vpop.f32.mrf.mxu2  ;;  %v1970_v32 = vpop.f32.mrf.mxu0  ;;  %2502 = vmatpush.bf16.msra.mxu0 %v5358_v0 }
 0x146   :  { %v2115_v42 = vadd.f32 %v2114_v60, %v2042_v40  ;;  %v1971_v1 = vadd.f32 %v1970_v32, %v6826_v49  ;;  %v150_v40 = vld [vmem:[#allocation4 + $0x2b0] sm:$0xff]  ;;  %v151_v32 = vld [vmem:[#allocation4 + $0x2b8] sm:$0xff]  ;;  %2575 = vmatpush.bf16.msra.mxu1 %v5486_v47 }
 0x147   :  { %v158_v60 = vld [vmem:[#allocation4 + $0x2f0] sm:$0xff]  ;;  %v7013_v11 = vpack.c.bf16 %v159_v46, %v151_v32 }
 0x148   :  { %v7004_v61 = vadd.f32 %v2187_v23, %v2115_v42  ;;  %v2044_v43 = vadd.f32 %v2043_v20, %v1971_v1  ;;  %v7006_v23 = vpack.c.bf16 %v156_v4, %v148_v25  ;;  %v7010_v30 = vpack.c.bf16 %v158_v60, %v150_v40  ;;  %v165_v40 = vld [vmem:[#allocation4 + $0x328] sm:$0xff]  ;;  %v166_v32 = vld [vmem:[#allocation4 + $0x330] sm:$0xff] }
 0x149   :  { %9900 = vst [vmem:[#allocation76_spill] sm:$0xff] %v7013_v11  ;;  %v173_v60 = vld [vmem:[#allocation4 + $0x368] sm:$0xff] }
 0x14a   :  { %9897 = vst [vmem:[#allocation73_spill] sm:$0xff] %v7006_v23 }
 0x14b   :  { %9899 = vst [vmem:[#allocation75_spill] sm:$0xff] %v7010_v30 }
 0x14c   :  { %v2189_v20 = vpop.f32.mrf.mxu3  ;;  %v2046_v19 = vpop.f32.mrf.mxu1 }
 0x14d   :  { %v2116_v42 = vpop.f32.mrf.mxu2  ;;  %v1973_v45 = vpop.f32.mrf.mxu0 }
 0x14e   :  { %v2117_v1 = vadd.f32 %v2116_v42, %v2044_v43  ;;  %v1974_v44 = vadd.f32 %v1973_v45, %v6826_v49  ;;  %v174_v42 = vld [vmem:[#allocation4 + $0x370] sm:$0xff] }
 0x14f   :  { %2312 = vmatmul.bf16.gmra.mxu1 %v7008_v10 }
 0x150   :  { %v7015_v5 = vadd.f32 %v2189_v20, %v2117_v1  ;;  %v2047_v25 = vadd.f32 %v2046_v19, %v1974_v44  ;;  %2239 = vmatmul.bf16.gmra.mxu0 %v7006_v23  ;;  %v164_v44 = vld [vmem:[#allocation4 + $0x320] sm:$0xff]  ;;  %v167_v1 = vld [vmem:[#allocation4 + $0x338] sm:$0xff] }
 0x151   :  { %2458 = vmatmul.bf16.gmra.mxu3 %v7013_v11  ;;  %v175_v20 = vld [vmem:[#allocation4 + $0x378] sm:$0xff]  ;;  %v7024_v31 = vpack.c.bf16 %v172_v35, %v164_v44  ;;  %v7026_v11 = vpack.c.bf16 %v173_v60, %v165_v40  ;;  %v5595_v44 = vld [vmem:[#allocation7 + $0x250] sm:$0xf0] }
 0x152   :  { %9901 = vst [vmem:[#allocation77_spill] sm:$0xff] %v7015_v5  ;;  %2385 = vmatmul.bf16.gmra.mxu2 %v7010_v30 }
 0x153   :  { %9903 = vst [vmem:[#allocation79_spill] sm:$0xff] %v7024_v31 }
 0x154   :  { %v2192_v9 = vpop.f32.mrf.mxu3  ;;  %v2048_v43 = vpop.f32.mrf.mxu1  ;;  %9904 = vst [vmem:[#allocation80_spill] sm:$0xff] %v7026_v11 }
 0x155   :  { %v2119_v0 = vpop.f32.mrf.mxu2  ;;  %v1975_v46 = vpop.f32.mrf.mxu0 }
 0x156   :  { %v2120_v45 = vadd.f32 %v2119_v0, %v2047_v25  ;;  %v1976_v4 = vadd.f32 %v1975_v46, %v6826_v49  ;;  %v7028_v46 = vpack.c.bf16 %v174_v42, %v166_v32 }
 0x158   :  { %v7022_v24 = vadd.f32 %v2192_v9, %v2120_v45  ;;  %v2049_v19 = vadd.f32 %v2048_v43, %v1976_v4  ;;  %9905 = vst [vmem:[#allocation81_spill] sm:$0xff] %v7028_v46  ;;  %v7031_v4 = vpack.c.bf16 %v175_v20, %v167_v1 }
 0x15a   :  { %9902 = vst [vmem:[#allocation78_spill] sm:$0xff] %v7022_v24 }
 0x15b   :  { %9906 = vst [vmem:[#allocation82_spill] sm:$0xff] %v7031_v4 }
 0x15c   :  { %v2194_v47 = vpop.f32.mrf.mxu3  ;;  %v2051_v9 = vpop.f32.mrf.mxu1 }
 0x15d   :  { %v2121_v2 = vpop.f32.mrf.mxu2  ;;  %v1978_v0 = vpop.f32.mrf.mxu0 }
 0x15e   :  { %v2122_v25 = vadd.f32 %v2121_v2, %v2049_v19  ;;  %v1979_v45 = vadd.f32 %v1978_v0, %v6826_v49  ;;  %v6399_v19 = vld [vmem:[#allocation7 + $0x244] sm:$0xf] }
 0x15f   :  { %2317 = vmatmul.bf16.gmra.mxu1 %v7026_v11  ;;  %v5598_v35 = vor.u32 %v6399_v19, %v5595_v44  ;;  %v188_v0 = vld [vmem:[#allocation4 + $0x3e0] sm:$0xff]  ;;  %v183_v11 = vld [vmem:[#allocation4 + $0x3b8] sm:$0xff]  ;;  %v5339_v44 = vld [vmem:[#allocation7 + $0x50] sm:$0xf0] }
 0x160   :  { %v7033_v43 = vadd.f32 %v2194_v47, %v2122_v25  ;;  %v2052_v30 = vadd.f32 %v2051_v9, %v1979_v45  ;;  %2244 = vmatmul.bf16.gmra.mxu0 %v7024_v31  ;;  %v180_v47 = vld [vmem:[#allocation4 + $0x3a0] sm:$0xff]  ;;  %v181_v45 = vld [vmem:[#allocation4 + $0x3a8] sm:$0xff]  ;;  %v191_v31 = vld [vmem:[#allocation4 + $0x3f8] sm:$0xff] }
 0x161   :  { %2463 = vmatmul.bf16.gmra.mxu3 %v7031_v4  ;;  %2649 = vmatpush.bf16.msra.mxu2 %v5598_v35  ;;  %v189_v9 = vld [vmem:[#allocation4 + $0x3e8] sm:$0xff]  ;;  %v190_v4 = vld [vmem:[#allocation4 + $0x3f0] sm:$0xff]  ;;  %v6335_v19 = vld [vmem:[#allocation7 + $0x44] sm:$0xf]  ;;  %v7042_v10 = vpack.c.bf16 %v188_v0, %v180_v47  ;;  %v7049_v16 = vpack.c.bf16 %v191_v31, %v183_v11 }
 0x162   :  { %9907 = vst [vmem:[#allocation83_spill] sm:$0xff] %v7033_v43  ;;  %2390 = vmatmul.bf16.gmra.mxu2 %v7028_v46  ;;  %v182_v46 = vld [vmem:[#allocation4 + $0x3b0] sm:$0xff]  ;;  %v7044_v35 = vpack.c.bf16 %v189_v9, %v181_v45  ;;  %v199_v45 = vld [vmem:[#allocation4 + $0x438] sm:$0xff] }
 0x163   :  { %v7046_v43 = vpack.c.bf16 %v190_v4, %v182_v46  ;;  %9911 = vst [vmem:[#allocation87_spill] sm:$0xff] %v7049_v16  ;;  %v207_v9 = vld [vmem:[#allocation4 + $0x478] sm:$0xff] }
 0x164   :  { %v2197_v32 = vpop.f32.mrf.mxu3  ;;  %v2053_v20 = vpop.f32.mrf.mxu1  ;;  %9909 = vst [vmem:[#allocation85_spill] sm:$0xff] %v7044_v35 }
 0x165   :  { %v2124_v40 = vpop.f32.mrf.mxu2  ;;  %v1980_v42 = vpop.f32.mrf.mxu0  ;;  %9910 = vst [vmem:[#allocation86_spill] sm:$0xff] %v7046_v43 }
 0x166   :  { %v2125_v60 = vadd.f32 %v2124_v40, %v2052_v30  ;;  %v1981_v1 = vadd.f32 %v1980_v42, %v6826_v49  ;;  %v6431_v30 = vld [vmem:[#allocation7 + $0x344] sm:$0xf]  ;;  %v5342_v42 = vor.u32 %v6335_v19, %v5339_v44 }
 0x168   :  { %v7040_v2 = vadd.f32 %v2197_v32, %v2125_v60  ;;  %v2054_v25 = vadd.f32 %v2053_v20, %v1981_v1  ;;  %v5723_v60 = vld [vmem:[#allocation7 + $0x350] sm:$0xf0]  ;;  %v6367_v32 = vld [vmem:[#allocation7 + $0x144] sm:$0xf]  ;;  %2503 = vmatpush.bf16.msra.mxu0 %v5342_v42 }
 0x169   :  { %v5467_v1 = vld [vmem:[#allocation7 + $0x150] sm:$0xf0]  ;;  %v5726_v24 = vor.u32 %v6431_v30, %v5723_v60 }
 0x16a   :  { %9908 = vst [vmem:[#allocation84_spill] sm:$0xff] %v7040_v2  ;;  %v5470_v5 = vor.u32 %v6367_v32, %v5467_v1 }
 0x16b   :  { %2722 = vmatpush.bf16.msra.mxu3 %v5726_v24  ;;  %v197_v24 = vld [vmem:[#allocation4 + $0x428] sm:$0xff] }
 0x16c   :  { %v2199_v23 = vpop.f32.mrf.mxu3  ;;  %v2056_v17 = vpop.f32.mrf.mxu1  ;;  %2576 = vmatpush.bf16.msra.mxu1 %v5470_v5  ;;  %v205_v5 = vld [vmem:[#allocation4 + $0x468] sm:$0xff] }
 0x16d   :  { %v2126_v40 = vpop.f32.mrf.mxu2  ;;  %v1983_v2 = vpop.f32.mrf.mxu0  ;;  %v7061_v42 = vpack.c.bf16 %v205_v5, %v197_v24 }
 0x16e   :  { %v2127_v20 = vadd.f32 %v2126_v40, %v2054_v25  ;;  %v1984_v18 = vadd.f32 %v1983_v2, %v6826_v49  ;;  %v204_v25 = vld [vmem:[#allocation4 + $0x460] sm:$0xff] }
 0x16f   :  { %2322 = vmatmul.bf16.gmra.mxu1 %v7044_v35  ;;  %9913 = vst [vmem:[#allocation89_spill] sm:$0xff] %v7061_v42 }
 0x170   :  { %v7051_v47 = vadd.f32 %v2199_v23, %v2127_v20  ;;  %v2057_v0 = vadd.f32 %v2056_v17, %v1984_v18  ;;  %2249 = vmatmul.bf16.gmra.mxu0 %v7042_v10  ;;  %v196_v23 = vld [vmem:[#allocation4 + $0x420] sm:$0xff]  ;;  %v198_v17 = vld [vmem:[#allocation4 + $0x430] sm:$0xff]  ;;  %v7066_v20 = vpack.c.bf16 %v207_v9, %v199_v45 }
 0x171   :  { %2468 = vmatmul.bf16.gmra.mxu3 %v7049_v16  ;;  %v206_v18 = vld [vmem:[#allocation4 + $0x470] sm:$0xff]  ;;  %v7059_v44 = vpack.c.bf16 %v204_v25, %v196_v23  ;;  %v6427_v25 = vld [vmem:[#allocation7 + $0x324] sm:$0xf] }
 0x172   :  { %2395 = vmatmul.bf16.gmra.mxu2 %v7046_v43  ;;  %v7063_v60 = vpack.c.bf16 %v206_v18, %v198_v17  ;;  %9915 = vst [vmem:[#allocation91_spill] sm:$0xff] %v7066_v20  ;;  %v5323_v23 = vld [vmem:[#allocation7 + $0x30] sm:$0xf0]  ;;  %v6363_v9 = vld [vmem:[#allocation7 + $0x124] sm:$0xf] }
 0x173   :  { %9912 = vst [vmem:[#allocation88_spill] sm:$0xff] %v7059_v44 }
 0x174   :  { %v2202_v49 = vpop.f32.mrf.mxu3  ;;  %v2058_v11 = vpop.f32.mrf.mxu1  ;;  %9914 = vst [vmem:[#allocation90_spill] sm:$0xff] %v7063_v60 }
 0x175   :  { %v2129_v46 = vpop.f32.mrf.mxu2  ;;  %v1985_v2 = vpop.f32.mrf.mxu0 }
 0x176   :  { %v2130_v4 = vadd.f32 %v2129_v46, %v2057_v0  ;;  %v6395_v46 = vld [vmem:[#allocation7 + $0x224] sm:$0xf] }
 0x178   :  { %v7057_v31 = vadd.f32 %v2202_v49, %v2130_v4  ;;  %v5579_v4 = vld [vmem:[#allocation7 + $0x230] sm:$0xf0]  ;;  %v6331_v49 = vld [vmem:[#allocation7 + $0x24] sm:$0xf] }
 0x179   :  { %v5582_v11 = vor.u32 %v6395_v46, %v5579_v4  ;;  %v5326_v18 = vor.u32 %v6331_v49, %v5323_v23  ;;  %v212_v4 = vld [vmem:[#allocation4 + $0x4a0] sm:$0xff]  ;;  %v222_v49 = vld [vmem:[#allocation4 + $0x4f0] sm:$0xff]  ;;  %v215_v23 = vld [vmem:[#allocation4 + $0x4b8] sm:$0xff] }
 0x17b   :  { %2650 = vmatpush.bf16.msra.mxu2 %v5582_v11  ;;  %2504 = vmatpush.bf16.msra.mxu0 %v5326_v18 }
 0x17c   :  { %v2204_v30 = vpop.f32.mrf.mxu3  ;;  %v2288_v1 = vpop.f32.mrf.mxu1 }
 0x17d   :  { %v2131_v19 = vpop.f32.mrf.mxu2  ;;  %v2215_v40 = vpop.f32.mrf.mxu0 }
 0x17e   :  { %v2216_v32 = vadd.f32 %v2215_v40, %v6842_v50  ;;  %v5707_v50 = vld [vmem:[#allocation7 + $0x330] sm:$0xf0] }
 0x17f   :  { %2327 = vmatmul.bf16.gmra.mxu1 %v7061_v42  ;;  %v5710_v45 = vor.u32 %v6427_v25, %v5707_v50  ;;  %v5451_v19 = vld [vmem:[#allocation7 + $0x130] sm:$0xf0]  ;;  %v223_v25 = vld [vmem:[#allocation4 + $0x4f8] sm:$0xff] }
 0x180   :  { %v2289_v0 = vadd.f32 %v2288_v1, %v2216_v32  ;;  %2254 = vmatmul.bf16.gmra.mxu0 %v7059_v44  ;;  %v5454_v32 = vor.u32 %v6363_v9, %v5451_v19  ;;  %v7082_v9 = vpack.c.bf16 %v223_v25, %v215_v23  ;;  %v229_v23 = vld [vmem:[#allocation4 + $0x528] sm:$0xff]  ;;  %v5435_v44 = vld [vmem:[#allocation7 + $0x110] sm:$0xf0] }
 0x181   :  { %2473 = vmatmul.bf16.gmra.mxu3 %v7066_v20  ;;  %v220_v20 = vld [vmem:[#allocation4 + $0x4e0] sm:$0xff]  ;;  %v237_v25 = vld [vmem:[#allocation4 + $0x568] sm:$0xff] }
 0x182   :  { %2400 = vmatmul.bf16.gmra.mxu2 %v7063_v60  ;;  %2723 = vmatpush.bf16.msra.mxu3 %v5710_v45  ;;  %v214_v60 = vld [vmem:[#allocation4 + $0x4b0] sm:$0xff]  ;;  %v7075_v42 = vpack.c.bf16 %v220_v20, %v212_v4  ;;  %9920 = vst [vmem:[#allocation96_spill] sm:$0xff] %v7082_v9 }
 0x183   :  { %2577 = vmatpush.bf16.msra.mxu1 %v5454_v32 }
 0x184   :  { %v2434_v5 = vpop.f32.mrf.mxu3  ;;  %v2290_v40 = vpop.f32.mrf.mxu1  ;;  %9917 = vst [vmem:[#allocation93_spill] sm:$0xff] %v7075_v42 }
 0x185   :  { %v2361_v2 = vpop.f32.mrf.mxu2  ;;  %v2217_v17 = vpop.f32.mrf.mxu0 }
 0x186   :  { %v2362_v24 = vadd.f32 %v2361_v2, %v2289_v0  ;;  %v2218_v30 = vadd.f32 %v2217_v17, %v6853_v29  ;;  %v213_v0 = vld [vmem:[#allocation4 + $0x4a8] sm:$0xff] }
 0x187   :  { %v221_v2 = vld [vmem:[#allocation4 + $0x4e8] sm:$0xff] }
 0x188   :  { %v7073_v1 = vadd.f32 %v2434_v5, %v2362_v24  ;;  %v2291_v46 = vadd.f32 %v2290_v40, %v2218_v30  ;;  %v7077_v24 = vpack.c.bf16 %v221_v2, %v213_v0  ;;  %v7079_v5 = vpack.c.bf16 %v222_v49, %v214_v60  ;;  %v228_v2 = vld [vmem:[#allocation4 + $0x520] sm:$0xff] }
 0x189   :  { %v236_v49 = vld [vmem:[#allocation4 + $0x560] sm:$0xff] }
 0x18a   :  { %9916 = vst [vmem:[#allocation92_spill] sm:$0xff] %v7073_v1  ;;  %v7095_v1 = vpack.c.bf16 %v237_v25, %v229_v23 }
 0x18b   :  { %9918 = vst [vmem:[#allocation94_spill] sm:$0xff] %v7077_v24 }
 0x18c   :  { %v2436_v11 = vpop.f32.mrf.mxu3  ;;  %9919 = vst [vmem:[#allocation95_spill] sm:$0xff] %v7079_v5  ;;  %v2293_v45 = vpop.f32.mrf.mxu1 }
 0x18d   :  { %v2363_v50 = vpop.f32.mrf.mxu2  ;;  %v2220_v17 = vpop.f32.mrf.mxu0 }
 0x18e   :  { %v2364_v29 = vadd.f32 %v2363_v50, %v2291_v46  ;;  %v2221_v18 = vadd.f32 %v2220_v17, %v6860_v59  ;;  %v230_v50 = vld [vmem:[#allocation4 + $0x530] sm:$0xff]  ;;  %v239_v17 = vld [vmem:[#allocation4 + $0x578] sm:$0xff] }
 0x18f   :  { %2332 = vmatmul.bf16.gmra.mxu1 %v7077_v24 }
 0x190   :  { %v7084_v19 = vadd.f32 %v2436_v11, %v2364_v29  ;;  %v2294_v30 = vadd.f32 %v2293_v45, %v2221_v18  ;;  %2259 = vmatmul.bf16.gmra.mxu0 %v7075_v42  ;;  %v238_v29 = vld [vmem:[#allocation4 + $0x570] sm:$0xff]  ;;  %v231_v11 = vld [vmem:[#allocation4 + $0x538] sm:$0xff]  ;;  %v6391_v18 = vld [vmem:[#allocation7 + $0x204] sm:$0xf] }
 0x191   :  { %2478 = vmatmul.bf16.gmra.mxu3 %v7082_v9  ;;  %v5563_v45 = vld [vmem:[#allocation7 + $0x210] sm:$0xf0]  ;;  %v7097_v9 = vpack.c.bf16 %v238_v29, %v230_v50  ;;  %v6359_v42 = vld [vmem:[#allocation7 + $0x104] sm:$0xf]  ;;  %v253_v29 = vld [vmem:[#allocation4 + $0x5e8] sm:$0xff] }
 0x192   :  { %9921 = vst [vmem:[#allocation97_spill] sm:$0xff] %v7084_v19  ;;  %2405 = vmatmul.bf16.gmra.mxu2 %v7079_v5  ;;  %v6327_v19 = vld [vmem:[#allocation7 + $0x4] sm:$0xf] }
 0x194   :  { %v2439_v60 = vpop.f32.mrf.mxu3  ;;  %v2295_v46 = vpop.f32.mrf.mxu1 }
 0x195   :  { %v2366_v20 = vpop.f32.mrf.mxu2  ;;  %v2222_v32 = vpop.f32.mrf.mxu0 }
 0x196   :  { %v2367_v40 = vadd.f32 %v2366_v20, %v2294_v30  ;;  %v2223_v59 = vadd.f32 %v2222_v32, %v6871_v22  ;;  %v7093_v20 = vpack.c.bf16 %v236_v49, %v228_v2  ;;  %v5566_v22 = vor.u32 %v6391_v18, %v5563_v45  ;;  %v5691_v32 = vld [vmem:[#allocation7 + $0x310] sm:$0xf0]  ;;  %v247_v18 = vld [vmem:[#allocation4 + $0x5b8] sm:$0xff] }
 0x197   :  { %v7100_v2 = vpack.c.bf16 %v239_v17, %v231_v11  ;;  %v5438_v49 = vor.u32 %v6359_v42, %v5435_v44  ;;  %v246_v11 = vld [vmem:[#allocation4 + $0x5b0] sm:$0xff]  ;;  %v255_v45 = vld [vmem:[#allocation4 + $0x5f8] sm:$0xff] }
 0x198   :  { %v7091_v4 = vadd.f32 %v2439_v60, %v2367_v40  ;;  %v2296_v0 = vadd.f32 %v2295_v46, %v2223_v59  ;;  %v5307_v40 = vld [vmem:[#allocation7 + $0x10] sm:$0xf0]  ;;  %v6423_v60 = vld [vmem:[#allocation7 + $0x304] sm:$0xf]  ;;  %2651 = vmatpush.bf16.msra.mxu2 %v5566_v22 }
 0x199   :  { %v5310_v5 = vor.u32 %v6327_v19, %v5307_v40  ;;  %v5694_v24 = vor.u32 %v6423_v60, %v5691_v32  ;;  %2578 = vmatpush.bf16.msra.mxu1 %v5438_v49  ;;  %v254_v17 = vld [vmem:[#allocation4 + $0x5f0] sm:$0xff] }
 0x19a   :  { %9922 = vst [vmem:[#allocation98_spill] sm:$0xff] %v7091_v4 }
 0x19b   :  { %2505 = vmatpush.bf16.msra.mxu0 %v5310_v5  ;;  %2724 = vmatpush.bf16.msra.mxu3 %v5694_v24  ;;  %v245_v5 = vld [vmem:[#allocation4 + $0x5a8] sm:$0xff] }
 0x19c   :  { %v2441_v46 = vpop.f32.mrf.mxu3  ;;  %v2298_v43 = vpop.f32.mrf.mxu1 }
 0x19d   :  { %v2368_v30 = vpop.f32.mrf.mxu2  ;;  %v2225_v4 = vpop.f32.mrf.mxu0 }
 0x19e   :  { %v2369_v59 = vadd.f32 %v2368_v30, %v2296_v0  ;;  %v2226_v16 = vadd.f32 %v2225_v4, %v6878_v7 }
 0x19f   :  { %2337 = vmatmul.bf16.gmra.mxu1 %v7095_v1 }
 0x1a0   :  { %v7102_v23 = vadd.f32 %v2441_v46, %v2369_v59  ;;  %v2299_v0 = vadd.f32 %v2298_v43, %v2226_v16  ;;  %2264 = vmatmul.bf16.gmra.mxu0 %v7093_v20  ;;  %v244_v16 = vld [vmem:[#allocation4 + $0x5a0] sm:$0xff]  ;;  %v7113_v59 = vpack.c.bf16 %v253_v29, %v245_v5 }
 0x1a1   :  { %2483 = vmatmul.bf16.gmra.mxu3 %v7100_v2  ;;  %v252_v43 = vld [vmem:[#allocation4 + $0x5e0] sm:$0xff] }
 0x1a2   :  { %9923 = vst [vmem:[#allocation99_spill] sm:$0xff] %v7102_v23  ;;  %2410 = vmatmul.bf16.gmra.mxu2 %v7097_v9  ;;  %v7111_v22 = vpack.c.bf16 %v252_v43, %v244_v16  ;;  %v6579_v16 = vld [vmem:[#allocation7 + $0x7e4] sm:$0xf]  ;;  %v6315_v43 = vld [vmem:[#allocation7 + $0x7f0] sm:$0xf0] }
 0x1a4   :  { %v2444_v4 = vpop.f32.mrf.mxu3  ;;  %v2300_v42 = vpop.f32.mrf.mxu1 }
 0x1a5   :  { %v2371_v7 = vpop.f32.mrf.mxu2  ;;  %v2227_v25 = vpop.f32.mrf.mxu0 }
 0x1a6   :  { %v2372_v19 = vadd.f32 %v2371_v7, %v2299_v0  ;;  %v2228_v44 = vadd.f32 %v2227_v25, %v6889_v6  ;;  %v7115_v6 = vpack.c.bf16 %v254_v17, %v246_v11  ;;  %v7118_v0 = vpack.c.bf16 %v255_v45, %v247_v18  ;;  %v6187_v25 = vld [vmem:[#allocation7 + $0x6f0] sm:$0xf0] }
 0x1a7   :  { %v6318_v18 = vor.u32 %v6579_v16, %v6315_v43 }
 0x1a8   :  { %v7109_v50 = vadd.f32 %v2444_v4, %v2372_v19  ;;  %v2301_v24 = vadd.f32 %v2300_v42, %v2228_v44  ;;  %v6547_v4 = vld [vmem:[#allocation7 + $0x6e4] sm:$0xf] }
 0x1a9   :  { %v6483_v44 = vld [vmem:[#allocation7 + $0x4e4] sm:$0xf]  ;;  %3009 = vmatpush.bf16.msrb.mxu3 %v6318_v18 }
 0x1aa   :  { %9924 = vst [vmem:[#allocation100_spill] sm:$0xff] %v7109_v50  ;;  %v5979_v50 = vld [vmem:[#allocation7 + $0x550] sm:$0xf0] }
 0x1ac   :  { %v2446_v60 = vpop.f32.mrf.mxu3  ;;  %v2303_v49 = vpop.f32.mrf.mxu1 }
 0x1ad   :  { %v2373_v30 = vpop.f32.mrf.mxu2  ;;  %v2230_v32 = vpop.f32.mrf.mxu0 }
 0x1ae   :  { %v2374_v40 = vadd.f32 %v2373_v30, %v2301_v24  ;;  %v2231_v46 = vadd.f32 %v2230_v32, %v6896_v63  ;;  %v6190_v24 = vor.u32 %v6547_v4, %v6187_v25  ;;  %v5931_v63 = vld [vmem:[#allocation7 + $0x4f0] sm:$0xf0]  ;;  %v260_v32 = vld [vmem:[#allocation4 + $0x620] sm:$0xff]  ;;  %v263_v4 = vld [vmem:[#allocation4 + $0x638] sm:$0xff] }
 0x1af   :  { %2342 = vmatmul.bf16.gmra.mxu1 %v7113_v59  ;;  %v5934_v17 = vor.u32 %v6483_v44, %v5931_v63  ;;  %v6515_v25 = vld [vmem:[#allocation7 + $0x5e4] sm:$0xf] }
 0x1b0   :  { %v7120_v7 = vadd.f32 %v2446_v60, %v2374_v40  ;;  %v2304_v19 = vadd.f32 %v2303_v49, %v2231_v46  ;;  %2269 = vmatmul.bf16.gmra.mxu0 %v7111_v22  ;;  %2936 = vmatpush.bf16.msrb.mxu2 %v6190_v24  ;;  %v261_v46 = vld [vmem:[#allocation4 + $0x628] sm:$0xff]  ;;  %v262_v49 = vld [vmem:[#allocation4 + $0x630] sm:$0xff] }
 0x1b1   :  { %2488 = vmatmul.bf16.gmra.mxu3 %v7118_v0  ;;  %2790 = vmatpush.bf16.msrb.mxu0 %v5934_v17  ;;  %v7131_v43 = vpack.c.bf16 %v261_v46, %v261_v46  ;;  %v7133_v24 = vpack.c.bf16 %v262_v49, %v262_v49 }
 0x1b2   :  { %9925 = vst [vmem:[#allocation101_spill] sm:$0xff] %v7120_v7  ;;  %2415 = vmatmul.bf16.gmra.mxu2 %v7115_v6  ;;  %v6059_v7 = vld [vmem:[#allocation7 + $0x5f0] sm:$0xf0] }
 0x1b3   :  { %v6062_v44 = vor.u32 %v6515_v25, %v6059_v7  ;;  %v6171_v25 = vld [vmem:[#allocation7 + $0x6d0] sm:$0xf0] }
 0x1b4   :  { %v2449_v29 = vpop.f32.mrf.mxu3  ;;  %v2305_v30 = vpop.f32.mrf.mxu1 }
 0x1b5   :  { %v2376_v42 = vpop.f32.mrf.mxu2  ;;  %v2232_v11 = vpop.f32.mrf.mxu0  ;;  %2863 = vmatpush.bf16.msrb.mxu1 %v6062_v44 }
 0x1b6   :  { %v2377_v5 = vadd.f32 %v2376_v42, %v2304_v19  ;;  %v2233_v45 = vadd.f32 %v2232_v11, %v6907_v28  ;;  %v7129_v42 = vpack.c.bf16 %v260_v32, %v260_v32  ;;  %v7136_v11 = vpack.c.bf16 %v263_v4, %v263_v4  ;;  %v6543_v4 = vld [vmem:[#allocation7 + $0x6c4] sm:$0xf] }
 0x1b7   :  { %v6174_v44 = vor.u32 %v6543_v4, %v6171_v25 }
 0x1b8   :  { %v7127_v40 = vadd.f32 %v2449_v29, %v2377_v5  ;;  %v2306_v60 = vadd.f32 %v2305_v30, %v2233_v45 }
 0x1b9   :  { %2937 = vmatpush.bf16.msrb.mxu2 %v6174_v44 }
 0x1ba   :  { %9926 = vst [vmem:[#allocation102_spill] sm:$0xff] %v7127_v40  ;;  %v6495_v40 = vld [vmem:[#allocation7 + $0x544] sm:$0xf] }
 0x1bc   :  { %v2451_v16 = vpop.f32.mrf.mxu3  ;;  %v2308_v29 = vpop.f32.mrf.mxu1 }
 0x1bd   :  { %v2378_v19 = vpop.f32.mrf.mxu2  ;;  %v2235_v28 = vpop.f32.mrf.mxu0 }
 0x1be   :  { %v2379_v63 = vadd.f32 %v2378_v19, %v2306_v60  ;;  %v2236_v5 = vadd.f32 %v2235_v28, %v6914_v8 }
 0x1bf   :  { %2347 = vmatmul.bf16.gmra.mxu1 %v7131_v43 }
 0x1c0   :  { %v7138_v17 = vadd.f32 %v2451_v16, %v2379_v63  ;;  %v2309_v18 = vadd.f32 %v2308_v29, %v2236_v5  ;;  %2274 = vmatmul.bf16.gmra.mxu0 %v7129_v42 }
 0x1c1   :  { %2493 = vmatmul.bf16.gmra.mxu3 %v7136_v11 }
 0x1c2   :  { %9927 = vst [vmem:[#allocation103_spill] sm:$0xff] %v7138_v17  ;;  %2420 = vmatmul.bf16.gmra.mxu2 %v7133_v24 }
 0x1c4   :  { %v2454_v30 = vpop.f32.mrf.mxu3  ;;  %v2310_v32 = vpop.f32.mrf.mxu1 }
 0x1c5   :  { %v2381_v7 = vpop.f32.mrf.mxu2  ;;  %v2237_v60 = vpop.f32.mrf.mxu0 }
 0x1c6   :  { %v2382_v45 = vadd.f32 %v2381_v7, %v2309_v18  ;;  %v2238_v8 = vadd.f32 %v2237_v60, %v6925_v26  ;;  %v6479_v26 = vld [vmem:[#allocation7 + $0x4c4] sm:$0xf] }
 0x1c8   :  { %v7145_v46 = vadd.f32 %v2454_v30, %v2382_v45  ;;  %v2311_v49 = vadd.f32 %v2310_v32, %v2238_v8  ;;  %v5915_v45 = vld [vmem:[#allocation7 + $0x4d0] sm:$0xf0]  ;;  %v6575_v30 = vld [vmem:[#allocation7 + $0x7c4] sm:$0xf] }
 0x1c9   :  { %v5918_v8 = vor.u32 %v6479_v26, %v5915_v45  ;;  %v6299_v32 = vld [vmem:[#allocation7 + $0x7d0] sm:$0xf0] }
 0x1ca   :  { %9928 = vst [vmem:[#allocation104_spill] sm:$0xff] %v7145_v46  ;;  %v6302_v44 = vor.u32 %v6575_v30, %v6299_v32 }
 0x1cb   :  { %2791 = vmatpush.bf16.msrb.mxu0 %v5918_v8 }
 0x1cc   :  { %v2456_v16 = vpop.f32.mrf.mxu3  ;;  %v2313_v29 = vpop.f32.mrf.mxu1  ;;  %3010 = vmatpush.bf16.msrb.mxu3 %v6302_v44 }
 0x1cd   :  { %v2383_v19 = vpop.f32.mrf.mxu2  ;;  %v2240_v28 = vpop.f32.mrf.mxu0 }
 0x1ce   :  { %v2384_v63 = vadd.f32 %v2383_v19, %v2311_v49  ;;  %v2241_v5 = vadd.f32 %v2240_v28, %v6932_v21  ;;  %v6511_v21 = vld [vmem:[#allocation7 + $0x5c4] sm:$0xf]  ;;  %v6043_v49 = vld [vmem:[#allocation7 + $0x5d0] sm:$0xf0] }
 0x1cf   :  { %2579 = vmatmul.bf16.vlgmr.msra.gmra.mxu1 %v6729_v53 }
 0x1d0   :  { %v7148_v18 = vadd.f32 %v2456_v16, %v2384_v63  ;;  %v2314_v7 = vadd.f32 %v2313_v29, %v2241_v5  ;;  %2506 = vmatmul.bf16.vlgmr.msra.gmra.mxu0 %v6727_v48  ;;  %v6046_v63 = vor.u32 %v6511_v21, %v6043_v49 }
 0x1d1   :  { %2725 = vmatmul.bf16.vlgmr.msra.gmra.mxu3 %v6733_v57 }
 0x1d2   :  { %9929 = vst [vmem:[#allocation105_spill] sm:$0xff] %v7148_v18  ;;  %2652 = vmatmul.bf16.vlgmr.msra.gmra.mxu2 %v6731_v54  ;;  %2864 = vmatpush.bf16.msrb.mxu1 %v6046_v63  ;;  %v5899_v63 = vld [vmem:[#allocation7 + $0x4b0] sm:$0xf0] }
 0x1d4   :  { %v2459_v25 = vpop.f32.mrf.mxu3  ;;  %v2315_v28 = vpop.f32.mrf.mxu1 }
 0x1d5   :  { %v2386_v60 = vpop.f32.mrf.mxu2  ;;  %v2242_v19 = vpop.f32.mrf.mxu0 }
 0x1d6   :  { %v2387_v4 = vadd.f32 %v2386_v60, %v2314_v7  ;;  %v2243_v16 = vadd.f32 %v2242_v19, %v6943_v62 }
 0x1d8   :  { %v7155_v5 = vadd.f32 %v2459_v25, %v2387_v4  ;;  %v2316_v29 = vadd.f32 %v2315_v28, %v2243_v16  ;;  %v6539_v4 = vld [vmem:[#allocation7 + $0x6a4] sm:$0xf]  ;;  %v6283_v28 = vld [vmem:[#allocation7 + $0x7b0] sm:$0xf0] }
 0x1d9   :  { %v6475_v25 = vld [vmem:[#allocation7 + $0x4a4] sm:$0xf] }
 0x1da   :  { %9930 = vst [vmem:[#allocation106_spill] sm:$0xff] %v7155_v5  ;;  %v6571_v16 = vld [vmem:[#allocation7 + $0x7a4] sm:$0xf] }
 0x1dc   :  { %v2461_v26 = vpop.f32.mrf.mxu3  ;;  %v2318_v7 = vpop.f32.mrf.mxu1 }
 0x1dd   :  { %v2388_v18 = vpop.f32.mrf.mxu2  ;;  %v2245_v45 = vpop.f32.mrf.mxu0 }
 0x1de   :  { %v2389_v46 = vadd.f32 %v2388_v18, %v2316_v29  ;;  %v2246_v17 = vadd.f32 %v2245_v45, %v6950_v27 }
 0x1df   :  { %2584 = vmatmul.bf16.gmra.mxu1 %v6741_v13 }
 0x1e0   :  { %v7158_v60 = vadd.f32 %v2461_v26, %v2389_v46  ;;  %v2319_v30 = vadd.f32 %v2318_v7, %v2246_v17  ;;  %2511 = vmatmul.bf16.gmra.mxu0 %v6739_v12  ;;  %v6155_v17 = vld [vmem:[#allocation7 + $0x6b0] sm:$0xf0]  ;;  %v5902_v7 = vor.u32 %v6475_v25, %v5899_v63 }
 0x1e1   :  { %2730 = vmatmul.bf16.gmra.mxu3 %v6745_v15  ;;  %v6158_v44 = vor.u32 %v6539_v4, %v6155_v17 }
 0x1e2   :  { %9931 = vst [vmem:[#allocation107_spill] sm:$0xff] %v7158_v60  ;;  %2657 = vmatmul.bf16.gmra.mxu2 %v6743_v14  ;;  %v6027_v60 = vld [vmem:[#allocation7 + $0x5b0] sm:$0xf0]  ;;  %2792 = vmatpush.bf16.msrb.mxu0 %v5902_v7 }
 0x1e3   :  { %2938 = vmatpush.bf16.msrb.mxu2 %v6158_v44 }
 0x1e4   :  { %v2464_v32 = vpop.f32.mrf.mxu3  ;;  %v2320_v49 = vpop.f32.mrf.mxu1 }
 0x1e5   :  { %v2391_v62 = vpop.f32.mrf.mxu2  ;;  %v2247_v18 = vpop.f32.mrf.mxu0 }
 0x1e6   :  { %v2392_v8 = vadd.f32 %v2391_v62, %v2319_v30  ;;  %v2248_v21 = vadd.f32 %v2247_v18, %v6961_v41  ;;  %v6286_v30 = vor.u32 %v6571_v16, %v6283_v28  ;;  %v6507_v62 = vld [vmem:[#allocation7 + $0x5a4] sm:$0xf] }
 0x1e8   :  { %v7165_v27 = vadd.f32 %v2464_v32, %v2392_v8  ;;  %v2321_v46 = vadd.f32 %v2320_v49, %v2248_v21  ;;  %v6030_v32 = vor.u32 %v6507_v62, %v6027_v60  ;;  %3011 = vmatpush.bf16.msrb.mxu3 %v6286_v30  ;;  %v6139_v30 = vld [vmem:[#allocation7 + $0x690] sm:$0xf0]  ;;  %v6471_v62 = vld [vmem:[#allocation7 + $0x484] sm:$0xf] }
 0x1ea   :  { %9932 = vst [vmem:[#allocation108_spill] sm:$0xff] %v7165_v27  ;;  %2865 = vmatpush.bf16.msrb.mxu1 %v6030_v32  ;;  %v5883_v32 = vld [vmem:[#allocation7 + $0x490] sm:$0xf0] }
 0x1ec   :  { %v2466_v26 = vpop.f32.mrf.mxu3  ;;  %v2323_v8 = vpop.f32.mrf.mxu1 }
 0x1ed   :  { %v2393_v19 = vpop.f32.mrf.mxu2  ;;  %v2250_v45 = vpop.f32.mrf.mxu0 }
 0x1ee   :  { %v2394_v29 = vadd.f32 %v2393_v19, %v2321_v46  ;;  %v2251_v41 = vadd.f32 %v2250_v45, %v6968_v3 }
 0x1ef   :  { %2589 = vmatmul.bf16.gmra.mxu1 %v6753_v37 }
 0x1f0   :  { %v7168_v18 = vadd.f32 %v2466_v26, %v2394_v29  ;;  %v2324_v21 = vadd.f32 %v2323_v8, %v2251_v41  ;;  %2516 = vmatmul.bf16.gmra.mxu0 %v6751_v36 }
 0x1f1   :  { %2735 = vmatmul.bf16.gmra.mxu3 %v6757_v39 }
 0x1f2   :  { %9933 = vst [vmem:[#allocation109_spill] sm:$0xff] %v7168_v18  ;;  %2662 = vmatmul.bf16.gmra.mxu2 %v6755_v38 }
 0x1f4   :  { %v2469_v3 = vpop.f32.mrf.mxu3  ;;  %v2325_v17 = vpop.f32.mrf.mxu1 }
 0x1f5   :  { %v2396_v49 = vpop.f32.mrf.mxu2  ;;  %v2252_v4 = vpop.f32.mrf.mxu0 }
 0x1f6   :  { %v2397_v46 = vadd.f32 %v2396_v49, %v2324_v21  ;;  %v2253_v60 = vadd.f32 %v2252_v4, %v6979_v34  ;;  %v6535_v34 = vld [vmem:[#allocation7 + $0x684] sm:$0xf]  ;;  %v5886_v4 = vor.u32 %v6471_v62, %v5883_v32 }
 0x1f7   :  { %v6142_v8 = vor.u32 %v6535_v34, %v6139_v30  ;;  %v6567_v21 = vld [vmem:[#allocation7 + $0x784] sm:$0xf] }
 0x1f8   :  { %v7175_v25 = vadd.f32 %v2469_v3, %v2397_v46  ;;  %v2326_v19 = vadd.f32 %v2325_v17, %v2253_v60  ;;  %v6503_v17 = vld [vmem:[#allocation7 + $0x584] sm:$0xf]  ;;  %2793 = vmatpush.bf16.msrb.mxu0 %v5886_v4 }
 0x1f9   :  { %2939 = vmatpush.bf16.msrb.mxu2 %v6142_v8  ;;  %v9939_v8 = vld [vmem:[#allocation18_spill] sm:$0xff] }
 0x1fa   :  { %9934 = vst [vmem:[#allocation110_spill] sm:$0xff] %v7175_v25  ;;  %v9944_v25 = vld [vmem:[#allocation78_spill] sm:$0xff] }
 0x1fc   :  { %v2471_v16 = vpop.f32.mrf.mxu3  ;;  %v2328_v26 = vpop.f32.mrf.mxu1 }
 0x1fd   :  { %v2398_v44 = vpop.f32.mrf.mxu2  ;;  %v2255_v28 = vpop.f32.mrf.mxu0 }
 0x1fe   :  { %v2399_v63 = vadd.f32 %v2398_v44, %v2326_v19  ;;  %v2256_v29 = vadd.f32 %v2255_v28, %v6986_v51  ;;  %v6267_v51 = vld [vmem:[#allocation7 + $0x790] sm:$0xf0] }
 0x1ff   :  { %2594 = vmatmul.bf16.gmra.mxu1 %v6765_v55  ;;  %v6270_v60 = vor.u32 %v6567_v21, %v6267_v51  ;;  %v6011_v19 = vld [vmem:[#allocation7 + $0x590] sm:$0xf0] }
 0x200   :  { %v7178_v45 = vadd.f32 %v2471_v16, %v2399_v63  ;;  %v2329_v7 = vadd.f32 %v2328_v26, %v2256_v29  ;;  %2521 = vmatmul.bf16.gmra.mxu0 %v6763_v52  ;;  %v6014_v16 = vor.u32 %v6503_v17, %v6011_v19  ;;  %v9940_v51 = vld [vmem:[#allocation19_spill] sm:$0xff]  ;;  %v9942_v17 = vld [vmem:[#allocation77_spill] sm:$0xff] }
 0x201   :  { %2740 = vmatmul.bf16.gmra.mxu3 %v6769_v58 }
 0x202   :  { %9935 = vst [vmem:[#allocation111_spill] sm:$0xff] %v7178_v45  ;;  %2667 = vmatmul.bf16.gmra.mxu2 %v6767_v56  ;;  %3012 = vmatpush.bf16.msrb.mxu3 %v6270_v60 }
 0x203   :  { %2866 = vmatpush.bf16.msrb.mxu1 %v6014_v16  ;;  %v6531_v16 = vld [vmem:[#allocation7 + $0x664] sm:$0xf] }
 0x204   :  { %v2474_v46 = vpop.f32.mrf.mxu3  ;;  %v2330_v63 = vpop.f32.mrf.mxu1 }
 0x205   :  { %v2401_v41 = vpop.f32.mrf.mxu2  ;;  %v2257_v3 = vpop.f32.mrf.mxu0 }
 0x206   :  { %v2402_v49 = vadd.f32 %v2401_v41, %v2329_v7  ;;  %v2258_v44 = vadd.f32 %v2257_v3, %v6997_v33  ;;  %v9938_v33 = vld [vmem:[#allocation17_spill] sm:$0xff] }
 0x208   :  { %v7185_v28 = vadd.f32 %v2474_v46, %v2402_v49  ;;  %v2331_v29 = vadd.f32 %v2330_v63, %v2258_v44  ;;  %v9941_v49 = vld [vmem:[#allocation20_spill] sm:$0xff] }
 0x20a   :  { %9936 = vst [vmem:[#allocation112_spill] sm:$0xff] %v7185_v28 }
 0x20c   :  { %v2476_v7 = vpop.f32.mrf.mxu3  ;;  %v2333_v41 = vpop.f32.mrf.mxu1 }
 0x20d   :  { %v2403_v26 = vpop.f32.mrf.mxu2  ;;  %v2260_v30 = vpop.f32.mrf.mxu0 }
 0x20e   :  { %v2404_v34 = vadd.f32 %v2403_v26, %v2331_v29  ;;  %v2261_v62 = vadd.f32 %v2260_v30, %v7004_v61  ;;  %v6123_v29 = vld [vmem:[#allocation7 + $0x670] sm:$0xf0]  ;;  %v6467_v26 = vld [vmem:[#allocation7 + $0x464] sm:$0xf] }
 0x20f   :  { %2599 = vmatmul.bf16.gmra.mxu1 %v9939_v8  ;;  %v5867_v30 = vld [vmem:[#allocation7 + $0x470] sm:$0xf0] }
 0x210   :  { %v7188_v32 = vadd.f32 %v2476_v7, %v2404_v34  ;;  %v2334_v21 = vadd.f32 %v2333_v41, %v2261_v62  ;;  %2526 = vmatmul.bf16.gmra.mxu0 %v9938_v33  ;;  %v6126_v7 = vor.u32 %v6531_v16, %v6123_v29  ;;  %v6563_v62 = vld [vmem:[#allocation7 + $0x764] sm:$0xf]  ;;  %v6251_v41 = vld [vmem:[#allocation7 + $0x770] sm:$0xf0]  ;;  %v9998_v33 = vld [vmem:[#allocation66_spill] sm:$0xff] }
 0x211   :  { %2745 = vmatmul.bf16.gmra.mxu3 %v9941_v49  ;;  %v6499_v16 = vld [vmem:[#allocation7 + $0x564] sm:$0xf]  ;;  %v5995_v29 = vld [vmem:[#allocation7 + $0x570] sm:$0xf0] }
 0x212   :  { %9937 = vst [vmem:[#allocation113_spill] sm:$0xff] %v7188_v32  ;;  %2672 = vmatmul.bf16.gmra.mxu2 %v9940_v51  ;;  %v5521_v51 = vld [vmem:[#allocation7 + $0x1a8] sm:$0xf] }
 0x213   :  { %2940 = vmatpush.bf16.msrb.mxu2 %v6126_v7 }
 0x214   :  { %v2479_v4 = vpop.f32.mrf.mxu3  ;;  %v2335_v44 = vpop.f32.mrf.mxu1 }
 0x215   :  { %v2406_v46 = vpop.f32.mrf.mxu2  ;;  %v2262_v60 = vpop.f32.mrf.mxu0 }
 0x216   :  { %v2407_v3 = vadd.f32 %v2406_v46, %v2334_v21  ;;  %v2263_v19 = vadd.f32 %v2262_v60, %v9942_v17  ;;  %v5870_v21 = vor.u32 %v6467_v26, %v5867_v30  ;;  %v6254_v46 = vor.u32 %v6563_v62, %v6251_v41  ;;  %v9946_v17 = vld [vmem:[#allocation21_spill] sm:$0xff] }
 0x218   :  { %v7195_v61 = vadd.f32 %v2479_v4, %v2407_v3  ;;  %v2336_v63 = vadd.f32 %v2335_v44, %v2263_v19  ;;  %2794 = vmatpush.bf16.msrb.mxu0 %v5870_v21  ;;  %3013 = vmatpush.bf16.msrb.mxu3 %v6254_v46  ;;  %v9947_v19 = vld [vmem:[#allocation22_spill] sm:$0xff]  ;;  %v9948_v44 = vld [vmem:[#allocation23_spill] sm:$0xff] }
 0x21a   :  { %9943 = vst [vmem:[#allocation77_spill] sm:$0xff] %v7195_v61 }
 0x21c   :  { %v2481_v28 = vpop.f32.mrf.mxu3  ;;  %v2338_v60 = vpop.f32.mrf.mxu1 }
 0x21d   :  { %v2408_v34 = vpop.f32.mrf.mxu2  ;;  %v2265_v45 = vpop.f32.mrf.mxu0 }
 0x21e   :  { %v2409_v32 = vadd.f32 %v2408_v34, %v2336_v63  ;;  %v2266_v18 = vadd.f32 %v2265_v45, %v9944_v25  ;;  %v9949_v63 = vld [vmem:[#allocation24_spill] sm:$0xff]  ;;  %v5998_v34 = vor.u32 %v6499_v16, %v5995_v29  ;;  %v9955_v29 = vld [vmem:[#allocation26_spill] sm:$0xff] }
 0x21f   :  { %2604 = vmatmul.bf16.gmra.mxu1 %v9947_v19 }
 0x220   :  { %v7198_v3 = vadd.f32 %v2481_v28, %v2409_v32  ;;  %v2339_v4 = vadd.f32 %v2338_v60, %v2266_v18  ;;  %2531 = vmatmul.bf16.gmra.mxu0 %v9946_v17  ;;  %v9950_v28 = vld [vmem:[#allocation83_spill] sm:$0xff]  ;;  %2867 = vmatpush.bf16.msrb.mxu1 %v5998_v34  ;;  %v9957_v34 = vld [vmem:[#allocation28_spill] sm:$0xff] }
 0x221   :  { %2750 = vmatmul.bf16.gmra.mxu3 %v9949_v63 }
 0x222   :  { %9945 = vst [vmem:[#allocation78_spill] sm:$0xff] %v7198_v3  ;;  %2677 = vmatmul.bf16.gmra.mxu2 %v9948_v44  ;;  %v9952_v3 = vld [vmem:[#allocation84_spill] sm:$0xff] }
 0x224   :  { %v2484_v45 = vpop.f32.mrf.mxu3  ;;  %v2340_v30 = vpop.f32.mrf.mxu1 }
 0x225   :  { %v2411_v26 = vpop.f32.mrf.mxu2  ;;  %v2267_v7 = vpop.f32.mrf.mxu0 }
 0x226   :  { %v2412_v25 = vadd.f32 %v2411_v26, %v2339_v4  ;;  %v2268_v32 = vadd.f32 %v2267_v7, %v9950_v28  ;;  %v9954_v4 = vld [vmem:[#allocation25_spill] sm:$0xff]  ;;  %v9956_v26 = vld [vmem:[#allocation27_spill] sm:$0xff] }
 0x228   :  { %v7205_v18 = vadd.f32 %v2484_v45, %v2412_v25  ;;  %v2341_v62 = vadd.f32 %v2340_v30, %v2268_v32  ;;  %v6527_v25 = vld [vmem:[#allocation7 + $0x644] sm:$0xf]  ;;  %v6107_v45 = vld [vmem:[#allocation7 + $0x650] sm:$0xf0] }
 0x229   :  { %v6110_v7 = vor.u32 %v6527_v25, %v6107_v45  ;;  %v5982_v25 = vor.u32 %v6495_v40, %v5979_v50  ;;  %v9963_v50 = vld [vmem:[#allocation32_spill] sm:$0xff] }
 0x22a   :  { %9951 = vst [vmem:[#allocation83_spill] sm:$0xff] %v7205_v18  ;;  %v6235_v18 = vld [vmem:[#allocation7 + $0x750] sm:$0xf0] }
 0x22b   :  { %2941 = vmatpush.bf16.msrb.mxu2 %v6110_v7  ;;  %2868 = vmatpush.bf16.msrb.mxu1 %v5982_v25 }
 0x22c   :  { %v2486_v46 = vpop.f32.mrf.mxu3  ;;  %v2343_v27 = vpop.f32.mrf.mxu1 }
 0x22d   :  { %v2413_v41 = vpop.f32.mrf.mxu2  ;;  %v2270_v60 = vpop.f32.mrf.mxu0 }
 0x22e   :  { %v2414_v21 = vadd.f32 %v2413_v41, %v2341_v62  ;;  %v2271_v61 = vadd.f32 %v2270_v60, %v9952_v3 }
 0x22f   :  { %2609 = vmatmul.bf16.gmra.mxu1 %v9955_v29 }
 0x230   :  { %v7208_v5 = vadd.f32 %v2486_v46, %v2414_v21  ;;  %v2344_v16 = vadd.f32 %v2343_v27, %v2271_v61  ;;  %2536 = vmatmul.bf16.gmra.mxu0 %v9954_v4  ;;  %v6463_v61 = vld [vmem:[#allocation7 + $0x444] sm:$0xf]  ;;  %v5851_v21 = vld [vmem:[#allocation7 + $0x450] sm:$0xf0]  ;;  %v6390_v4 = vld [vmem:[#allocation7 + $0x1f4] sm:$0xf0] }
 0x231   :  { %2755 = vmatmul.bf16.gmra.mxu3 %v9957_v34  ;;  %v6559_v46 = vld [vmem:[#allocation7 + $0x744] sm:$0xf]  ;;  %v5947_v34 = vld [vmem:[#allocation7 + $0x510] sm:$0xf0] }
 0x232   :  { %9953 = vst [vmem:[#allocation84_spill] sm:$0xff] %v7208_v5  ;;  %2682 = vmatmul.bf16.gmra.mxu2 %v9956_v26  ;;  %v5854_v5 = vor.u32 %v6463_v61, %v5851_v21  ;;  %v6238_v23 = vor.u32 %v6559_v46, %v6235_v18  ;;  %v9962_v61 = vld [vmem:[#allocation31_spill] sm:$0xff]  ;;  %v9973_v26 = vld [vmem:[#allocation41_spill] sm:$0xff] }
 0x234   :  { %v2489_v30 = vpop.f32.mrf.mxu3  ;;  %v2345_v41 = vpop.f32.mrf.mxu1  ;;  %2795 = vmatpush.bf16.msrb.mxu0 %v5854_v5  ;;  %3014 = vmatpush.bf16.msrb.mxu3 %v6238_v23 }
 0x235   :  { %v2416_v28 = vpop.f32.mrf.mxu2  ;;  %v2272_v62 = vpop.f32.mrf.mxu0 }
 0x236   :  { %v2417_v32 = vadd.f32 %v2416_v28, %v2344_v16  ;;  %v2273_v3 = vadd.f32 %v2272_v62, %v7051_v47 }
 0x238   :  { %v7215_v27 = vadd.f32 %v2489_v30, %v2417_v32  ;;  %v2346_v60 = vadd.f32 %v2345_v41, %v2273_v3  ;;  %v9960_v3 = vld [vmem:[#allocation29_spill] sm:$0xff]  ;;  %v9961_v41 = vld [vmem:[#allocation30_spill] sm:$0xff] }
 0x23a   :  { %9958 = vst [vmem:[#allocation114_spill] sm:$0xff] %v7215_v27  ;;  %v6491_v27 = vld [vmem:[#allocation7 + $0x524] sm:$0xf] }
 0x23c   :  { %v2491_v7 = vpop.f32.mrf.mxu3  ;;  %v2348_v32 = vpop.f32.mrf.mxu1 }
 0x23d   :  { %v2418_v16 = vpop.f32.mrf.mxu2  ;;  %v2275_v47 = vpop.f32.mrf.mxu0 }
 0x23e   :  { %v2419_v45 = vadd.f32 %v2418_v16, %v2346_v60  ;;  %v2276_v28 = vadd.f32 %v2275_v47, %v7057_v31  ;;  %v6595_v31 = vld [vmem:[%s9418_s2] sm:$0xf] }
 0x23f   :  { %2614 = vmatmul.bf16.gmra.mxu1 %v9961_v41  ;;  %v7229_v60 = vperm.slane %v6595_v31, 1  ;;  %v6203_v41 = vld [vmem:[#allocation7 + $0x710] sm:$0xf0] }
 0x240   :  { %v7218_v30 = vadd.f32 %v2491_v7, %v2419_v45  ;;  %v2349_v62 = vadd.f32 %v2348_v32, %v2276_v28  ;;  %2541 = vmatmul.bf16.gmra.mxu0 %v9960_v3  ;;  %v6523_v28 = vld [vmem:[#allocation7 + $0x624] sm:$0xf]  ;;  %v6091_v32 = vld [vmem:[#allocation7 + $0x630] sm:$0xf0] }
 0x241   :  { %2760 = vmatmul.bf16.gmra.mxu3 %v9963_v50  ;;  %v5963_v50 = vld [vmem:[#allocation7 + $0x530] sm:$0xf0] }
 0x242   :  { %9959 = vst [vmem:[#allocation115_spill] sm:$0xff] %v7218_v30  ;;  %2687 = vmatmul.bf16.gmra.mxu2 %v9962_v61  ;;  %v9967_v30 = vld [vmem:[#allocation35_spill] sm:$0xff] }
 0x244   :  { %v2494_v5 = vpop.f32.mrf.mxu3  ;;  %v2350_v21 = vpop.f32.mrf.mxu1 }
 0x245   :  { %v2421_v23 = vpop.f32.mrf.mxu2  ;;  %v2277_v18 = vpop.f32.mrf.mxu0  ;;  %v6555_v21 = vld [vmem:[#allocation7 + $0x724] sm:$0xf] }
 0x246   :  { %v2422_v40 = vadd.f32 %v2421_v23, %v2349_v62  ;;  %v9965_v23 = vld [vmem:[#allocation33_spill] sm:$0xff]  ;;  %v6094_v18 = vor.u32 %v6523_v28, %v6091_v32 }
 0x248   :  { %v7224_v46 = vadd.f32 %v2494_v5, %v2422_v40  ;;  %v6459_v40 = vld [vmem:[#allocation7 + $0x424] sm:$0xf]  ;;  %v5835_v5 = vld [vmem:[#allocation7 + $0x430] sm:$0xf0]  ;;  %2942 = vmatpush.bf16.msrb.mxu2 %v6094_v18 }
 0x249   :  { %v5838_v31 = vor.u32 %v6459_v40, %v5835_v5 }
 0x24a   :  { %9964 = vst [vmem:[#allocation116_spill] sm:$0xff] %v7224_v46  ;;  %v9966_v46 = vld [vmem:[#allocation34_spill] sm:$0xff] }
 0x24b   :  { %2796 = vmatpush.bf16.msrb.mxu0 %v5838_v31 }
 0x24c   :  { %v2496_v16 = vpop.f32.mrf.mxu3  ;;  %v2580_v47 = vpop.f32.mrf.mxu1 }
 0x24d   :  { %v2423_v25 = vpop.f32.mrf.mxu2  ;;  %v2507_v45 = vpop.f32.mrf.mxu0  ;;  %v9968_v16 = vld [vmem:[#allocation36_spill] sm:$0xff] }
 0x24e   :  { %v2508_v7 = vadd.f32 %v2507_v45, %v7229_v60  ;;  %v6219_v25 = vld [vmem:[#allocation7 + $0x730] sm:$0xf0] }
 0x24f   :  { %2619 = vmatmul.bf16.gmra.mxu1 %v9966_v46  ;;  %v6222_v45 = vor.u32 %v6555_v21, %v6219_v25 }
 0x250   :  { %v2581_v62 = vadd.f32 %v2580_v47, %v2508_v7  ;;  %2546 = vmatmul.bf16.gmra.mxu0 %v9965_v23  ;;  %v5966_v7 = vor.u32 %v6491_v27, %v5963_v50 }
 0x251   :  { %2765 = vmatmul.bf16.gmra.mxu3 %v9968_v16 }
 0x252   :  { %2692 = vmatmul.bf16.gmra.mxu2 %v9967_v30  ;;  %3015 = vmatpush.bf16.msrb.mxu3 %v6222_v45  ;;  %v9970_v45 = vld [vmem:[#allocation38_spill] sm:$0xff] }
 0x253   :  { %2869 = vmatpush.bf16.msrb.mxu1 %v5966_v7  ;;  %v9971_v7 = vld [vmem:[#allocation39_spill] sm:$0xff] }
 0x254   :  { %v2726_v32 = vpop.f32.mrf.mxu3  ;;  %v2582_v61 = vpop.f32.mrf.mxu1 }
 0x255   :  { %v2653_v47 = vpop.f32.mrf.mxu2  ;;  %v2509_v23 = vpop.f32.mrf.mxu0 }
 0x256   :  { %v2654_v28 = vadd.f32 %v2653_v47, %v2581_v62  ;;  %v2510_v46 = vadd.f32 %v2509_v23, %v7229_v60  ;;  %v9969_v62 = vld [vmem:[#allocation37_spill] sm:$0xff]  ;;  %v9972_v23 = vld [vmem:[#allocation40_spill] sm:$0xff] }
 0x258   :  { %v7237_v30 = vadd.f32 %v2726_v32, %v2654_v28  ;;  %v2583_v40 = vadd.f32 %v2582_v61, %v2510_v46 }
 0x25c   :  { %v2728_v18 = vpop.f32.mrf.mxu3  ;;  %v2585_v31 = vpop.f32.mrf.mxu1 }
 0x25d   :  { %v2655_v5 = vpop.f32.mrf.mxu2  ;;  %v2512_v21 = vpop.f32.mrf.mxu0 }
 0x25e   :  { %v2656_v16 = vadd.f32 %v2655_v5, %v2583_v40  ;;  %v2513_v25 = vadd.f32 %v2512_v21, %v7229_v60  ;;  %v6075_v21 = vld [vmem:[#allocation7 + $0x610] sm:$0xf0] }
 0x25f   :  { %2624 = vmatmul.bf16.gmra.mxu1 %v9970_v45  ;;  %v6551_v45 = vld [vmem:[#allocation7 + $0x704] sm:$0xf] }
 0x260   :  { %v7240_v27 = vadd.f32 %v2728_v18, %v2656_v16  ;;  %v2586_v50 = vadd.f32 %v2585_v31, %v2513_v25  ;;  %2551 = vmatmul.bf16.gmra.mxu0 %v9969_v62  ;;  %v6519_v18 = vld [vmem:[#allocation7 + $0x604] sm:$0xf]  ;;  %v5819_v62 = vld [vmem:[#allocation7 + $0x410] sm:$0xf0]  ;;  %v6206_v3 = vor.u32 %v6551_v45, %v6203_v41  ;;  %v9974_v41 = vld [vmem:[#allocation42_spill] sm:$0xff] }
 0x261   :  { %2770 = vmatmul.bf16.gmra.mxu3 %v9972_v23  ;;  %v6455_v25 = vld [vmem:[#allocation7 + $0x404] sm:$0xf]  ;;  %v6078_v31 = vor.u32 %v6519_v18, %v6075_v21 }
 0x262   :  { %2697 = vmatmul.bf16.gmra.mxu2 %v9971_v7  ;;  %v5822_v7 = vor.u32 %v6455_v25, %v5819_v62  ;;  %v6487_v23 = vld [vmem:[#allocation7 + $0x504] sm:$0xf]  ;;  %3016 = vmatpush.bf16.msrb.mxu3 %v6206_v3  ;;  %v9975_v62 = vld [vmem:[#allocation43_spill] sm:$0xff] }
 0x263   :  { %2943 = vmatpush.bf16.msrb.mxu2 %v6078_v31 }
 0x264   :  { %v2731_v46 = vpop.f32.mrf.mxu3  ;;  %v2587_v40 = vpop.f32.mrf.mxu1  ;;  %2797 = vmatpush.bf16.msrb.mxu0 %v5822_v7 }
 0x265   :  { %v2658_v47 = vpop.f32.mrf.mxu2  ;;  %v2514_v28 = vpop.f32.mrf.mxu0 }
 0x266   :  { %v2659_v61 = vadd.f32 %v2658_v47, %v2586_v50  ;;  %v2515_v32 = vadd.f32 %v2514_v28, %v7229_v60  ;;  %v5950_v50 = vor.u32 %v6487_v23, %v5947_v34  ;;  %v9976_v34 = vld [vmem:[#allocation44_spill] sm:$0xff] }
 0x268   :  { %v7247_v5 = vadd.f32 %v2731_v46, %v2659_v61  ;;  %v2588_v16 = vadd.f32 %v2587_v40, %v2515_v32  ;;  %2870 = vmatpush.bf16.msrb.mxu1 %v5950_v50 }
 0x26c   :  { %v2733_v61 = vpop.f32.mrf.mxu3  ;;  %v2590_v40 = vpop.f32.mrf.mxu1 }
 0x26d   :  { %v2660_v47 = vpop.f32.mrf.mxu2  ;;  %v2517_v46 = vpop.f32.mrf.mxu0 }
 0x26e   :  { %v2661_v28 = vadd.f32 %v2660_v47, %v2588_v16  ;;  %v2518_v32 = vadd.f32 %v2517_v46, %v7229_v60 }
 0x26f   :  { %2629 = vmatmul.bf16.gmra.mxu1 %v9974_v41  ;;  %v9977_v41 = vld [vmem:[#allocation45_spill] sm:$0xff] }
 0x270   :  { %v7250_v18 = vadd.f32 %v2733_v61, %v2661_v28  ;;  %v2591_v21 = vadd.f32 %v2590_v40, %v2518_v32  ;;  %2556 = vmatmul.bf16.gmra.mxu0 %v9973_v26  ;;  %v6454_v26 = vld [vmem:[#allocation7 + $0x3f4] sm:$0xf0] }
 0x271   :  { %2775 = vmatmul.bf16.gmra.mxu3 %v9976_v34 }
 0x272   :  { %2702 = vmatmul.bf16.gmra.mxu2 %v9975_v62 }
 0x274   :  { %v2736_v7 = vpop.f32.mrf.mxu3  ;;  %v2592_v25 = vpop.f32.mrf.mxu1 }
 0x275   :  { %v2663_v45 = vpop.f32.mrf.mxu2  ;;  %v2519_v23 = vpop.f32.mrf.mxu0 }
 0x276   :  { %v2664_v3 = vadd.f32 %v2663_v45, %v2591_v21  ;;  %v2520_v16 = vadd.f32 %v2519_v23, %v7229_v60  ;;  %v9978_v21 = vld [vmem:[#allocation46_spill] sm:$0xff]  ;;  %v9979_v45 = vld [vmem:[#allocation47_spill] sm:$0xff]  ;;  %v9980_v23 = vld [vmem:[#allocation48_spill] sm:$0xff] }
 0x278   :  { %v7257_v31 = vadd.f32 %v2736_v7, %v2664_v3  ;;  %v2593_v50 = vadd.f32 %v2592_v25, %v2520_v16  ;;  %v5681_v3 = vld [vmem:[#allocation7 + $0x2e8] sm:$0xf]  ;;  %v6422_v7 = vld [vmem:[#allocation7 + $0x2f4] sm:$0xf0] }
 0x279   :  { %v5425_v16 = vld [vmem:[#allocation7 + $0xe8] sm:$0xf]  ;;  %v5682_v25 = vor.u32 %v6422_v7, %v5681_v3 }
 0x27b   :  { %3228 = vmatpush.bf16.msra.mxu2 %v5682_v25 }
 0x27c   :  { %v2738_v61 = vpop.f32.mrf.mxu3  ;;  %v2595_v40 = vpop.f32.mrf.mxu1 }
 0x27d   :  { %v2665_v47 = vpop.f32.mrf.mxu2  ;;  %v2522_v46 = vpop.f32.mrf.mxu0 }
 0x27e   :  { %v2666_v28 = vadd.f32 %v2665_v47, %v2593_v50  ;;  %v2523_v32 = vadd.f32 %v2522_v46, %v7229_v60  ;;  %v6358_v50 = vld [vmem:[#allocation7 + $0xf4] sm:$0xf0]  ;;  %v5809_v47 = vld [vmem:[#allocation7 + $0x3e8] sm:$0xf] }
 0x27f   :  { %2634 = vmatmul.bf16.gmra.mxu1 %v9978_v21  ;;  %v5426_v29 = vor.u32 %v6358_v50, %v5425_v16 }
 0x280   :  { %v7260_v62 = vadd.f32 %v2738_v61, %v2666_v28  ;;  %v2596_v34 = vadd.f32 %v2595_v40, %v2523_v32  ;;  %2561 = vmatmul.bf16.gmra.mxu0 %v9977_v41  ;;  %v5810_v28 = vor.u32 %v6454_v26, %v5809_v47 }
 0x281   :  { %2780 = vmatmul.bf16.gmra.mxu3 %v9980_v23  ;;  %3082 = vmatpush.bf16.msra.mxu0 %v5426_v29  ;;  %v9982_v29 = vld [vmem:[#allocation50_spill] sm:$0xff] }
 0x282   :  { %2707 = vmatmul.bf16.gmra.mxu2 %v9979_v45  ;;  %3301 = vmatpush.bf16.msra.mxu3 %v5810_v28  ;;  %v5553_v45 = vld [vmem:[#allocation7 + $0x1e8] sm:$0xf]  ;;  %v9983_v28 = vld [vmem:[#allocation51_spill] sm:$0xff] }
 0x283   :  { %v5554_v7 = vor.u32 %v6390_v4, %v5553_v45 }
 0x284   :  { %v2741_v32 = vpop.f32.mrf.mxu3  ;;  %v2597_v41 = vpop.f32.mrf.mxu1 }
 0x285   :  { %v2668_v46 = vpop.f32.mrf.mxu2  ;;  %v2524_v40 = vpop.f32.mrf.mxu0  ;;  %3155 = vmatpush.bf16.msra.mxu1 %v5554_v7  ;;  %v6418_v7 = vld [vmem:[#allocation7 + $0x2d4] sm:$0xf0] }
 0x286   :  { %v2669_v61 = vadd.f32 %v2668_v46, %v2596_v34  ;;  %v2525_v21 = vadd.f32 %v2524_v40, %v7229_v60  ;;  %v9981_v46 = vld [vmem:[#allocation49_spill] sm:$0xff] }
 0x288   :  { %v7267_v23 = vadd.f32 %v2741_v32, %v2669_v61  ;;  %v2598_v3 = vadd.f32 %v2597_v41, %v2525_v21  ;;  %v9984_v61 = vld [vmem:[#allocation52_spill] sm:$0xff] }
 0x28c   :  { %v2743_v16 = vpop.f32.mrf.mxu3  ;;  %v2600_v50 = vpop.f32.mrf.mxu1 }
 0x28d   :  { %v2670_v63 = vpop.f32.mrf.mxu2  ;;  %v2527_v26 = vpop.f32.mrf.mxu0 }
 0x28e   :  { %v2671_v44 = vadd.f32 %v2670_v63, %v2598_v3  ;;  %v2528_v34 = vadd.f32 %v2527_v26, %v7229_v60  ;;  %v5665_v3 = vld [vmem:[#allocation7 + $0x2c8] sm:$0xf] }
 0x28f   :  { %2639 = vmatmul.bf16.gmra.mxu1 %v9982_v29 }
 0x290   :  { %v7270_v25 = vadd.f32 %v2743_v16, %v2671_v44  ;;  %v2601_v47 = vadd.f32 %v2600_v50, %v2528_v34  ;;  %2566 = vmatmul.bf16.gmra.mxu0 %v9981_v46  ;;  %v5666_v16 = vor.u32 %v6418_v7, %v5665_v3  ;;  %v6354_v46 = vld [vmem:[#allocation7 + $0xd4] sm:$0xf0]  ;;  %v9986_v7 = vld [vmem:[#allocation54_spill] sm:$0xff] }
 0x291   :  { %2785 = vmatmul.bf16.gmra.mxu3 %v9984_v61  ;;  %v6386_v3 = vld [vmem:[#allocation7 + $0x1d4] sm:$0xf0] }
 0x292   :  { %2712 = vmatmul.bf16.gmra.mxu2 %v9983_v28 }
 0x293   :  { %3229 = vmatpush.bf16.msra.mxu2 %v5666_v16 }
 0x294   :  { %v2746_v21 = vpop.f32.mrf.mxu3  ;;  %v2602_v32 = vpop.f32.mrf.mxu1 }
 0x295   :  { %v2673_v4 = vpop.f32.mrf.mxu2  ;;  %v2529_v63 = vpop.f32.mrf.mxu0 }
 0x296   :  { %v2674_v41 = vadd.f32 %v2673_v4, %v2601_v47  ;;  %v2530_v45 = vadd.f32 %v2529_v63, %v7229_v60  ;;  %v5409_v4 = vld [vmem:[#allocation7 + $0xc8] sm:$0xf] }
 0x297   :  { %v5793_v63 = vld [vmem:[#allocation7 + $0x3c8] sm:$0xf] }
 0x298   :  { %v7277_v40 = vadd.f32 %v2746_v21, %v2674_v41  ;;  %v2603_v44 = vadd.f32 %v2602_v32, %v2530_v45  ;;  %v9985_v41 = vld [vmem:[#allocation53_spill] sm:$0xff]  ;;  %v5410_v21 = vor.u32 %v6354_v46, %v5409_v4  ;;  %v6450_v45 = vld [vmem:[#allocation7 + $0x3d4] sm:$0xf0] }
 0x299   :  { %v5537_v32 = vld [vmem:[#allocation7 + $0x1c8] sm:$0xf]  ;;  %v5794_v16 = vor.u32 %v6450_v45, %v5793_v63 }
 0x29a   :  { %3083 = vmatpush.bf16.msra.mxu0 %v5410_v21 }
 0x29b   :  { %3302 = vmatpush.bf16.msra.mxu3 %v5794_v16  ;;  %v9989_v16 = vld [vmem:[#allocation57_spill] sm:$0xff] }
 0x29c   :  { %v2748_v50 = vpop.f32.mrf.mxu3  ;;  %v2605_v29 = vpop.f32.mrf.mxu1 }
 0x29d   :  { %v2675_v26 = vpop.f32.mrf.mxu2  ;;  %v2532_v28 = vpop.f32.mrf.mxu0 }
 0x29e   :  { %v2676_v34 = vadd.f32 %v2675_v26, %v2603_v44  ;;  %v2533_v61 = vadd.f32 %v2532_v28, %v7229_v60  ;;  %v9987_v44 = vld [vmem:[#allocation55_spill] sm:$0xff]  ;;  %v5538_v26 = vor.u32 %v6386_v3, %v5537_v32  ;;  %v9988_v28 = vld [vmem:[#allocation56_spill] sm:$0xff] }
 0x29f   :  { %2871 = vmatmul.bf16.vlgmr.msrb.gmra.mxu1 %v9986_v7 }
 0x2a0   :  { %v7280_v47 = vadd.f32 %v2748_v50, %v2676_v34  ;;  %v2606_v19 = vadd.f32 %v2605_v29, %v2533_v61  ;;  %2798 = vmatmul.bf16.vlgmr.msrb.gmra.mxu0 %v9985_v41  ;;  %3156 = vmatpush.bf16.msra.mxu1 %v5538_v26  ;;  %v9991_v26 = vld [vmem:[#allocation59_spill] sm:$0xff] }
 0x2a1   :  { %3017 = vmatmul.bf16.vlgmr.msrb.gmra.mxu3 %v9988_v28 }
 0x2a2   :  { %2944 = vmatmul.bf16.vlgmr.msrb.gmra.mxu2 %v9987_v44 }
 0x2a4   :  { %v2751_v29 = vpop.f32.mrf.mxu3  ;;  %v2607_v4 = vpop.f32.mrf.mxu1 }
 0x2a5   :  { %v2678_v34 = vpop.f32.mrf.mxu2  ;;  %v2534_v61 = vpop.f32.mrf.mxu0 }
 0x2a6   :  { %v2679_v50 = vadd.f32 %v2678_v34, %v2606_v19  ;;  %v2535_v46 = vadd.f32 %v2534_v61, %v7229_v60  ;;  %v9990_v19 = vld [vmem:[#allocation58_spill] sm:$0xff]  ;;  %v9992_v34 = vld [vmem:[#allocation60_spill] sm:$0xff] }
 0x2a8   :  { %v7287_v41 = vadd.f32 %v2751_v29, %v2679_v50  ;;  %v2608_v17 = vadd.f32 %v2607_v4, %v2535_v46 }
 0x2ac   :  { %v2753_v44 = vpop.f32.mrf.mxu3  ;;  %v2610_v32 = vpop.f32.mrf.mxu1 }
 0x2ad   :  { %v2680_v7 = vpop.f32.mrf.mxu2  ;;  %v2537_v63 = vpop.f32.mrf.mxu0 }
 0x2ae   :  { %v2681_v49 = vadd.f32 %v2680_v7, %v2608_v17  ;;  %v2538_v45 = vadd.f32 %v2537_v63, %v7229_v60 }
 0x2af   :  { %2876 = vmatmul.bf16.gmra.mxu1 %v9990_v19  ;;  %v5777_v19 = vld [vmem:[#allocation7 + $0x3a8] sm:$0xf] }
 0x2b0   :  { %v7290_v21 = vadd.f32 %v2753_v44, %v2681_v49  ;;  %v2611_v3 = vadd.f32 %v2610_v32, %v2538_v45  ;;  %2803 = vmatmul.bf16.gmra.mxu0 %v9989_v16  ;;  %v5649_v49 = vld [vmem:[#allocation7 + $0x2a8] sm:$0xf]  ;;  %v6414_v44 = vld [vmem:[#allocation7 + $0x2b4] sm:$0xf0] }
 0x2b1   :  { %3022 = vmatmul.bf16.gmra.mxu3 %v9992_v34  ;;  %v5650_v45 = vor.u32 %v6414_v44, %v5649_v49  ;;  %v5393_v32 = vld [vmem:[#allocation7 + $0xa8] sm:$0xf]  ;;  %v6350_v16 = vld [vmem:[#allocation7 + $0xb4] sm:$0xf0] }
 0x2b2   :  { %2949 = vmatmul.bf16.gmra.mxu2 %v9991_v26  ;;  %v5394_v28 = vor.u32 %v6350_v16, %v5393_v32  ;;  %v6446_v26 = vld [vmem:[#allocation7 + $0x3b4] sm:$0xf0]  ;;  %v9993_v16 = vld [vmem:[#allocation61_spill] sm:$0xff]  ;;  %v9994_v32 = vld [vmem:[#allocation62_spill] sm:$0xff] }
 0x2b3   :  { %v6382_v34 = vld [vmem:[#allocation7 + $0x1b4] sm:$0xf0]  ;;  %3230 = vmatpush.bf16.msra.mxu2 %v5650_v45 }
 0x2b4   :  { %v2756_v61 = vpop.f32.mrf.mxu3  ;;  %v2612_v46 = vpop.f32.mrf.mxu1  ;;  %3084 = vmatpush.bf16.msra.mxu0 %v5394_v28  ;;  %v9995_v45 = vld [vmem:[#allocation63_spill] sm:$0xff] }
 0x2b5   :  { %v2683_v50 = vpop.f32.mrf.mxu2  ;;  %v2539_v17 = vpop.f32.mrf.mxu0 }
 0x2b6   :  { %v2684_v29 = vadd.f32 %v2683_v50, %v2611_v3  ;;  %v2540_v7 = vadd.f32 %v2539_v17, %v7229_v60  ;;  %v5778_v3 = vor.u32 %v6446_v26, %v5777_v19  ;;  %v5522_v50 = vor.u32 %v6382_v34, %v5521_v51  ;;  %v9996_v51 = vld [vmem:[#allocation64_spill] sm:$0xff] }
 0x2b8   :  { %v7297_v4 = vadd.f32 %v2756_v61, %v2684_v29  ;;  %v2613_v63 = vadd.f32 %v2612_v46, %v2540_v7  ;;  %3303 = vmatpush.bf16.msra.mxu3 %v5778_v3  ;;  %3157 = vmatpush.bf16.msra.mxu1 %v5522_v50 }
 0x2bc   :  { %v2758_v61 = vpop.f32.mrf.mxu3  ;;  %v2615_v46 = vpop.f32.mrf.mxu1 }
 0x2bd   :  { %v2685_v8 = vpop.f32.mrf.mxu2  ;;  %v2542_v17 = vpop.f32.mrf.mxu0 }
 0x2be   :  { %v2686_v29 = vadd.f32 %v2685_v8, %v2613_v63  ;;  %v2543_v7 = vadd.f32 %v2542_v17, %v7229_v60 }
 0x2bf   :  { %2881 = vmatmul.bf16.gmra.mxu1 %v9994_v32 }
 0x2c0   :  { %v7300_v49 = vadd.f32 %v2758_v61, %v2686_v29  ;;  %v2616_v44 = vadd.f32 %v2615_v46, %v2543_v7  ;;  %2808 = vmatmul.bf16.gmra.mxu0 %v9993_v16  ;;  %v9997_v16 = vld [vmem:[#allocation65_spill] sm:$0xff] }
 0x2c1   :  { %3027 = vmatmul.bf16.gmra.mxu3 %v9996_v51 }
 0x2c2   :  { %2954 = vmatmul.bf16.gmra.mxu2 %v9995_v45 }
 0x2c4   :  { %v2761_v26 = vpop.f32.mrf.mxu3  ;;  %v2617_v63 = vpop.f32.mrf.mxu1 }
 0x2c5   :  { %v2688_v28 = vpop.f32.mrf.mxu2  ;;  %v2544_v8 = vpop.f32.mrf.mxu0 }
 0x2c6   :  { %v2689_v19 = vadd.f32 %v2688_v28, %v2616_v44  ;;  %v2545_v34 = vadd.f32 %v2544_v8, %v7229_v60  ;;  %v5633_v44 = vld [vmem:[#allocation7 + $0x288] sm:$0xf]  ;;  %v6410_v28 = vld [vmem:[#allocation7 + $0x294] sm:$0xf0] }
 0x2c7   :  { %v9999_v8 = vld [vmem:[#allocation67_spill] sm:$0xff] }
 0x2c8   :  { %v7307_v3 = vadd.f32 %v2761_v26, %v2689_v19  ;;  %v2618_v50 = vadd.f32 %v2617_v63, %v2545_v34  ;;  %v5634_v19 = vor.u32 %v6410_v28, %v5633_v44  ;;  %v10000_v26 = vld [vmem:[#allocation68_spill] sm:$0xff]  ;;  %v5377_v34 = vld [vmem:[#allocation7 + $0x88] sm:$0xf] }
 0x2c9   :  { %v6346_v63 = vld [vmem:[#allocation7 + $0x94] sm:$0xf0] }
 0x2ca   :  { %3231 = vmatpush.bf16.msra.mxu2 %v5634_v19 }
 0x2cc   :  { %v2763_v17 = vpop.f32.mrf.mxu3  ;;  %v2620_v32 = vpop.f32.mrf.mxu1 }
 0x2cd   :  { %v2690_v29 = vpop.f32.mrf.mxu2  ;;  %v2547_v7 = vpop.f32.mrf.mxu0 }
 0x2ce   :  { %v2691_v61 = vadd.f32 %v2690_v29, %v2618_v50  ;;  %v2548_v46 = vadd.f32 %v2547_v7, %v7229_v60  ;;  %v5761_v50 = vld [vmem:[#allocation7 + $0x388] sm:$0xf]  ;;  %v5378_v29 = vor.u32 %v6346_v63, %v5377_v34  ;;  %v6442_v7 = vld [vmem:[#allocation7 + $0x394] sm:$0xf0] }
 0x2cf   :  { %2886 = vmatmul.bf16.gmra.mxu1 %v9998_v33 }
 0x2d0   :  { %v7310_v45 = vadd.f32 %v2763_v17, %v2691_v61  ;;  %v2621_v51 = vadd.f32 %v2620_v32, %v2548_v46  ;;  %2813 = vmatmul.bf16.gmra.mxu0 %v9997_v16  ;;  %v5505_v61 = vld [vmem:[#allocation7 + $0x188] sm:$0xf]  ;;  %v6378_v17 = vld [vmem:[#allocation7 + $0x194] sm:$0xf0]  ;;  %v5762_v46 = vor.u32 %v6442_v7, %v5761_v50 }
 0x2d1   :  { %3032 = vmatmul.bf16.gmra.mxu3 %v10000_v26  ;;  %v5506_v16 = vor.u32 %v6378_v17, %v5505_v61  ;;  %3085 = vmatpush.bf16.msra.mxu0 %v5378_v29  ;;  %v10003_v61 = vld [vmem:[#allocation69_spill] sm:$0xff]  ;;  %v10004_v29 = vld [vmem:[#allocation70_spill] sm:$0xff] }
 0x2d2   :  { %2959 = vmatmul.bf16.gmra.mxu2 %v9999_v8  ;;  %3304 = vmatpush.bf16.msra.mxu3 %v5762_v46 }
 0x2d3   :  { %3158 = vmatpush.bf16.msra.mxu1 %v5506_v16  ;;  %v10006_v16 = vld [vmem:[#allocation72_spill] sm:$0xff] }
 0x2d4   :  { %v2766_v56 = vpop.f32.mrf.mxu3  ;;  %v2622_v44 = vpop.f32.mrf.mxu1 }
 0x2d5   :  { %v2693_v32 = vpop.f32.mrf.mxu2  ;;  %v2549_v55 = vpop.f32.mrf.mxu0 }
 0x2d6   :  { %v2694_v58 = vadd.f32 %v2693_v32, %v2621_v51  ;;  %v2550_v8 = vadd.f32 %v2549_v55, %v7229_v60  ;;  %v10005_v55 = vld [vmem:[#allocation71_spill] sm:$0xff] }
 0x2d8   :  { %v7317_v28 = vadd.f32 %v2766_v56, %v2694_v58  ;;  %v2623_v26 = vadd.f32 %v2622_v44, %v2550_v8  ;;  %v5617_v44 = vld [vmem:[#allocation7 + $0x268] sm:$0xf] }
 0x2da   :  { %10001 = vst [vmem:[#allocation117_spill] sm:$0xff] %v7317_v28 }
 0x2dc   :  { %v2768_v63 = vpop.f32.mrf.mxu3  ;;  %v2625_v50 = vpop.f32.mrf.mxu1 }
 0x2dd   :  { %v2695_v19 = vpop.f32.mrf.mxu2  ;;  %v2552_v33 = vpop.f32.mrf.mxu0 }
 0x2de   :  { %v2696_v34 = vadd.f32 %v2695_v19, %v2623_v26  ;;  %v2553_v52 = vadd.f32 %v2552_v33, %v7229_v60  ;;  %v5361_v19 = vld [vmem:[#allocation7 + $0x68] sm:$0xf] }
 0x2df   :  { %2891 = vmatmul.bf16.gmra.mxu1 %v10004_v29  ;;  %v6438_v29 = vld [vmem:[#allocation7 + $0x374] sm:$0xf0] }
 0x2e0   :  { %v7320_v7 = vadd.f32 %v2768_v63, %v2696_v34  ;;  %v2626_v51 = vadd.f32 %v2625_v50, %v2553_v52  ;;  %2818 = vmatmul.bf16.gmra.mxu0 %v10003_v61  ;;  %v6406_v52 = vld [vmem:[#allocation7 + $0x274] sm:$0xf0]  ;;  %v5745_v50 = vld [vmem:[#allocation7 + $0x368] sm:$0xf] }
 0x2e1   :  { %3037 = vmatmul.bf16.gmra.mxu3 %v10006_v16  ;;  %v5618_v34 = vor.u32 %v6406_v52, %v5617_v44  ;;  %v6342_v63 = vld [vmem:[#allocation7 + $0x74] sm:$0xf0]  ;;  %v5746_v61 = vor.u32 %v6438_v29, %v5745_v50  ;;  %v10009_v52 = vld [vmem:[#allocation73_spill] sm:$0xff] }
 0x2e2   :  { %10002 = vst [vmem:[#allocation118_spill] sm:$0xff] %v7320_v7  ;;  %2964 = vmatmul.bf16.gmra.mxu2 %v10005_v55  ;;  %v5362_v55 = vor.u32 %v6342_v63, %v5361_v19  ;;  %v10010_v19 = vld [vmem:[#allocation74_spill] sm:$0xff]  ;;  %v10011_v29 = vld [vmem:[#allocation75_spill] sm:$0xff] }
 0x2e3   :  { %3232 = vmatpush.bf16.msra.mxu2 %v5618_v34  ;;  %3305 = vmatpush.bf16.msra.mxu3 %v5746_v61 }
 0x2e4   :  { %v2771_v8 = vpop.f32.mrf.mxu3  ;;  %v2627_v32 = vpop.f32.mrf.mxu1  ;;  %3086 = vmatpush.bf16.msra.mxu0 %v5362_v55  ;;  %v10012_v55 = vld [vmem:[#allocation76_spill] sm:$0xff] }
 0x2e5   :  { %v2698_v56 = vpop.f32.mrf.mxu2  ;;  %v2554_v26 = vpop.f32.mrf.mxu0 }
 0x2e6   :  { %v2699_v58 = vadd.f32 %v2698_v56, %v2626_v51  ;;  %v2555_v17 = vadd.f32 %v2554_v26, %v7229_v60 }
 0x2e8   :  { %v7327_v33 = vadd.f32 %v2771_v8, %v2699_v58  ;;  %v2628_v46 = vadd.f32 %v2627_v32, %v2555_v17  ;;  %v5489_v32 = vld [vmem:[#allocation7 + $0x168] sm:$0xf] }
 0x2ea   :  { %10007 = vst [vmem:[#allocation119_spill] sm:$0xff] %v7327_v33  ;;  %v6374_v33 = vld [vmem:[#allocation7 + $0x174] sm:$0xf0] }
 0x2eb   :  { %v5490_v7 = vor.u32 %v6374_v33, %v5489_v32 }
 0x2ec   :  { %v2773_v56 = vpop.f32.mrf.mxu3  ;;  %v2630_v8 = vpop.f32.mrf.mxu1 }
 0x2ed   :  { %v2700_v16 = vpop.f32.mrf.mxu2  ;;  %v2557_v26 = vpop.f32.mrf.mxu0  ;;  %3159 = vmatpush.bf16.msra.mxu1 %v5490_v7 }
 0x2ee   :  { %v2701_v51 = vadd.f32 %v2700_v16, %v2628_v46  ;;  %v2558_v58 = vadd.f32 %v2557_v26, %v7229_v60 }
 0x2ef   :  { %2896 = vmatmul.bf16.gmra.mxu1 %v10010_v19 }
 0x2f0   :  { %v7330_v17 = vadd.f32 %v2773_v56, %v2701_v51  ;;  %v2631_v44 = vadd.f32 %v2630_v8, %v2558_v58  ;;  %2823 = vmatmul.bf16.gmra.mxu0 %v10009_v52 }
 0x2f1   :  { %3042 = vmatmul.bf16.gmra.mxu3 %v10012_v55  ;;  %v10015_v55 = vld [vmem:[#allocation79_spill] sm:$0xff] }
 0x2f2   :  { %10008 = vst [vmem:[#allocation120_spill] sm:$0xff] %v7330_v17  ;;  %2969 = vmatmul.bf16.gmra.mxu2 %v10011_v29  ;;  %v6370_v17 = vld [vmem:[#allocation7 + $0x154] sm:$0xf0] }
 0x2f4   :  { %v2776_v46 = vpop.f32.mrf.mxu3  ;;  %v2632_v50 = vpop.f32.mrf.mxu1 }
 0x2f5   :  { %v2703_v61 = vpop.f32.mrf.mxu2  ;;  %v2559_v34 = vpop.f32.mrf.mxu0 }
 0x2f6   :  { %v2704_v16 = vadd.f32 %v2703_v61, %v2631_v44  ;;  %v2560_v63 = vadd.f32 %v2559_v34, %v7229_v60  ;;  %v10016_v44 = vld [vmem:[#allocation80_spill] sm:$0xff]  ;;  %v10017_v61 = vld [vmem:[#allocation81_spill] sm:$0xff]  ;;  %v10018_v34 = vld [vmem:[#allocation82_spill] sm:$0xff] }
 0x2f8   :  { %v7337_v51 = vadd.f32 %v2776_v46, %v2704_v16  ;;  %v2633_v56 = vadd.f32 %v2632_v50, %v2560_v63  ;;  %v5601_v16 = vld [vmem:[#allocation7 + $0x248] sm:$0xf]  ;;  %v6402_v46 = vld [vmem:[#allocation7 + $0x254] sm:$0xf0] }
 0x2f9   :  { %v5602_v63 = vor.u32 %v6402_v46, %v5601_v16 }
 0x2fa   :  { %10013 = vst [vmem:[#allocation121_spill] sm:$0xff] %v7337_v51  ;;  %v5473_v51 = vld [vmem:[#allocation7 + $0x148] sm:$0xf] }
 0x2fb   :  { %3233 = vmatpush.bf16.msra.mxu2 %v5602_v63  ;;  %v5474_v28 = vor.u32 %v6370_v17, %v5473_v51 }
 0x2fc   :  { %v2778_v33 = vpop.f32.mrf.mxu3  ;;  %v2635_v29 = vpop.f32.mrf.mxu1 }
 0x2fd   :  { %v2705_v26 = vpop.f32.mrf.mxu2  ;;  %v2562_v8 = vpop.f32.mrf.mxu0  ;;  %3160 = vmatpush.bf16.msra.mxu1 %v5474_v28 }
 0x2fe   :  { %v2706_v58 = vadd.f32 %v2705_v26, %v2633_v56  ;;  %v2563_v32 = vadd.f32 %v2562_v8, %v7229_v60 }
 0x2ff   :  { %2901 = vmatmul.bf16.gmra.mxu1 %v10016_v44  ;;  %v6338_v44 = vld [vmem:[#allocation7 + $0x54] sm:$0xf0] }
 0x300   :  { %v7340_v19 = vadd.f32 %v2778_v33, %v2706_v58  ;;  %v2636_v7 = vadd.f32 %v2635_v29, %v2563_v32  ;;  %2828 = vmatmul.bf16.gmra.mxu0 %v10015_v55  ;;  %v5345_v32 = vld [vmem:[#allocation7 + $0x48] sm:$0xf] }
 0x301   :  { %3047 = vmatmul.bf16.gmra.mxu3 %v10018_v34  ;;  %v5729_v55 = vld [vmem:[#allocation7 + $0x348] sm:$0xf]  ;;  %v6434_v34 = vld [vmem:[#allocation7 + $0x354] sm:$0xf0] }
 0x302   :  { %10014 = vst [vmem:[#allocation122_spill] sm:$0xff] %v7340_v19  ;;  %2974 = vmatmul.bf16.gmra.mxu2 %v10017_v61  ;;  %v5346_v19 = vor.u32 %v6338_v44, %v5345_v32  ;;  %v10019_v44 = vld [vmem:[#allocation86_spill] sm:$0xff] }
 0x304   :  { %v2781_v26 = vpop.f32.mrf.mxu3  ;;  %v2637_v33 = vpop.f32.mrf.mxu1  ;;  %3087 = vmatpush.bf16.msra.mxu0 %v5346_v19 }
 0x305   :  { %v2708_v50 = vpop.f32.mrf.mxu2  ;;  %v2564_v52 = vpop.f32.mrf.mxu0 }
 0x306   :  { %v2709_v56 = vadd.f32 %v2708_v50, %v2636_v7  ;;  %v2565_v58 = vadd.f32 %v2564_v52, %v7229_v60  ;;  %v5730_v50 = vor.u32 %v6434_v34, %v5729_v55 }
 0x308   :  { %v7347_v29 = vadd.f32 %v2781_v26, %v2709_v56  ;;  %v2638_v8 = vadd.f32 %v2637_v33, %v2565_v58  ;;  %3306 = vmatpush.bf16.msra.mxu3 %v5730_v50  ;;  %v10023_v50 = vld [vmem:[#allocation90_spill] sm:$0xff] }
 0x30c   :  { %v2783_v46 = vpop.f32.mrf.mxu3  ;;  %v2640_v52 = vpop.f32.mrf.mxu1 }
 0x30d   :  { %v2710_v61 = vpop.f32.mrf.mxu2  ;;  %v2567_v7 = vpop.f32.mrf.mxu0 }
 0x30e   :  { %v2711_v16 = vadd.f32 %v2710_v61, %v2638_v8  ;;  %v2568_v63 = vadd.f32 %v2567_v7, %v7229_v60  ;;  %v10020_v61 = vld [vmem:[#allocation87_spill] sm:$0xff]  ;;  %v10022_v7 = vld [vmem:[#allocation89_spill] sm:$0xff] }
 0x30f   :  { %2906 = vmatmul.bf16.gmra.mxu1 %v7044_v35 }
 0x310   :  { %v7350_v56 = vadd.f32 %v2783_v46, %v2711_v16  ;;  %v2641_v26 = vadd.f32 %v2640_v52, %v2568_v63  ;;  %2833 = vmatmul.bf16.gmra.mxu0 %v7042_v10  ;;  %v10021_v46 = vld [vmem:[#allocation88_spill] sm:$0xff]  ;;  %v10024_v63 = vld [vmem:[#allocation91_spill] sm:$0xff]  ;;  %v5585_v52 = vld [vmem:[#allocation7 + $0x228] sm:$0xf] }
 0x311   :  { %3052 = vmatmul.bf16.gmra.mxu3 %v10020_v61  ;;  %v6366_v61 = vld [vmem:[#allocation7 + $0x134] sm:$0xf0] }
 0x312   :  { %2979 = vmatmul.bf16.gmra.mxu2 %v10019_v44 }
 0x314   :  { %v2786_v17 = vpop.f32.mrf.mxu3  ;;  %v2642_v60 = vpop.f32.mrf.mxu1 }
 0x315   :  { %v2713_v58 = vpop.f32.mrf.mxu2  ;;  %v2569_v51 = vpop.f32.mrf.mxu0  ;;  %v5713_v60 = vld [vmem:[#allocation7 + $0x328] sm:$0xf] }
 0x316   :  { %v2714_v55 = vadd.f32 %v2713_v58, %v2641_v26  ;;  %v6398_v26 = vld [vmem:[#allocation7 + $0x234] sm:$0xf0]  ;;  %v5329_v58 = vld [vmem:[#allocation7 + $0x28] sm:$0xf] }
 0x317   :  { %v6334_v51 = vld [vmem:[#allocation7 + $0x34] sm:$0xf0] }
 0x318   :  { %v7356_v34 = vadd.f32 %v2786_v17, %v2714_v55  ;;  %v5586_v17 = vor.u32 %v6398_v26, %v5585_v52 }
 0x31a   :  { %3234 = vmatpush.bf16.msra.mxu2 %v5586_v17  ;;  %v10028_v17 = vld [vmem:[#allocation94_spill] sm:$0xff] }
 0x31c   :  { %v2788_v33 = vpop.f32.mrf.mxu3  ;;  %v2872_v32 = vpop.f32.mrf.mxu1 }
 0x31d   :  { %v2715_v19 = vpop.f32.mrf.mxu2  ;;  %v2799_v8 = vpop.f32.mrf.mxu0 }
 0x31e   :  { %v2800_v28 = vadd.f32 %v2799_v8, %v7237_v30  ;;  %v6430_v19 = vld [vmem:[#allocation7 + $0x334] sm:$0xf0] }
 0x31f   :  { %2911 = vmatmul.bf16.gmra.mxu1 %v10022_v7 }
 0x320   :  { %v2873_v16 = vadd.f32 %v2872_v32, %v2800_v28  ;;  %2838 = vmatmul.bf16.gmra.mxu0 %v10021_v46  ;;  %v5330_v28 = vor.u32 %v6334_v51, %v5329_v58  ;;  %v5714_v32 = vor.u32 %v6430_v19, %v5713_v60  ;;  %v5457_v46 = vld [vmem:[#allocation7 + $0x128] sm:$0xf] }
 0x321   :  { %3057 = vmatmul.bf16.gmra.mxu3 %v10024_v63  ;;  %v5458_v63 = vor.u32 %v6366_v61, %v5457_v46  ;;  %v10029_v61 = vld [vmem:[#allocation95_spill] sm:$0xff]  ;;  %v10030_v46 = vld [vmem:[#allocation96_spill] sm:$0xff] }
 0x322   :  { %2984 = vmatmul.bf16.gmra.mxu2 %v10023_v50  ;;  %3088 = vmatpush.bf16.msra.mxu0 %v5330_v28 }
 0x323   :  { %3307 = vmatpush.bf16.msra.mxu3 %v5714_v32  ;;  %3161 = vmatpush.bf16.msra.mxu1 %v5458_v63 }
 0x324   :  { %v3018_v30 = vpop.f32.mrf.mxu3  ;;  %v2874_v50 = vpop.f32.mrf.mxu1 }
 0x325   :  { %v2945_v55 = vpop.f32.mrf.mxu2  ;;  %v2801_v8 = vpop.f32.mrf.mxu0 }
 0x326   :  { %v2946_v33 = vadd.f32 %v2945_v55, %v2873_v16  ;;  %v2802_v7 = vadd.f32 %v2801_v8, %v7240_v27  ;;  %v10027_v27 = vld [vmem:[#allocation93_spill] sm:$0xff] }
 0x328   :  { %v7364_v44 = vadd.f32 %v3018_v30, %v2946_v33  ;;  %v2875_v52 = vadd.f32 %v2874_v50, %v2802_v7 }
 0x32a   :  { %10025 = vst [vmem:[#allocation123_spill] sm:$0xff] %v7364_v44 }
 0x32c   :  { %v3020_v16 = vpop.f32.mrf.mxu3  ;;  %v2877_v51 = vpop.f32.mrf.mxu1 }
 0x32d   :  { %v2947_v26 = vpop.f32.mrf.mxu2  ;;  %v2804_v55 = vpop.f32.mrf.mxu0 }
 0x32e   :  { %v2948_v35 = vadd.f32 %v2947_v26, %v2875_v52  ;;  %v2805_v58 = vadd.f32 %v2804_v55, %v7247_v5  ;;  %v6394_v55 = vld [vmem:[#allocation7 + $0x214] sm:$0xf0] }
 0x32f   :  { %2916 = vmatmul.bf16.gmra.mxu1 %v10028_v17 }
 0x330   :  { %v7367_v60 = vadd.f32 %v3020_v16, %v2948_v35  ;;  %v2878_v19 = vadd.f32 %v2877_v51, %v2805_v58  ;;  %2843 = vmatmul.bf16.gmra.mxu0 %v10027_v27  ;;  %v5569_v16 = vld [vmem:[#allocation7 + $0x208] sm:$0xf] }
 0x331   :  { %3062 = vmatmul.bf16.gmra.mxu3 %v10030_v46  ;;  %v5313_v58 = vld [vmem:[#allocation7 + $0x8] sm:$0xf]  ;;  %v5570_v44 = vor.u32 %v6394_v55, %v5569_v16  ;;  %v6426_v46 = vld [vmem:[#allocation7 + $0x314] sm:$0xf0] }
 0x332   :  { %10026 = vst [vmem:[#allocation124_spill] sm:$0xff] %v7367_v60  ;;  %2989 = vmatmul.bf16.gmra.mxu2 %v10029_v61 }
 0x333   :  { %3235 = vmatpush.bf16.msra.mxu2 %v5570_v44 }
 0x334   :  { %v3023_v63 = vpop.f32.mrf.mxu3  ;;  %v2879_v8 = vpop.f32.mrf.mxu1 }
 0x335   :  { %v2950_v7 = vpop.f32.mrf.mxu2  ;;  %v2806_v33 = vpop.f32.mrf.mxu0 }
 0x336   :  { %v2951_v50 = vadd.f32 %v2950_v7, %v2878_v19  ;;  %v2807_v30 = vadd.f32 %v2806_v33, %v7250_v18  ;;  %v6330_v19 = vld [vmem:[#allocation7 + $0x14] sm:$0xf0]  ;;  %v5697_v7 = vld [vmem:[#allocation7 + $0x308] sm:$0xf] }
 0x337   :  { %v5314_v18 = vor.u32 %v6330_v19, %v5313_v58  ;;  %v6362_v33 = vld [vmem:[#allocation7 + $0x114] sm:$0xf0] }
 0x338   :  { %v7374_v5 = vadd.f32 %v3023_v63, %v2951_v50  ;;  %v2880_v35 = vadd.f32 %v2879_v8, %v2807_v30  ;;  %v5698_v50 = vor.u32 %v6426_v46, %v5697_v7  ;;  %v5441_v63 = vld [vmem:[#allocation7 + $0x108] sm:$0xf] }
 0x339   :  { %v5442_v8 = vor.u32 %v6362_v33, %v5441_v63  ;;  %3089 = vmatpush.bf16.msra.mxu0 %v5314_v18  ;;  %v5937_v63 = vld [vmem:[#allocation7 + $0x4e8] sm:$0xf] }
 0x33a   :  { %10031 = vst [vmem:[#allocation125_spill] sm:$0xff] %v7374_v5  ;;  %3308 = vmatpush.bf16.msra.mxu3 %v5698_v50  ;;  %v6550_v50 = vld [vmem:[#allocation7 + $0x6f4] sm:$0xf0] }
 0x33b   :  { %3162 = vmatpush.bf16.msra.mxu1 %v5442_v8  ;;  %v6486_v8 = vld [vmem:[#allocation7 + $0x4f4] sm:$0xf0] }
 0x33c   :  { %v3025_v52 = vpop.f32.mrf.mxu3  ;;  %v2882_v60 = vpop.f32.mrf.mxu1  ;;  %v6498_v5 = vld [vmem:[#allocation7 + $0x554] sm:$0xf0] }
 0x33d   :  { %v2952_v28 = vpop.f32.mrf.mxu2  ;;  %v2809_v26 = vpop.f32.mrf.mxu0 }
 0x33e   :  { %v2953_v32 = vadd.f32 %v2952_v28, %v2880_v35  ;;  %v2810_v51 = vadd.f32 %v2809_v26, %v7257_v31 }
 0x33f   :  { %2921 = vmatmul.bf16.gmra.mxu1 %v7095_v1 }
 0x340   :  { %v7377_v61 = vadd.f32 %v3025_v52, %v2953_v32  ;;  %v2883_v30 = vadd.f32 %v2882_v60, %v2810_v51  ;;  %2848 = vmatmul.bf16.gmra.mxu0 %v7093_v20 }
 0x341   :  { %3067 = vmatmul.bf16.gmra.mxu3 %v7100_v2 }
 0x342   :  { %10032 = vst [vmem:[#allocation126_spill] sm:$0xff] %v7377_v61  ;;  %2994 = vmatmul.bf16.gmra.mxu2 %v7097_v9  ;;  %v5985_v61 = vld [vmem:[#allocation7 + $0x548] sm:$0xf] }
 0x344   :  { %v3028_v28 = vpop.f32.mrf.mxu3  ;;  %v2884_v60 = vpop.f32.mrf.mxu1 }
 0x345   :  { %v2955_v31 = vpop.f32.mrf.mxu2  ;;  %v2811_v46 = vpop.f32.mrf.mxu0 }
 0x346   :  { %v2956_v35 = vadd.f32 %v2955_v31, %v2883_v30  ;;  %v2812_v32 = vadd.f32 %v2811_v46, %v7260_v62  ;;  %v6193_v62 = vld [vmem:[#allocation7 + $0x6e8] sm:$0xf] }
 0x347   :  { %v6194_v30 = vor.u32 %v6550_v50, %v6193_v62  ;;  %v6321_v31 = vld [vmem:[#allocation7 + $0x7e8] sm:$0xf] }
 0x348   :  { %v7384_v52 = vadd.f32 %v3028_v28, %v2956_v35  ;;  %v2885_v44 = vadd.f32 %v2884_v60, %v2812_v32  ;;  %v5938_v32 = vor.u32 %v6486_v8, %v5937_v63  ;;  %v6065_v50 = vld [vmem:[#allocation7 + $0x5e8] sm:$0xf] }
 0x349   :  { %3520 = vmatpush.bf16.msrb.mxu2 %v6194_v30 }
 0x34a   :  { %10033 = vst [vmem:[#allocation127_spill] sm:$0xff] %v7384_v52  ;;  %3374 = vmatpush.bf16.msrb.mxu0 %v5938_v32 }
 0x34c   :  { %v3030_v55 = vpop.f32.mrf.mxu3  ;;  %v2887_v19 = vpop.f32.mrf.mxu1 }
 0x34d   :  { %v2957_v26 = vpop.f32.mrf.mxu2  ;;  %v2814_v58 = vpop.f32.mrf.mxu0 }
 0x34e   :  { %v2958_v16 = vadd.f32 %v2957_v26, %v2885_v44  ;;  %v2815_v51 = vadd.f32 %v2814_v58, %v7267_v23  ;;  %v6582_v23 = vld [vmem:[#allocation7 + $0x7f4] sm:$0xf0] }
 0x34f   :  { %2926 = vmatmul.bf16.gmra.mxu1 %v7113_v59  ;;  %v6322_v60 = vor.u32 %v6582_v23, %v6321_v31 }
 0x350   :  { %v7387_v7 = vadd.f32 %v3030_v55, %v2958_v16  ;;  %v2888_v18 = vadd.f32 %v2887_v19, %v2815_v51  ;;  %2853 = vmatmul.bf16.gmra.mxu0 %v7111_v22 }
 0x351   :  { %3072 = vmatmul.bf16.gmra.mxu3 %v7118_v0 }
 0x352   :  { %10034 = vst [vmem:[#allocation128_spill] sm:$0xff] %v7387_v7  ;;  %2999 = vmatmul.bf16.gmra.mxu2 %v7115_v6  ;;  %3593 = vmatpush.bf16.msrb.mxu3 %v6322_v60  ;;  %v6518_v7 = vld [vmem:[#allocation7 + $0x5f4] sm:$0xf0] }
 0x353   :  { %v6066_v63 = vor.u32 %v6518_v7, %v6065_v50 }
 0x354   :  { %v3033_v28 = vpop.f32.mrf.mxu3  ;;  %v2889_v26 = vpop.f32.mrf.mxu1 }
 0x355   :  { %v2960_v33 = vpop.f32.mrf.mxu2  ;;  %v2816_v46 = vpop.f32.mrf.mxu0  ;;  %3447 = vmatpush.bf16.msrb.mxu1 %v6066_v63  ;;  %v6305_v63 = vld [vmem:[#allocation7 + $0x7c8] sm:$0xf] }
 0x356   :  { %v2961_v35 = vadd.f32 %v2960_v33, %v2888_v18  ;;  %v2817_v44 = vadd.f32 %v2816_v46, %v7270_v25 }
 0x358   :  { %v7394_v16 = vadd.f32 %v3033_v28, %v2961_v35  ;;  %v2890_v55 = vadd.f32 %v2889_v26, %v2817_v44 }
 0x35a   :  { %10035 = vst [vmem:[#allocation129_spill] sm:$0xff] %v7394_v16 }
 0x35c   :  { %v3035_v19 = vpop.f32.mrf.mxu3  ;;  %v2892_v33 = vpop.f32.mrf.mxu1 }
 0x35d   :  { %v2962_v58 = vpop.f32.mrf.mxu2  ;;  %v2819_v62 = vpop.f32.mrf.mxu0 }
 0x35e   :  { %v2963_v51 = vadd.f32 %v2962_v58, %v2890_v55  ;;  %v2820_v18 = vadd.f32 %v2819_v62, %v7277_v40  ;;  %v6177_v55 = vld [vmem:[#allocation7 + $0x6c8] sm:$0xf]  ;;  %v6546_v58 = vld [vmem:[#allocation7 + $0x6d4] sm:$0xf0] }
 0x35f   :  { %2931 = vmatmul.bf16.gmra.mxu1 %v7131_v43  ;;  %v6178_v62 = vor.u32 %v6546_v58, %v6177_v55 }
 0x360   :  { %v7397_v8 = vadd.f32 %v3035_v19, %v2963_v51  ;;  %v2893_v25 = vadd.f32 %v2892_v33, %v2820_v18  ;;  %2858 = vmatmul.bf16.gmra.mxu0 %v7129_v42  ;;  %v6482_v33 = vld [vmem:[#allocation7 + $0x4d4] sm:$0xf0] }
 0x361   :  { %3077 = vmatmul.bf16.gmra.mxu3 %v7136_v11  ;;  %3521 = vmatpush.bf16.msrb.mxu2 %v6178_v62 }
 0x362   :  { %10036 = vst [vmem:[#allocation130_spill] sm:$0xff] %v7397_v8  ;;  %3004 = vmatmul.bf16.gmra.mxu2 %v7133_v24  ;;  %v6566_v8 = vld [vmem:[#allocation7 + $0x774] sm:$0xf0] }
 0x364   :  { %v3038_v23 = vpop.f32.mrf.mxu3  ;;  %v2894_v28 = vpop.f32.mrf.mxu1 }
 0x365   :  { %v2965_v30 = vpop.f32.mrf.mxu2  ;;  %v2821_v35 = vpop.f32.mrf.mxu0 }
 0x366   :  { %v2966_v31 = vadd.f32 %v2965_v30, %v2893_v25  ;;  %v2822_v40 = vadd.f32 %v2821_v35, %v7280_v47  ;;  %v5921_v47 = vld [vmem:[#allocation7 + $0x4c8] sm:$0xf] }
 0x367   :  { %v5922_v30 = vor.u32 %v6482_v33, %v5921_v47 }
 0x368   :  { %v7404_v7 = vadd.f32 %v3038_v23, %v2966_v31  ;;  %v2895_v46 = vadd.f32 %v2894_v28, %v2822_v40  ;;  %v6049_v31 = vld [vmem:[#allocation7 + $0x5c8] sm:$0xf]  ;;  %v6514_v23 = vld [vmem:[#allocation7 + $0x5d4] sm:$0xf0] }
 0x369   :  { %3375 = vmatpush.bf16.msrb.mxu0 %v5922_v30 }
 0x36a   :  { %10037 = vst [vmem:[#allocation131_spill] sm:$0xff] %v7404_v7 }
 0x36c   :  { %v3040_v44 = vpop.f32.mrf.mxu3  ;;  %v2897_v19 = vpop.f32.mrf.mxu1 }
 0x36d   :  { %v2967_v32 = vpop.f32.mrf.mxu2  ;;  %v2824_v26 = vpop.f32.mrf.mxu0 }
 0x36e   :  { %v2968_v60 = vadd.f32 %v2967_v32, %v2895_v46  ;;  %v2825_v51 = vadd.f32 %v2824_v26, %v7287_v41  ;;  %v6578_v41 = vld [vmem:[#allocation7 + $0x7d4] sm:$0xf0]  ;;  %v6050_v32 = vor.u32 %v6514_v23, %v6049_v31 }
 0x36f   :  { %3163 = vmatmul.bf16.vlgmr.msra.gmra.mxu1 %v6729_v53  ;;  %v6306_v46 = vor.u32 %v6578_v41, %v6305_v63 }
 0x370   :  { %v7407_v50 = vadd.f32 %v3040_v44, %v2968_v60  ;;  %v2898_v18 = vadd.f32 %v2897_v19, %v2825_v51  ;;  %3090 = vmatmul.bf16.vlgmr.msra.gmra.mxu0 %v6727_v48  ;;  %3448 = vmatpush.bf16.msrb.mxu1 %v6050_v32 }
 0x371   :  { %3309 = vmatmul.bf16.vlgmr.msra.gmra.mxu3 %v6733_v57 }
 0x372   :  { %10038 = vst [vmem:[#allocation132_spill] sm:$0xff] %v7407_v50  ;;  %3236 = vmatmul.bf16.vlgmr.msra.gmra.mxu2 %v6731_v54  ;;  %3594 = vmatpush.bf16.msrb.mxu3 %v6306_v46 }
 0x374   :  { %v3043_v40 = vpop.f32.mrf.mxu3  ;;  %v2899_v44 = vpop.f32.mrf.mxu1 }
 0x375   :  { %v2970_v25 = vpop.f32.mrf.mxu2  ;;  %v2826_v28 = vpop.f32.mrf.mxu0 }
 0x376   :  { %v2971_v35 = vadd.f32 %v2970_v25, %v2898_v18  ;;  %v2827_v60 = vadd.f32 %v2826_v28, %v7290_v21 }
 0x378   :  { %v7414_v26 = vadd.f32 %v3043_v40, %v2971_v35  ;;  %v2900_v55 = vadd.f32 %v2899_v44, %v2827_v60  ;;  %v6161_v60 = vld [vmem:[#allocation7 + $0x6a8] sm:$0xf]  ;;  %v6542_v44 = vld [vmem:[#allocation7 + $0x6b4] sm:$0xf0] }
 0x37a   :  { %10039 = vst [vmem:[#allocation133_spill] sm:$0xff] %v7414_v26  ;;  %v10052_v26 = vld [vmem:[#allocation119_spill] sm:$0xff] }
 0x37c   :  { %v3045_v19 = vpop.f32.mrf.mxu3  ;;  %v2902_v18 = vpop.f32.mrf.mxu1 }
 0x37d   :  { %v2972_v58 = vpop.f32.mrf.mxu2  ;;  %v2829_v62 = vpop.f32.mrf.mxu0 }
 0x37e   :  { %v2973_v51 = vadd.f32 %v2972_v58, %v2900_v55  ;;  %v2830_v47 = vadd.f32 %v2829_v62, %v7297_v4  ;;  %v5905_v55 = vld [vmem:[#allocation7 + $0x4a8] sm:$0xf]  ;;  %v6478_v62 = vld [vmem:[#allocation7 + $0x4b4] sm:$0xf0] }
 0x37f   :  { %3168 = vmatmul.bf16.gmra.mxu1 %v6741_v13 }
 0x380   :  { %v7417_v33 = vadd.f32 %v3045_v19, %v2973_v51  ;;  %v2903_v63 = vadd.f32 %v2902_v18, %v2830_v47  ;;  %3095 = vmatmul.bf16.gmra.mxu0 %v6739_v12  ;;  %v6162_v19 = vor.u32 %v6542_v44, %v6161_v60  ;;  %v6289_v47 = vld [vmem:[#allocation7 + $0x7a8] sm:$0xf]  ;;  %v6574_v18 = vld [vmem:[#allocation7 + $0x7b4] sm:$0xf0] }
 0x381   :  { %3314 = vmatmul.bf16.gmra.mxu3 %v6745_v15 }
 0x382   :  { %10040 = vst [vmem:[#allocation134_spill] sm:$0xff] %v7417_v33  ;;  %3241 = vmatmul.bf16.gmra.mxu2 %v6743_v14 }
 0x383   :  { %3522 = vmatpush.bf16.msrb.mxu2 %v6162_v19  ;;  %v10044_v19 = vld [vmem:[#allocation117_spill] sm:$0xff] }
 0x384   :  { %v3048_v30 = vpop.f32.mrf.mxu3  ;;  %v2904_v23 = vpop.f32.mrf.mxu1 }
 0x385   :  { %v2975_v21 = vpop.f32.mrf.mxu2  ;;  %v2831_v41 = vpop.f32.mrf.mxu0 }
 0x386   :  { %v2976_v25 = vadd.f32 %v2975_v21, %v2903_v63  ;;  %v2832_v31 = vadd.f32 %v2831_v41, %v7300_v49  ;;  %v5906_v49 = vor.u32 %v6478_v62, %v5905_v55  ;;  %v6290_v21 = vor.u32 %v6574_v18, %v6289_v47 }
 0x388   :  { %v7424_v4 = vadd.f32 %v3048_v30, %v2976_v25  ;;  %v2905_v35 = vadd.f32 %v2904_v23, %v2832_v31  ;;  %v6033_v25 = vld [vmem:[#allocation7 + $0x5a8] sm:$0xf]  ;;  %v6510_v30 = vld [vmem:[#allocation7 + $0x5b4] sm:$0xf0]  ;;  %3376 = vmatpush.bf16.msrb.mxu0 %v5906_v49  ;;  %3595 = vmatpush.bf16.msrb.mxu3 %v6290_v21 }
 0x389   :  { %v6034_v31 = vor.u32 %v6510_v30, %v6033_v25  ;;  %v10046_v21 = vld [vmem:[#allocation13_spill] sm:$0xff]  ;;  %v10047_v25 = vld [vmem:[#allocation14_spill] sm:$0xff]  ;;  %v10048_v30 = vld [vmem:[#allocation15_spill] sm:$0xff] }
 0x38a   :  { %10041 = vst [vmem:[#allocation135_spill] sm:$0xff] %v7424_v4 }
 0x38b   :  { %3449 = vmatpush.bf16.msrb.mxu1 %v6034_v31  ;;  %v6538_v31 = vld [vmem:[#allocation7 + $0x694] sm:$0xf0] }
 0x38c   :  { %v3050_v46 = vpop.f32.mrf.mxu3  ;;  %v2907_v51 = vpop.f32.mrf.mxu1 }
 0x38d   :  { %v2977_v40 = vpop.f32.mrf.mxu2  ;;  %v2834_v32 = vpop.f32.mrf.mxu0 }
 0x38e   :  { %v2978_v28 = vadd.f32 %v2977_v40, %v2905_v35  ;;  %v2835_v58 = vadd.f32 %v2834_v32, %v7307_v3 }
 0x38f   :  { %3173 = vmatmul.bf16.gmra.mxu1 %v6753_v37 }
 0x390   :  { %v7427_v63 = vadd.f32 %v3050_v46, %v2978_v28  ;;  %v2908_v41 = vadd.f32 %v2907_v51, %v2835_v58  ;;  %3100 = vmatmul.bf16.gmra.mxu0 %v6751_v36 }
 0x391   :  { %3319 = vmatmul.bf16.gmra.mxu3 %v6757_v39 }
 0x392   :  { %10042 = vst [vmem:[#allocation136_spill] sm:$0xff] %v7427_v63  ;;  %3246 = vmatmul.bf16.gmra.mxu2 %v6755_v38 }
 0x394   :  { %v3053_v35 = vpop.f32.mrf.mxu3  ;;  %v2909_v46 = vpop.f32.mrf.mxu1 }
 0x395   :  { %v2980_v3 = vpop.f32.mrf.mxu2  ;;  %v2836_v40 = vpop.f32.mrf.mxu0 }
 0x396   :  { %v2981_v23 = vadd.f32 %v2980_v3, %v2908_v41  ;;  %v2837_v28 = vadd.f32 %v2836_v40, %v7310_v45  ;;  %v10049_v45 = vld [vmem:[#allocation16_spill] sm:$0xff]  ;;  %v6145_v41 = vld [vmem:[#allocation7 + $0x688] sm:$0xf] }
 0x397   :  { %v5889_v3 = vld [vmem:[#allocation7 + $0x488] sm:$0xf]  ;;  %v6474_v40 = vld [vmem:[#allocation7 + $0x494] sm:$0xf0] }
 0x398   :  { %v7434_v32 = vadd.f32 %v3053_v35, %v2981_v23  ;;  %v2910_v60 = vadd.f32 %v2909_v46, %v2837_v28  ;;  %v6146_v35 = vor.u32 %v6538_v31, %v6145_v41  ;;  %v6273_v28 = vld [vmem:[#allocation7 + $0x788] sm:$0xf]  ;;  %v6570_v46 = vld [vmem:[#allocation7 + $0x794] sm:$0xf0] }
 0x39a   :  { %10043 = vst [vmem:[#allocation137_spill] sm:$0xff] %v7434_v32  ;;  %3523 = vmatpush.bf16.msrb.mxu2 %v6146_v35  ;;  %v10055_v35 = vld [vmem:[#allocation18_spill] sm:$0xff] }
 0x39c   :  { %v3055_v58 = vpop.f32.mrf.mxu3  ;;  %v2912_v47 = vpop.f32.mrf.mxu1 }
 0x39d   :  { %v2982_v44 = vpop.f32.mrf.mxu2  ;;  %v2839_v51 = vpop.f32.mrf.mxu0 }
 0x39e   :  { %v2983_v55 = vadd.f32 %v2982_v44, %v2910_v60  ;;  %v2840_v62 = vadd.f32 %v2839_v51, %v10044_v19  ;;  %v6274_v51 = vor.u32 %v6570_v46, %v6273_v28  ;;  %v6017_v19 = vld [vmem:[#allocation7 + $0x588] sm:$0xf] }
 0x39f   :  { %3178 = vmatmul.bf16.gmra.mxu1 %v10047_v25 }
 0x3a0   :  { %v7437_v18 = vadd.f32 %v3055_v58, %v2983_v55  ;;  %v2913_v49 = vadd.f32 %v2912_v47, %v2840_v62  ;;  %3105 = vmatmul.bf16.gmra.mxu0 %v10046_v21  ;;  %v5890_v58 = vor.u32 %v6474_v40, %v5889_v3  ;;  %v6506_v62 = vld [vmem:[#allocation7 + $0x594] sm:$0xf0]  ;;  %v10050_v47 = vld [vmem:[#allocation118_spill] sm:$0xff]  ;;  %3596 = vmatpush.bf16.msrb.mxu3 %v6274_v51 }
 0x3a1   :  { %3324 = vmatmul.bf16.gmra.mxu3 %v10049_v45  ;;  %v6018_v63 = vor.u32 %v6506_v62, %v6017_v19  ;;  %v10058_v51 = vld [vmem:[#allocation120_spill] sm:$0xff]  ;;  %v10114_v45 = vld [vmem:[#allocation66_spill] sm:$0xff] }
 0x3a2   :  { %10045 = vst [vmem:[#allocation117_spill] sm:$0xff] %v7437_v18  ;;  %3251 = vmatmul.bf16.gmra.mxu2 %v10048_v30  ;;  %3377 = vmatpush.bf16.msrb.mxu0 %v5890_v58 }
 0x3a3   :  { %3450 = vmatpush.bf16.msrb.mxu1 %v6018_v63 }
 0x3a4   :  { %v3058_v44 = vpop.f32.mrf.mxu3  ;;  %v2914_v32 = vpop.f32.mrf.mxu1 }
 0x3a5   :  { %v2985_v23 = vpop.f32.mrf.mxu2  ;;  %v2841_v55 = vpop.f32.mrf.mxu0 }
 0x3a6   :  { %v2986_v60 = vadd.f32 %v2985_v23, %v2913_v49  ;;  %v2842_v18 = vadd.f32 %v2841_v55, %v10050_v47  ;;  %v10054_v55 = vld [vmem:[#allocation17_spill] sm:$0xff] }
 0x3a8   :  { %v7444_v4 = vadd.f32 %v3058_v44, %v2986_v60  ;;  %v2915_v41 = vadd.f32 %v2914_v32, %v2842_v18  ;;  %v10056_v60 = vld [vmem:[#allocation19_spill] sm:$0xff]  ;;  %v10057_v44 = vld [vmem:[#allocation20_spill] sm:$0xff] }
 0x3aa   :  { %10051 = vst [vmem:[#allocation118_spill] sm:$0xff] %v7444_v4 }
 0x3ac   :  { %v3060_v49 = vpop.f32.mrf.mxu3  ;;  %v2917_v40 = vpop.f32.mrf.mxu1 }
 0x3ad   :  { %v2987_v31 = vpop.f32.mrf.mxu2  ;;  %v2844_v23 = vpop.f32.mrf.mxu0 }
 0x3ae   :  { %v2988_v33 = vadd.f32 %v2987_v31, %v2915_v41  ;;  %v2845_v3 = vadd.f32 %v2844_v23, %v10052_v26  ;;  %v6129_v23 = vld [vmem:[#allocation7 + $0x668] sm:$0xf] }
 0x3af   :  { %3183 = vmatmul.bf16.gmra.mxu1 %v10055_v35  ;;  %v6380_v35 = vld [vmem:[#allocation7 + $0x1ac] sm:$0xf] }
 0x3b0   :  { %v7447_v28 = vadd.f32 %v3060_v49, %v2988_v33  ;;  %v2918_v46 = vadd.f32 %v2917_v40, %v2845_v3  ;;  %3110 = vmatmul.bf16.gmra.mxu0 %v10054_v55  ;;  %v6534_v3 = vld [vmem:[#allocation7 + $0x674] sm:$0xf0]  ;;  %v5873_v40 = vld [vmem:[#allocation7 + $0x468] sm:$0xf] }
 0x3b1   :  { %3329 = vmatmul.bf16.gmra.mxu3 %v10057_v44  ;;  %v6130_v7 = vor.u32 %v6534_v3, %v6129_v23 }
 0x3b2   :  { %10053 = vst [vmem:[#allocation119_spill] sm:$0xff] %v7447_v28  ;;  %3256 = vmatmul.bf16.gmra.mxu2 %v10056_v60  ;;  %v10060_v28 = vld [vmem:[#allocation121_spill] sm:$0xff] }
 0x3b3   :  { %3524 = vmatpush.bf16.msrb.mxu2 %v6130_v7 }
 0x3b4   :  { %v3063_v18 = vpop.f32.mrf.mxu3  ;;  %v2919_v62 = vpop.f32.mrf.mxu1 }
 0x3b5   :  { %v2990_v32 = vpop.f32.mrf.mxu2  ;;  %v2846_v58 = vpop.f32.mrf.mxu0 }
 0x3b6   :  { %v2991_v63 = vadd.f32 %v2990_v32, %v2918_v46  ;;  %v2847_v19 = vadd.f32 %v2846_v58, %v10058_v51  ;;  %v6470_v46 = vld [vmem:[#allocation7 + $0x474] sm:$0xf0]  ;;  %v6257_v32 = vld [vmem:[#allocation7 + $0x768] sm:$0xf] }
 0x3b7   :  { %v5874_v58 = vor.u32 %v6470_v46, %v5873_v40  ;;  %v10062_v51 = vld [vmem:[#allocation21_spill] sm:$0xff] }
 0x3b8   :  { %v7454_v26 = vadd.f32 %v3063_v18, %v2991_v63  ;;  %v2920_v33 = vadd.f32 %v2919_v62, %v2847_v19  ;;  %v6258_v63 = vor.u32 %v6566_v8, %v6257_v32  ;;  %v10063_v19 = vld [vmem:[#allocation22_spill] sm:$0xff]  ;;  %v10064_v62 = vld [vmem:[#allocation23_spill] sm:$0xff] }
 0x3b9   :  { %3378 = vmatpush.bf16.msrb.mxu0 %v5874_v58  ;;  %v10066_v8 = vld [vmem:[#allocation122_spill] sm:$0xff] }
 0x3ba   :  { %10059 = vst [vmem:[#allocation120_spill] sm:$0xff] %v7454_v26  ;;  %3597 = vmatpush.bf16.msrb.mxu3 %v6258_v63 }
 0x3bc   :  { %v3065_v31 = vpop.f32.mrf.mxu3  ;;  %v2922_v50 = vpop.f32.mrf.mxu1 }
 0x3bd   :  { %v2992_v47 = vpop.f32.mrf.mxu2  ;;  %v2849_v49 = vpop.f32.mrf.mxu0 }
 0x3be   :  { %v2993_v41 = vadd.f32 %v2992_v47, %v2920_v33  ;;  %v2850_v4 = vadd.f32 %v2849_v49, %v10060_v28  ;;  %v10065_v33 = vld [vmem:[#allocation24_spill] sm:$0xff]  ;;  %v6001_v28 = vld [vmem:[#allocation7 + $0x568] sm:$0xf] }
 0x3bf   :  { %3188 = vmatmul.bf16.gmra.mxu1 %v10063_v19  ;;  %v6502_v47 = vld [vmem:[#allocation7 + $0x574] sm:$0xf0] }
 0x3c0   :  { %v7457_v16 = vadd.f32 %v3065_v31, %v2993_v41  ;;  %v2923_v18 = vadd.f32 %v2922_v50, %v2850_v4  ;;  %3115 = vmatmul.bf16.gmra.mxu0 %v10062_v51  ;;  %v6002_v23 = vor.u32 %v6502_v47, %v6001_v28  ;;  %v10070_v47 = vld [vmem:[#allocation26_spill] sm:$0xff] }
 0x3c1   :  { %3334 = vmatmul.bf16.gmra.mxu3 %v10065_v33  ;;  %v5555_v33 = vld [vmem:[#allocation7 + $0x1f8] sm:$0xf0] }
 0x3c2   :  { %10061 = vst [vmem:[#allocation121_spill] sm:$0xff] %v7457_v16  ;;  %3261 = vmatmul.bf16.gmra.mxu2 %v10064_v62  ;;  %3451 = vmatpush.bf16.msrb.mxu1 %v6002_v23  ;;  %v10072_v23 = vld [vmem:[#allocation28_spill] sm:$0xff] }
 0x3c4   :  { %v3068_v31 = vpop.f32.mrf.mxu3  ;;  %v2924_v4 = vpop.f32.mrf.mxu1 }
 0x3c5   :  { %v2995_v49 = vpop.f32.mrf.mxu2  ;;  %v2851_v3 = vpop.f32.mrf.mxu0 }
 0x3c6   :  { %v2996_v41 = vadd.f32 %v2995_v49, %v2923_v18  ;;  %v2852_v50 = vadd.f32 %v2851_v3, %v10066_v8  ;;  %v10069_v18 = vld [vmem:[#allocation25_spill] sm:$0xff]  ;;  %v10071_v49 = vld [vmem:[#allocation27_spill] sm:$0xff] }
 0x3c8   :  { %v7464_v7 = vadd.f32 %v3068_v31, %v2996_v41  ;;  %v2925_v40 = vadd.f32 %v2924_v4, %v2852_v50  ;;  %v6113_v41 = vld [vmem:[#allocation7 + $0x648] sm:$0xf]  ;;  %v6530_v31 = vld [vmem:[#allocation7 + $0x654] sm:$0xf0] }
 0x3c9   :  { %v6114_v3 = vor.u32 %v6530_v31, %v6113_v41  ;;  %v5986_v41 = vor.u32 %v6498_v5, %v5985_v61  ;;  %v10078_v61 = vld [vmem:[#allocation32_spill] sm:$0xff] }
 0x3ca   :  { %10067 = vst [vmem:[#allocation122_spill] sm:$0xff] %v7464_v7  ;;  %v6562_v7 = vld [vmem:[#allocation7 + $0x754] sm:$0xf0] }
 0x3cb   :  { %3525 = vmatpush.bf16.msrb.mxu2 %v6114_v3  ;;  %3452 = vmatpush.bf16.msrb.mxu1 %v5986_v41 }
 0x3cc   :  { %v3070_v16 = vpop.f32.mrf.mxu3  ;;  %v2927_v63 = vpop.f32.mrf.mxu1 }
 0x3cd   :  { %v2997_v46 = vpop.f32.mrf.mxu2  ;;  %v2854_v26 = vpop.f32.mrf.mxu0 }
 0x3ce   :  { %v2998_v32 = vadd.f32 %v2997_v46, %v2925_v40  ;;  %v2855_v58 = vadd.f32 %v2854_v26, %v7347_v29  ;;  %v5857_v46 = vld [vmem:[#allocation7 + $0x448] sm:$0xf] }
 0x3cf   :  { %3193 = vmatmul.bf16.gmra.mxu1 %v10070_v47  ;;  %v10088_v47 = vld [vmem:[#allocation41_spill] sm:$0xff] }
 0x3d0   :  { %v7467_v52 = vadd.f32 %v3070_v16, %v2998_v32  ;;  %v2928_v28 = vadd.f32 %v2927_v63, %v2855_v58  ;;  %3120 = vmatmul.bf16.gmra.mxu0 %v10069_v18  ;;  %v6466_v32 = vld [vmem:[#allocation7 + $0x454] sm:$0xf0]  ;;  %v6241_v58 = vld [vmem:[#allocation7 + $0x748] sm:$0xf] }
 0x3d1   :  { %3339 = vmatmul.bf16.gmra.mxu3 %v10072_v23  ;;  %v6242_v23 = vor.u32 %v6562_v7, %v6241_v58 }
 0x3d2   :  { %10068 = vst [vmem:[#allocation138_spill] sm:$0xff] %v7467_v52  ;;  %3266 = vmatmul.bf16.gmra.mxu2 %v10071_v49  ;;  %v5858_v52 = vor.u32 %v6466_v32, %v5857_v46  ;;  %v10077_v46 = vld [vmem:[#allocation31_spill] sm:$0xff] }
 0x3d3   :  { %3598 = vmatpush.bf16.msrb.mxu3 %v6242_v23  ;;  %v6490_v49 = vld [vmem:[#allocation7 + $0x514] sm:$0xf0] }
 0x3d4   :  { %v3073_v4 = vpop.f32.mrf.mxu3  ;;  %v2929_v16 = vpop.f32.mrf.mxu1  ;;  %3379 = vmatpush.bf16.msrb.mxu0 %v5858_v52 }
 0x3d5   :  { %v3000_v8 = vpop.f32.mrf.mxu2  ;;  %v2856_v40 = vpop.f32.mrf.mxu0 }
 0x3d6   :  { %v3001_v50 = vadd.f32 %v3000_v8, %v2928_v28  ;;  %v2857_v29 = vadd.f32 %v2856_v40, %v7350_v56 }
 0x3d8   :  { %v7474_v26 = vadd.f32 %v3073_v4, %v3001_v50  ;;  %v2930_v63 = vadd.f32 %v2929_v16, %v2857_v29  ;;  %v10075_v29 = vld [vmem:[#allocation29_spill] sm:$0xff]  ;;  %v10076_v16 = vld [vmem:[#allocation30_spill] sm:$0xff] }
 0x3da   :  { %10073 = vst [vmem:[#allocation139_spill] sm:$0xff] %v7474_v26  ;;  %v5969_v26 = vld [vmem:[#allocation7 + $0x528] sm:$0xf] }
 0x3dc   :  { %v3075_v3 = vpop.f32.mrf.mxu3  ;;  %v2932_v50 = vpop.f32.mrf.mxu1 }
 0x3dd   :  { %v3002_v28 = vpop.f32.mrf.mxu2  ;;  %v2859_v56 = vpop.f32.mrf.mxu0 }
 0x3de   :  { %v3003_v31 = vadd.f32 %v3002_v28, %v2930_v63  ;;  %v2860_v8 = vadd.f32 %v2859_v56, %v7356_v34  ;;  %v6596_v34 = vld [vmem:[%s9418_s2] sm:$0xf] }
 0x3df   :  { %3198 = vmatmul.bf16.gmra.mxu1 %v10076_v16  ;;  %v7488_v63 = vperm.slane %v6596_v34, 2  ;;  %v6554_v16 = vld [vmem:[#allocation7 + $0x714] sm:$0xf0] }
 0x3e0   :  { %v7477_v4 = vadd.f32 %v3075_v3, %v3003_v31  ;;  %v2933_v40 = vadd.f32 %v2932_v50, %v2860_v8  ;;  %3125 = vmatmul.bf16.gmra.mxu0 %v10075_v29  ;;  %v6097_v8 = vld [vmem:[#allocation7 + $0x628] sm:$0xf]  ;;  %v6526_v50 = vld [vmem:[#allocation7 + $0x634] sm:$0xf0] }
 0x3e1   :  { %3344 = vmatmul.bf16.gmra.mxu3 %v10078_v61  ;;  %v6494_v61 = vld [vmem:[#allocation7 + $0x534] sm:$0xf0] }
 0x3e2   :  { %10074 = vst [vmem:[#allocation140_spill] sm:$0xff] %v7477_v4  ;;  %3271 = vmatmul.bf16.gmra.mxu2 %v10077_v46  ;;  %v10082_v4 = vld [vmem:[#allocation35_spill] sm:$0xff] }
 0x3e4   :  { %v3078_v7 = vpop.f32.mrf.mxu3  ;;  %v2934_v32 = vpop.f32.mrf.mxu1 }
 0x3e5   :  { %v3005_v5 = vpop.f32.mrf.mxu2  ;;  %v2861_v23 = vpop.f32.mrf.mxu0  ;;  %v6225_v32 = vld [vmem:[#allocation7 + $0x728] sm:$0xf] }
 0x3e6   :  { %v3006_v52 = vadd.f32 %v3005_v5, %v2933_v40  ;;  %v10080_v5 = vld [vmem:[#allocation33_spill] sm:$0xff]  ;;  %v6098_v23 = vor.u32 %v6526_v50, %v6097_v8 }
 0x3e8   :  { %v7483_v58 = vadd.f32 %v3078_v7, %v3006_v52  ;;  %v5841_v52 = vld [vmem:[#allocation7 + $0x428] sm:$0xf]  ;;  %v6462_v7 = vld [vmem:[#allocation7 + $0x434] sm:$0xf0]  ;;  %3526 = vmatpush.bf16.msrb.mxu2 %v6098_v23 }
 0x3e9   :  { %v5842_v34 = vor.u32 %v6462_v7, %v5841_v52 }
 0x3ea   :  { %10079 = vst [vmem:[#allocation141_spill] sm:$0xff] %v7483_v58  ;;  %v10081_v58 = vld [vmem:[#allocation34_spill] sm:$0xff] }
 0x3eb   :  { %3380 = vmatpush.bf16.msrb.mxu0 %v5842_v34 }
 0x3ec   :  { %v3080_v28 = vpop.f32.mrf.mxu3  ;;  %v3164_v56 = vpop.f32.mrf.mxu1 }
 0x3ed   :  { %v3007_v41 = vpop.f32.mrf.mxu2  ;;  %v3091_v31 = vpop.f32.mrf.mxu0  ;;  %v10083_v28 = vld [vmem:[#allocation36_spill] sm:$0xff] }
 0x3ee   :  { %v3092_v3 = vadd.f32 %v3091_v31, %v7488_v63  ;;  %v6558_v41 = vld [vmem:[#allocation7 + $0x734] sm:$0xf0] }
 0x3ef   :  { %3203 = vmatmul.bf16.gmra.mxu1 %v10081_v58  ;;  %v6226_v31 = vor.u32 %v6558_v41, %v6225_v32 }
 0x3f0   :  { %v3165_v40 = vadd.f32 %v3164_v56, %v3092_v3  ;;  %3130 = vmatmul.bf16.gmra.mxu0 %v10080_v5  ;;  %v5970_v3 = vor.u32 %v6494_v61, %v5969_v26 }
 0x3f1   :  { %3349 = vmatmul.bf16.gmra.mxu3 %v10083_v28 }
 0x3f2   :  { %3276 = vmatmul.bf16.gmra.mxu2 %v10082_v4  ;;  %3599 = vmatpush.bf16.msrb.mxu3 %v6226_v31  ;;  %v10085_v31 = vld [vmem:[#allocation38_spill] sm:$0xff] }
 0x3f3   :  { %3453 = vmatpush.bf16.msrb.mxu1 %v5970_v3  ;;  %v10086_v3 = vld [vmem:[#allocation39_spill] sm:$0xff] }
 0x3f4   :  { %v3310_v50 = vpop.f32.mrf.mxu3  ;;  %v3166_v46 = vpop.f32.mrf.mxu1 }
 0x3f5   :  { %v3237_v56 = vpop.f32.mrf.mxu2  ;;  %v3093_v5 = vpop.f32.mrf.mxu0 }
 0x3f6   :  { %v3238_v8 = vadd.f32 %v3237_v56, %v3165_v40  ;;  %v3094_v58 = vadd.f32 %v3093_v5, %v7488_v63  ;;  %v10084_v40 = vld [vmem:[#allocation37_spill] sm:$0xff]  ;;  %v10087_v5 = vld [vmem:[#allocation40_spill] sm:$0xff] }
 0x3f8   :  { %v7496_v4 = vadd.f32 %v3310_v50, %v3238_v8  ;;  %v3167_v52 = vadd.f32 %v3166_v46, %v3094_v58 }
 0x3fc   :  { %v3312_v23 = vpop.f32.mrf.mxu3  ;;  %v3169_v34 = vpop.f32.mrf.mxu1 }
 0x3fd   :  { %v3239_v7 = vpop.f32.mrf.mxu2  ;;  %v3096_v32 = vpop.f32.mrf.mxu0 }
 0x3fe   :  { %v3240_v28 = vadd.f32 %v3239_v7, %v3167_v52  ;;  %v3097_v41 = vadd.f32 %v3096_v32, %v7488_v63  ;;  %v6522_v32 = vld [vmem:[#allocation7 + $0x614] sm:$0xf0] }
 0x3ff   :  { %3208 = vmatmul.bf16.gmra.mxu1 %v10085_v31  ;;  %v6209_v31 = vld [vmem:[#allocation7 + $0x708] sm:$0xf] }
 0x400   :  { %v7499_v26 = vadd.f32 %v3312_v23, %v3240_v28  ;;  %v3170_v61 = vadd.f32 %v3169_v34, %v3097_v41  ;;  %3135 = vmatmul.bf16.gmra.mxu0 %v10084_v40  ;;  %v6081_v23 = vld [vmem:[#allocation7 + $0x608] sm:$0xf]  ;;  %v6458_v40 = vld [vmem:[#allocation7 + $0x414] sm:$0xf0]  ;;  %v6210_v29 = vor.u32 %v6554_v16, %v6209_v31 }
 0x401   :  { %3354 = vmatmul.bf16.gmra.mxu3 %v10087_v5  ;;  %v5825_v41 = vld [vmem:[#allocation7 + $0x408] sm:$0xf]  ;;  %v6082_v34 = vor.u32 %v6522_v32, %v6081_v23 }
 0x402   :  { %3281 = vmatmul.bf16.gmra.mxu2 %v10086_v3  ;;  %v5826_v3 = vor.u32 %v6458_v40, %v5825_v41  ;;  %v5953_v5 = vld [vmem:[#allocation7 + $0x508] sm:$0xf]  ;;  %3600 = vmatpush.bf16.msrb.mxu3 %v6210_v29  ;;  %v10090_v40 = vld [vmem:[#allocation43_spill] sm:$0xff] }
 0x403   :  { %3527 = vmatpush.bf16.msrb.mxu2 %v6082_v34  ;;  %v10089_v16 = vld [vmem:[#allocation42_spill] sm:$0xff] }
 0x404   :  { %v3315_v58 = vpop.f32.mrf.mxu3  ;;  %v3171_v52 = vpop.f32.mrf.mxu1  ;;  %3381 = vmatpush.bf16.msrb.mxu0 %v5826_v3 }
 0x405   :  { %v3242_v56 = vpop.f32.mrf.mxu2  ;;  %v3098_v8 = vpop.f32.mrf.mxu0 }
 0x406   :  { %v3243_v46 = vadd.f32 %v3242_v56, %v3170_v61  ;;  %v3099_v50 = vadd.f32 %v3098_v8, %v7488_v63  ;;  %v5954_v61 = vor.u32 %v6490_v49, %v5953_v5  ;;  %v10091_v49 = vld [vmem:[#allocation44_spill] sm:$0xff] }
 0x408   :  { %v7506_v7 = vadd.f32 %v3315_v58, %v3243_v46  ;;  %v3172_v28 = vadd.f32 %v3171_v52, %v3099_v50  ;;  %3454 = vmatpush.bf16.msrb.mxu1 %v5954_v61 }
 0x40c   :  { %v3317_v46 = vpop.f32.mrf.mxu3  ;;  %v3174_v52 = vpop.f32.mrf.mxu1 }
 0x40d   :  { %v3244_v56 = vpop.f32.mrf.mxu2  ;;  %v3101_v58 = vpop.f32.mrf.mxu0 }
 0x40e   :  { %v3245_v8 = vadd.f32 %v3244_v56, %v3172_v28  ;;  %v3102_v50 = vadd.f32 %v3101_v58, %v7488_v63 }
 0x40f   :  { %3213 = vmatmul.bf16.gmra.mxu1 %v10089_v16  ;;  %v10092_v16 = vld [vmem:[#allocation45_spill] sm:$0xff] }
 0x410   :  { %v7509_v23 = vadd.f32 %v3317_v46, %v3245_v8  ;;  %v3175_v32 = vadd.f32 %v3174_v52, %v3102_v50  ;;  %3140 = vmatmul.bf16.gmra.mxu0 %v10088_v47  ;;  %v5811_v47 = vld [vmem:[#allocation7 + $0x3f8] sm:$0xf0] }
 0x411   :  { %3359 = vmatmul.bf16.gmra.mxu3 %v10091_v49 }
 0x412   :  { %3286 = vmatmul.bf16.gmra.mxu2 %v10090_v40 }
 0x414   :  { %v3320_v3 = vpop.f32.mrf.mxu3  ;;  %v3176_v41 = vpop.f32.mrf.mxu1 }
 0x415   :  { %v3247_v31 = vpop.f32.mrf.mxu2  ;;  %v3103_v5 = vpop.f32.mrf.mxu0 }
 0x416   :  { %v3248_v29 = vadd.f32 %v3247_v31, %v3175_v32  ;;  %v3104_v28 = vadd.f32 %v3103_v5, %v7488_v63  ;;  %v10093_v32 = vld [vmem:[#allocation46_spill] sm:$0xff]  ;;  %v10094_v31 = vld [vmem:[#allocation47_spill] sm:$0xff]  ;;  %v10095_v5 = vld [vmem:[#allocation48_spill] sm:$0xff] }
 0x418   :  { %v7516_v34 = vadd.f32 %v3320_v3, %v3248_v29  ;;  %v3177_v61 = vadd.f32 %v3176_v41, %v3104_v28  ;;  %v6420_v29 = vld [vmem:[#allocation7 + $0x2ec] sm:$0xf]  ;;  %v5683_v3 = vld [vmem:[#allocation7 + $0x2f8] sm:$0xf0] }
 0x419   :  { %v6356_v28 = vld [vmem:[#allocation7 + $0xec] sm:$0xf]  ;;  %v5686_v41 = vor.u32 %v6420_v29, %v5683_v3 }
 0x41b   :  { %3812 = vmatpush.bf16.msra.mxu2 %v5686_v41 }
 0x41c   :  { %v3322_v46 = vpop.f32.mrf.mxu3  ;;  %v3179_v52 = vpop.f32.mrf.mxu1 }
 0x41d   :  { %v3249_v56 = vpop.f32.mrf.mxu2  ;;  %v3106_v58 = vpop.f32.mrf.mxu0 }
 0x41e   :  { %v3250_v8 = vadd.f32 %v3249_v56, %v3177_v61  ;;  %v3107_v50 = vadd.f32 %v3106_v58, %v7488_v63  ;;  %v5427_v61 = vld [vmem:[#allocation7 + $0xf8] sm:$0xf0]  ;;  %v6452_v56 = vld [vmem:[#allocation7 + $0x3ec] sm:$0xf] }
 0x41f   :  { %3218 = vmatmul.bf16.gmra.mxu1 %v10093_v32  ;;  %v5430_v18 = vor.u32 %v6356_v28, %v5427_v61 }
 0x420   :  { %v7519_v40 = vadd.f32 %v3322_v46, %v3250_v8  ;;  %v3180_v49 = vadd.f32 %v3179_v52, %v3107_v50  ;;  %3145 = vmatmul.bf16.gmra.mxu0 %v10092_v16  ;;  %v5814_v8 = vor.u32 %v6452_v56, %v5811_v47 }
 0x421   :  { %3364 = vmatmul.bf16.gmra.mxu3 %v10095_v5  ;;  %3666 = vmatpush.bf16.msra.mxu0 %v5430_v18  ;;  %v10097_v18 = vld [vmem:[#allocation50_spill] sm:$0xff] }
 0x422   :  { %3291 = vmatmul.bf16.gmra.mxu2 %v10094_v31  ;;  %3885 = vmatpush.bf16.msra.mxu3 %v5814_v8  ;;  %v6388_v31 = vld [vmem:[#allocation7 + $0x1ec] sm:$0xf]  ;;  %v10098_v8 = vld [vmem:[#allocation51_spill] sm:$0xff] }
 0x423   :  { %v5558_v3 = vor.u32 %v6388_v31, %v5555_v33 }
 0x424   :  { %v3325_v50 = vpop.f32.mrf.mxu3  ;;  %v3181_v16 = vpop.f32.mrf.mxu1 }
 0x425   :  { %v3252_v58 = vpop.f32.mrf.mxu2  ;;  %v3108_v52 = vpop.f32.mrf.mxu0  ;;  %3739 = vmatpush.bf16.msra.mxu1 %v5558_v3  ;;  %v5667_v3 = vld [vmem:[#allocation7 + $0x2d8] sm:$0xf0] }
 0x426   :  { %v3253_v46 = vadd.f32 %v3252_v58, %v3180_v49  ;;  %v3109_v32 = vadd.f32 %v3108_v52, %v7488_v63  ;;  %v10096_v58 = vld [vmem:[#allocation49_spill] sm:$0xff] }
 0x428   :  { %v7526_v5 = vadd.f32 %v3325_v50, %v3253_v46  ;;  %v3182_v29 = vadd.f32 %v3181_v16, %v3109_v32  ;;  %v10099_v46 = vld [vmem:[#allocation52_spill] sm:$0xff] }
 0x42c   :  { %v3327_v28 = vpop.f32.mrf.mxu3  ;;  %v3184_v61 = vpop.f32.mrf.mxu1 }
 0x42d   :  { %v3254_v62 = vpop.f32.mrf.mxu2  ;;  %v3111_v47 = vpop.f32.mrf.mxu0 }
 0x42e   :  { %v3255_v19 = vadd.f32 %v3254_v62, %v3182_v29  ;;  %v3112_v49 = vadd.f32 %v3111_v47, %v7488_v63  ;;  %v6416_v29 = vld [vmem:[#allocation7 + $0x2cc] sm:$0xf] }
 0x42f   :  { %3223 = vmatmul.bf16.gmra.mxu1 %v10097_v18 }
 0x430   :  { %v7529_v41 = vadd.f32 %v3327_v28, %v3255_v19  ;;  %v3185_v56 = vadd.f32 %v3184_v61, %v3112_v49  ;;  %3150 = vmatmul.bf16.gmra.mxu0 %v10096_v58  ;;  %v5670_v28 = vor.u32 %v6416_v29, %v5667_v3  ;;  %v5411_v58 = vld [vmem:[#allocation7 + $0xd8] sm:$0xf0]  ;;  %v10101_v3 = vld [vmem:[#allocation54_spill] sm:$0xff] }
 0x431   :  { %3369 = vmatmul.bf16.gmra.mxu3 %v10099_v46  ;;  %v5539_v29 = vld [vmem:[#allocation7 + $0x1d8] sm:$0xf0] }
 0x432   :  { %3296 = vmatmul.bf16.gmra.mxu2 %v10098_v8 }
 0x433   :  { %3813 = vmatpush.bf16.msra.mxu2 %v5670_v28 }
 0x434   :  { %v3330_v32 = vpop.f32.mrf.mxu3  ;;  %v3186_v50 = vpop.f32.mrf.mxu1 }
 0x435   :  { %v3257_v33 = vpop.f32.mrf.mxu2  ;;  %v3113_v62 = vpop.f32.mrf.mxu0 }
 0x436   :  { %v3258_v16 = vadd.f32 %v3257_v33, %v3185_v56  ;;  %v3114_v31 = vadd.f32 %v3113_v62, %v7488_v63  ;;  %v6352_v33 = vld [vmem:[#allocation7 + $0xcc] sm:$0xf] }
 0x437   :  { %v6448_v62 = vld [vmem:[#allocation7 + $0x3cc] sm:$0xf] }
 0x438   :  { %v7536_v52 = vadd.f32 %v3330_v32, %v3258_v16  ;;  %v3187_v19 = vadd.f32 %v3186_v50, %v3114_v31  ;;  %v10100_v16 = vld [vmem:[#allocation53_spill] sm:$0xff]  ;;  %v5414_v32 = vor.u32 %v6352_v33, %v5411_v58  ;;  %v5795_v31 = vld [vmem:[#allocation7 + $0x3d8] sm:$0xf0]  ;;  %v6384_v50 = vld [vmem:[#allocation7 + $0x1cc] sm:$0xf] }
 0x439   :  { %v5798_v28 = vor.u32 %v6448_v62, %v5795_v31 }
 0x43a   :  { %3667 = vmatpush.bf16.msra.mxu0 %v5414_v32 }
 0x43b   :  { %3886 = vmatpush.bf16.msra.mxu3 %v5798_v28  ;;  %v10104_v28 = vld [vmem:[#allocation57_spill] sm:$0xff] }
 0x43c   :  { %v3332_v61 = vpop.f32.mrf.mxu3  ;;  %v3189_v18 = vpop.f32.mrf.mxu1 }
 0x43d   :  { %v3259_v47 = vpop.f32.mrf.mxu2  ;;  %v3116_v8 = vpop.f32.mrf.mxu0 }
 0x43e   :  { %v3260_v49 = vadd.f32 %v3259_v47, %v3187_v19  ;;  %v3117_v46 = vadd.f32 %v3116_v8, %v7488_v63  ;;  %v10102_v19 = vld [vmem:[#allocation55_spill] sm:$0xff]  ;;  %v5542_v47 = vor.u32 %v6384_v50, %v5539_v29  ;;  %v10103_v8 = vld [vmem:[#allocation56_spill] sm:$0xff] }
 0x43f   :  { %3455 = vmatmul.bf16.vlgmr.msrb.gmra.mxu1 %v10101_v3 }
 0x440   :  { %v7539_v56 = vadd.f32 %v3332_v61, %v3260_v49  ;;  %v3190_v51 = vadd.f32 %v3189_v18, %v3117_v46  ;;  %3382 = vmatmul.bf16.vlgmr.msrb.gmra.mxu0 %v10100_v16  ;;  %3740 = vmatpush.bf16.msra.mxu1 %v5542_v47  ;;  %v10106_v47 = vld [vmem:[#allocation59_spill] sm:$0xff] }
 0x441   :  { %3601 = vmatmul.bf16.vlgmr.msrb.gmra.mxu3 %v10103_v8 }
 0x442   :  { %3528 = vmatmul.bf16.vlgmr.msrb.gmra.mxu2 %v10102_v19 }
 0x444   :  { %v3335_v18 = vpop.f32.mrf.mxu3  ;;  %v3191_v33 = vpop.f32.mrf.mxu1 }
 0x445   :  { %v3262_v49 = vpop.f32.mrf.mxu2  ;;  %v3118_v46 = vpop.f32.mrf.mxu0 }
 0x446   :  { %v3263_v61 = vadd.f32 %v3262_v49, %v3190_v51  ;;  %v3119_v58 = vadd.f32 %v3118_v46, %v7488_v63  ;;  %v10105_v51 = vld [vmem:[#allocation58_spill] sm:$0xff]  ;;  %v10107_v49 = vld [vmem:[#allocation60_spill] sm:$0xff] }
 0x448   :  { %v7546_v16 = vadd.f32 %v3335_v18, %v3263_v61  ;;  %v3192_v44 = vadd.f32 %v3191_v33, %v3119_v58 }
 0x44c   :  { %v3337_v19 = vpop.f32.mrf.mxu3  ;;  %v3194_v50 = vpop.f32.mrf.mxu1 }
 0x44d   :  { %v3264_v3 = vpop.f32.mrf.mxu2  ;;  %v3121_v62 = vpop.f32.mrf.mxu0 }
 0x44e   :  { %v3265_v60 = vadd.f32 %v3264_v3, %v3192_v44  ;;  %v3122_v31 = vadd.f32 %v3121_v62, %v7488_v63 }
 0x44f   :  { %3460 = vmatmul.bf16.gmra.mxu1 %v10105_v51  ;;  %v6444_v51 = vld [vmem:[#allocation7 + $0x3ac] sm:$0xf] }
 0x450   :  { %v7549_v32 = vadd.f32 %v3337_v19, %v3265_v60  ;;  %v3195_v29 = vadd.f32 %v3194_v50, %v3122_v31  ;;  %3387 = vmatmul.bf16.gmra.mxu0 %v10104_v28  ;;  %v6412_v60 = vld [vmem:[#allocation7 + $0x2ac] sm:$0xf]  ;;  %v5651_v19 = vld [vmem:[#allocation7 + $0x2b8] sm:$0xf0] }
 0x451   :  { %3606 = vmatmul.bf16.gmra.mxu3 %v10107_v49  ;;  %v5654_v31 = vor.u32 %v6412_v60, %v5651_v19  ;;  %v6348_v50 = vld [vmem:[#allocation7 + $0xac] sm:$0xf]  ;;  %v5395_v28 = vld [vmem:[#allocation7 + $0xb8] sm:$0xf0] }
 0x452   :  { %3533 = vmatmul.bf16.gmra.mxu2 %v10106_v47  ;;  %v5398_v8 = vor.u32 %v6348_v50, %v5395_v28  ;;  %v5779_v47 = vld [vmem:[#allocation7 + $0x3b8] sm:$0xf0]  ;;  %v10108_v28 = vld [vmem:[#allocation61_spill] sm:$0xff]  ;;  %v10109_v50 = vld [vmem:[#allocation62_spill] sm:$0xff] }
 0x453   :  { %v5523_v49 = vld [vmem:[#allocation7 + $0x1b8] sm:$0xf0]  ;;  %3814 = vmatpush.bf16.msra.mxu2 %v5654_v31  ;;  %v10110_v31 = vld [vmem:[#allocation63_spill] sm:$0xff] }
 0x454   :  { %v3340_v46 = vpop.f32.mrf.mxu3  ;;  %v3196_v58 = vpop.f32.mrf.mxu1  ;;  %3668 = vmatpush.bf16.msra.mxu0 %v5398_v8 }
 0x455   :  { %v3267_v61 = vpop.f32.mrf.mxu2  ;;  %v3123_v44 = vpop.f32.mrf.mxu0 }
 0x456   :  { %v3268_v18 = vadd.f32 %v3267_v61, %v3195_v29  ;;  %v3124_v3 = vadd.f32 %v3123_v44, %v7488_v63  ;;  %v5782_v29 = vor.u32 %v6444_v51, %v5779_v47  ;;  %v5526_v61 = vor.u32 %v6380_v35, %v5523_v49  ;;  %v10111_v35 = vld [vmem:[#allocation64_spill] sm:$0xff] }
 0x458   :  { %v7556_v33 = vadd.f32 %v3340_v46, %v3268_v18  ;;  %v3197_v62 = vadd.f32 %v3196_v58, %v3124_v3  ;;  %3887 = vmatpush.bf16.msra.mxu3 %v5782_v29  ;;  %3741 = vmatpush.bf16.msra.mxu1 %v5526_v61 }
 0x45c   :  { %v3342_v46 = vpop.f32.mrf.mxu3  ;;  %v3199_v58 = vpop.f32.mrf.mxu1 }
 0x45d   :  { %v3269_v55 = vpop.f32.mrf.mxu2  ;;  %v3126_v44 = vpop.f32.mrf.mxu0 }
 0x45e   :  { %v3270_v18 = vadd.f32 %v3269_v55, %v3197_v62  ;;  %v3127_v3 = vadd.f32 %v3126_v44, %v7488_v63 }
 0x45f   :  { %3465 = vmatmul.bf16.gmra.mxu1 %v10109_v50 }
 0x460   :  { %v7559_v60 = vadd.f32 %v3342_v46, %v3270_v18  ;;  %v3200_v19 = vadd.f32 %v3199_v58, %v3127_v3  ;;  %3392 = vmatmul.bf16.gmra.mxu0 %v10108_v28  ;;  %v10113_v28 = vld [vmem:[#allocation65_spill] sm:$0xff] }
 0x461   :  { %3611 = vmatmul.bf16.gmra.mxu3 %v10111_v35 }
 0x462   :  { %3538 = vmatmul.bf16.gmra.mxu2 %v10110_v31 }
 0x464   :  { %v3345_v47 = vpop.f32.mrf.mxu3  ;;  %v3201_v62 = vpop.f32.mrf.mxu1 }
 0x465   :  { %v3272_v8 = vpop.f32.mrf.mxu2  ;;  %v3128_v55 = vpop.f32.mrf.mxu0 }
 0x466   :  { %v3273_v51 = vadd.f32 %v3272_v8, %v3200_v19  ;;  %v3129_v49 = vadd.f32 %v3128_v55, %v7488_v63  ;;  %v6408_v19 = vld [vmem:[#allocation7 + $0x28c] sm:$0xf]  ;;  %v5635_v8 = vld [vmem:[#allocation7 + $0x298] sm:$0xf0]  ;;  %v10115_v55 = vld [vmem:[#allocation67_spill] sm:$0xff] }
 0x468   :  { %v7566_v29 = vadd.f32 %v3345_v47, %v3273_v51  ;;  %v3202_v61 = vadd.f32 %v3201_v62, %v3129_v49  ;;  %v5638_v51 = vor.u32 %v6408_v19, %v5635_v8  ;;  %v10116_v47 = vld [vmem:[#allocation68_spill] sm:$0xff]  ;;  %v6344_v49 = vld [vmem:[#allocation7 + $0x8c] sm:$0xf] }
 0x469   :  { %v5379_v62 = vld [vmem:[#allocation7 + $0x98] sm:$0xf0] }
 0x46a   :  { %3815 = vmatpush.bf16.msra.mxu2 %v5638_v51 }
 0x46c   :  { %v3347_v44 = vpop.f32.mrf.mxu3  ;;  %v3204_v50 = vpop.f32.mrf.mxu1 }
 0x46d   :  { %v3274_v18 = vpop.f32.mrf.mxu2  ;;  %v3131_v3 = vpop.f32.mrf.mxu0 }
 0x46e   :  { %v3275_v46 = vadd.f32 %v3274_v18, %v3202_v61  ;;  %v3132_v58 = vadd.f32 %v3131_v3, %v7488_v63  ;;  %v6440_v61 = vld [vmem:[#allocation7 + $0x38c] sm:$0xf]  ;;  %v5382_v18 = vor.u32 %v6344_v49, %v5379_v62  ;;  %v5763_v3 = vld [vmem:[#allocation7 + $0x398] sm:$0xf0] }
 0x46f   :  { %3470 = vmatmul.bf16.gmra.mxu1 %v10114_v45 }
 0x470   :  { %v7569_v31 = vadd.f32 %v3347_v44, %v3275_v46  ;;  %v3205_v35 = vadd.f32 %v3204_v50, %v3132_v58  ;;  %3397 = vmatmul.bf16.gmra.mxu0 %v10113_v28  ;;  %v6376_v46 = vld [vmem:[#allocation7 + $0x18c] sm:$0xf]  ;;  %v5507_v44 = vld [vmem:[#allocation7 + $0x198] sm:$0xf0]  ;;  %v5766_v58 = vor.u32 %v6440_v61, %v5763_v3 }
 0x471   :  { %3616 = vmatmul.bf16.gmra.mxu3 %v10116_v47  ;;  %v5510_v28 = vor.u32 %v6376_v46, %v5507_v44  ;;  %3669 = vmatpush.bf16.msra.mxu0 %v5382_v18  ;;  %v10119_v46 = vld [vmem:[#allocation69_spill] sm:$0xff]  ;;  %v10120_v18 = vld [vmem:[#allocation70_spill] sm:$0xff] }
 0x472   :  { %10112 = vst [vmem:[#allocation142_spill] sm:$0xff] %v7569_v31  ;;  %3543 = vmatmul.bf16.gmra.mxu2 %v10115_v55  ;;  %3888 = vmatpush.bf16.msra.mxu3 %v5766_v58 }
 0x473   :  { %3742 = vmatpush.bf16.msra.mxu1 %v5510_v28  ;;  %v10122_v28 = vld [vmem:[#allocation72_spill] sm:$0xff] }
 0x474   :  { %v3350_v25 = vpop.f32.mrf.mxu3  ;;  %v3206_v19 = vpop.f32.mrf.mxu1 }
 0x475   :  { %v3277_v50 = vpop.f32.mrf.mxu2  ;;  %v3133_v21 = vpop.f32.mrf.mxu0 }
 0x476   :  { %v3278_v30 = vadd.f32 %v3277_v50, %v3205_v35  ;;  %v3134_v55 = vadd.f32 %v3133_v21, %v7488_v63  ;;  %v10121_v21 = vld [vmem:[#allocation71_spill] sm:$0xff] }
 0x478   :  { %v7576_v8 = vadd.f32 %v3350_v25, %v3278_v30  ;;  %v3207_v47 = vadd.f32 %v3206_v19, %v3134_v55  ;;  %v6404_v19 = vld [vmem:[#allocation7 + $0x26c] sm:$0xf] }
 0x47a   :  { %10117 = vst [vmem:[#allocation143_spill] sm:$0xff] %v7576_v8 }
 0x47c   :  { %v3352_v62 = vpop.f32.mrf.mxu3  ;;  %v3209_v61 = vpop.f32.mrf.mxu1 }
 0x47d   :  { %v3279_v51 = vpop.f32.mrf.mxu2  ;;  %v3136_v45 = vpop.f32.mrf.mxu0 }
 0x47e   :  { %v3280_v49 = vadd.f32 %v3279_v51, %v3207_v47  ;;  %v3137_v31 = vadd.f32 %v3136_v45, %v7488_v63  ;;  %v6340_v51 = vld [vmem:[#allocation7 + $0x6c] sm:$0xf] }
 0x47f   :  { %3475 = vmatmul.bf16.gmra.mxu1 %v10120_v18  ;;  %v5747_v18 = vld [vmem:[#allocation7 + $0x378] sm:$0xf0] }
 0x480   :  { %v7579_v3 = vadd.f32 %v3352_v62, %v3280_v49  ;;  %v3210_v35 = vadd.f32 %v3209_v61, %v3137_v31  ;;  %3402 = vmatmul.bf16.gmra.mxu0 %v10119_v46  ;;  %v5619_v31 = vld [vmem:[#allocation7 + $0x278] sm:$0xf0]  ;;  %v6436_v61 = vld [vmem:[#allocation7 + $0x36c] sm:$0xf] }
 0x481   :  { %3621 = vmatmul.bf16.gmra.mxu3 %v10122_v28  ;;  %v5622_v49 = vor.u32 %v6404_v19, %v5619_v31  ;;  %v5363_v62 = vld [vmem:[#allocation7 + $0x78] sm:$0xf0]  ;;  %v5750_v46 = vor.u32 %v6436_v61, %v5747_v18  ;;  %v10125_v31 = vld [vmem:[#allocation73_spill] sm:$0xff]  ;;  %v10127_v18 = vld [vmem:[#allocation75_spill] sm:$0xff] }
 0x482   :  { %10118 = vst [vmem:[#allocation144_spill] sm:$0xff] %v7579_v3  ;;  %3548 = vmatmul.bf16.gmra.mxu2 %v10121_v21  ;;  %v5366_v21 = vor.u32 %v6340_v51, %v5363_v62  ;;  %v10126_v51 = vld [vmem:[#allocation74_spill] sm:$0xff] }
 0x483   :  { %3816 = vmatpush.bf16.msra.mxu2 %v5622_v49  ;;  %3889 = vmatpush.bf16.msra.mxu3 %v5750_v46 }
 0x484   :  { %v3355_v55 = vpop.f32.mrf.mxu3  ;;  %v3211_v50 = vpop.f32.mrf.mxu1  ;;  %3670 = vmatpush.bf16.msra.mxu0 %v5366_v21  ;;  %v10128_v21 = vld [vmem:[#allocation76_spill] sm:$0xff] }
 0x485   :  { %v3282_v25 = vpop.f32.mrf.mxu2  ;;  %v3138_v47 = vpop.f32.mrf.mxu0 }
 0x486   :  { %v3283_v30 = vadd.f32 %v3282_v25, %v3210_v35  ;;  %v3139_v44 = vadd.f32 %v3138_v47, %v7488_v63 }
 0x488   :  { %v7586_v45 = vadd.f32 %v3355_v55, %v3283_v30  ;;  %v3212_v58 = vadd.f32 %v3211_v50, %v3139_v44  ;;  %v6372_v50 = vld [vmem:[#allocation7 + $0x16c] sm:$0xf] }
 0x48a   :  { %10123 = vst [vmem:[#allocation145_spill] sm:$0xff] %v7586_v45  ;;  %v5491_v45 = vld [vmem:[#allocation7 + $0x178] sm:$0xf0] }
 0x48b   :  { %v5494_v3 = vor.u32 %v6372_v50, %v5491_v45 }
 0x48c   :  { %v3357_v25 = vpop.f32.mrf.mxu3  ;;  %v3214_v55 = vpop.f32.mrf.mxu1 }
 0x48d   :  { %v3284_v28 = vpop.f32.mrf.mxu2  ;;  %v3141_v47 = vpop.f32.mrf.mxu0  ;;  %3743 = vmatpush.bf16.msra.mxu1 %v5494_v3 }
 0x48e   :  { %v3285_v35 = vadd.f32 %v3284_v28, %v3212_v58  ;;  %v3142_v30 = vadd.f32 %v3141_v47, %v7488_v63 }
 0x48f   :  { %3480 = vmatmul.bf16.gmra.mxu1 %v10126_v51 }
 0x490   :  { %v7589_v44 = vadd.f32 %v3357_v25, %v3285_v35  ;;  %v3215_v19 = vadd.f32 %v3214_v55, %v3142_v30  ;;  %3407 = vmatmul.bf16.gmra.mxu0 %v10125_v31 }
 0x491   :  { %3626 = vmatmul.bf16.gmra.mxu3 %v10128_v21  ;;  %v10131_v21 = vld [vmem:[#allocation79_spill] sm:$0xff] }
 0x492   :  { %10124 = vst [vmem:[#allocation146_spill] sm:$0xff] %v7589_v44  ;;  %3553 = vmatmul.bf16.gmra.mxu2 %v10127_v18  ;;  %v5475_v44 = vld [vmem:[#allocation7 + $0x158] sm:$0xf0] }
 0x494   :  { %v3360_v58 = vpop.f32.mrf.mxu3  ;;  %v3216_v61 = vpop.f32.mrf.mxu1 }
 0x495   :  { %v3287_v46 = vpop.f32.mrf.mxu2  ;;  %v3143_v49 = vpop.f32.mrf.mxu0 }
 0x496   :  { %v3288_v28 = vadd.f32 %v3287_v46, %v3215_v19  ;;  %v3144_v62 = vadd.f32 %v3143_v49, %v7488_v63  ;;  %v10132_v19 = vld [vmem:[#allocation80_spill] sm:$0xff]  ;;  %v10133_v46 = vld [vmem:[#allocation81_spill] sm:$0xff]  ;;  %v10134_v49 = vld [vmem:[#allocation82_spill] sm:$0xff] }
 0x498   :  { %v7596_v35 = vadd.f32 %v3360_v58, %v3288_v28  ;;  %v3217_v25 = vadd.f32 %v3216_v61, %v3144_v62  ;;  %v6400_v28 = vld [vmem:[#allocation7 + $0x24c] sm:$0xf]  ;;  %v5603_v58 = vld [vmem:[#allocation7 + $0x258] sm:$0xf0] }
 0x499   :  { %v5606_v62 = vor.u32 %v6400_v28, %v5603_v58 }
 0x49a   :  { %10129 = vst [vmem:[#allocation147_spill] sm:$0xff] %v7596_v35  ;;  %v6368_v35 = vld [vmem:[#allocation7 + $0x14c] sm:$0xf] }
 0x49b   :  { %3817 = vmatpush.bf16.msra.mxu2 %v5606_v62  ;;  %v5478_v8 = vor.u32 %v6368_v35, %v5475_v44 }
 0x49c   :  { %v3362_v45 = vpop.f32.mrf.mxu3  ;;  %v3219_v18 = vpop.f32.mrf.mxu1 }
 0x49d   :  { %v3289_v47 = vpop.f32.mrf.mxu2  ;;  %v3146_v55 = vpop.f32.mrf.mxu0  ;;  %3744 = vmatpush.bf16.msra.mxu1 %v5478_v8 }
 0x49e   :  { %v3290_v30 = vadd.f32 %v3289_v47, %v3217_v25  ;;  %v3147_v50 = vadd.f32 %v3146_v55, %v7488_v63 }
 0x49f   :  { %3485 = vmatmul.bf16.gmra.mxu1 %v10132_v19  ;;  %v5347_v19 = vld [vmem:[#allocation7 + $0x58] sm:$0xf0] }
 0x4a0   :  { %v7599_v51 = vadd.f32 %v3362_v45, %v3290_v30  ;;  %v3220_v3 = vadd.f32 %v3219_v18, %v3147_v50  ;;  %3412 = vmatmul.bf16.gmra.mxu0 %v10131_v21  ;;  %v6336_v50 = vld [vmem:[#allocation7 + $0x4c] sm:$0xf] }
 0x4a1   :  { %3631 = vmatmul.bf16.gmra.mxu3 %v10134_v49  ;;  %v6432_v21 = vld [vmem:[#allocation7 + $0x34c] sm:$0xf]  ;;  %v5731_v49 = vld [vmem:[#allocation7 + $0x358] sm:$0xf0] }
 0x4a2   :  { %10130 = vst [vmem:[#allocation148_spill] sm:$0xff] %v7599_v51  ;;  %3558 = vmatmul.bf16.gmra.mxu2 %v10133_v46  ;;  %v5350_v51 = vor.u32 %v6336_v50, %v5347_v19  ;;  %v10135_v19 = vld [vmem:[#allocation85_spill] sm:$0xff] }
 0x4a4   :  { %v3365_v47 = vpop.f32.mrf.mxu3  ;;  %v3221_v45 = vpop.f32.mrf.mxu1  ;;  %3671 = vmatpush.bf16.msra.mxu0 %v5350_v51 }
 0x4a5   :  { %v3292_v61 = vpop.f32.mrf.mxu2  ;;  %v3148_v31 = vpop.f32.mrf.mxu0 }
 0x4a6   :  { %v3293_v25 = vadd.f32 %v3292_v61, %v3220_v3  ;;  %v3149_v30 = vadd.f32 %v3148_v31, %v7488_v63  ;;  %v5734_v61 = vor.u32 %v6432_v21, %v5731_v49 }
 0x4a8   :  { %v7606_v18 = vadd.f32 %v3365_v47, %v3293_v25  ;;  %v3222_v55 = vadd.f32 %v3221_v45, %v3149_v30  ;;  %3890 = vmatpush.bf16.msra.mxu3 %v5734_v61  ;;  %v10136_v30 = vld [vmem:[#allocation86_spill] sm:$0xff]  ;;  %v10139_v61 = vld [vmem:[#allocation89_spill] sm:$0xff] }
 0x4ac   :  { %v3367_v58 = vpop.f32.mrf.mxu3  ;;  %v3224_v31 = vpop.f32.mrf.mxu1 }
 0x4ad   :  { %v3294_v46 = vpop.f32.mrf.mxu2  ;;  %v3151_v3 = vpop.f32.mrf.mxu0 }
 0x4ae   :  { %v3295_v28 = vadd.f32 %v3294_v46, %v3222_v55  ;;  %v3152_v62 = vadd.f32 %v3151_v3, %v7488_v63  ;;  %v10137_v46 = vld [vmem:[#allocation87_spill] sm:$0xff]  ;;  %v10138_v3 = vld [vmem:[#allocation88_spill] sm:$0xff] }
 0x4af   :  { %3490 = vmatmul.bf16.gmra.mxu1 %v10135_v19 }
 0x4b0   :  { %v7609_v25 = vadd.f32 %v3367_v58, %v3295_v28  ;;  %v3225_v47 = vadd.f32 %v3224_v31, %v3152_v62  ;;  %3417 = vmatmul.bf16.gmra.mxu0 %v7042_v10  ;;  %v10140_v62 = vld [vmem:[#allocation90_spill] sm:$0xff] }
 0x4b1   :  { %3636 = vmatmul.bf16.gmra.mxu3 %v10137_v46  ;;  %v6396_v31 = vld [vmem:[#allocation7 + $0x22c] sm:$0xf] }
 0x4b2   :  { %3563 = vmatmul.bf16.gmra.mxu2 %v10136_v30 }
 0x4b4   :  { %v3370_v44 = vpop.f32.mrf.mxu3  ;;  %v3226_v63 = vpop.f32.mrf.mxu1 }
 0x4b5   :  { %v3297_v45 = vpop.f32.mrf.mxu2  ;;  %v3153_v35 = vpop.f32.mrf.mxu0  ;;  %v6428_v63 = vld [vmem:[#allocation7 + $0x32c] sm:$0xf] }
 0x4b6   :  { %v3298_v21 = vadd.f32 %v3297_v45, %v3225_v47  ;;  %v5587_v47 = vld [vmem:[#allocation7 + $0x238] sm:$0xf0]  ;;  %v6332_v45 = vld [vmem:[#allocation7 + $0x2c] sm:$0xf]  ;;  %v10141_v35 = vld [vmem:[#allocation91_spill] sm:$0xff] }
 0x4b8   :  { %v7615_v49 = vadd.f32 %v3370_v44, %v3298_v21  ;;  %v5590_v21 = vor.u32 %v6396_v31, %v5587_v47  ;;  %v5331_v44 = vld [vmem:[#allocation7 + $0x38] sm:$0xf0] }
 0x4ba   :  { %3818 = vmatpush.bf16.msra.mxu2 %v5590_v21 }
 0x4bc   :  { %v3372_v55 = vpop.f32.mrf.mxu3  ;;  %v3456_v28 = vpop.f32.mrf.mxu1 }
 0x4bd   :  { %v3299_v51 = vpop.f32.mrf.mxu2  ;;  %v3383_v50 = vpop.f32.mrf.mxu0  ;;  %v5334_v55 = vor.u32 %v6332_v45, %v5331_v44 }
 0x4be   :  { %v3384_v8 = vadd.f32 %v3383_v50, %v7496_v4  ;;  %v5715_v51 = vld [vmem:[#allocation7 + $0x338] sm:$0xf0]  ;;  %v6364_v4 = vld [vmem:[#allocation7 + $0x12c] sm:$0xf] }
 0x4bf   :  { %3495 = vmatmul.bf16.gmra.mxu1 %v10139_v61  ;;  %v5718_v46 = vor.u32 %v6428_v63, %v5715_v51  ;;  %v5459_v50 = vld [vmem:[#allocation7 + $0x138] sm:$0xf0]  ;;  %3672 = vmatpush.bf16.msra.mxu0 %v5334_v55 }
 0x4c0   :  { %v3457_v58 = vadd.f32 %v3456_v28, %v3384_v8  ;;  %3422 = vmatmul.bf16.gmra.mxu0 %v10138_v3  ;;  %v5462_v28 = vor.u32 %v6364_v4, %v5459_v50  ;;  %v6392_v50 = vld [vmem:[#allocation7 + $0x20c] sm:$0xf] }
 0x4c1   :  { %3641 = vmatmul.bf16.gmra.mxu3 %v10141_v35 }
 0x4c2   :  { %3568 = vmatmul.bf16.gmra.mxu2 %v10140_v62  ;;  %3891 = vmatpush.bf16.msra.mxu3 %v5718_v46 }
 0x4c3   :  { %3745 = vmatpush.bf16.msra.mxu1 %v5462_v28  ;;  %v6328_v28 = vld [vmem:[#allocation7 + $0xc] sm:$0xf] }
 0x4c4   :  { %v3602_v61 = vpop.f32.mrf.mxu3  ;;  %v3458_v19 = vpop.f32.mrf.mxu1 }
 0x4c5   :  { %v3529_v8 = vpop.f32.mrf.mxu2  ;;  %v3385_v30 = vpop.f32.mrf.mxu0 }
 0x4c6   :  { %v3530_v3 = vadd.f32 %v3529_v8, %v3457_v58  ;;  %v3386_v62 = vadd.f32 %v3385_v30, %v7499_v26  ;;  %v10143_v26 = vld [vmem:[#allocation95_spill] sm:$0xff]  ;;  %v10144_v30 = vld [vmem:[#allocation96_spill] sm:$0xff] }
 0x4c7   :  { %v5571_v8 = vld [vmem:[#allocation7 + $0x218] sm:$0xf0] }
 0x4c8   :  { %v7623_v31 = vadd.f32 %v3602_v61, %v3530_v3  ;;  %v3459_v47 = vadd.f32 %v3458_v19, %v3386_v62 }
 0x4ca   :  { %10142 = vst [vmem:[#allocation149_spill] sm:$0xff] %v7623_v31 }
 0x4cc   :  { %v3604_v44 = vpop.f32.mrf.mxu3  ;;  %v3461_v21 = vpop.f32.mrf.mxu1 }
 0x4cd   :  { %v3531_v35 = vpop.f32.mrf.mxu2  ;;  %v3388_v63 = vpop.f32.mrf.mxu0 }
 0x4ce   :  { %v3532_v45 = vadd.f32 %v3531_v35, %v3459_v47  ;;  %v3389_v51 = vadd.f32 %v3388_v63, %v7506_v7  ;;  %v6424_v63 = vld [vmem:[#allocation7 + $0x30c] sm:$0xf] }
 0x4cf   :  { %3500 = vmatmul.bf16.gmra.mxu1 %v10028_v17  ;;  %v6360_v17 = vld [vmem:[#allocation7 + $0x10c] sm:$0xf] }
 0x4d0   :  { %v7626_v4 = vadd.f32 %v3604_v44, %v3532_v45  ;;  %v3462_v58 = vadd.f32 %v3461_v21, %v3389_v51  ;;  %3427 = vmatmul.bf16.gmra.mxu0 %v10027_v27  ;;  %v5574_v45 = vor.u32 %v6392_v50, %v5571_v8  ;;  %v5315_v44 = vld [vmem:[#allocation7 + $0x18] sm:$0xf0] }
 0x4d1   :  { %3646 = vmatmul.bf16.gmra.mxu3 %v10144_v30  ;;  %v5699_v51 = vld [vmem:[#allocation7 + $0x318] sm:$0xf0] }
 0x4d2   :  { %3573 = vmatmul.bf16.gmra.mxu2 %v10143_v26  ;;  %v5443_v27 = vld [vmem:[#allocation7 + $0x118] sm:$0xf0] }
 0x4d3   :  { %3819 = vmatpush.bf16.msra.mxu2 %v5574_v45 }
 0x4d4   :  { %v3607_v3 = vpop.f32.mrf.mxu3  ;;  %v3463_v35 = vpop.f32.mrf.mxu1 }
 0x4d5   :  { %v3534_v46 = vpop.f32.mrf.mxu2  ;;  %v3390_v61 = vpop.f32.mrf.mxu0 }
 0x4d6   :  { %v3535_v19 = vadd.f32 %v3534_v46, %v3462_v58  ;;  %v3391_v62 = vadd.f32 %v3390_v61, %v7509_v23  ;;  %v5318_v58 = vor.u32 %v6328_v28, %v5315_v44  ;;  %v5702_v46 = vor.u32 %v6424_v63, %v5699_v51 }
 0x4d8   :  { %v7633_v7 = vadd.f32 %v3607_v3, %v3535_v19  ;;  %v3464_v55 = vadd.f32 %v3463_v35, %v3391_v62  ;;  %v5446_v3 = vor.u32 %v6360_v17, %v5443_v27  ;;  %3673 = vmatpush.bf16.msra.mxu0 %v5318_v58  ;;  %3892 = vmatpush.bf16.msra.mxu3 %v5702_v46  ;;  %v6195_v58 = vld [vmem:[#allocation7 + $0x6f8] sm:$0xf0]  ;;  %v6484_v46 = vld [vmem:[#allocation7 + $0x4ec] sm:$0xf] }
 0x4da   :  { %3746 = vmatpush.bf16.msra.mxu1 %v5446_v3  ;;  %v5939_v3 = vld [vmem:[#allocation7 + $0x4f8] sm:$0xf0] }
 0x4dc   :  { %v3609_v30 = vpop.f32.mrf.mxu3  ;;  %v3466_v19 = vpop.f32.mrf.mxu1 }
 0x4dd   :  { %v3536_v47 = vpop.f32.mrf.mxu2  ;;  %v3393_v26 = vpop.f32.mrf.mxu0 }
 0x4de   :  { %v3537_v21 = vadd.f32 %v3536_v47, %v3464_v55  ;;  %v3394_v23 = vadd.f32 %v3393_v26, %v7516_v34 }
 0x4df   :  { %3505 = vmatmul.bf16.gmra.mxu1 %v7095_v1 }
 0x4e0   :  { %v7636_v61 = vadd.f32 %v3609_v30, %v3537_v21  ;;  %v3467_v62 = vadd.f32 %v3466_v19, %v3394_v23  ;;  %3432 = vmatmul.bf16.gmra.mxu0 %v7093_v20 }
 0x4e1   :  { %3651 = vmatmul.bf16.gmra.mxu3 %v7100_v2 }
 0x4e2   :  { %3578 = vmatmul.bf16.gmra.mxu2 %v7097_v9 }
 0x4e4   :  { %v3612_v34 = vpop.f32.mrf.mxu3  ;;  %v3468_v17 = vpop.f32.mrf.mxu1 }
 0x4e5   :  { %v3539_v35 = vpop.f32.mrf.mxu2  ;;  %v3395_v26 = vpop.f32.mrf.mxu0 }
 0x4e6   :  { %v3540_v55 = vadd.f32 %v3539_v35, %v3467_v62  ;;  %v3396_v27 = vadd.f32 %v3395_v26, %v7519_v40  ;;  %v6548_v40 = vld [vmem:[#allocation7 + $0x6ec] sm:$0xf]  ;;  %v5942_v26 = vor.u32 %v6484_v46, %v5939_v3 }
 0x4e7   :  { %v6198_v19 = vor.u32 %v6548_v40, %v6195_v58  ;;  %v6580_v62 = vld [vmem:[#allocation7 + $0x7ec] sm:$0xf] }
 0x4e8   :  { %v7643_v30 = vadd.f32 %v3612_v34, %v3540_v55  ;;  %v3469_v50 = vadd.f32 %v3468_v17, %v3396_v27  ;;  %3958 = vmatpush.bf16.msrb.mxu0 %v5942_v26 }
 0x4e9   :  { %4104 = vmatpush.bf16.msrb.mxu2 %v6198_v19 }
 0x4ea   :  { %10145 = vst [vmem:[#allocation150_spill] sm:$0xff] %v7643_v30 }
 0x4ec   :  { %v3614_v47 = vpop.f32.mrf.mxu3  ;;  %v3471_v63 = vpop.f32.mrf.mxu1 }
 0x4ed   :  { %v3541_v8 = vpop.f32.mrf.mxu2  ;;  %v3398_v45 = vpop.f32.mrf.mxu0 }
 0x4ee   :  { %v3542_v28 = vadd.f32 %v3541_v8, %v3469_v50  ;;  %v3399_v44 = vadd.f32 %v3398_v45, %v7526_v5  ;;  %v6323_v5 = vld [vmem:[#allocation7 + $0x7f8] sm:$0xf0] }
 0x4ef   :  { %3510 = vmatmul.bf16.gmra.mxu1 %v7113_v59  ;;  %v6326_v27 = vor.u32 %v6580_v62, %v6323_v5  ;;  %v6067_v45 = vld [vmem:[#allocation7 + $0x5f8] sm:$0xf0] }
 0x4f0   :  { %v7646_v51 = vadd.f32 %v3614_v47, %v3542_v28  ;;  %v3472_v21 = vadd.f32 %v3471_v63, %v3399_v44  ;;  %3437 = vmatmul.bf16.gmra.mxu0 %v7111_v22  ;;  %v6516_v47 = vld [vmem:[#allocation7 + $0x5ec] sm:$0xf] }
 0x4f1   :  { %3656 = vmatmul.bf16.gmra.mxu3 %v7118_v0  ;;  %v6070_v63 = vor.u32 %v6516_v47, %v6067_v45 }
 0x4f2   :  { %10146 = vst [vmem:[#allocation151_spill] sm:$0xff] %v7646_v51  ;;  %3583 = vmatmul.bf16.gmra.mxu2 %v7115_v6  ;;  %4177 = vmatpush.bf16.msrb.mxu3 %v6326_v27  ;;  %v6544_v27 = vld [vmem:[#allocation7 + $0x6cc] sm:$0xf] }
 0x4f3   :  { %4031 = vmatpush.bf16.msrb.mxu1 %v6070_v63 }
 0x4f4   :  { %v3617_v55 = vpop.f32.mrf.mxu3  ;;  %v3473_v50 = vpop.f32.mrf.mxu1 }
 0x4f5   :  { %v3544_v23 = vpop.f32.mrf.mxu2  ;;  %v3400_v34 = vpop.f32.mrf.mxu0 }
 0x4f6   :  { %v3545_v35 = vadd.f32 %v3544_v23, %v3472_v21  ;;  %v3401_v17 = vadd.f32 %v3400_v34, %v7529_v41 }
 0x4f8   :  { %v7653_v8 = vadd.f32 %v3617_v55, %v3545_v35  ;;  %v3474_v28 = vadd.f32 %v3473_v50, %v3401_v17  ;;  %v6179_v17 = vld [vmem:[#allocation7 + $0x6d8] sm:$0xf0] }
 0x4fa   :  { %10147 = vst [vmem:[#allocation152_spill] sm:$0xff] %v7653_v8 }
 0x4fc   :  { %v3619_v58 = vpop.f32.mrf.mxu3  ;;  %v3476_v46 = vpop.f32.mrf.mxu1 }
 0x4fd   :  { %v3546_v44 = vpop.f32.mrf.mxu2  ;;  %v3403_v21 = vpop.f32.mrf.mxu0 }
 0x4fe   :  { %v3547_v40 = vadd.f32 %v3546_v44, %v3474_v28  ;;  %v3404_v23 = vadd.f32 %v3403_v21, %v7536_v52  ;;  %v6182_v28 = vor.u32 %v6544_v27, %v6179_v17 }
 0x4ff   :  { %3515 = vmatmul.bf16.gmra.mxu1 %v7131_v43 }
 0x500   :  { %v7656_v3 = vadd.f32 %v3619_v58, %v3547_v40  ;;  %v3477_v41 = vadd.f32 %v3476_v46, %v3404_v23  ;;  %3442 = vmatmul.bf16.gmra.mxu0 %v7129_v42  ;;  %4105 = vmatpush.bf16.msrb.mxu2 %v6182_v28  ;;  %v5923_v23 = vld [vmem:[#allocation7 + $0x4d8] sm:$0xf0]  ;;  %v6576_v46 = vld [vmem:[#allocation7 + $0x7cc] sm:$0xf] }
 0x501   :  { %3661 = vmatmul.bf16.gmra.mxu3 %v7136_v11 }
 0x502   :  { %10148 = vst [vmem:[#allocation153_spill] sm:$0xff] %v7656_v3  ;;  %3588 = vmatmul.bf16.gmra.mxu2 %v7133_v24 }
 0x504   :  { %v3622_v5 = vpop.f32.mrf.mxu3  ;;  %v3478_v52 = vpop.f32.mrf.mxu1 }
 0x505   :  { %v3549_v19 = vpop.f32.mrf.mxu2  ;;  %v3405_v35 = vpop.f32.mrf.mxu0 }
 0x506   :  { %v3550_v62 = vadd.f32 %v3549_v19, %v3477_v41  ;;  %v3406_v55 = vadd.f32 %v3405_v35, %v7539_v56  ;;  %v6480_v56 = vld [vmem:[#allocation7 + $0x4cc] sm:$0xf] }
 0x507   :  { %v5926_v19 = vor.u32 %v6480_v56, %v5923_v23 }
 0x508   :  { %v7663_v34 = vadd.f32 %v3622_v5, %v3550_v62  ;;  %v3479_v26 = vadd.f32 %v3478_v52, %v3406_v55  ;;  %v6307_v62 = vld [vmem:[#allocation7 + $0x7d8] sm:$0xf0] }
 0x509   :  { %v6051_v5 = vld [vmem:[#allocation7 + $0x5d8] sm:$0xf0]  ;;  %3959 = vmatpush.bf16.msrb.mxu0 %v5926_v19 }
 0x50a   :  { %10149 = vst [vmem:[#allocation154_spill] sm:$0xff] %v7663_v34 }
 0x50c   :  { %v3624_v45 = vpop.f32.mrf.mxu3  ;;  %v3481_v40 = vpop.f32.mrf.mxu1 }
 0x50d   :  { %v3551_v50 = vpop.f32.mrf.mxu2  ;;  %v3408_v44 = vpop.f32.mrf.mxu0 }
 0x50e   :  { %v3552_v47 = vadd.f32 %v3551_v50, %v3479_v26  ;;  %v3409_v63 = vadd.f32 %v3408_v44, %v7546_v16  ;;  %v6512_v16 = vld [vmem:[#allocation7 + $0x5cc] sm:$0xf]  ;;  %v6310_v26 = vor.u32 %v6576_v46, %v6307_v62 }
 0x50f   :  { %3747 = vmatmul.bf16.vlgmr.msra.gmra.mxu1 %v6729_v53  ;;  %v6054_v27 = vor.u32 %v6512_v16, %v6051_v5  ;;  %v6540_v62 = vld [vmem:[#allocation7 + $0x6ac] sm:$0xf]  ;;  %v6163_v16 = vld [vmem:[#allocation7 + $0x6b8] sm:$0xf0] }
 0x510   :  { %v7666_v58 = vadd.f32 %v3624_v45, %v3552_v47  ;;  %v3482_v21 = vadd.f32 %v3481_v40, %v3409_v63  ;;  %3674 = vmatmul.bf16.vlgmr.msra.gmra.mxu0 %v6727_v48  ;;  %4178 = vmatpush.bf16.msrb.mxu3 %v6310_v26  ;;  %v6476_v5 = vld [vmem:[#allocation7 + $0x4ac] sm:$0xf] }
 0x511   :  { %3893 = vmatmul.bf16.vlgmr.msra.gmra.mxu3 %v6733_v57  ;;  %4032 = vmatpush.bf16.msrb.mxu1 %v6054_v27 }
 0x512   :  { %10150 = vst [vmem:[#allocation155_spill] sm:$0xff] %v7666_v58  ;;  %3820 = vmatmul.bf16.vlgmr.msra.gmra.mxu2 %v6731_v54 }
 0x514   :  { %v3627_v55 = vpop.f32.mrf.mxu3  ;;  %v3483_v53 = vpop.f32.mrf.mxu1 }
 0x515   :  { %v3554_v41 = vpop.f32.mrf.mxu2  ;;  %v3410_v52 = vpop.f32.mrf.mxu0 }
 0x516   :  { %v3555_v35 = vadd.f32 %v3554_v41, %v3482_v21  ;;  %v3411_v48 = vadd.f32 %v3410_v52, %v7549_v32 }
 0x518   :  { %v7673_v54 = vadd.f32 %v3627_v55, %v3555_v35  ;;  %v3484_v57 = vadd.f32 %v3483_v53, %v3411_v48  ;;  %v6166_v35 = vor.u32 %v6540_v62, %v6163_v16  ;;  %v6572_v55 = vld [vmem:[#allocation7 + $0x7ac] sm:$0xf]  ;;  %v10157_v16 = vld [vmem:[#allocation143_spill] sm:$0xff] }
 0x519   :  { %v6508_v53 = vld [vmem:[#allocation7 + $0x5ac] sm:$0xf] }
 0x51a   :  { %10151 = vst [vmem:[#allocation156_spill] sm:$0xff] %v7673_v54  ;;  %4106 = vmatpush.bf16.msrb.mxu2 %v6166_v35  ;;  %v10160_v35 = vld [vmem:[#allocation14_spill] sm:$0xff] }
 0x51c   :  { %v3629_v28 = vpop.f32.mrf.mxu3  ;;  %v3486_v44 = vpop.f32.mrf.mxu1 }
 0x51d   :  { %v3556_v17 = vpop.f32.mrf.mxu2  ;;  %v3413_v47 = vpop.f32.mrf.mxu0 }
 0x51e   :  { %v3557_v50 = vadd.f32 %v3556_v17, %v3484_v57  ;;  %v3414_v45 = vadd.f32 %v3413_v47, %v7556_v33  ;;  %v6035_v57 = vld [vmem:[#allocation7 + $0x5b8] sm:$0xf0] }
 0x51f   :  { %3752 = vmatmul.bf16.gmra.mxu1 %v6741_v13  ;;  %v5907_v13 = vld [vmem:[#allocation7 + $0x4b8] sm:$0xf0] }
 0x520   :  { %v7676_v63 = vadd.f32 %v3629_v28, %v3557_v50  ;;  %v3487_v40 = vadd.f32 %v3486_v44, %v3414_v45  ;;  %3679 = vmatmul.bf16.gmra.mxu0 %v6739_v12  ;;  %v5910_v27 = vor.u32 %v6476_v5, %v5907_v13  ;;  %v6038_v50 = vor.u32 %v6508_v53, %v6035_v57  ;;  %v10161_v13 = vld [vmem:[#allocation15_spill] sm:$0xff]  ;;  %v6568_v53 = vld [vmem:[#allocation7 + $0x78c] sm:$0xf]  ;;  %v6275_v57 = vld [vmem:[#allocation7 + $0x798] sm:$0xf0] }
 0x521   :  { %3898 = vmatmul.bf16.gmra.mxu3 %v6745_v15 }
 0x522   :  { %10152 = vst [vmem:[#allocation157_spill] sm:$0xff] %v7676_v63  ;;  %3825 = vmatmul.bf16.gmra.mxu2 %v6743_v14  ;;  %v6291_v14 = vld [vmem:[#allocation7 + $0x7b8] sm:$0xf0]  ;;  %3960 = vmatpush.bf16.msrb.mxu0 %v5910_v27 }
 0x523   :  { %v6294_v48 = vor.u32 %v6572_v55, %v6291_v14  ;;  %4033 = vmatpush.bf16.msrb.mxu1 %v6038_v50  ;;  %v10162_v55 = vld [vmem:[#allocation16_spill] sm:$0xff]  ;;  %v6536_v14 = vld [vmem:[#allocation7 + $0x68c] sm:$0xf] }
 0x524   :  { %v3632_v56 = vpop.f32.mrf.mxu3  ;;  %v3488_v41 = vpop.f32.mrf.mxu1 }
 0x525   :  { %v3559_v32 = vpop.f32.mrf.mxu2  ;;  %v3415_v23 = vpop.f32.mrf.mxu0  ;;  %4179 = vmatpush.bf16.msrb.mxu3 %v6294_v48  ;;  %v5891_v48 = vld [vmem:[#allocation7 + $0x498] sm:$0xf0] }
 0x526   :  { %v3560_v21 = vadd.f32 %v3559_v32, %v3487_v40  ;;  %v3416_v46 = vadd.f32 %v3415_v23, %v7559_v60  ;;  %v10155_v32 = vld [vmem:[#allocation142_spill] sm:$0xff] }
 0x528   :  { %v7683_v33 = vadd.f32 %v3632_v56, %v3560_v21  ;;  %v3489_v19 = vadd.f32 %v3488_v41, %v3416_v46 }
 0x52a   :  { %10153 = vst [vmem:[#allocation158_spill] sm:$0xff] %v7683_v33 }
 0x52c   :  { %v3634_v15 = vpop.f32.mrf.mxu3  ;;  %v3491_v17 = vpop.f32.mrf.mxu1 }
 0x52d   :  { %v3561_v12 = vpop.f32.mrf.mxu2  ;;  %v3418_v26 = vpop.f32.mrf.mxu0 }
 0x52e   :  { %v3562_v52 = vadd.f32 %v3561_v12, %v3489_v19  ;;  %v3419_v60 = vadd.f32 %v3418_v26, %v7566_v29  ;;  %v10159_v12 = vld [vmem:[#allocation13_spill] sm:$0xff] }
 0x52f   :  { %3757 = vmatmul.bf16.gmra.mxu1 %v6753_v37 }
 0x530   :  { %v7686_v28 = vadd.f32 %v3634_v15, %v3562_v52  ;;  %v3492_v47 = vadd.f32 %v3491_v17, %v3419_v60  ;;  %3684 = vmatmul.bf16.gmra.mxu0 %v6751_v36  ;;  %v6147_v52 = vld [vmem:[#allocation7 + $0x698] sm:$0xf0]  ;;  %v6472_v15 = vld [vmem:[#allocation7 + $0x48c] sm:$0xf] }
 0x531   :  { %3903 = vmatmul.bf16.gmra.mxu3 %v6757_v39  ;;  %v6150_v27 = vor.u32 %v6536_v14, %v6147_v52  ;;  %v10169_v14 = vld [vmem:[#allocation19_spill] sm:$0xff]  ;;  %v10170_v52 = vld [vmem:[#allocation20_spill] sm:$0xff] }
 0x532   :  { %10154 = vst [vmem:[#allocation159_spill] sm:$0xff] %v7686_v28  ;;  %3830 = vmatmul.bf16.gmra.mxu2 %v6755_v38 }
 0x533   :  { %4107 = vmatpush.bf16.msrb.mxu2 %v6150_v27 }
 0x534   :  { %v3637_v29 = vpop.f32.mrf.mxu3  ;;  %v3493_v56 = vpop.f32.mrf.mxu1 }
 0x535   :  { %v3564_v45 = vpop.f32.mrf.mxu2  ;;  %v3420_v40 = vpop.f32.mrf.mxu0 }
 0x536   :  { %v3565_v44 = vadd.f32 %v3564_v45, %v3492_v47  ;;  %v3421_v21 = vadd.f32 %v3420_v40, %v10155_v32  ;;  %v5894_v47 = vor.u32 %v6472_v15, %v5891_v48  ;;  %v6278_v45 = vor.u32 %v6568_v53, %v6275_v57  ;;  %v10163_v40 = vld [vmem:[#allocation144_spill] sm:$0xff]  ;;  %v10171_v53 = vld [vmem:[#allocation146_spill] sm:$0xff] }
 0x538   :  { %v7693_v23 = vadd.f32 %v3637_v29, %v3565_v44  ;;  %v3494_v46 = vadd.f32 %v3493_v56, %v3421_v21  ;;  %v6504_v44 = vld [vmem:[#allocation7 + $0x58c] sm:$0xf]  ;;  %v6019_v29 = vld [vmem:[#allocation7 + $0x598] sm:$0xf0]  ;;  %3961 = vmatpush.bf16.msrb.mxu0 %v5894_v47  ;;  %4180 = vmatpush.bf16.msrb.mxu3 %v6278_v45 }
 0x539   :  { %v6022_v56 = vor.u32 %v6504_v44, %v6019_v29  ;;  %v6532_v47 = vld [vmem:[#allocation7 + $0x66c] sm:$0xf]  ;;  %v6131_v45 = vld [vmem:[#allocation7 + $0x678] sm:$0xf0] }
 0x53a   :  { %10156 = vst [vmem:[#allocation142_spill] sm:$0xff] %v7693_v23  ;;  %v6468_v44 = vld [vmem:[#allocation7 + $0x46c] sm:$0xf] }
 0x53b   :  { %4034 = vmatpush.bf16.msrb.mxu1 %v6022_v56  ;;  %v6259_v56 = vld [vmem:[#allocation7 + $0x778] sm:$0xf0] }
 0x53c   :  { %v3639_v36 = vpop.f32.mrf.mxu3  ;;  %v3496_v5 = vpop.f32.mrf.mxu1 }
 0x53d   :  { %v3566_v41 = vpop.f32.mrf.mxu2  ;;  %v3423_v62 = vpop.f32.mrf.mxu0 }
 0x53e   :  { %v3567_v19 = vadd.f32 %v3566_v41, %v3494_v46  ;;  %v3424_v37 = vadd.f32 %v3423_v62, %v10157_v16 }
 0x53f   :  { %3762 = vmatmul.bf16.gmra.mxu1 %v10160_v35 }
 0x540   :  { %v7696_v38 = vadd.f32 %v3639_v36, %v3567_v19  ;;  %v3497_v39 = vadd.f32 %v3496_v5, %v3424_v37  ;;  %3689 = vmatmul.bf16.gmra.mxu0 %v10159_v12  ;;  %v10165_v37 = vld [vmem:[#allocation145_spill] sm:$0xff] }
 0x541   :  { %3908 = vmatmul.bf16.gmra.mxu3 %v10162_v55  ;;  %v10168_v55 = vld [vmem:[#allocation18_spill] sm:$0xff] }
 0x542   :  { %10158 = vst [vmem:[#allocation143_spill] sm:$0xff] %v7696_v38  ;;  %3835 = vmatmul.bf16.gmra.mxu2 %v10161_v13  ;;  %v10167_v13 = vld [vmem:[#allocation17_spill] sm:$0xff] }
 0x543   :  { %v10262_v38 = vld [vmem:[#allocation97_spill] sm:$0xff] }
 0x544   :  { %v3642_v17 = vpop.f32.mrf.mxu3  ;;  %v3498_v21 = vpop.f32.mrf.mxu1 }
 0x545   :  { %v3569_v26 = vpop.f32.mrf.mxu2  ;;  %v3425_v50 = vpop.f32.mrf.mxu0 }
 0x546   :  { %v3570_v60 = vadd.f32 %v3569_v26, %v3497_v39  ;;  %v3426_v32 = vadd.f32 %v3425_v50, %v10163_v40  ;;  %v6134_v40 = vor.u32 %v6532_v47, %v6131_v45  ;;  %v10179_v47 = vld [vmem:[#allocation148_spill] sm:$0xff] }
 0x548   :  { %v7703_v46 = vadd.f32 %v3642_v17, %v3570_v60  ;;  %v3499_v41 = vadd.f32 %v3498_v21, %v3426_v32  ;;  %v5875_v32 = vld [vmem:[#allocation7 + $0x478] sm:$0xf0]  ;;  %v6564_v21 = vld [vmem:[#allocation7 + $0x76c] sm:$0xf]  ;;  %4108 = vmatpush.bf16.msrb.mxu2 %v6134_v40 }
 0x54a   :  { %10164 = vst [vmem:[#allocation13_spill] sm:$0xff] %v7703_v46  ;;  %v10232_v46 = vld [vmem:[#allocation69_spill] sm:$0xff] }
 0x54c   :  { %v3644_v62 = vpop.f32.mrf.mxu3  ;;  %v3501_v39 = vpop.f32.mrf.mxu1 }
 0x54d   :  { %v3571_v19 = vpop.f32.mrf.mxu2  ;;  %v3428_v16 = vpop.f32.mrf.mxu0 }
 0x54e   :  { %v3572_v36 = vadd.f32 %v3571_v19, %v3499_v41  ;;  %v3429_v5 = vadd.f32 %v3428_v16, %v10165_v37  ;;  %v6262_v16 = vor.u32 %v6564_v21, %v6259_v56  ;;  %v10173_v37 = vld [vmem:[#allocation147_spill] sm:$0xff] }
 0x54f   :  { %3767 = vmatmul.bf16.gmra.mxu1 %v10168_v55  ;;  %v10175_v55 = vld [vmem:[#allocation21_spill] sm:$0xff] }
 0x550   :  { %v7706_v12 = vadd.f32 %v3644_v62, %v3572_v36  ;;  %v3502_v35 = vadd.f32 %v3501_v39, %v3429_v5  ;;  %3694 = vmatmul.bf16.gmra.mxu0 %v10167_v13  ;;  %v5878_v62 = vor.u32 %v6468_v44, %v5875_v32  ;;  %4181 = vmatpush.bf16.msrb.mxu3 %v6262_v16 }
 0x551   :  { %3913 = vmatmul.bf16.gmra.mxu3 %v10170_v52  ;;  %v10177_v52 = vld [vmem:[#allocation23_spill] sm:$0xff] }
 0x552   :  { %10166 = vst [vmem:[#allocation14_spill] sm:$0xff] %v7706_v12  ;;  %3840 = vmatmul.bf16.gmra.mxu2 %v10169_v14  ;;  %3962 = vmatpush.bf16.msrb.mxu0 %v5878_v62  ;;  %v10176_v14 = vld [vmem:[#allocation22_spill] sm:$0xff] }
 0x554   :  { %v3647_v27 = vpop.f32.mrf.mxu3  ;;  %v3503_v60 = vpop.f32.mrf.mxu1 }
 0x555   :  { %v3574_v15 = vpop.f32.mrf.mxu2  ;;  %v3430_v48 = vpop.f32.mrf.mxu0 }
 0x556   :  { %v3575_v26 = vadd.f32 %v3574_v15, %v3502_v35  ;;  %v3431_v57 = vadd.f32 %v3430_v48, %v10171_v53  ;;  %v10178_v15 = vld [vmem:[#allocation24_spill] sm:$0xff] }
 0x558   :  { %v7713_v17 = vadd.f32 %v3647_v27, %v3575_v26  ;;  %v3504_v50 = vadd.f32 %v3503_v60, %v3431_v57  ;;  %v6500_v26 = vld [vmem:[#allocation7 + $0x56c] sm:$0xf]  ;;  %v6003_v27 = vld [vmem:[#allocation7 + $0x578] sm:$0xf0] }
 0x559   :  { %v6006_v53 = vor.u32 %v6500_v26, %v6003_v27 }
 0x55a   :  { %10172 = vst [vmem:[#allocation15_spill] sm:$0xff] %v7713_v17  ;;  %v10226_v17 = vld [vmem:[#allocation65_spill] sm:$0xff] }
 0x55b   :  { %4035 = vmatpush.bf16.msrb.mxu1 %v6006_v53 }
 0x55c   :  { %v3649_v19 = vpop.f32.mrf.mxu3  ;;  %v3506_v39 = vpop.f32.mrf.mxu1 }
 0x55d   :  { %v3576_v29 = vpop.f32.mrf.mxu2  ;;  %v3433_v36 = vpop.f32.mrf.mxu0 }
 0x55e   :  { %v3577_v41 = vadd.f32 %v3576_v29, %v3504_v50  ;;  %v3434_v5 = vadd.f32 %v3433_v36, %v10173_v37  ;;  %v10182_v37 = vld [vmem:[#allocation25_spill] sm:$0xff] }
 0x55f   :  { %3772 = vmatmul.bf16.gmra.mxu1 %v10176_v14  ;;  %v6115_v14 = vld [vmem:[#allocation7 + $0x658] sm:$0xf0] }
 0x560   :  { %v7716_v35 = vadd.f32 %v3649_v19, %v3577_v41  ;;  %v3507_v13 = vadd.f32 %v3506_v39, %v3434_v5  ;;  %3699 = vmatmul.bf16.gmra.mxu0 %v10175_v55  ;;  %v10183_v5 = vld [vmem:[#allocation26_spill] sm:$0xff]  ;;  %v10184_v39 = vld [vmem:[#allocation27_spill] sm:$0xff] }
 0x561   :  { %3918 = vmatmul.bf16.gmra.mxu3 %v10178_v15  ;;  %v6528_v55 = vld [vmem:[#allocation7 + $0x64c] sm:$0xf] }
 0x562   :  { %10174 = vst [vmem:[#allocation16_spill] sm:$0xff] %v7716_v35  ;;  %3845 = vmatmul.bf16.gmra.mxu2 %v10177_v52  ;;  %v6118_v52 = vor.u32 %v6528_v55, %v6115_v14  ;;  %v10188_v55 = vld [vmem:[#allocation29_spill] sm:$0xff]  ;;  %v10189_v14 = vld [vmem:[#allocation30_spill] sm:$0xff] }
 0x564   :  { %v3652_v60 = vpop.f32.mrf.mxu3  ;;  %v3508_v44 = vpop.f32.mrf.mxu1  ;;  %4109 = vmatpush.bf16.msrb.mxu2 %v6118_v52  ;;  %v10190_v52 = vld [vmem:[#allocation31_spill] sm:$0xff] }
 0x565   :  { %v3579_v48 = vpop.f32.mrf.mxu2  ;;  %v3435_v50 = vpop.f32.mrf.mxu0 }
 0x566   :  { %v3580_v57 = vadd.f32 %v3579_v48, %v3507_v13  ;;  %v3436_v45 = vadd.f32 %v3435_v50, %v10179_v47  ;;  %v10185_v13 = vld [vmem:[#allocation28_spill] sm:$0xff]  ;;  %v6560_v47 = vld [vmem:[#allocation7 + $0x74c] sm:$0xf] }
 0x567   :  { %v5859_v50 = vld [vmem:[#allocation7 + $0x458] sm:$0xf0] }
 0x568   :  { %v7723_v29 = vadd.f32 %v3652_v60, %v3580_v57  ;;  %v3509_v40 = vadd.f32 %v3508_v44, %v3436_v45  ;;  %v6464_v60 = vld [vmem:[#allocation7 + $0x44c] sm:$0xf] }
 0x569   :  { %v5862_v44 = vor.u32 %v6464_v60, %v5859_v50 }
 0x56a   :  { %10180 = vst [vmem:[#allocation144_spill] sm:$0xff] %v7723_v29  ;;  %v10221_v29 = vld [vmem:[#allocation61_spill] sm:$0xff] }
 0x56b   :  { %3963 = vmatpush.bf16.msrb.mxu0 %v5862_v44 }
 0x56c   :  { %v3654_v56 = vpop.f32.mrf.mxu3  ;;  %v3511_v36 = vpop.f32.mrf.mxu1 }
 0x56d   :  { %v3581_v32 = vpop.f32.mrf.mxu2  ;;  %v3438_v41 = vpop.f32.mrf.mxu0 }
 0x56e   :  { %v3582_v21 = vadd.f32 %v3581_v32, %v3509_v40  ;;  %v3439_v19 = vadd.f32 %v3438_v41, %v7606_v18  ;;  %v6243_v40 = vld [vmem:[#allocation7 + $0x758] sm:$0xf0]  ;;  %v6496_v32 = vld [vmem:[#allocation7 + $0x54c] sm:$0xf] }
 0x56f   :  { %3777 = vmatmul.bf16.gmra.mxu1 %v10183_v5 }
 0x570   :  { %v7726_v62 = vadd.f32 %v3654_v56, %v3582_v21  ;;  %v3512_v16 = vadd.f32 %v3511_v36, %v3439_v19  ;;  %3704 = vmatmul.bf16.gmra.mxu0 %v10182_v37  ;;  %v5987_v21 = vld [vmem:[#allocation7 + $0x558] sm:$0xf0]  ;;  %v6246_v56 = vor.u32 %v6560_v47, %v6243_v40 }
 0x571   :  { %3923 = vmatmul.bf16.gmra.mxu3 %v10185_v13  ;;  %v5990_v41 = vor.u32 %v6496_v32, %v5987_v21  ;;  %v6524_v21 = vld [vmem:[#allocation7 + $0x62c] sm:$0xf] }
 0x572   :  { %10181 = vst [vmem:[#allocation145_spill] sm:$0xff] %v7726_v62  ;;  %3850 = vmatmul.bf16.gmra.mxu2 %v10184_v39  ;;  %4182 = vmatpush.bf16.msrb.mxu3 %v6246_v56  ;;  %v6099_v56 = vld [vmem:[#allocation7 + $0x638] sm:$0xf0] }
 0x573   :  { %4036 = vmatpush.bf16.msrb.mxu1 %v5990_v41 }
 0x574   :  { %v3657_v27 = vpop.f32.mrf.mxu3  ;;  %v3513_v53 = vpop.f32.mrf.mxu1 }
 0x575   :  { %v3584_v15 = vpop.f32.mrf.mxu2  ;;  %v3440_v48 = vpop.f32.mrf.mxu0 }
 0x576   :  { %v3585_v26 = vadd.f32 %v3584_v15, %v3512_v16  ;;  %v3441_v18 = vadd.f32 %v3440_v48, %v7609_v25  ;;  %v10191_v15 = vld [vmem:[#allocation32_spill] sm:$0xff] }
 0x578   :  { %v7733_v57 = vadd.f32 %v3657_v27, %v3585_v26  ;;  %v3514_v45 = vadd.f32 %v3513_v53, %v3441_v18 }
 0x57a   :  { %10186 = vst [vmem:[#allocation17_spill] sm:$0xff] %v7733_v57  ;;  %v10217_v57 = vld [vmem:[#allocation57_spill] sm:$0xff] }
 0x57c   :  { %v3659_v16 = vpop.f32.mrf.mxu3  ;;  %v3516_v5 = vpop.f32.mrf.mxu1 }
 0x57d   :  { %v3586_v19 = vpop.f32.mrf.mxu2  ;;  %v3443_v25 = vpop.f32.mrf.mxu0 }
 0x57e   :  { %v3587_v36 = vadd.f32 %v3586_v19, %v3514_v45  ;;  %v3444_v37 = vadd.f32 %v3443_v25, %v7615_v49  ;;  %v6597_v49 = vld [vmem:[%s9418_s2] sm:$0xf]  ;;  %v10193_v19 = vld [vmem:[#allocation33_spill] sm:$0xff] }
 0x57f   :  { %3782 = vmatmul.bf16.gmra.mxu1 %v10189_v14  ;;  %v7747_v50 = vperm.slane %v6597_v49, 3  ;;  %v5843_v25 = vld [vmem:[#allocation7 + $0x438] sm:$0xf0] }
 0x580   :  { %v7736_v39 = vadd.f32 %v3659_v16, %v3587_v36  ;;  %v3517_v13 = vadd.f32 %v3516_v5, %v3444_v37  ;;  %3709 = vmatmul.bf16.gmra.mxu0 %v10188_v55  ;;  %v6102_v36 = vor.u32 %v6524_v21, %v6099_v56  ;;  %v6460_v16 = vld [vmem:[#allocation7 + $0x42c] sm:$0xf]  ;;  %v6227_v14 = vld [vmem:[#allocation7 + $0x738] sm:$0xf0] }
 0x581   :  { %3928 = vmatmul.bf16.gmra.mxu3 %v10191_v15  ;;  %v6556_v37 = vld [vmem:[#allocation7 + $0x72c] sm:$0xf]  ;;  %v5846_v55 = vor.u32 %v6460_v16, %v5843_v25 }
 0x582   :  { %10187 = vst [vmem:[#allocation18_spill] sm:$0xff] %v7736_v39  ;;  %3855 = vmatmul.bf16.gmra.mxu2 %v10190_v52  ;;  %v10194_v5 = vld [vmem:[#allocation34_spill] sm:$0xff]  ;;  %v10196_v52 = vld [vmem:[#allocation36_spill] sm:$0xff]  ;;  %v6230_v15 = vor.u32 %v6556_v37, %v6227_v14 }
 0x583   :  { %4110 = vmatpush.bf16.msrb.mxu2 %v6102_v36  ;;  %3964 = vmatpush.bf16.msrb.mxu0 %v5846_v55  ;;  %v10199_v55 = vld [vmem:[#allocation39_spill] sm:$0xff]  ;;  %v10200_v14 = vld [vmem:[#allocation40_spill] sm:$0xff] }
 0x584   :  { %v3662_v48 = vpop.f32.mrf.mxu3  ;;  %v3518_v53 = vpop.f32.mrf.mxu1  ;;  %4183 = vmatpush.bf16.msrb.mxu3 %v6230_v15 }
 0x585   :  { %v3589_v26 = vpop.f32.mrf.mxu2  ;;  %v3445_v18 = vpop.f32.mrf.mxu0 }
 0x586   :  { %v3590_v27 = vadd.f32 %v3589_v26, %v3517_v13  ;;  %v10195_v13 = vld [vmem:[#allocation35_spill] sm:$0xff]  ;;  %v6492_v26 = vld [vmem:[#allocation7 + $0x52c] sm:$0xf] }
 0x588   :  { %v7742_v60 = vadd.f32 %v3662_v48, %v3590_v27  ;;  %v5971_v27 = vld [vmem:[#allocation7 + $0x538] sm:$0xf0] }
 0x589   :  { %v5974_v48 = vor.u32 %v6492_v26, %v5971_v27 }
 0x58a   :  { %10192 = vst [vmem:[#allocation19_spill] sm:$0xff] %v7742_v60  ;;  %v10213_v60 = vld [vmem:[#allocation53_spill] sm:$0xff] }
 0x58b   :  { %4037 = vmatpush.bf16.msrb.mxu1 %v5974_v48 }
 0x58c   :  { %v3664_v45 = vpop.f32.mrf.mxu3  ;;  %v3748_v32 = vpop.f32.mrf.mxu1 }
 0x58d   :  { %v3591_v47 = vpop.f32.mrf.mxu2  ;;  %v3675_v44 = vpop.f32.mrf.mxu0 }
 0x58e   :  { %v3676_v40 = vadd.f32 %v3675_v44, %v7747_v50 }
 0x58f   :  { %3787 = vmatmul.bf16.gmra.mxu1 %v10194_v5 }
 0x590   :  { %v3749_v41 = vadd.f32 %v3748_v32, %v3676_v40  ;;  %3714 = vmatmul.bf16.gmra.mxu0 %v10193_v19 }
 0x591   :  { %3933 = vmatmul.bf16.gmra.mxu3 %v10196_v52 }
 0x592   :  { %3860 = vmatmul.bf16.gmra.mxu2 %v10195_v13  ;;  %v10198_v13 = vld [vmem:[#allocation38_spill] sm:$0xff] }
 0x594   :  { %v3894_v49 = vpop.f32.mrf.mxu3  ;;  %v3750_v44 = vpop.f32.mrf.mxu1 }
 0x595   :  { %v3821_v18 = vpop.f32.mrf.mxu2  ;;  %v3677_v47 = vpop.f32.mrf.mxu0 }
 0x596   :  { %v3822_v53 = vadd.f32 %v3821_v18, %v3749_v41  ;;  %v3678_v45 = vadd.f32 %v3677_v47, %v7747_v50  ;;  %v10197_v41 = vld [vmem:[#allocation37_spill] sm:$0xff]  ;;  %v6520_v47 = vld [vmem:[#allocation7 + $0x60c] sm:$0xf] }
 0x598   :  { %v7755_v40 = vadd.f32 %v3894_v49, %v3822_v53  ;;  %v3751_v32 = vadd.f32 %v3750_v44, %v3678_v45  ;;  %v6083_v45 = vld [vmem:[#allocation7 + $0x618] sm:$0xf0]  ;;  %v6456_v44 = vld [vmem:[#allocation7 + $0x40c] sm:$0xf] }
 0x59c   :  { %v3896_v19 = vpop.f32.mrf.mxu3  ;;  %v3753_v25 = vpop.f32.mrf.mxu1 }
 0x59d   :  { %v3823_v21 = vpop.f32.mrf.mxu2  ;;  %v3680_v36 = vpop.f32.mrf.mxu0 }
 0x59e   :  { %v3824_v56 = vadd.f32 %v3823_v21, %v3751_v32  ;;  %v3681_v16 = vadd.f32 %v3680_v36, %v7747_v50  ;;  %v6086_v32 = vor.u32 %v6520_v47, %v6083_v45  ;;  %v5827_v21 = vld [vmem:[#allocation7 + $0x418] sm:$0xf0]  ;;  %v10202_v47 = vld [vmem:[#allocation42_spill] sm:$0xff]  ;;  %v10203_v45 = vld [vmem:[#allocation43_spill] sm:$0xff] }
 0x59f   :  { %3792 = vmatmul.bf16.gmra.mxu1 %v10198_v13  ;;  %v5830_v36 = vor.u32 %v6456_v44, %v5827_v21  ;;  %v10204_v44 = vld [vmem:[#allocation44_spill] sm:$0xff] }
 0x5a0   :  { %v7758_v37 = vadd.f32 %v3896_v19, %v3824_v56  ;;  %v3754_v5 = vadd.f32 %v3753_v25, %v3681_v16  ;;  %3719 = vmatmul.bf16.gmra.mxu0 %v10197_v41  ;;  %v6552_v56 = vld [vmem:[#allocation7 + $0x70c] sm:$0xf]  ;;  %v6211_v19 = vld [vmem:[#allocation7 + $0x718] sm:$0xf0]  ;;  %4111 = vmatpush.bf16.msrb.mxu2 %v6086_v32 }
 0x5a1   :  { %3938 = vmatmul.bf16.gmra.mxu3 %v10200_v14  ;;  %v6214_v16 = vor.u32 %v6552_v56, %v6211_v19  ;;  %v6488_v25 = vld [vmem:[#allocation7 + $0x50c] sm:$0xf]  ;;  %v5955_v41 = vld [vmem:[#allocation7 + $0x518] sm:$0xf0]  ;;  %3965 = vmatpush.bf16.msrb.mxu0 %v5830_v36 }
 0x5a2   :  { %3865 = vmatmul.bf16.gmra.mxu2 %v10199_v55 }
 0x5a3   :  { %4184 = vmatpush.bf16.msrb.mxu3 %v6214_v16 }
 0x5a4   :  { %v3899_v26 = vpop.f32.mrf.mxu3  ;;  %v3755_v18 = vpop.f32.mrf.mxu1 }
 0x5a5   :  { %v3826_v52 = vpop.f32.mrf.mxu2  ;;  %v3682_v27 = vpop.f32.mrf.mxu0 }
 0x5a6   :  { %v3827_v15 = vadd.f32 %v3826_v52, %v3754_v5  ;;  %v3683_v48 = vadd.f32 %v3682_v27, %v7747_v50  ;;  %v5958_v5 = vor.u32 %v6488_v25, %v5955_v41 }
 0x5a8   :  { %v7765_v53 = vadd.f32 %v3899_v26, %v3827_v15  ;;  %v3756_v49 = vadd.f32 %v3755_v18, %v3683_v48  ;;  %4038 = vmatpush.bf16.msrb.mxu1 %v5958_v5  ;;  %v10201_v18 = vld [vmem:[#allocation41_spill] sm:$0xff] }
 0x5ac   :  { %v3901_v14 = vpop.f32.mrf.mxu3  ;;  %v3758_v26 = vpop.f32.mrf.mxu1 }
 0x5ad   :  { %v3828_v13 = vpop.f32.mrf.mxu2  ;;  %v3685_v52 = vpop.f32.mrf.mxu0 }
 0x5ae   :  { %v3829_v55 = vadd.f32 %v3828_v13, %v3756_v49  ;;  %v3686_v15 = vadd.f32 %v3685_v52, %v7747_v50 }
 0x5af   :  { %3797 = vmatmul.bf16.gmra.mxu1 %v10202_v47  ;;  %v10207_v47 = vld [vmem:[#allocation47_spill] sm:$0xff] }
 0x5b0   :  { %v7768_v27 = vadd.f32 %v3901_v14, %v3829_v55  ;;  %v3759_v48 = vadd.f32 %v3758_v26, %v3686_v15  ;;  %3724 = vmatmul.bf16.gmra.mxu0 %v10201_v18  ;;  %v10205_v18 = vld [vmem:[#allocation45_spill] sm:$0xff] }
 0x5b1   :  { %3943 = vmatmul.bf16.gmra.mxu3 %v10204_v44 }
 0x5b2   :  { %3870 = vmatmul.bf16.gmra.mxu2 %v10203_v45  ;;  %v10208_v45 = vld [vmem:[#allocation48_spill] sm:$0xff] }
 0x5b4   :  { %v3904_v49 = vpop.f32.mrf.mxu3  ;;  %v3760_v36 = vpop.f32.mrf.mxu1 }
 0x5b5   :  { %v3831_v32 = vpop.f32.mrf.mxu2  ;;  %v3687_v56 = vpop.f32.mrf.mxu0 }
 0x5b6   :  { %v3832_v21 = vadd.f32 %v3831_v32, %v3759_v48  ;;  %v3688_v19 = vadd.f32 %v3687_v56, %v7747_v50  ;;  %v10206_v48 = vld [vmem:[#allocation46_spill] sm:$0xff] }
 0x5b8   :  { %v7775_v16 = vadd.f32 %v3904_v49, %v3832_v21  ;;  %v3761_v25 = vadd.f32 %v3760_v36, %v3688_v19 }
 0x5bc   :  { %v3906_v13 = vpop.f32.mrf.mxu3  ;;  %v3763_v52 = vpop.f32.mrf.mxu1 }
 0x5bd   :  { %v3833_v41 = vpop.f32.mrf.mxu2  ;;  %v3690_v55 = vpop.f32.mrf.mxu0 }
 0x5be   :  { %v3834_v5 = vadd.f32 %v3833_v41, %v3761_v25  ;;  %v3691_v14 = vadd.f32 %v3690_v55, %v7747_v50 }
 0x5bf   :  { %3802 = vmatmul.bf16.gmra.mxu1 %v10206_v48 }
 0x5c0   :  { %v7778_v15 = vadd.f32 %v3906_v13, %v3834_v5  ;;  %v3764_v26 = vadd.f32 %v3763_v52, %v3691_v14  ;;  %3729 = vmatmul.bf16.gmra.mxu0 %v10205_v18 }
 0x5c1   :  { %3948 = vmatmul.bf16.gmra.mxu3 %v10208_v45  ;;  %v10211_v45 = vld [vmem:[#allocation51_spill] sm:$0xff] }
 0x5c2   :  { %3875 = vmatmul.bf16.gmra.mxu2 %v10207_v47  ;;  %v10209_v47 = vld [vmem:[#allocation49_spill] sm:$0xff] }
 0x5c4   :  { %v3909_v21 = vpop.f32.mrf.mxu3  ;;  %v3765_v19 = vpop.f32.mrf.mxu1 }
 0x5c5   :  { %v3836_v44 = vpop.f32.mrf.mxu2  ;;  %v3692_v49 = vpop.f32.mrf.mxu0 }
 0x5c6   :  { %v3837_v32 = vadd.f32 %v3836_v44, %v3764_v26  ;;  %v3693_v56 = vadd.f32 %v3692_v49, %v7747_v50  ;;  %v10210_v26 = vld [vmem:[#allocation50_spill] sm:$0xff]  ;;  %v10212_v44 = vld [vmem:[#allocation52_spill] sm:$0xff] }
 0x5c8   :  { %v7785_v36 = vadd.f32 %v3909_v21, %v3837_v32  ;;  %v3766_v25 = vadd.f32 %v3765_v19, %v3693_v56 }
 0x5cc   :  { %v3911_v13 = vpop.f32.mrf.mxu3  ;;  %v3768_v52 = vpop.f32.mrf.mxu1 }
 0x5cd   :  { %v3838_v41 = vpop.f32.mrf.mxu2  ;;  %v3695_v55 = vpop.f32.mrf.mxu0 }
 0x5ce   :  { %v3839_v5 = vadd.f32 %v3838_v41, %v3766_v25  ;;  %v3696_v14 = vadd.f32 %v3695_v55, %v7747_v50 }
 0x5cf   :  { %3807 = vmatmul.bf16.gmra.mxu1 %v10210_v26 }
 0x5d0   :  { %v7788_v18 = vadd.f32 %v3911_v13, %v3839_v5  ;;  %v3769_v48 = vadd.f32 %v3768_v52, %v3696_v14  ;;  %3734 = vmatmul.bf16.gmra.mxu0 %v10209_v47 }
 0x5d1   :  { %3953 = vmatmul.bf16.gmra.mxu3 %v10212_v44 }
 0x5d2   :  { %3880 = vmatmul.bf16.gmra.mxu2 %v10211_v45 }
 0x5d4   :  { %v3914_v49 = vpop.f32.mrf.mxu3  ;;  %v3770_v25 = vpop.f32.mrf.mxu1 }
 0x5d5   :  { %v3841_v32 = vpop.f32.mrf.mxu2  ;;  %v3697_v56 = vpop.f32.mrf.mxu0 }
 0x5d6   :  { %v3842_v21 = vadd.f32 %v3841_v32, %v3769_v48  ;;  %v3698_v19 = vadd.f32 %v3697_v56, %v7747_v50  ;;  %v10214_v48 = vld [vmem:[#allocation54_spill] sm:$0xff]  ;;  %v10215_v32 = vld [vmem:[#allocation55_spill] sm:$0xff]  ;;  %v10216_v56 = vld [vmem:[#allocation56_spill] sm:$0xff] }
 0x5d8   :  { %v7795_v41 = vadd.f32 %v3914_v49, %v3842_v21  ;;  %v3771_v5 = vadd.f32 %v3770_v25, %v3698_v19 }
 0x5dc   :  { %v3916_v14 = vpop.f32.mrf.mxu3  ;;  %v3773_v26 = vpop.f32.mrf.mxu1 }
 0x5dd   :  { %v3843_v13 = vpop.f32.mrf.mxu2  ;;  %v3700_v52 = vpop.f32.mrf.mxu0 }
 0x5de   :  { %v3844_v55 = vadd.f32 %v3843_v13, %v3771_v5  ;;  %v3701_v47 = vadd.f32 %v3700_v52, %v7747_v50 }
 0x5df   :  { %4039 = vmatmul.bf16.vlgmr.msrb.gmra.mxu1 %v10214_v48 }
 0x5e0   :  { %v7798_v45 = vadd.f32 %v3916_v14, %v3844_v55  ;;  %v3774_v44 = vadd.f32 %v3773_v26, %v3701_v47  ;;  %3966 = vmatmul.bf16.vlgmr.msrb.gmra.mxu0 %v10213_v60 }
 0x5e1   :  { %4185 = vmatmul.bf16.vlgmr.msrb.gmra.mxu3 %v10216_v56 }
 0x5e2   :  { %4112 = vmatmul.bf16.vlgmr.msrb.gmra.mxu2 %v10215_v32 }
 0x5e4   :  { %v3919_v19 = vpop.f32.mrf.mxu3  ;;  %v3775_v13 = vpop.f32.mrf.mxu1 }
 0x5e5   :  { %v3846_v21 = vpop.f32.mrf.mxu2  ;;  %v3702_v25 = vpop.f32.mrf.mxu0 }
 0x5e6   :  { %v3847_v49 = vadd.f32 %v3846_v21, %v3774_v44  ;;  %v3703_v5 = vadd.f32 %v3702_v25, %v7747_v50  ;;  %v10218_v44 = vld [vmem:[#allocation58_spill] sm:$0xff]  ;;  %v10219_v21 = vld [vmem:[#allocation59_spill] sm:$0xff]  ;;  %v10220_v25 = vld [vmem:[#allocation60_spill] sm:$0xff] }
 0x5e8   :  { %v7805_v52 = vadd.f32 %v3919_v19, %v3847_v49  ;;  %v3776_v55 = vadd.f32 %v3775_v13, %v3703_v5 }
 0x5ec   :  { %v3921_v26 = vpop.f32.mrf.mxu3  ;;  %v3778_v39 = vpop.f32.mrf.mxu1 }
 0x5ed   :  { %v3848_v14 = vpop.f32.mrf.mxu2  ;;  %v3705_v60 = vpop.f32.mrf.mxu0 }
 0x5ee   :  { %v3849_v47 = vadd.f32 %v3848_v14, %v3776_v55  ;;  %v3706_v48 = vadd.f32 %v3705_v60, %v7747_v50 }
 0x5ef   :  { %4044 = vmatmul.bf16.gmra.mxu1 %v10218_v44 }
 0x5f0   :  { %v7808_v32 = vadd.f32 %v3921_v26, %v3849_v47  ;;  %v3779_v56 = vadd.f32 %v3778_v39, %v3706_v48  ;;  %3971 = vmatmul.bf16.gmra.mxu0 %v10217_v57 }
 0x5f1   :  { %4190 = vmatmul.bf16.gmra.mxu3 %v10220_v25 }
 0x5f2   :  { %4117 = vmatmul.bf16.gmra.mxu2 %v10219_v21 }
 0x5f4   :  { %v3924_v5 = vpop.f32.mrf.mxu3  ;;  %v3780_v14 = vpop.f32.mrf.mxu1 }
 0x5f5   :  { %v3851_v49 = vpop.f32.mrf.mxu2  ;;  %v3707_v13 = vpop.f32.mrf.mxu0 }
 0x5f6   :  { %v3852_v19 = vadd.f32 %v3851_v49, %v3779_v56  ;;  %v3708_v55 = vadd.f32 %v3707_v13, %v7747_v50  ;;  %v10222_v56 = vld [vmem:[#allocation62_spill] sm:$0xff]  ;;  %v10223_v49 = vld [vmem:[#allocation63_spill] sm:$0xff]  ;;  %v10224_v13 = vld [vmem:[#allocation64_spill] sm:$0xff] }
 0x5f8   :  { %v7815_v60 = vadd.f32 %v3924_v5, %v3852_v19  ;;  %v3781_v47 = vadd.f32 %v3780_v14, %v3708_v55 }
 0x5fc   :  { %v3926_v48 = vpop.f32.mrf.mxu3  ;;  %v3783_v62 = vpop.f32.mrf.mxu1 }
 0x5fd   :  { %v3853_v26 = vpop.f32.mrf.mxu2  ;;  %v3710_v57 = vpop.f32.mrf.mxu0 }
 0x5fe   :  { %v3854_v39 = vadd.f32 %v3853_v26, %v3781_v47  ;;  %v3711_v44 = vadd.f32 %v3710_v57, %v7747_v50 }
 0x5ff   :  { %4049 = vmatmul.bf16.gmra.mxu1 %v10222_v56 }
 0x600   :  { %v7818_v21 = vadd.f32 %v3926_v48, %v3854_v39  ;;  %v3784_v25 = vadd.f32 %v3783_v62, %v3711_v44  ;;  %3976 = vmatmul.bf16.gmra.mxu0 %v10221_v29 }
 0x601   :  { %4195 = vmatmul.bf16.gmra.mxu3 %v10224_v13 }
 0x602   :  { %4122 = vmatmul.bf16.gmra.mxu2 %v10223_v49 }
 0x604   :  { %v3929_v55 = vpop.f32.mrf.mxu3  ;;  %v3785_v26 = vpop.f32.mrf.mxu1 }
 0x605   :  { %v3856_v19 = vpop.f32.mrf.mxu2  ;;  %v3712_v14 = vpop.f32.mrf.mxu0 }
 0x606   :  { %v3857_v5 = vadd.f32 %v3856_v19, %v3784_v25  ;;  %v3713_v47 = vadd.f32 %v3712_v14, %v7747_v50  ;;  %v10227_v25 = vld [vmem:[#allocation66_spill] sm:$0xff]  ;;  %v10228_v19 = vld [vmem:[#allocation67_spill] sm:$0xff]  ;;  %v10229_v14 = vld [vmem:[#allocation68_spill] sm:$0xff] }
 0x608   :  { %v7825_v57 = vadd.f32 %v3929_v55, %v3857_v5  ;;  %v3786_v39 = vadd.f32 %v3785_v26, %v3713_v47 }
 0x60c   :  { %v3931_v44 = vpop.f32.mrf.mxu3  ;;  %v3788_v35 = vpop.f32.mrf.mxu1 }
 0x60d   :  { %v3858_v48 = vpop.f32.mrf.mxu2  ;;  %v3715_v29 = vpop.f32.mrf.mxu0 }
 0x60e   :  { %v3859_v62 = vadd.f32 %v3858_v48, %v3786_v39  ;;  %v3716_v56 = vadd.f32 %v3715_v29, %v7747_v50 }
 0x60f   :  { %4054 = vmatmul.bf16.gmra.mxu1 %v10227_v25 }
 0x610   :  { %v7828_v49 = vadd.f32 %v3931_v44, %v3859_v62  ;;  %v3789_v13 = vadd.f32 %v3788_v35, %v3716_v56  ;;  %3981 = vmatmul.bf16.gmra.mxu0 %v10226_v17 }
 0x611   :  { %4200 = vmatmul.bf16.gmra.mxu3 %v10229_v14 }
 0x612   :  { %10225 = vst [vmem:[#allocation20_spill] sm:$0xff] %v7828_v49  ;;  %4127 = vmatmul.bf16.gmra.mxu2 %v10228_v19 }
 0x614   :  { %v3934_v47 = vpop.f32.mrf.mxu3  ;;  %v3790_v48 = vpop.f32.mrf.mxu1 }
 0x615   :  { %v3861_v5 = vpop.f32.mrf.mxu2  ;;  %v3717_v26 = vpop.f32.mrf.mxu0 }
 0x616   :  { %v3862_v55 = vadd.f32 %v3861_v5, %v3789_v13  ;;  %v3718_v39 = vadd.f32 %v3717_v26, %v7747_v50  ;;  %v10233_v13 = vld [vmem:[#allocation70_spill] sm:$0xff]  ;;  %v10234_v5 = vld [vmem:[#allocation71_spill] sm:$0xff]  ;;  %v10235_v26 = vld [vmem:[#allocation72_spill] sm:$0xff] }
 0x618   :  { %v7835_v29 = vadd.f32 %v3934_v47, %v3862_v55  ;;  %v3791_v62 = vadd.f32 %v3790_v48, %v3718_v39 }
 0x61a   :  { %10230 = vst [vmem:[#allocation146_spill] sm:$0xff] %v7835_v29  ;;  %v10238_v29 = vld [vmem:[#allocation73_spill] sm:$0xff] }
 0x61c   :  { %v3936_v56 = vpop.f32.mrf.mxu3  ;;  %v3793_v12 = vpop.f32.mrf.mxu1 }
 0x61d   :  { %v3863_v44 = vpop.f32.mrf.mxu2  ;;  %v3720_v17 = vpop.f32.mrf.mxu0 }
 0x61e   :  { %v3864_v35 = vadd.f32 %v3863_v44, %v3791_v62  ;;  %v3721_v25 = vadd.f32 %v3720_v17, %v7747_v50 }
 0x61f   :  { %4059 = vmatmul.bf16.gmra.mxu1 %v10233_v13 }
 0x620   :  { %v7838_v19 = vadd.f32 %v3936_v56, %v3864_v35  ;;  %v3794_v14 = vadd.f32 %v3793_v12, %v3721_v25  ;;  %3986 = vmatmul.bf16.gmra.mxu0 %v10232_v46 }
 0x621   :  { %4205 = vmatmul.bf16.gmra.mxu3 %v10235_v26 }
 0x622   :  { %10231 = vst [vmem:[#allocation147_spill] sm:$0xff] %v7838_v19  ;;  %4132 = vmatmul.bf16.gmra.mxu2 %v10234_v5 }
 0x624   :  { %v3939_v39 = vpop.f32.mrf.mxu3  ;;  %v3795_v44 = vpop.f32.mrf.mxu1 }
 0x625   :  { %v3866_v55 = vpop.f32.mrf.mxu2  ;;  %v3722_v48 = vpop.f32.mrf.mxu0 }
 0x626   :  { %v3867_v47 = vadd.f32 %v3866_v55, %v3794_v14  ;;  %v3723_v62 = vadd.f32 %v3722_v48, %v7747_v50  ;;  %v10239_v14 = vld [vmem:[#allocation74_spill] sm:$0xff]  ;;  %v10240_v55 = vld [vmem:[#allocation75_spill] sm:$0xff]  ;;  %v10241_v48 = vld [vmem:[#allocation76_spill] sm:$0xff] }
 0x628   :  { %v7845_v17 = vadd.f32 %v3939_v39, %v3867_v47  ;;  %v3796_v35 = vadd.f32 %v3795_v44, %v3723_v62 }
 0x62a   :  { %10236 = vst [vmem:[#allocation21_spill] sm:$0xff] %v7845_v17  ;;  %v10244_v17 = vld [vmem:[#allocation79_spill] sm:$0xff] }
 0x62c   :  { %v3941_v25 = vpop.f32.mrf.mxu3  ;;  %v3798_v19 = vpop.f32.mrf.mxu1 }
 0x62d   :  { %v3868_v56 = vpop.f32.mrf.mxu2  ;;  %v3725_v46 = vpop.f32.mrf.mxu0 }
 0x62e   :  { %v3869_v12 = vadd.f32 %v3868_v56, %v3796_v35  ;;  %v3726_v13 = vadd.f32 %v3725_v46, %v7747_v50 }
 0x62f   :  { %4064 = vmatmul.bf16.gmra.mxu1 %v10239_v14 }
 0x630   :  { %v7848_v5 = vadd.f32 %v3941_v25, %v3869_v12  ;;  %v3799_v26 = vadd.f32 %v3798_v19, %v3726_v13  ;;  %3991 = vmatmul.bf16.gmra.mxu0 %v10238_v29 }
 0x631   :  { %4210 = vmatmul.bf16.gmra.mxu3 %v10241_v48 }
 0x632   :  { %10237 = vst [vmem:[#allocation22_spill] sm:$0xff] %v7848_v5  ;;  %4137 = vmatmul.bf16.gmra.mxu2 %v10240_v55 }
 0x634   :  { %v3944_v62 = vpop.f32.mrf.mxu3  ;;  %v3800_v56 = vpop.f32.mrf.mxu1 }
 0x635   :  { %v3871_v47 = vpop.f32.mrf.mxu2  ;;  %v3727_v44 = vpop.f32.mrf.mxu0 }
 0x636   :  { %v3872_v39 = vadd.f32 %v3871_v47, %v3799_v26  ;;  %v3728_v35 = vadd.f32 %v3727_v44, %v7747_v50  ;;  %v10245_v26 = vld [vmem:[#allocation80_spill] sm:$0xff]  ;;  %v10246_v47 = vld [vmem:[#allocation81_spill] sm:$0xff]  ;;  %v10247_v44 = vld [vmem:[#allocation82_spill] sm:$0xff] }
 0x638   :  { %v7855_v46 = vadd.f32 %v3944_v62, %v3872_v39  ;;  %v3801_v12 = vadd.f32 %v3800_v56, %v3728_v35 }
 0x63a   :  { %10242 = vst [vmem:[#allocation23_spill] sm:$0xff] %v7855_v46 }
 0x63c   :  { %v3946_v13 = vpop.f32.mrf.mxu3  ;;  %v3803_v5 = vpop.f32.mrf.mxu1 }
 0x63d   :  { %v3873_v25 = vpop.f32.mrf.mxu2  ;;  %v3730_v29 = vpop.f32.mrf.mxu0 }
 0x63e   :  { %v3874_v19 = vadd.f32 %v3873_v25, %v3801_v12  ;;  %v3731_v14 = vadd.f32 %v3730_v29, %v7747_v50 }
 0x63f   :  { %4069 = vmatmul.bf16.gmra.mxu1 %v10245_v26 }
 0x640   :  { %v7858_v55 = vadd.f32 %v3946_v13, %v3874_v19  ;;  %v3804_v48 = vadd.f32 %v3803_v5, %v3731_v14  ;;  %3996 = vmatmul.bf16.gmra.mxu0 %v10244_v17 }
 0x641   :  { %4215 = vmatmul.bf16.gmra.mxu3 %v10247_v44 }
 0x642   :  { %10243 = vst [vmem:[#allocation24_spill] sm:$0xff] %v7858_v55  ;;  %4142 = vmatmul.bf16.gmra.mxu2 %v10246_v47 }
 0x644   :  { %v3949_v35 = vpop.f32.mrf.mxu3  ;;  %v3805_v25 = vpop.f32.mrf.mxu1 }
 0x645   :  { %v3876_v39 = vpop.f32.mrf.mxu2  ;;  %v3732_v56 = vpop.f32.mrf.mxu0 }
 0x646   :  { %v3877_v62 = vadd.f32 %v3876_v39, %v3804_v48  ;;  %v3733_v12 = vadd.f32 %v3732_v56, %v7747_v50  ;;  %v10250_v48 = vld [vmem:[#allocation85_spill] sm:$0xff]  ;;  %v10251_v39 = vld [vmem:[#allocation86_spill] sm:$0xff]  ;;  %v10252_v56 = vld [vmem:[#allocation87_spill] sm:$0xff] }
 0x648   :  { %v7865_v29 = vadd.f32 %v3949_v35, %v3877_v62  ;;  %v3806_v19 = vadd.f32 %v3805_v25, %v3733_v12 }
 0x64a   :  { %10248 = vst [vmem:[#allocation148_spill] sm:$0xff] %v7865_v29 }
 0x64c   :  { %v3951_v14 = vpop.f32.mrf.mxu3  ;;  %v3808_v55 = vpop.f32.mrf.mxu1 }
 0x64d   :  { %v3878_v13 = vpop.f32.mrf.mxu2  ;;  %v3735_v17 = vpop.f32.mrf.mxu0 }
 0x64e   :  { %v3879_v5 = vadd.f32 %v3878_v13, %v3806_v19  ;;  %v3736_v26 = vadd.f32 %v3735_v17, %v7747_v50 }
 0x64f   :  { %4074 = vmatmul.bf16.gmra.mxu1 %v10250_v48  ;;  %v10255_v48 = vld [vmem:[#allocation123_spill] sm:$0xff] }
 0x650   :  { %v7868_v47 = vadd.f32 %v3951_v14, %v3879_v5  ;;  %v3809_v44 = vadd.f32 %v3808_v55, %v3736_v26  ;;  %4001 = vmatmul.bf16.gmra.mxu0 %v7042_v10  ;;  %v4350_v10 = vld [vmem:[%s9421_s5] sm:$0xf] }
 0x651   :  { %4220 = vmatmul.bf16.gmra.mxu3 %v10252_v56  ;;  %v10254_v26 = vld [vmem:[#allocation88_spill] sm:$0xff]  ;;  %v10256_v56 = vld [vmem:[#allocation89_spill] sm:$0xff] }
 0x652   :  { %10249 = vst [vmem:[#allocation25_spill] sm:$0xff] %v7868_v47  ;;  %4147 = vmatmul.bf16.gmra.mxu2 %v10251_v39  ;;  %v9643_v39 = vmax.f32 %v10255_v48, 0.0  ;;  %v10261_v48 = vld [vmem:[#allocation124_spill] sm:$0xff] }
 0x654   :  { %v3954_v12 = vpop.f32.mrf.mxu3  ;;  %v3810_v19 = vpop.f32.mrf.mxu1 }
 0x655   :  { %v3881_v62 = vpop.f32.mrf.mxu2  ;;  %v3737_v25 = vpop.f32.mrf.mxu0  ;;  %v10259_v19 = vld [vmem:[#allocation91_spill] sm:$0xff] }
 0x656   :  { %v3882_v35 = vadd.f32 %v3881_v62, %v3809_v44  ;;  %v7882_v44 = vperm.slane %v4350_v10, 1  ;;  %v10257_v62 = vld [vmem:[#allocation90_spill] sm:$0xff]  ;;  %v7887_v25 = vperm.slane %v4350_v10, 0 }
 0x658   :  { %v7874_v13 = vadd.f32 %v3954_v12, %v3882_v35  ;;  %v10258_v35 = vld [vmem:[#allocation92_spill] sm:$0xff] }
 0x659   :  { %v9646_v12 = vmax.f32 %v10258_v35, 0.0  ;;  %v9652_v35 = vmax.f32 %v10262_v38, 0.0 }
 0x65a   :  { %10253 = vst [vmem:[#allocation26_spill] sm:$0xff] %v7874_v13 }
 0x65c   :  { %v3956_v17 = vpop.f32.mrf.mxu3  ;;  %v4040_v14 = vpop.f32.mrf.mxu1 }
 0x65d   :  { %v3883_v50 = vpop.f32.mrf.mxu2  ;;  %v3967_v5 = vpop.f32.mrf.mxu0  ;;  %v7891_v17 = vperm.slane %v4350_v10, 2 }
 0x65e   :  { %v3968_v55 = vadd.f32 %v3967_v5, %v7755_v40  ;;  %v9647_v50 = vmax.f32 %v7623_v31, 0.0 }
 0x65f   :  { %4079 = vmatmul.bf16.gmra.mxu1 %v10256_v56 }
 0x660   :  { %4006 = vmatmul.bf16.gmra.mxu0 %v10254_v26  ;;  %v4041_v40 = vadd.f32 %v4040_v14, %v3968_v55  ;;  %v4361_v26 = vmul.f32 %v7882_v44, %v9643_v39  ;;  %v7905_v55 = vperm.slane %v4350_v10, 3  ;;  %v9651_v39 = vmax.f32 %v10261_v48, 0.0 }
 0x661   :  { %4225 = vmatmul.bf16.gmra.mxu3 %v10259_v19  ;;  %v4362_v19 = vmul.f32 %v7891_v17, %v9647_v50 }
 0x662   :  { %4152 = vmatmul.bf16.gmra.mxu2 %v10257_v62  ;;  %v4360_v62 = vmul.f32 %v7887_v25, %v9646_v12  ;;  %v9653_v12 = vmax.f32 %v7626_v4, 0.0 }
 0x664   :  { %v4186_v56 = vpop.f32.mrf.mxu3  ;;  %v4042_v29 = vpop.f32.mrf.mxu1 }
 0x665   :  { %v4113_v5 = vpop.f32.mrf.mxu2  ;;  %v3969_v47 = vpop.f32.mrf.mxu0 }
 0x666   :  { %v4114_v13 = vadd.f32 %v4113_v5, %v4041_v40  ;;  %v3970_v14 = vadd.f32 %v3969_v47, %v7758_v37  ;;  %v4460_v5 = vadd.f32 %v4361_v26, %v4360_v62  ;;  %v4365_v37 = vmul.f32 %v7882_v44, %v9651_v39 }
 0x667   :  { %v4364_v62 = vmul.f32 %v7887_v25, %v9652_v35  ;;  %v10268_v35 = vld [vmem:[#allocation96_spill] sm:$0xff] }
 0x668   :  { %v7902_v46 = vadd.f32 %v4186_v56, %v4114_v13  ;;  %v4043_v49 = vadd.f32 %v4042_v29, %v3970_v14  ;;  %v4461_v13 = vadd.f32 %v4460_v5, %v4362_v19  ;;  %v4366_v19 = vmul.f32 %v7891_v17, %v9653_v12  ;;  %v10263_v5 = vld [vmem:[#allocation93_spill] sm:$0xff] }
 0x669   :  { %v4465_v39 = vadd.f32 %v4365_v37, %v4364_v62 }
 0x66a   :  { %10260 = vst [vmem:[#allocation27_spill] sm:$0xff] %v7902_v46  ;;  %v9650_v40 = vmax.f32 %v7902_v46, 0.0 }
 0x66c   :  { %v4363_v50 = vmul.f32 %v7905_v55, %v9650_v40  ;;  %v4188_v10 = vpop.f32.mrf.mxu3  ;;  %v4045_v26 = vpop.f32.mrf.mxu1  ;;  %v10266_v40 = vld [vmem:[#allocation95_spill] sm:$0xff] }
 0x66d   :  { %v4115_v56 = vpop.f32.mrf.mxu2  ;;  %v3972_v31 = vpop.f32.mrf.mxu0 }
 0x66e   :  { %v4116_v47 = vadd.f32 %v4115_v56, %v4043_v49  ;;  %v4462_v23 = vadd.f32 %v4461_v13, %v4363_v50  ;;  %v3973_v14 = vadd.f32 %v3972_v31, %v7765_v53  ;;  %v10264_v49 = vld [vmem:[#allocation125_spill] sm:$0xff]  ;;  %v10265_v13 = vld [vmem:[#allocation94_spill] sm:$0xff] }
 0x66f   :  { %v9656_v56 = vmax.f32 %v10264_v49, 0.0  ;;  %4084 = vmatmul.bf16.gmra.mxu1 %v10265_v13 }
 0x670   :  { %v7920_v29 = vadd.f32 %v4188_v10, %v4116_v47  ;;  %4463 = vadd.xlane.f32.xlu0 %v4462_v23  ;;  %4011 = vmatmul.bf16.gmra.mxu0 %v10263_v5  ;;  %v10267_v47 = vld [vmem:[#allocation98_spill] sm:$0xff]  ;;  %v4046_v23 = vadd.f32 %v4045_v26, %v3973_v14  ;;  %v4466_v5 = vadd.f32 %v4465_v39, %v4366_v19  ;;  %v10270_v26 = vmax.f32 %v7633_v7, 0.0 }
 0x671   :  { %4230 = vmatmul.bf16.gmra.mxu3 %v10268_v35  ;;  %v4369_v13 = vmul.f32 %v7882_v44, %v9656_v56  ;;  %v10269_v35 = vmax.f32 %v10267_v47, 0.0  ;;  %v10271_v56 = vld [vmem:[#allocation126_spill] sm:$0xff] }
 0x672   :  { %v9655_v50 = vmax.f32 %v7920_v29, 0.0  ;;  %4157 = vmatmul.bf16.gmra.mxu2 %v10266_v40  ;;  %v4370_v14 = vmul.f32 %v7891_v17, %v10270_v26 }
 0x673   :  { %v4368_v31 = vmul.f32 %v7887_v25, %v10269_v35 }
 0x674   :  { %v4367_v53 = vmul.f32 %v7905_v55, %v9655_v50  ;;  %v4191_v40 = vpop.f32.mrf.mxu3  ;;  %v4047_v10 = vpop.f32.mrf.mxu1 }
 0x675   :  { %v4118_v12 = vpop.f32.mrf.mxu2  ;;  %v3974_v37 = vpop.f32.mrf.mxu0  ;;  %v4470_v19 = vadd.f32 %v4369_v13, %v4368_v31 }
 0x676   :  { %v4119_v46 = vadd.f32 %v4118_v12, %v4046_v23  ;;  %v4467_v62 = vadd.f32 %v4466_v5, %v4367_v53  ;;  %v3975_v39 = vadd.f32 %v3974_v37, %v7768_v27  ;;  %v9659_v12 = vmax.f32 %v10271_v56, 0.0  ;;  %v10272_v53 = vld [vmem:[#allocation99_spill] sm:$0xff] }
 0x677   :  { %v9660_v5 = vmax.f32 %v10272_v53, 0.0  ;;  %v4471_v26 = vadd.f32 %v4470_v19, %v4370_v14  ;;  %v10274_v14 = vmax.f32 %v7636_v61, 0.0 }
 0x678   :  { %v7946_v50 = vadd.f32 %v4191_v40, %v4119_v46  ;;  %4468 = vadd.xlane.f32.xlu1 %v4467_v62  ;;  %v4048_v47 = vadd.f32 %v4047_v10, %v3975_v39  ;;  %v4373_v27 = vmul.f32 %v7882_v44, %v9659_v12 }
 0x679   :  { %v4372_v49 = vmul.f32 %v7887_v25, %v9660_v5  ;;  %v4374_v19 = vmul.f32 %v7891_v17, %v10274_v14 }
 0x67a   :  { %v9664_v23 = vmax.f32 %v7946_v50, 0.0 }
 0x67c   :  { %v4371_v35 = vmul.f32 %v7905_v55, %v9664_v23  ;;  %v4193_v13 = vpop.f32.mrf.mxu3  ;;  %v4050_v62 = vpop.f32.mrf.mxu1 }
 0x67d   :  { %v4120_v46 = vpop.f32.mrf.mxu2  ;;  %v3977_v40 = vpop.f32.mrf.mxu0 }
 0x67e   :  { %v4121_v31 = vadd.f32 %v4120_v46, %v4048_v47  ;;  %v4472_v37 = vadd.f32 %v4471_v26, %v4371_v35  ;;  %v3978_v39 = vadd.f32 %v3977_v40, %v7775_v16  ;;  %v10275_v47 = vld [vmem:[#allocation127_spill] sm:$0xff]  ;;  %v4475_v26 = vadd.f32 %v4373_v27, %v4372_v49 }
 0x67f   :  { %v9661_v46 = vmax.f32 %v10275_v47, 0.0  ;;  %4089 = vmatmul.bf16.gmra.mxu1 %v7095_v1  ;;  %v9665_v16 = vmax.f32 %v7643_v30, 0.0 }
 0x680   :  { %v7962_v10 = vadd.f32 %v4193_v13, %v4121_v31  ;;  %4473 = vadd.xlane.f32.xlu1 %v4472_v37  ;;  %4016 = vmatmul.bf16.gmra.mxu0 %v7093_v20  ;;  %v10276_v31 = vld [vmem:[#allocation100_spill] sm:$0xff]  ;;  %v4051_v40 = vadd.f32 %v4050_v62, %v3978_v39  ;;  %v4476_v37 = vadd.f32 %v4475_v26, %v4374_v19 }
 0x681   :  { %v9663_v13 = vmax.f32 %v10276_v31, 0.0  ;;  %4235 = vmatmul.bf16.gmra.mxu3 %v7100_v2  ;;  %v4377_v1 = vmul.f32 %v7882_v44, %v9661_v46  ;;  %v4378_v62 = vmul.f32 %v7891_v17, %v9665_v16  ;;  %v10278_v46 = vld [vmem:[#allocation128_spill] sm:$0xff] }
 0x682   :  { %10273 = vst [vmem:[#allocation28_spill] sm:$0xff] %v7962_v10  ;;  %v9662_v35 = vmax.f32 %v7962_v10, 0.0  ;;  %4162 = vmatmul.bf16.gmra.mxu2 %v7097_v9 }
 0x683   :  { %v4376_v2 = vmul.f32 %v7887_v25, %v9663_v13 }
 0x684   :  { %v4375_v20 = vmul.f32 %v7905_v55, %v9662_v35  ;;  %v4196_v9 = vpop.f32.mrf.mxu3  ;;  %v4052_v5 = vpop.f32.mrf.mxu1 }
 0x685   :  { %v4123_v14 = vpop.f32.mrf.mxu2  ;;  %v3979_v49 = vpop.f32.mrf.mxu0  ;;  %v4480_v26 = vadd.f32 %v4377_v1, %v4376_v2 }
 0x686   :  { %v4124_v12 = vadd.f32 %v4123_v14, %v4051_v40  ;;  %v4477_v27 = vadd.f32 %v4476_v37, %v4375_v20  ;;  %v3980_v19 = vadd.f32 %v3979_v49, %v7778_v15  ;;  %v9671_v40 = vmax.f32 %v10278_v46, 0.0  ;;  %v10279_v20 = vld [vmem:[#allocation101_spill] sm:$0xff] }
 0x687   :  { %v9673_v37 = vmax.f32 %v10279_v20, 0.0  ;;  %v4481_v16 = vadd.f32 %v4480_v26, %v4378_v62  ;;  %v10283_v26 = vld [vmem:[#allocation102_spill] sm:$0xff] }
 0x688   :  { %v7988_v39 = vadd.f32 %v4196_v9, %v4124_v12  ;;  %4478 = vadd.xlane.f32.xlu2 %v4477_v27  ;;  %v4053_v23 = vadd.f32 %v4052_v5, %v3980_v19  ;;  %v4381_v15 = vmul.f32 %v7882_v44, %v9671_v40 }
 0x689   :  { %v4380_v35 = vmul.f32 %v7887_v25, %v9673_v37 }
 0x68a   :  { %10277 = vst [vmem:[#allocation29_spill] sm:$0xff] %v7988_v39  ;;  %v9667_v14 = vmax.f32 %v7988_v39, 0.0  ;;  %v10280_v39 = vmax.f32 %v7646_v51, 0.0 }
 0x68c   :  { %v4379_v13 = vmul.f32 %v7905_v55, %v9667_v14  ;;  %v4198_v9 = vpop.f32.mrf.mxu3  ;;  %v4055_v2 = vpop.f32.mrf.mxu1  ;;  %v4382_v14 = vmul.f32 %v7891_v17, %v10280_v39  ;;  %v9672_v39 = vmax.f32 %v7653_v8, 0.0 }
 0x68d   :  { %v4125_v12 = vpop.f32.mrf.mxu2  ;;  %v3982_v49 = vpop.f32.mrf.mxu0 }
 0x68e   :  { %v4126_v1 = vadd.f32 %v4125_v12, %v4053_v23  ;;  %v4482_v27 = vadd.f32 %v4481_v16, %v4379_v13  ;;  %v3983_v62 = vadd.f32 %v3982_v49, %v7785_v36  ;;  %v10282_v23 = vld [vmem:[#allocation129_spill] sm:$0xff]  ;;  %v4485_v16 = vadd.f32 %v4381_v15, %v4380_v35 }
 0x68f   :  { %v9669_v19 = vmax.f32 %v10282_v23, 0.0  ;;  %4094 = vmatmul.bf16.gmra.mxu1 %v7113_v59  ;;  %v9670_v12 = vmax.f32 %v10283_v26, 0.0 }
 0x690   :  { %v8007_v5 = vadd.f32 %v4198_v9, %v4126_v1  ;;  %4483 = vadd.xlane.f32.xlu0 %v4482_v27  ;;  %4021 = vmatmul.bf16.gmra.mxu0 %v7111_v22  ;;  %v4056_v22 = vadd.f32 %v4055_v2, %v3983_v62  ;;  %v4486_v1 = vadd.f32 %v4485_v16, %v4382_v14  ;;  %v10285_v16 = vld [vmem:[#allocation130_spill] sm:$0xff] }
 0x691   :  { %4240 = vmatmul.bf16.gmra.mxu3 %v7118_v0  ;;  %v4385_v59 = vmul.f32 %v7882_v44, %v9669_v19  ;;  %v4384_v0 = vmul.f32 %v7887_v25, %v9670_v12  ;;  %v9675_v19 = vmax.f32 %v7656_v3, 0.0 }
 0x692   :  { %10281 = vst [vmem:[#allocation30_spill] sm:$0xff] %v8007_v5  ;;  %v9668_v13 = vmax.f32 %v8007_v5, 0.0  ;;  %4167 = vmatmul.bf16.gmra.mxu2 %v7115_v6 }
 0x693   :  { %v4490_v62 = vadd.f32 %v4385_v59, %v4384_v0 }
 0x694   :  { %v4383_v36 = vmul.f32 %v7905_v55, %v9668_v13  ;;  %v4201_v6 = vpop.f32.mrf.mxu3  ;;  %v4057_v27 = vpop.f32.mrf.mxu1  ;;  %v4386_v13 = vmul.f32 %v7891_v17, %v9672_v39 }
 0x695   :  { %v4128_v9 = vpop.f32.mrf.mxu2  ;;  %v3984_v35 = vpop.f32.mrf.mxu0 }
 0x696   :  { %v4129_v49 = vadd.f32 %v4128_v9, %v4056_v22  ;;  %v4487_v15 = vadd.f32 %v4486_v1, %v4383_v36  ;;  %v3985_v14 = vadd.f32 %v3984_v35, %v7788_v18  ;;  %v9679_v22 = vmax.f32 %v10285_v16, 0.0  ;;  %v10286_v36 = vld [vmem:[#allocation103_spill] sm:$0xff] }
 0x697   :  { %v9681_v1 = vmax.f32 %v10286_v36, 0.0  ;;  %v4491_v39 = vadd.f32 %v4490_v62, %v4386_v13  ;;  %v10289_v62 = vld [vmem:[#allocation104_spill] sm:$0xff] }
 0x698   :  { %v8030_v2 = vadd.f32 %v4201_v6, %v4129_v49  ;;  %4488 = vadd.xlane.f32.xlu2 %v4487_v15  ;;  %v4058_v40 = vadd.f32 %v4057_v27, %v3985_v14  ;;  %v4389_v18 = vmul.f32 %v7882_v44, %v9679_v22 }
 0x699   :  { %v4388_v37 = vmul.f32 %v7887_v25, %v9681_v1 }
 0x69a   :  { %10284 = vst [vmem:[#allocation31_spill] sm:$0xff] %v8030_v2  ;;  %v9674_v9 = vmax.f32 %v8030_v2, 0.0 }
 0x69c   :  { %v4387_v12 = vmul.f32 %v7905_v55, %v9674_v9  ;;  %v4203_v6 = vpop.f32.mrf.mxu3  ;;  %v4060_v0 = vpop.f32.mrf.mxu1  ;;  %v4390_v9 = vmul.f32 %v7891_v17, %v9675_v19 }
 0x69d   :  { %v4130_v49 = vpop.f32.mrf.mxu2  ;;  %v3987_v35 = vpop.f32.mrf.mxu0 }
 0x69e   :  { %v4131_v59 = vadd.f32 %v4130_v49, %v4058_v40  ;;  %v4492_v15 = vadd.f32 %v4491_v39, %v4387_v12  ;;  %v3988_v13 = vadd.f32 %v3987_v35, %v7795_v41  ;;  %v10288_v40 = vld [vmem:[#allocation131_spill] sm:$0xff]  ;;  %v4495_v39 = vadd.f32 %v4389_v18, %v4388_v37 }
 0x69f   :  { %v9677_v14 = vmax.f32 %v10288_v40, 0.0  ;;  %4099 = vmatmul.bf16.gmra.mxu1 %v7131_v43  ;;  %v9678_v49 = vmax.f32 %v10289_v62, 0.0 }
 0x6a0   :  { %v8049_v27 = vadd.f32 %v4203_v6, %v4131_v59  ;;  %4493 = vadd.xlane.f32.xlu0 %v4492_v15  ;;  %4026 = vmatmul.bf16.gmra.mxu0 %v7129_v42  ;;  %v9680_v59 = vmax.f32 %v7663_v34, 0.0  ;;  %v4061_v42 = vadd.f32 %v4060_v0, %v3988_v13  ;;  %v4496_v6 = vadd.f32 %v4495_v39, %v4390_v9  ;;  %v10291_v39 = vld [vmem:[#allocation132_spill] sm:$0xff] }
 0x6a1   :  { %4245 = vmatmul.bf16.gmra.mxu3 %v7136_v11  ;;  %v4393_v43 = vmul.f32 %v7882_v44, %v9677_v14  ;;  %v4392_v11 = vmul.f32 %v7887_v25, %v9678_v49  ;;  %v9686_v14 = vmax.f32 %v7666_v58, 0.0 }
 0x6a2   :  { %10287 = vst [vmem:[#allocation32_spill] sm:$0xff] %v8049_v27  ;;  %v9676_v12 = vmax.f32 %v8049_v27, 0.0  ;;  %4172 = vmatmul.bf16.gmra.mxu2 %v7133_v24 }
 0x6a3   :  { %v4500_v13 = vadd.f32 %v4393_v43, %v4392_v11 }
 0x6a4   :  { %v4391_v41 = vmul.f32 %v7905_v55, %v9676_v12  ;;  %v4206_v24 = vpop.f32.mrf.mxu3  ;;  %v4062_v19 = vpop.f32.mrf.mxu1  ;;  %v4394_v12 = vmul.f32 %v7891_v17, %v9680_v59 }
 0x6a5   :  { %v4133_v35 = vpop.f32.mrf.mxu2  ;;  %v3989_v37 = vpop.f32.mrf.mxu0 }
 0x6a6   :  { %v4134_v15 = vadd.f32 %v4133_v35, %v4061_v42  ;;  %v4497_v18 = vadd.f32 %v4496_v6, %v4391_v41  ;;  %v3990_v9 = vadd.f32 %v3989_v37, %v7798_v45  ;;  %v9683_v42 = vmax.f32 %v10291_v39, 0.0  ;;  %v10292_v41 = vld [vmem:[#allocation105_spill] sm:$0xff] }
 0x6a7   :  { %v9684_v6 = vmax.f32 %v10292_v41, 0.0  ;;  %v4501_v59 = vadd.f32 %v4500_v13, %v4394_v12 }
 0x6a8   :  { %v8072_v0 = vadd.f32 %v4206_v24, %v4134_v15  ;;  %4498 = vadd.xlane.f32.xlu1 %v4497_v18  ;;  %v4063_v22 = vadd.f32 %v4062_v19, %v3990_v9  ;;  %v4397_v45 = vmul.f32 %v7882_v44, %v9683_v42  ;;  %v10294_v9 = vld [vmem:[#allocation133_spill] sm:$0xff]  ;;  %v9692_v42 = vmax.f32 %v7673_v54, 0.0 }
 0x6a9   :  { %v4396_v1 = vmul.f32 %v7887_v25, %v9684_v6  ;;  %v9689_v13 = vmax.f32 %v10294_v9, 0.0 }
 0x6aa   :  { %10290 = vst [vmem:[#allocation33_spill] sm:$0xff] %v8072_v0  ;;  %v9682_v35 = vmax.f32 %v8072_v0, 0.0 }
 0x6ac   :  { %v4395_v49 = vmul.f32 %v7905_v55, %v9682_v35  ;;  %v4208_v24 = vpop.f32.mrf.mxu3  ;;  %v4065_v11 = vpop.f32.mrf.mxu1  ;;  %v4398_v35 = vmul.f32 %v7891_v17, %v9686_v14 }
 0x6ad   :  { %v4135_v15 = vpop.f32.mrf.mxu2  ;;  %v3992_v37 = vpop.f32.mrf.mxu0 }
 0x6ae   :  { %v4136_v43 = vadd.f32 %v4135_v15, %v4063_v22  ;;  %v4502_v18 = vadd.f32 %v4501_v59, %v4395_v49  ;;  %v3993_v12 = vadd.f32 %v3992_v37, %v7805_v52  ;;  %v4505_v15 = vadd.f32 %v4397_v45, %v4396_v1  ;;  %v10295_v49 = vld [vmem:[#allocation106_spill] sm:$0xff] }
 0x6af   :  { %v9690_v59 = vmax.f32 %v10295_v49, 0.0  ;;  %v4401_v52 = vmul.f32 %v7882_v44, %v9689_v13 }
 0x6b0   :  { %v8091_v19 = vadd.f32 %v4208_v24, %v4136_v43  ;;  %4503 = vadd.xlane.f32.xlu2 %v4502_v18  ;;  %v4066_v58 = vadd.f32 %v4065_v11, %v3993_v12  ;;  %v4506_v14 = vadd.f32 %v4505_v15, %v4398_v35  ;;  %v10297_v15 = vld [vmem:[#allocation134_spill] sm:$0xff] }
 0x6b1   :  { %v4400_v45 = vmul.f32 %v7887_v25, %v9690_v59 }
 0x6b2   :  { %10293 = vst [vmem:[#allocation34_spill] sm:$0xff] %v8091_v19  ;;  %v9688_v22 = vmax.f32 %v8091_v19, 0.0 }
 0x6b3   :  { %v4510_v12 = vadd.f32 %v4401_v52, %v4400_v45 }
 0x6b4   :  { %v4399_v6 = vmul.f32 %v7905_v55, %v9688_v22  ;;  %v4211_v37 = vpop.f32.mrf.mxu3  ;;  %v4067_v1 = vpop.f32.mrf.mxu1  ;;  %v4402_v22 = vmul.f32 %v7891_v17, %v9692_v42 }
 0x6b5   :  { %v4138_v43 = vpop.f32.mrf.mxu2  ;;  %v3994_v18 = vpop.f32.mrf.mxu0 }
 0x6b6   :  { %v4139_v24 = vadd.f32 %v4138_v43, %v4066_v58  ;;  %v4507_v39 = vadd.f32 %v4506_v14, %v4399_v6  ;;  %v3995_v35 = vadd.f32 %v3994_v18, %v7808_v32  ;;  %v9695_v58 = vmax.f32 %v10297_v15, 0.0  ;;  %v10298_v14 = vld [vmem:[#allocation107_spill] sm:$0xff] }
 0x6b7   :  { %v9696_v6 = vmax.f32 %v10298_v14, 0.0  ;;  %v4511_v42 = vadd.f32 %v4510_v12, %v4402_v22 }
 0x6b8   :  { %v8110_v11 = vadd.f32 %v4211_v37, %v4139_v24  ;;  %4508 = vadd.xlane.f32.xlu0 %v4507_v39  ;;  %v4068_v54 = vadd.f32 %v4067_v1, %v3995_v35  ;;  %v4405_v32 = vmul.f32 %v7882_v44, %v9695_v58  ;;  %v10301_v35 = vld [vmem:[#allocation135_spill] sm:$0xff]  ;;  %v9703_v58 = vmax.f32 %v7683_v33, 0.0 }
 0x6b9   :  { %v4404_v13 = vmul.f32 %v7887_v25, %v9696_v6  ;;  %v9700_v12 = vmax.f32 %v10301_v35, 0.0 }
 0x6ba   :  { %10296 = vst [vmem:[#allocation35_spill] sm:$0xff] %v8110_v11  ;;  %v9694_v43 = vmax.f32 %v8110_v11, 0.0  ;;  %v10299_v11 = vmax.f32 %v7676_v63, 0.0 }
 0x6bc   :  { %v4403_v59 = vmul.f32 %v7905_v55, %v9694_v43  ;;  %v4213_v52 = vpop.f32.mrf.mxu3  ;;  %v4070_v45 = vpop.f32.mrf.mxu1  ;;  %v4406_v43 = vmul.f32 %v7891_v17, %v10299_v11 }
 0x6bd   :  { %v4140_v24 = vpop.f32.mrf.mxu2  ;;  %v3997_v37 = vpop.f32.mrf.mxu0 }
 0x6be   :  { %v4141_v39 = vadd.f32 %v4140_v24, %v4068_v54  ;;  %v4512_v18 = vadd.f32 %v4511_v42, %v4403_v59  ;;  %v3998_v22 = vadd.f32 %v3997_v37, %v7815_v60  ;;  %v4515_v24 = vadd.f32 %v4405_v32, %v4404_v13  ;;  %v10302_v42 = vld [vmem:[#allocation108_spill] sm:$0xff] }
 0x6bf   :  { %v9701_v59 = vmax.f32 %v10302_v42, 0.0  ;;  %v4409_v60 = vmul.f32 %v7882_v44, %v9700_v12 }
 0x6c0   :  { %v8129_v1 = vadd.f32 %v4213_v52, %v4141_v39  ;;  %4513 = vadd.xlane.f32.xlu1 %v4512_v18  ;;  %v4071_v63 = vadd.f32 %v4070_v45, %v3998_v22  ;;  %v4516_v11 = vadd.f32 %v4515_v24, %v4406_v43  ;;  %v10304_v24 = vld [vmem:[#allocation136_spill] sm:$0xff] }
 0x6c1   :  { %v4408_v32 = vmul.f32 %v7887_v25, %v9701_v59 }
 0x6c2   :  { %10300 = vst [vmem:[#allocation36_spill] sm:$0xff] %v8129_v1  ;;  %v9699_v54 = vmax.f32 %v8129_v1, 0.0 }
 0x6c3   :  { %v4520_v22 = vadd.f32 %v4409_v60, %v4408_v32 }
 0x6c4   :  { %v4407_v6 = vmul.f32 %v7905_v55, %v9699_v54  ;;  %v4216_v37 = vpop.f32.mrf.mxu3  ;;  %v4072_v13 = vpop.f32.mrf.mxu1  ;;  %v4410_v54 = vmul.f32 %v7891_v17, %v9703_v58 }
 0x6c5   :  { %v4143_v39 = vpop.f32.mrf.mxu2  ;;  %v3999_v18 = vpop.f32.mrf.mxu0 }
 0x6c6   :  { %v4144_v52 = vadd.f32 %v4143_v39, %v4071_v63  ;;  %v4517_v15 = vadd.f32 %v4516_v11, %v4407_v6  ;;  %v4000_v43 = vadd.f32 %v3999_v18, %v7818_v21  ;;  %v9706_v63 = vmax.f32 %v10304_v24, 0.0  ;;  %v10305_v6 = vld [vmem:[#allocation109_spill] sm:$0xff] }
 0x6c7   :  { %v9708_v11 = vmax.f32 %v10305_v6, 0.0  ;;  %v4521_v58 = vadd.f32 %v4520_v22, %v4410_v54 }
 0x6c8   :  { %v8148_v45 = vadd.f32 %v4216_v37, %v4144_v52  ;;  %4518 = vadd.xlane.f32.xlu2 %v4517_v15  ;;  %v4073_v33 = vadd.f32 %v4072_v13, %v4000_v43  ;;  %v4413_v21 = vmul.f32 %v7882_v44, %v9706_v63  ;;  %v10308_v43 = vld [vmem:[#allocation137_spill] sm:$0xff]  ;;  %v10310_v63 = vld [vmem:[#allocation142_spill] sm:$0xff] }
 0x6c9   :  { %v4412_v12 = vmul.f32 %v7887_v25, %v9708_v11  ;;  %v9712_v22 = vmax.f32 %v10308_v43, 0.0  ;;  %v9717_v24 = vmax.f32 %v10310_v63, 0.0  ;;  %v10315_v43 = vld [vmem:[#allocation143_spill] sm:$0xff] }
 0x6ca   :  { %10303 = vst [vmem:[#allocation37_spill] sm:$0xff] %v8148_v45  ;;  %v9705_v39 = vmax.f32 %v8148_v45, 0.0  ;;  %v10306_v45 = vmax.f32 %v7686_v28, 0.0 }
 0x6cc   :  { %v4411_v59 = vmul.f32 %v7905_v55, %v9705_v39  ;;  %v4218_v60 = vpop.f32.mrf.mxu3  ;;  %v4075_v32 = vpop.f32.mrf.mxu1  ;;  %v4414_v39 = vmul.f32 %v7891_v17, %v10306_v45 }
 0x6cd   :  { %v4145_v52 = vpop.f32.mrf.mxu2  ;;  %v4002_v37 = vpop.f32.mrf.mxu0 }
 0x6ce   :  { %v4146_v15 = vadd.f32 %v4145_v52, %v4073_v33  ;;  %v4522_v18 = vadd.f32 %v4521_v58, %v4411_v59  ;;  %v4003_v54 = vadd.f32 %v4002_v37, %v7825_v57  ;;  %v4525_v52 = vadd.f32 %v4413_v21, %v4412_v12  ;;  %v10309_v58 = vld [vmem:[#allocation110_spill] sm:$0xff] }
 0x6cf   :  { %v9715_v59 = vmax.f32 %v10309_v58, 0.0  ;;  %v4417_v57 = vmul.f32 %v7882_v44, %v9712_v22  ;;  %v10313_v22 = vld [vmem:[#allocation117_spill] sm:$0xff] }
 0x6d0   :  { %v8167_v13 = vadd.f32 %v4218_v60, %v4146_v15  ;;  %4523 = vadd.xlane.f32.xlu0 %v4522_v18  ;;  %v4076_v28 = vadd.f32 %v4075_v32, %v4003_v54  ;;  %v4526_v45 = vadd.f32 %v4525_v52, %v4414_v39  ;;  %v10312_v39 = vld [vmem:[#allocation20_spill] sm:$0xff] }
 0x6d1   :  { %v4416_v21 = vmul.f32 %v7887_v25, %v9715_v59 }
 0x6d2   :  { %10307 = vst [vmem:[#allocation38_spill] sm:$0xff] %v8167_v13  ;;  %v9711_v33 = vmax.f32 %v8167_v13, 0.0 }
 0x6d3   :  { %v4530_v52 = vadd.f32 %v4417_v57, %v4416_v21 }
 0x6d4   :  { %v4415_v11 = vmul.f32 %v7905_v55, %v9711_v33  ;;  %v4221_v37 = vpop.f32.mrf.mxu3  ;;  %v4077_v12 = vpop.f32.mrf.mxu1  ;;  %v4418_v33 = vmul.f32 %v7891_v17, %v9717_v24 }
 0x6d5   :  { %v4148_v15 = vpop.f32.mrf.mxu2  ;;  %v4004_v18 = vpop.f32.mrf.mxu0 }
 0x6d6   :  { %v4149_v60 = vadd.f32 %v4148_v15, %v4076_v28  ;;  %v4527_v6 = vadd.f32 %v4526_v45, %v4415_v11  ;;  %v4005_v54 = vadd.f32 %v4004_v18, %v10312_v39  ;;  %v9720_v28 = vmax.f32 %v10313_v22, 0.0  ;;  %v10314_v11 = vld [vmem:[#allocation111_spill] sm:$0xff]  ;;  %v10321_v22 = vld [vmem:[#allocation13_spill] sm:$0xff] }
 0x6d7   :  { %v9723_v45 = vmax.f32 %v10314_v11, 0.0  ;;  %v4531_v24 = vadd.f32 %v4530_v52, %v4418_v33  ;;  %v10318_v33 = vld [vmem:[#allocation146_spill] sm:$0xff]  ;;  %v9732_v11 = vmax.f32 %v10321_v22, 0.0 }
 0x6d8   :  { %v8186_v32 = vadd.f32 %v4221_v37, %v4149_v60  ;;  %4528 = vadd.xlane.f32.xlu1 %v4527_v6  ;;  %v4078_v63 = vadd.f32 %v4077_v12, %v4005_v54  ;;  %v4421_v6 = vmul.f32 %v7882_v44, %v9720_v28  ;;  %v10319_v52 = vld [vmem:[#allocation118_spill] sm:$0xff] }
 0x6d9   :  { %v4420_v58 = vmul.f32 %v7887_v25, %v9723_v45  ;;  %v9727_v28 = vmax.f32 %v10319_v52, 0.0  ;;  %v10326_v52 = vld [vmem:[#allocation14_spill] sm:$0xff] }
 0x6da   :  { %10311 = vst [vmem:[#allocation39_spill] sm:$0xff] %v8186_v32  ;;  %v9719_v15 = vmax.f32 %v8186_v32, 0.0  ;;  %v10316_v32 = vmax.f32 %v10315_v43, 0.0 }
 0x6dc   :  { %v4419_v59 = vmul.f32 %v7905_v55, %v9719_v15  ;;  %v4223_v37 = vpop.f32.mrf.mxu3  ;;  %v4080_v39 = vpop.f32.mrf.mxu1  ;;  %v4422_v15 = vmul.f32 %v7891_v17, %v10316_v32 }
 0x6dd   :  { %v4150_v60 = vpop.f32.mrf.mxu2  ;;  %v4007_v18 = vpop.f32.mrf.mxu0 }
 0x6de   :  { %v4151_v57 = vadd.f32 %v4150_v60, %v4078_v63  ;;  %v4532_v21 = vadd.f32 %v4531_v24, %v4419_v59  ;;  %v4008_v54 = vadd.f32 %v4007_v18, %v10318_v33  ;;  %v4535_v60 = vadd.f32 %v4421_v6, %v4420_v58  ;;  %v10320_v24 = vld [vmem:[#allocation112_spill] sm:$0xff] }
 0x6df   :  { %v9730_v59 = vmax.f32 %v10320_v24, 0.0 }
 0x6e0   :  { %v8205_v12 = vadd.f32 %v4223_v37, %v4151_v57  ;;  %4533 = vadd.xlane.f32.xlu2 %v4532_v21  ;;  %v4081_v43 = vadd.f32 %v4080_v39, %v4008_v54  ;;  %v4536_v32 = vadd.f32 %v4535_v60, %v4422_v15  ;;  %v4425_v37 = vmul.f32 %v7882_v44, %v9727_v28  ;;  %v10323_v15 = vld [vmem:[#allocation147_spill] sm:$0xff] }
 0x6e1   :  { %v4424_v6 = vmul.f32 %v7887_v25, %v9730_v59  ;;  %v10324_v28 = vld [vmem:[#allocation119_spill] sm:$0xff] }
 0x6e2   :  { %10317 = vst [vmem:[#allocation40_spill] sm:$0xff] %v8205_v12  ;;  %v9726_v63 = vmax.f32 %v8205_v12, 0.0 }
 0x6e3   :  { %v4540_v60 = vadd.f32 %v4425_v37, %v4424_v6 }
 0x6e4   :  { %v4423_v45 = vmul.f32 %v7905_v55, %v9726_v63  ;;  %v4226_v21 = vpop.f32.mrf.mxu3  ;;  %v4082_v58 = vpop.f32.mrf.mxu1  ;;  %v4426_v63 = vmul.f32 %v7891_v17, %v9732_v11 }
 0x6e5   :  { %v4153_v57 = vpop.f32.mrf.mxu2  ;;  %v4009_v33 = vpop.f32.mrf.mxu0 }
 0x6e6   :  { %v4154_v18 = vadd.f32 %v4153_v57, %v4081_v43  ;;  %v4537_v13 = vadd.f32 %v4536_v32, %v4423_v45  ;;  %v4010_v54 = vadd.f32 %v4009_v33, %v10323_v15  ;;  %v9735_v43 = vmax.f32 %v10324_v28, 0.0  ;;  %v10325_v45 = vld [vmem:[#allocation113_spill] sm:$0xff]  ;;  %v10332_v28 = vld [vmem:[#allocation15_spill] sm:$0xff] }
 0x6e7   :  { %v9738_v32 = vmax.f32 %v10325_v45, 0.0  ;;  %v4541_v11 = vadd.f32 %v4540_v60, %v4426_v63  ;;  %v10329_v63 = vld [vmem:[#allocation21_spill] sm:$0xff]  ;;  %v10330_v60 = vld [vmem:[#allocation120_spill] sm:$0xff]  ;;  %v9747_v45 = vmax.f32 %v10332_v28, 0.0 }
 0x6e8   :  { %v8224_v39 = vadd.f32 %v4226_v21, %v4154_v18  ;;  %4538 = vadd.xlane.f32.xlu0 %v4537_v13  ;;  %v4083_v22 = vadd.f32 %v4082_v58, %v4010_v54  ;;  %v4429_v13 = vmul.f32 %v7882_v44, %v9735_v43  ;;  %v9742_v43 = vmax.f32 %v10330_v60, 0.0  ;;  %v10337_v60 = vld [vmem:[#allocation16_spill] sm:$0xff] }
 0x6e9   :  { %v4428_v24 = vmul.f32 %v7887_v25, %v9738_v32 }
 0x6ea   :  { %10322 = vst [vmem:[#allocation41_spill] sm:$0xff] %v8224_v39  ;;  %v9734_v57 = vmax.f32 %v8224_v39, 0.0  ;;  %v10327_v39 = vmax.f32 %v10326_v52, 0.0 }
 0x6ec   :  { %v4427_v59 = vmul.f32 %v7905_v55, %v9734_v57  ;;  %v4228_v21 = vpop.f32.mrf.mxu3  ;;  %v4085_v15 = vpop.f32.mrf.mxu1  ;;  %v4430_v57 = vmul.f32 %v7891_v17, %v10327_v39 }
 0x6ed   :  { %v4155_v18 = vpop.f32.mrf.mxu2  ;;  %v4012_v33 = vpop.f32.mrf.mxu0 }
 0x6ee   :  { %v4156_v37 = vadd.f32 %v4155_v18, %v4083_v22  ;;  %v4542_v6 = vadd.f32 %v4541_v11, %v4427_v59  ;;  %v4013_v54 = vadd.f32 %v4012_v33, %v10329_v63  ;;  %v4545_v18 = vadd.f32 %v4429_v13, %v4428_v24  ;;  %v10331_v11 = vld [vmem:[#allocation77_spill] sm:$0xff] }
 0x6ef   :  { %v9745_v59 = vmax.f32 %v10331_v11, 0.0 }
 0x6f0   :  { %v8243_v58 = vadd.f32 %v4228_v21, %v4156_v37  ;;  %4543 = vadd.xlane.f32.xlu1 %v4542_v6  ;;  %v4086_v52 = vadd.f32 %v4085_v15, %v4013_v54  ;;  %v4546_v39 = vadd.f32 %v4545_v18, %v4430_v57  ;;  %v4433_v21 = vmul.f32 %v7882_v44, %v9742_v43  ;;  %v10334_v57 = vld [vmem:[#allocation22_spill] sm:$0xff]  ;;  %v10335_v43 = vld [vmem:[#allocation121_spill] sm:$0xff] }
 0x6f1   :  { %v4432_v13 = vmul.f32 %v7887_v25, %v9745_v59 }
 0x6f2   :  { %10328 = vst [vmem:[#allocation42_spill] sm:$0xff] %v8243_v58  ;;  %v9741_v22 = vmax.f32 %v8243_v58, 0.0 }
 0x6f3   :  { %v4550_v18 = vadd.f32 %v4433_v21, %v4432_v13 }
 0x6f4   :  { %v4431_v32 = vmul.f32 %v7905_v55, %v9741_v22  ;;  %v4231_v6 = vpop.f32.mrf.mxu3  ;;  %v4087_v24 = vpop.f32.mrf.mxu1  ;;  %v4434_v22 = vmul.f32 %v7891_v17, %v9747_v45 }
 0x6f5   :  { %v4158_v37 = vpop.f32.mrf.mxu2  ;;  %v4014_v63 = vpop.f32.mrf.mxu0 }
 0x6f6   :  { %v4159_v33 = vadd.f32 %v4158_v37, %v4086_v52  ;;  %v4547_v12 = vadd.f32 %v4546_v39, %v4431_v32  ;;  %v4015_v54 = vadd.f32 %v4014_v63, %v10334_v57  ;;  %v9750_v52 = vmax.f32 %v10335_v43, 0.0  ;;  %v10336_v32 = vld [vmem:[#allocation78_spill] sm:$0xff]  ;;  %v10343_v43 = vld [vmem:[#allocation144_spill] sm:$0xff] }
 0x6f7   :  { %v9753_v39 = vmax.f32 %v10336_v32, 0.0  ;;  %v4551_v45 = vadd.f32 %v4550_v18, %v4434_v22  ;;  %v10340_v22 = vld [vmem:[#allocation23_spill] sm:$0xff]  ;;  %v10341_v18 = vld [vmem:[#allocation122_spill] sm:$0xff]  ;;  %v9762_v32 = vmax.f32 %v10343_v43, 0.0 }
 0x6f8   :  { %v8262_v15 = vadd.f32 %v4231_v6, %v4159_v33  ;;  %4548 = vadd.xlane.f32.xlu2 %v4547_v12  ;;  %v4088_v28 = vadd.f32 %v4087_v24, %v4015_v54  ;;  %v4437_v12 = vmul.f32 %v7882_v44, %v9750_v52  ;;  %v9757_v52 = vmax.f32 %v10341_v18, 0.0  ;;  %v10348_v18 = vld [vmem:[#allocation145_spill] sm:$0xff] }
 0x6f9   :  { %v4436_v11 = vmul.f32 %v7887_v25, %v9753_v39 }
 0x6fa   :  { %10333 = vst [vmem:[#allocation43_spill] sm:$0xff] %v8262_v15  ;;  %v9749_v37 = vmax.f32 %v8262_v15, 0.0  ;;  %v10338_v15 = vmax.f32 %v10337_v60, 0.0 }
 0x6fc   :  { %v4435_v59 = vmul.f32 %v7905_v55, %v9749_v37  ;;  %v4233_v6 = vpop.f32.mrf.mxu3  ;;  %v4090_v57 = vpop.f32.mrf.mxu1  ;;  %v4438_v37 = vmul.f32 %v7891_v17, %v10338_v15 }
 0x6fd   :  { %v4160_v33 = vpop.f32.mrf.mxu2  ;;  %v4017_v63 = vpop.f32.mrf.mxu0 }
 0x6fe   :  { %v4161_v21 = vadd.f32 %v4160_v33, %v4088_v28  ;;  %v4552_v13 = vadd.f32 %v4551_v45, %v4435_v59  ;;  %v4018_v54 = vadd.f32 %v4017_v63, %v10340_v22  ;;  %v4555_v33 = vadd.f32 %v4437_v12, %v4436_v11  ;;  %v10342_v45 = vld [vmem:[#allocation83_spill] sm:$0xff] }
 0x6ff   :  { %v9760_v59 = vmax.f32 %v10342_v45, 0.0 }
 0x700   :  { %v8281_v24 = vadd.f32 %v4233_v6, %v4161_v21  ;;  %4553 = vadd.xlane.f32.xlu0 %v4552_v13  ;;  %v4091_v60 = vadd.f32 %v4090_v57, %v4018_v54  ;;  %v4556_v15 = vadd.f32 %v4555_v33, %v4438_v37  ;;  %v4441_v6 = vmul.f32 %v7882_v44, %v9757_v52  ;;  %v10345_v37 = vld [vmem:[#allocation24_spill] sm:$0xff]  ;;  %v10346_v52 = vld [vmem:[#allocation138_spill] sm:$0xff] }
 0x701   :  { %v4440_v12 = vmul.f32 %v7887_v25, %v9760_v59 }
 0x702   :  { %10339 = vst [vmem:[#allocation44_spill] sm:$0xff] %v8281_v24  ;;  %v9756_v28 = vmax.f32 %v8281_v24, 0.0 }
 0x703   :  { %v4560_v33 = vadd.f32 %v4441_v6, %v4440_v12 }
 0x704   :  { %v4439_v39 = vmul.f32 %v7905_v55, %v9756_v28  ;;  %v4236_v13 = vpop.f32.mrf.mxu3  ;;  %v4092_v11 = vpop.f32.mrf.mxu1  ;;  %v4442_v28 = vmul.f32 %v7891_v17, %v9762_v32 }
 0x705   :  { %v4163_v21 = vpop.f32.mrf.mxu2  ;;  %v4019_v22 = vpop.f32.mrf.mxu0 }
 0x706   :  { %v4164_v63 = vadd.f32 %v4163_v21, %v4091_v60  ;;  %v4557_v58 = vadd.f32 %v4556_v15, %v4439_v39  ;;  %v4020_v54 = vadd.f32 %v4019_v22, %v10345_v37  ;;  %v9765_v60 = vmax.f32 %v10346_v52, 0.0  ;;  %v10347_v39 = vld [vmem:[#allocation84_spill] sm:$0xff]  ;;  %v10354_v52 = vld [vmem:[#allocation17_spill] sm:$0xff] }
 0x707   :  { %v9768_v15 = vmax.f32 %v10347_v39, 0.0  ;;  %v4561_v32 = vadd.f32 %v4560_v33, %v4442_v28  ;;  %v10351_v28 = vld [vmem:[#allocation148_spill] sm:$0xff]  ;;  %v10352_v33 = vld [vmem:[#allocation139_spill] sm:$0xff]  ;;  %v9777_v39 = vmax.f32 %v10354_v52, 0.0 }
 0x708   :  { %v8300_v57 = vadd.f32 %v4236_v13, %v4164_v63  ;;  %4558 = vadd.xlane.f32.xlu1 %v4557_v58  ;;  %v4093_v43 = vadd.f32 %v4092_v11, %v4020_v54  ;;  %v4445_v58 = vmul.f32 %v7882_v44, %v9765_v60  ;;  %v9772_v60 = vmax.f32 %v10352_v33, 0.0  ;;  %v10359_v33 = vld [vmem:[#allocation18_spill] sm:$0xff] }
 0x709   :  { %v4444_v45 = vmul.f32 %v7887_v25, %v9768_v15 }
 0x70a   :  { %10344 = vst [vmem:[#allocation45_spill] sm:$0xff] %v8300_v57  ;;  %v9764_v21 = vmax.f32 %v8300_v57, 0.0  ;;  %v10349_v57 = vmax.f32 %v10348_v18, 0.0 }
 0x70c   :  { %v4443_v59 = vmul.f32 %v7905_v55, %v9764_v21  ;;  %v4238_v13 = vpop.f32.mrf.mxu3  ;;  %v4095_v37 = vpop.f32.mrf.mxu1  ;;  %v4446_v21 = vmul.f32 %v7891_v17, %v10349_v57 }
 0x70d   :  { %v4165_v63 = vpop.f32.mrf.mxu2  ;;  %v4022_v22 = vpop.f32.mrf.mxu0 }
 0x70e   :  { %v4166_v6 = vadd.f32 %v4165_v63, %v4093_v43  ;;  %v4562_v12 = vadd.f32 %v4561_v32, %v4443_v59  ;;  %v4023_v54 = vadd.f32 %v4022_v22, %v10351_v28  ;;  %v4565_v63 = vadd.f32 %v4445_v58, %v4444_v45  ;;  %v10353_v32 = vld [vmem:[#allocation114_spill] sm:$0xff] }
 0x70f   :  { %v9775_v59 = vmax.f32 %v10353_v32, 0.0 }
 0x710   :  { %v8319_v11 = vadd.f32 %v4238_v13, %v4166_v6  ;;  %4563 = vadd.xlane.f32.xlu2 %v4562_v12  ;;  %v4096_v18 = vadd.f32 %v4095_v37, %v4023_v54  ;;  %v4566_v57 = vadd.f32 %v4565_v63, %v4446_v21  ;;  %v4449_v13 = vmul.f32 %v7882_v44, %v9772_v60  ;;  %v10356_v21 = vld [vmem:[#allocation25_spill] sm:$0xff]  ;;  %v10357_v60 = vld [vmem:[#allocation140_spill] sm:$0xff] }
 0x711   :  { %v4448_v58 = vmul.f32 %v7887_v25, %v9775_v59 }
 0x712   :  { %10350 = vst [vmem:[#allocation46_spill] sm:$0xff] %v8319_v11  ;;  %v9771_v43 = vmax.f32 %v8319_v11, 0.0 }
 0x713   :  { %v4570_v63 = vadd.f32 %v4449_v13, %v4448_v58 }
 0x714   :  { %v4447_v15 = vmul.f32 %v7905_v55, %v9771_v43  ;;  %v4241_v12 = vpop.f32.mrf.mxu3  ;;  %v4097_v45 = vpop.f32.mrf.mxu1  ;;  %v4450_v43 = vmul.f32 %v7891_v17, %v9777_v39 }
 0x715   :  { %v4168_v6 = vpop.f32.mrf.mxu2  ;;  %v4024_v28 = vpop.f32.mrf.mxu0 }
 0x716   :  { %v4169_v22 = vadd.f32 %v4168_v6, %v4096_v18  ;;  %v4567_v24 = vadd.f32 %v4566_v57, %v4447_v15  ;;  %v4025_v54 = vadd.f32 %v4024_v28, %v10356_v21  ;;  %v9780_v18 = vmax.f32 %v10357_v60, 0.0  ;;  %v10358_v15 = vld [vmem:[#allocation115_spill] sm:$0xff]  ;;  %v10363_v60 = vld [vmem:[#allocation141_spill] sm:$0xff] }
 0x717   :  { %v9783_v57 = vmax.f32 %v10358_v15, 0.0  ;;  %v4571_v39 = vadd.f32 %v4570_v63, %v4450_v43  ;;  %v10360_v43 = vmax.f32 %v10359_v33, 0.0 }
 0x718   :  { %v8338_v37 = vadd.f32 %v4241_v12, %v4169_v22  ;;  %4568 = vadd.xlane.f32.xlu0 %v4567_v24  ;;  %v4098_v52 = vadd.f32 %v4097_v45, %v4025_v54  ;;  %v5167_v22 = vld [vmem:[%s9419_s3 + $0x178] sm:$0xff]  ;;  %v4453_v13 = vmul.f32 %v7882_v44, %v9780_v18  ;;  %v9788_v18 = vmax.f32 %v10363_v60, 0.0 }
 0x719   :  { %5225 = vmatpush.msra.mxu2 %v5167_v22  ;;  %v4452_v45 = vmul.f32 %v7887_v25, %v9783_v57  ;;  %v4454_v54 = vmul.f32 %v7891_v17, %v10360_v43  ;;  %v10362_v22 = vld [vmem:[#allocation26_spill] sm:$0xff] }
 0x71a   :  { %10355 = vst [vmem:[#allocation47_spill] sm:$0xff] %v8338_v37  ;;  %v9778_v6 = vmax.f32 %v8338_v37, 0.0  ;;  %v10365_v37 = vld [vmem:[#allocation19_spill] sm:$0xff] }
 0x71b   :  { %v9787_v15 = vmax.f32 %v10365_v37, 0.0 }
 0x71c   :  { %v4451_v59 = vmul.f32 %v7905_v55, %v9778_v6  ;;  %v4243_v28 = vpop.f32.mrf.mxu3  ;;  %v4100_v32 = vpop.f32.mrf.mxu1 }
 0x71d   :  { %v4170_v24 = vpop.f32.mrf.mxu2  ;;  %v4027_v58 = vpop.f32.mrf.mxu0 }
 0x71e   :  { %v4171_v12 = vadd.f32 %v4170_v24, %v4098_v52  ;;  %v4572_v21 = vadd.f32 %v4571_v39, %v4451_v59  ;;  %v4028_v6 = vadd.f32 %v4027_v58, %v10362_v22  ;;  %v4575_v24 = vadd.f32 %v4453_v13, %v4452_v45  ;;  %v10364_v39 = vld [vmem:[#allocation116_spill] sm:$0xff] }
 0x71f   :  { %v9789_v59 = vmax.f32 %v10364_v39, 0.0  ;;  %v5151_v13 = vld [vmem:[%s9419_s3 + $0xf8] sm:$0xff] }
 0x720   :  { %v8360_v63 = vadd.f32 %v4243_v28, %v4171_v12  ;;  %4573 = vadd.xlane.f32.xlu1 %v4572_v21  ;;  %v4101_v33 = vadd.f32 %v4100_v32, %v4028_v6  ;;  %v4576_v43 = vadd.f32 %v4575_v24, %v4454_v54  ;;  %v5135_v12 = vld [vmem:[%s9419_s3 + $0x78] sm:$0xff]  ;;  %v4457_v32 = vmul.f32 %v7882_v44, %v9788_v18 }
 0x721   :  { %v5183_v28 = vld [vmem:[%s9419_s3 + $0x1f8] sm:$0xff]  ;;  %5185 = vmatpush.msra.mxu0 %v5135_v12  ;;  %5205 = vmatpush.msra.mxu1 %v5151_v13  ;;  %v4456_v24 = vmul.f32 %v7887_v25, %v9789_v59  ;;  %v5134_v25 = vld [vmem:[%s9419_s3 + $0x70] sm:$0xff] }
 0x722   :  { %10361 = vst [vmem:[#allocation48_spill] sm:$0xff] %v8360_v63  ;;  %v9785_v52 = vmax.f32 %v8360_v63, 0.0  ;;  %5245 = vmatpush.msra.mxu3 %v5183_v28 }
 0x723   :  { %v4580_v28 = vadd.f32 %v4457_v32, %v4456_v24  ;;  %5186 = vmatpush.msra.mxu0 %v5134_v25  ;;  %v5165_v32 = vld [vmem:[%s9419_s3 + $0x168] sm:$0xff]  ;;  %v5180_v24 = vld [vmem:[%s9419_s3 + $0x1e0] sm:$0xff]  ;;  %v5147_v25 = vld [vmem:[%s9419_s3 + $0xd8] sm:$0xff] }
 0x724   :  { %v4455_v57 = vmul.f32 %v7905_v55, %v9785_v52  ;;  %v4246_v21 = vpop.f32.mrf.mxu3  ;;  %v4102_v22 = vpop.f32.mrf.mxu1  ;;  %v4458_v52 = vmul.f32 %v7891_v17, %v9787_v15  ;;  %v5182_v17 = vld [vmem:[%s9419_s3 + $0x1f0] sm:$0xff] }
 0x725   :  { %v4173_v58 = vpop.f32.mrf.mxu2  ;;  %v4029_v45 = vpop.f32.mrf.mxu0  ;;  %5246 = vmatpush.msra.mxu3 %v5182_v17  ;;  %v5132_v22 = vld [vmem:[%s9419_s3 + $0x60] sm:$0xff]  ;;  %v5162_v17 = vld [vmem:[%s9419_s3 + $0x150] sm:$0xff] }
 0x726   :  { %v4174_v6 = vadd.f32 %v4173_v58, %v4101_v33  ;;  %v4577_v54 = vadd.f32 %v4576_v43, %v4455_v57  ;;  %v4581_v57 = vadd.f32 %v4580_v28, %v4458_v52  ;;  %v5166_v43 = vld [vmem:[%s9419_s3 + $0x170] sm:$0xff]  ;;  %v5149_v45 = vld [vmem:[%s9419_s3 + $0xe8] sm:$0xff]  ;;  %v5148_v28 = vld [vmem:[%s9419_s3 + $0xe0] sm:$0xff] }
 0x727   :  { %5226 = vmatpush.msra.mxu2 %v5166_v43  ;;  %v5179_v43 = vld [vmem:[%s9419_s3 + $0x1d8] sm:$0xff] }
 0x728   :  { %v8388_v12 = vadd.f32 %v4246_v21, %v4174_v6  ;;  %4578 = vadd.xlane.f32.xlu2 %v4577_v54  ;;  %v5133_v6 = vld [vmem:[%s9419_s3 + $0x68] sm:$0xff]  ;;  %v5164_v54 = vld [vmem:[%s9419_s3 + $0x160] sm:$0xff] }
 0x729   :  { %v5181_v21 = vld [vmem:[%s9419_s3 + $0x1e8] sm:$0xff]  ;;  %5227 = vmatpush.msra.mxu2 %v5165_v32  ;;  %5187 = vmatpush.msra.mxu0 %v5133_v6  ;;  %v8456_v32 = vpop.xlane.xlu1 %4468  ;;  %v8458_v6 = vpop.xlane.xlu2 %4478 }
 0x72a   :  { %10366 = vst [vmem:[#allocation49_spill] sm:$0xff] %v8388_v12  ;;  %v9786_v44 = vmax.f32 %v8388_v12, 0.0  ;;  %5247 = vmatpush.msra.mxu3 %v5181_v21 }
 0x72b   :  { %5228 = vmatpush.msra.mxu2 %v5164_v54  ;;  %5188 = vmatpush.msra.mxu0 %v5132_v22  ;;  %v5129_v54 = vld [vmem:[%s9419_s3 + $0x48] sm:$0xff] }
 0x72c   :  { %v4459_v33 = vmul.f32 %v7905_v55, %v9786_v44  ;;  %v5150_v55 = vld [vmem:[%s9419_s3 + $0xf0] sm:$0xff]  ;;  %v4248_v52 = vpop.f32.mrf.mxu3  ;;  %5248 = vmatpush.msra.mxu3 %v5180_v24  ;;  %v5177_v22 = vld [vmem:[%s9419_s3 + $0x1c8] sm:$0xff] }
 0x72d   :  { %v4175_v13 = vpop.f32.mrf.mxu2  ;;  %5206 = vmatpush.msra.mxu1 %v5150_v55  ;;  %v5130_v55 = vld [vmem:[%s9419_s3 + $0x50] sm:$0xff] }
 0x72e   :  { %v4582_v58 = vadd.f32 %v4581_v57, %v4459_v33  ;;  %v5163_v33 = vld [vmem:[%s9419_s3 + $0x158] sm:$0xff]  ;;  %5249 = vmatpush.msra.mxu3 %v5179_v43  ;;  %v8445_v13 = vpop.xlane.xlu0 %4463  ;;  %v5178_v52 = vld [vmem:[%s9419_s3 + $0x1d0] sm:$0xff] }
 0x72f   :  { %5207 = vmatpush.msra.mxu1 %v5149_v45  ;;  %v5131_v57 = vld [vmem:[%s9419_s3 + $0x58] sm:$0xff]  ;;  %5229 = vmatpush.msra.mxu2 %v5163_v33  ;;  %v5161_v45 = vld [vmem:[%s9419_s3 + $0x148] sm:$0xff] }
 0x730   :  { %4583 = vadd.xlane.f32.xlu0 %v4582_v58  ;;  %5189 = vmatpush.msra.mxu0 %v5131_v57  ;;  %v5146_v58 = vld [vmem:[%s9419_s3 + $0xd0] sm:$0xff]  ;;  %v5145_v57 = vld [vmem:[%s9419_s3 + $0xc8] sm:$0xff] }
 0x731   :  { %5208 = vmatpush.msra.mxu1 %v5148_v28  ;;  %5230 = vmatpush.msra.mxu2 %v5162_v17  ;;  %v8471_v24 = vpop.xlane.xlu2 %4488  ;;  %v8473_v28 = vpop.xlane.xlu1 %4473 }
 0x732   :  { %5190 = vmatpush.msra.mxu0 %v5130_v55  ;;  %5250 = vmatpush.msra.mxu3 %v5178_v52  ;;  %v5160_v55 = vld [vmem:[%s9419_s3 + $0x140] sm:$0xff]  ;;  %v4689_v39 = vmax.f32 %v8456_v32, %v8471_v24 }
 0x733   :  { %5209 = vmatpush.msra.mxu1 %v5147_v25  ;;  %5231 = vmatpush.msra.mxu2 %v5161_v45  ;;  %v5128_v52 = vld [vmem:[%s9419_s3 + $0x40] sm:$0xff] }
 0x734   :  { %5191 = vmatpush.msra.mxu0 %v5129_v54  ;;  %5251 = vmatpush.msra.mxu3 %v5177_v22  ;;  %v5144_v54 = vld [vmem:[%s9419_s3 + $0xc0] sm:$0xff] }
 0x735   :  { %5210 = vmatpush.msra.mxu1 %v5146_v58  ;;  %v5176_v58 = vld [vmem:[%s9419_s3 + $0x1c0] sm:$0xff]  ;;  %5232 = vmatpush.msra.mxu2 %v5160_v55 }
 0x736   :  { %v8460_v21 = vpop.xlane.xlu0 %4483  ;;  %5192 = vmatpush.msra.mxu0 %v5128_v52  ;;  %5252 = vmatpush.msra.mxu3 %v5176_v58 }
 0x737   :  { %5211 = vmatpush.msra.mxu1 %v5145_v57 }
 0x739   :  { %v8480_v43 = vpop.xlane.xlu2 %4503  ;;  %v8482_v25 = vpop.xlane.xlu1 %4498  ;;  %5212 = vmatpush.msra.mxu1 %v5144_v54  ;;  %v4688_v54 = vmax.f32 %v8445_v13, %v8460_v21 }
 0x73a   :  { %v4691_v37 = vmax.f32 %v8458_v6, %v8482_v25 }
 0x73b   :  { %v4692_v11 = vmax.f32 %v4688_v54, %v8480_v43 }
 0x73e   :  { %v8475_v33 = vpop.xlane.xlu0 %4493 }
 0x73f   :  { %v4690_v63 = vmax.f32 %v8473_v28, %v8475_v33 }
 0x741   :  { %v8495_v45 = vpop.xlane.xlu2 %4518  ;;  %v8500_v22 = vpop.xlane.xlu1 %4513 }
 0x742   :  { %v4695_v35 = vmax.f32 %v4691_v37, %v8495_v45  ;;  %v4694_v1 = vmax.f32 %v4690_v63, %v8500_v22 }
 0x746   :  { %v8484_v17 = vpop.xlane.xlu0 %4508 }
 0x747   :  { %v4693_v42 = vmax.f32 %v4689_v39, %v8484_v17 }
 0x74b   :  { %v8506_v15 = vpop.xlane.xlu1 %4528 }
 0x74c   :  { %v4697_v19 = vmax.f32 %v4693_v42, %v8506_v15 }
 0x74e   :  { %v8502_v57 = vpop.xlane.xlu0 %4523 }
 0x74f   :  { %v4696_v14 = vmax.f32 %v4692_v11, %v8502_v57 }
 0x753   :  { %v8504_v44 = vpop.xlane.xlu2 %4533 }
 0x754   :  { %v4698_v41 = vmax.f32 %v4694_v1, %v8504_v44 }
 0x75b   :  { %v8508_v18 = vpop.xlane.xlu0 %4538 }
 0x75c   :  { %v4699_v9 = vmax.f32 %v4695_v35, %v8508_v18 }
 0x763   :  { %v8512_v55 = vpop.xlane.xlu1 %4543 }
 0x764   :  { %v4700_v0 = vmax.f32 %v4696_v14, %v8512_v55 }
 0x76b   :  { %v8510_v59 = vpop.xlane.xlu2 %4548 }
 0x76c   :  { %v4701_v37 = vmax.f32 %v4697_v19, %v8510_v59 }
 0x773   :  { %v8514_v52 = vpop.xlane.xlu0 %4553 }
 0x774   :  { %v4702_v63 = vmax.f32 %v4698_v41, %v8514_v52 }
 0x77b   :  { %v8518_v58 = vpop.xlane.xlu1 %4558 }
 0x77c   :  { %v4703_v54 = vmax.f32 %v4699_v9, %v8518_v58  ;;  %v4585_v9 = vlaneseq }
 0x77e   :  { %v8553_v3 = vshrl.u32 %v4585_v9, 7 }
 0x780   :  { %v8559_v16 = vadd.s32 16, %v8553_v3  ;;  %v8589_v9 = vadd.s32 96, %v8553_v3  ;;  %v8595_v36 = vadd.s32 112, %v8553_v3  ;;  %v8601_v2 = vadd.s32 128, %v8553_v3 }
 0x781   :  { %v8604_v8 = vadd.s32 136, %v8553_v3  ;;  %v8607_v23 = vadd.s32 144, %v8553_v3  ;;  %v8610_v26 = vadd.s32 152, %v8553_v3  ;;  %v8613_v5 = vadd.s32 160, %v8553_v3 }
 0x782   :  { %v8616_v51 = vadd.s32 168, %v8553_v3  ;;  %v8619_v46 = vadd.s32 176, %v8553_v3  ;;  %v8624_v30 = vadd.s32 184, %v8553_v3  ;;  %v8627_v47 = vadd.s32 192, %v8553_v3 }
 0x783   :  { %v8516_v12 = vpop.xlane.xlu2 %4563  ;;  %10367 = vst [vmem:[#allocation50_spill] sm:$0xff] %v8604_v8 }
 0x784   :  { %v4704_v11 = vmax.f32 %v4700_v0, %v8516_v12  ;;  %v8556_v0 = vadd.s32 8, %v8553_v3  ;;  %10368 = vst [vmem:[#allocation51_spill] sm:$0xff] %v8607_v23 }
 0x785   :  { %10369 = vst [vmem:[#allocation52_spill] sm:$0xff] %v8610_v26 }
 0x786   :  { %10370 = vst [vmem:[#allocation53_spill] sm:$0xff] %v8613_v5 }
 0x787   :  { %10371 = vst [vmem:[#allocation54_spill] sm:$0xff] %v8616_v51 }
 0x788   :  { %10372 = vst [vmem:[#allocation55_spill] sm:$0xff] %v8619_v46 }
 0x78b   :  { %v8524_v60 = vpop.xlane.xlu0 %4568 }
 0x78c   :  { %v4705_v42 = vmax.f32 %v4701_v37, %v8524_v60  ;;  %v8562_v37 = vadd.s32 24, %v8553_v3 }
 0x793   :  { %v8542_v34 = vpop.xlane.xlu1 %4573 }
 0x794   :  { %v4706_v1 = vmax.f32 %v4702_v63, %v8542_v34  ;;  %v8565_v63 = vadd.s32 32, %v8553_v3 }
 0x79b   :  { %v8536_v49 = vpop.xlane.xlu2 %4578 }
 0x79c   :  { %v4707_v35 = vmax.f32 %v4703_v54, %v8536_v49 }
 0x79e   :  { %v4710_v40 = vmax.f32 %v4706_v1, %v4707_v35  ;;  %v8583_v1 = vadd.s32 80, %v8553_v3 }
 0x7a3   :  { %v8548_v39 = vpop.xlane.xlu0 %4583 }
 0x7a4   :  { %v4708_v14 = vmax.f32 %v4704_v11, %v8548_v39  ;;  %v8568_v11 = vadd.s32 40, %v8553_v3 }
 0x7a6   :  { %v4709_v62 = vmax.f32 %v4708_v14, %v4705_v42  ;;  %v8580_v42 = vadd.s32 72, %v8553_v3  ;;  %v8586_v14 = vadd.s32 88, %v8553_v3 }
 0x7a8   :  { %v4711_v27 = vmax.f32 %v4709_v62, %v4710_v40  ;;  %v8571_v40 = vadd.s32 48, %v8553_v3  ;;  %v8577_v62 = vadd.s32 64, %v8553_v3 }
 0x7aa   :  { %v4712_v19 = vrot.slane %v4711_v27, 4 }
 0x7ac   :  { %v4713_v41 = vmax.f32 %v4711_v27, %v4712_v19  ;;  %v8574_v27 = vadd.s32 56, %v8553_v3  ;;  %v8592_v19 = vadd.s32 104, %v8553_v3 }
 0x7ae   :  { %v4714_v54 = vrot.slane %v4713_v41, 2 }
 0x7b0   :  { %v4715_v35 = vmax.f32 %v4713_v41, %v4714_v54  ;;  %v8598_v41 = vadd.s32 120, %v8553_v3 }
 0x7b2   :  { %v4716_v54 = vrot.slane %v4715_v35, 1 }
 0x7b4   :  { %v8621_v20 = vmax.f32 %v4715_v35, %v4716_v54  ;;  %v6682_v35 = vmov -inf  }
 0x7b5   :  { %61 = vst.msk [vmem:[#allocation2] sm:$0x1] %vm9822_vm0, %v6682_v35 }
 0x7b6   :  { %vm4718_vm1 = vcmp.ge.f32.partialorder %v8445_v13, %v8621_v20  ;;  %vm4719_vm2 = vcmp.ge.f32.partialorder %v8456_v32, %v8621_v20  ;;  %vm4720_vm3 = vcmp.ge.f32.partialorder %v8473_v28, %v8621_v20  ;;  %vm4721_vm4 = vcmp.ge.f32.partialorder %v8458_v6, %v8621_v20 }
 0x7b7   :  { %vm4722_vm5 = vcmp.ge.f32.partialorder %v8460_v21, %v8621_v20  ;;  %vm4723_vm6 = vcmp.ge.f32.partialorder %v8471_v24, %v8621_v20  ;;  %vm4724_vm7 = vcmp.ge.f32.partialorder %v8475_v33, %v8621_v20  ;;  %vm4725_vm8 = vcmp.ge.f32.partialorder %v8482_v25, %v8621_v20 }
 0x7b8   :  { %vm4726_vm9 = vcmp.ge.f32.partialorder %v8480_v43, %v8621_v20  ;;  %vm4736_vm12 = vcmp.ge.f32.partialorder %v8514_v52, %v8621_v20  ;;  %vm4737_vm13 = vcmp.ge.f32.partialorder %v8518_v58, %v8621_v20  ;;  %vm4738_vm14 = vcmp.ge.f32.partialorder %v8516_v12, %v8621_v20 }
 0x7b9   :  { %vm4739_vm15 = vcmp.ge.f32.partialorder %v8524_v60, %v8621_v20  ;;  %vm4740_vm0 = vcmp.ge.f32.partialorder %v8542_v34, %v8621_v20  ;;  %vm4741_vm10 = vcmp.ge.f32.partialorder %v8536_v49, %v8621_v20  ;;  %vm4742_vm11 = vcmp.ge.f32.partialorder %v8548_v39, %v8621_v20 }
 0x7ba   :  { %v4743_v54 = vsel %vm4718_vm1, %v8553_v3, 200  ;;  %v4744_v35 = vsel %vm4719_vm2, %v8556_v0, 200  ;;  %v4745_v31 = vsel %vm4720_vm3, %v8559_v16, 200  ;;  %v4746_v10 = vsel %vm4721_vm4, %v8562_v37, 200 }
 0x7bb   :  { %v4747_v13 = vsel %vm4722_vm5, %v8565_v63, 200  ;;  %v4748_v32 = vsel %vm4723_vm6, %v8568_v11, 200  ;;  %v4749_v28 = vsel %vm4724_vm7, %v8571_v40, 200  ;;  %v4750_v6 = vsel %vm4725_vm8, %v8574_v27, 200 }
 0x7bc   :  { %v4751_v21 = vsel %vm4726_vm9, %v8577_v62, 200  ;;  %vm10373_vm1 = vcmp.ge.f32.partialorder %v8484_v17, %v8621_v20  ;;  %vm10374_vm2 = vcmp.ge.f32.partialorder %v8500_v22, %v8621_v20  ;;  %vm10375_vm3 = vcmp.ge.f32.partialorder %v8495_v45, %v8621_v20 }
 0x7bd   :  { %v4752_v24 = vsel %vm10373_vm1, %v8580_v42, 200  ;;  %v4753_v33 = vsel %vm10374_vm2, %v8583_v1, 200  ;;  %v4754_v25 = vsel %vm10375_vm3, %v8586_v14, 200  ;;  %vm10376_vm4 = vcmp.ge.f32.partialorder %v8502_v57, %v8621_v20 }
 0x7be   :  { %v4755_v43 = vsel %vm10376_vm4, %v8589_v9, 200  ;;  %vm10377_vm5 = vcmp.ge.f32.partialorder %v8506_v15, %v8621_v20  ;;  %vm10378_vm6 = vcmp.ge.f32.partialorder %v8504_v44, %v8621_v20  ;;  %vm10379_vm7 = vcmp.ge.f32.partialorder %v8508_v18, %v8621_v20 }
 0x7bf   :  { %v4756_v17 = vsel %vm10377_vm5, %v8592_v19, 200  ;;  %v4757_v22 = vsel %vm10378_vm6, %v8595_v36, 200  ;;  %v4758_v45 = vsel %vm10379_vm7, %v8598_v41, 200  ;;  %vm10380_vm8 = vcmp.ge.f32.partialorder %v8512_v55, %v8621_v20 }
 0x7c0   :  { %v4759_v57 = vsel %vm10380_vm8, %v8601_v2, 200  ;;  %vm10381_vm9 = vcmp.ge.f32.partialorder %v8510_v59, %v8621_v20  ;;  %v4761_v44 = vsel %vm4736_vm12, %v8607_v23, 200  ;;  %v4762_v18 = vsel %vm4737_vm13, %v8610_v26, 200 }
 0x7c1   :  { %v4760_v15 = vsel %vm10381_vm9, %v8604_v8, 200  ;;  %v4763_v55 = vsel %vm4738_vm14, %v8613_v5, 200  ;;  %v4764_v59 = vsel %vm4739_vm15, %v8616_v51, 200  ;;  %v4765_v52 = vsel %vm4740_vm0, %v8619_v46, 200 }
 0x7c2   :  { %v4766_v58 = vsel %vm4741_vm10, %v8624_v30, 200  ;;  %v4767_v12 = vsel %vm4742_vm11, %v8627_v47, 200  ;;  %vm4768_vm12 = vcmp.lt.s32.totalorder %v4743_v54, %v4747_v13  ;;  %vm4770_vm13 = vcmp.lt.s32.totalorder %v4744_v35, %v4748_v32 }
 0x7c3   :  { %v4769_v5 = vsel %vm4768_vm12, %v4743_v54, %v4747_v13  ;;  %v4771_v60 = vsel %vm4770_vm13, %v4744_v35, %v4748_v32  ;;  %vm4772_vm14 = vcmp.lt.s32.totalorder %v4745_v31, %v4749_v28  ;;  %vm4774_vm15 = vcmp.lt.s32.totalorder %v4746_v10, %v4750_v6 }
 0x7c4   :  { %v4773_v51 = vsel %vm4772_vm14, %v4745_v31, %v4749_v28  ;;  %v4775_v26 = vsel %vm4774_vm15, %v4746_v10, %v4750_v6  ;;  %vm4776_vm1 = vcmp.lt.s32.totalorder %v4769_v5, %v4751_v21  ;;  %vm4778_vm0 = vcmp.lt.s32.totalorder %v4771_v60, %v4752_v24 }
 0x7c5   :  { %v4777_v34 = vsel %vm4776_vm1, %v4769_v5, %v4751_v21  ;;  %v4779_v46 = vsel %vm4778_vm0, %v4771_v60, %v4752_v24  ;;  %vm4780_vm2 = vcmp.lt.s32.totalorder %v4773_v51, %v4753_v33  ;;  %vm4782_vm3 = vcmp.lt.s32.totalorder %v4775_v26, %v4754_v25 }
 0x7c6   :  { %v4781_v49 = vsel %vm4780_vm2, %v4773_v51, %v4753_v33  ;;  %v4783_v23 = vsel %vm4782_vm3, %v4775_v26, %v4754_v25  ;;  %vm4784_vm10 = vcmp.lt.s32.totalorder %v4777_v34, %v4755_v43  ;;  %vm4786_vm4 = vcmp.lt.s32.totalorder %v4779_v46, %v4756_v17  ;;  %v5265_v51 = vld [vmem:[#allocation2] sm:$0x1] }
 0x7c7   :  { %v4785_v39 = vsel %vm4784_vm10, %v4777_v34, %v4755_v43  ;;  %v4787_v8 = vsel %vm4786_vm4, %v4779_v46, %v4756_v17  ;;  %vm4788_vm11 = vcmp.lt.s32.totalorder %v4781_v49, %v4757_v22  ;;  %vm4790_vm5 = vcmp.lt.s32.totalorder %v4783_v23, %v4758_v45 }
 0x7c8   :  { %v4789_v54 = vsel %vm4788_vm11, %v4781_v49, %v4757_v22  ;;  %v4791_v35 = vsel %vm4790_vm5, %v4783_v23, %v4758_v45  ;;  %vm4792_vm6 = vcmp.lt.s32.totalorder %v4785_v39, %v4759_v57  ;;  %vm4794_vm7 = vcmp.lt.s32.totalorder %v4787_v8, %v4760_v15 }
 0x7c9   :  { %v4793_v31 = vsel %vm4792_vm6, %v4785_v39, %v4759_v57  ;;  %v4795_v10 = vsel %vm4794_vm7, %v4787_v8, %v4760_v15  ;;  %vm4796_vm8 = vcmp.lt.s32.totalorder %v4789_v54, %v4761_v44  ;;  %vm4798_vm9 = vcmp.lt.s32.totalorder %v4791_v35, %v4762_v18 }
 0x7ca   :  { %v4797_v5 = vsel %vm4796_vm8, %v4789_v54, %v4761_v44  ;;  %v4799_v13 = vsel %vm4798_vm9, %v4791_v35, %v4762_v18  ;;  %vm4800_vm12 = vcmp.lt.s32.totalorder %v4793_v31, %v4763_v55  ;;  %vm4802_vm13 = vcmp.lt.s32.totalorder %v4795_v10, %v4764_v59 }
 0x7cb   :  { %v4801_v26 = vsel %vm4800_vm12, %v4793_v31, %v4763_v55  ;;  %v4803_v32 = vsel %vm4802_vm13, %v4795_v10, %v4764_v59  ;;  %vm4804_vm14 = vcmp.lt.s32.totalorder %v4797_v5, %v4765_v52  ;;  %vm4806_vm15 = vcmp.lt.s32.totalorder %v4799_v13, %v4766_v58  ;;  %v10385_v55 = vld [vmem:[#allocation123_spill] sm:$0xff] }
 0x7cc   :  { %v4805_v46 = vsel %vm4804_vm14, %v4797_v5, %v4765_v52  ;;  %v4807_v28 = vsel %vm4806_vm15, %v4799_v13, %v4766_v58  ;;  %vm4808_vm1 = vcmp.lt.s32.totalorder %v4801_v26, %v4767_v12  ;;  %v6683_v23 = vmov 0   ;;  %v10387_v58 = vld [vmem:[#allocation149_spill] sm:$0xff] }
 0x7cd   :  { %v4809_v6 = vsel %vm4808_vm1, %v4801_v26, %v4767_v12  ;;  %vm4812_vm0 = vcmp.lt.s32.totalorder %v4805_v46, %v4807_v28  ;;  %6593 = vset.pattern.permute.xlu1 %v6683_v23  ;;  %vm5266_vm2 = vcmp.gt.f32.partialorder %v8621_v20, %v5265_v51  ;;  %6594 = vset.pattern.permute.xlu0 %v6683_v23  ;;  %vm10382_vm10 = vcmask 0  }
 0x7ce   :  { %vm4810_vm3 = vcmp.lt.s32.totalorder %v4809_v6, %v4803_v32  ;;  %v4813_v8 = vsel %vm4812_vm0, %v4805_v46, %v4807_v28  ;;  %v5271_v21 = vsel %vm5266_vm2, 1, %v6683_v23  ;;  %v5267_v24 = vsel %vm5266_vm2, %v8621_v20, %v5265_v51  ;;  %v10383_v20 = vld [vmem:[#allocation92_spill] sm:$0xff] }
 0x7cf   :  { %v4811_v33 = vsel %vm4810_vm3, %v4809_v6, %v4803_v32  ;;  %5273 = vperm.xlu1 %6593, %v5271_v21   ;;  %5269 = vst.msk [vmem:[#allocation2] sm:$0x1] %vm10382_vm10, %v5267_v24  ;;  %v10384_v44 = vmax.f32 %v10383_v20, 0.0  ;;  %v10386_v59 = vmax.f32 %v10385_v55, 0.0  ;;  %v10388_v12 = vmax.f32 %v10387_v58, 0.0  ;;  %v10397_v32 = vld [vmem:[#allocation125_spill] sm:$0xff] }
 0x7d0   :  { %vm4814_vm4 = vcmp.lt.s32.totalorder %v4811_v33, %v4813_v8  ;;  %v10389_v34 = vmax.f32 %v10262_v38, 0.0  ;;  %v10390_v39 = vmax.f32 %v10261_v48, 0.0  ;;  %v10394_v5 = vmax.f32 %v7920_v29, 0.0  ;;  %v10395_v29 = vld [vmem:[#allocation98_spill] sm:$0xff]  ;;  %v10408_v58 = vld [vmem:[#allocation127_spill] sm:$0xff] }
 0x7d1   :  { %v4815_v25 = vsel %vm4814_vm4, %v4811_v33, %v4813_v8  ;;  %v10396_v51 = vmax.f32 %v10395_v29, 0.0  ;;  %v10398_v46 = vmax.f32 %v10397_v32, 0.0  ;;  %v10399_v6 = vmax.f32 %v7633_v7, 0.0 }
 0x7d2   :  { %v4816_v43 = vrot.slane %v4815_v25, 4  ;;  %v10400_v21 = vmax.f32 %v7946_v50, 0.0  ;;  %v10403_v50 = vmax.f32 %v7636_v61, 0.0 }
 0x7d4   :  { %vm4817_vm11 = vcmp.lt.s32.totalorder %v4815_v25, %v4816_v43 }
 0x7d5   :  { %v4818_v17 = vsel %vm4817_vm11, %v4815_v25, %v4816_v43 }
 0x7d6   :  { %v4819_v22 = vrot.slane %v4818_v17, 2 }
 0x7d8   :  { %vm4820_vm5 = vcmp.lt.s32.totalorder %v4818_v17, %v4819_v22 }
 0x7d9   :  { %v4821_v45 = vsel %vm4820_vm5, %v4818_v17, %v4819_v22  ;;  %v10401_v17 = vmax.f32 %v10272_v53, 0.0  ;;  %v10402_v22 = vmax.f32 %v10271_v56, 0.0  ;;  %v10404_v53 = vld [vmem:[#allocation28_spill] sm:$0xff] }
 0x7da   :  { %v4822_v57 = vrot.slane %v4821_v45, 1  ;;  %v10405_v20 = vmax.f32 %v10404_v53, 0.0 }
 0x7dc   :  { %vm4823_vm6 = vcmp.lt.s32.totalorder %v4821_v45, %v4822_v57 }
 0x7dd   :  { %v8783_v15 = vsel %vm4823_vm6, %v4821_v45, %v4822_v57 }
 0x7de   :  { %vm4848_vm7 = vcmp.eq.s32.totalorder %v8624_v30, %v8783_v15  ;;  %vm4849_vm8 = vcmp.eq.s32.totalorder %v8627_v47, %v8783_v15  ;;  %vm4825_vm9 = vcmp.eq.s32.totalorder %v8553_v3, %v8783_v15  ;;  %vm4826_vm12 = vcmp.eq.s32.totalorder %v8556_v0, %v8783_v15  ;;  %v10392_v0 = vld [vmem:[#allocation27_spill] sm:$0xff] }
 0x7df   :  { %v4900_v18 = vsel %vm4825_vm9, %v10384_v44, 0.0  ;;  %v4901_v52 = vsel %vm4825_vm9, %v10386_v59, 0.0  ;;  %v4902_v60 = vsel %vm4825_vm9, %v10388_v12, 0.0  ;;  %v4904_v49 = vsel %vm4826_vm12, %v10389_v34, 0.0  ;;  %v10406_v59 = vld [vmem:[#allocation100_spill] sm:$0xff]  ;;  %v10410_v34 = vld [vmem:[#allocation150_spill] sm:$0xff] }
 0x7e0   :  { %v4905_v54 = vsel %vm4826_vm12, %v10390_v39, 0.0  ;;  %v10391_v3 = vmax.f32 %v7626_v4, 0.0  ;;  %vm4827_vm13 = vcmp.eq.s32.totalorder %v8559_v16, %v8783_v15  ;;  %v10393_v31 = vmax.f32 %v10392_v0, 0.0 }
 0x7e1   :  { %v4907_v13 = vsel %vm4826_vm12, %v10394_v5, 0.0  ;;  %vm4828_vm14 = vcmp.eq.s32.totalorder %v8562_v37, %v8783_v15  ;;  %vm4829_vm15 = vcmp.eq.s32.totalorder %v8565_v63, %v8783_v15  ;;  %vm4830_vm1 = vcmp.eq.s32.totalorder %v8568_v11, %v8783_v15  ;;  %v10414_v5 = vld [vmem:[#allocation101_spill] sm:$0xff] }
 0x7e2   :  { %v4906_v35 = vsel %vm4826_vm12, %v10391_v3, 0.0  ;;  %v4903_v10 = vsel %vm4825_vm9, %v10393_v31, 0.0  ;;  %vm4831_vm0 = vcmp.eq.s32.totalorder %v8571_v40, %v8783_v15  ;;  %vm4832_vm2 = vcmp.eq.s32.totalorder %v8574_v27, %v8783_v15 }
 0x7e3   :  { %v5000_v4 = vadd.f32 %v4904_v49, %v4900_v18  ;;  %v5030_v38 = vadd.f32 %v4905_v54, %v4901_v52  ;;  %v5060_v48 = vadd.f32 %v4906_v35, %v4902_v60  ;;  %v4908_v26 = vsel %vm4827_vm13, %v10396_v51, 0.0  ;;  %v10412_v54 = vld [vmem:[#allocation29_spill] sm:$0xff]  ;;  %v10418_v51 = vld [vmem:[#allocation151_spill] sm:$0xff] }
 0x7e4   :  { %v4909_v28 = vsel %vm4827_vm13, %v10398_v46, 0.0  ;;  %v4910_v23 = vsel %vm4827_vm13, %v10399_v6, 0.0  ;;  %v5090_v8 = vadd.f32 %v4907_v13, %v4903_v10  ;;  %vm4833_vm3 = vcmp.eq.s32.totalorder %v8577_v62, %v8783_v15  ;;  %v10420_v46 = vld [vmem:[#allocation30_spill] sm:$0xff] }
 0x7e5   :  { %v4911_v24 = vsel %vm4827_vm13, %v10400_v21, 0.0  ;;  %v5001_v33 = vadd.f32 %v5000_v4, %v4908_v26  ;;  %v5031_v25 = vadd.f32 %v5030_v38, %v4909_v28  ;;  %v5061_v43 = vadd.f32 %v5060_v48, %v4910_v23  ;;  %v10416_v38 = vld [vmem:[#allocation128_spill] sm:$0xff] }
 0x7e6   :  { %v4912_v7 = vsel %vm4828_vm14, %v10401_v17, 0.0  ;;  %v4913_v45 = vsel %vm4828_vm14, %v10402_v22, 0.0  ;;  %v4914_v16 = vsel %vm4828_vm14, %v10403_v50, 0.0  ;;  %v5091_v57 = vadd.f32 %v5090_v8, %v4911_v24  ;;  %v10422_v24 = vld [vmem:[#allocation102_spill] sm:$0xff]  ;;  %v10426_v22 = vld [vmem:[#allocation152_spill] sm:$0xff] }
 0x7e7   :  { %vm4834_vm10 = vcmp.eq.s32.totalorder %v8580_v42, %v8783_v15  ;;  %v4915_v56 = vsel %vm4828_vm14, %v10405_v20, 0.0  ;;  %v5002_v44 = vadd.f32 %v5001_v33, %v4912_v7  ;;  %v5032_v18 = vadd.f32 %v5031_v25, %v4913_v45 }
 0x7e8   :  { %v5062_v55 = vadd.f32 %v5061_v43, %v4914_v16  ;;  %v10407_v52 = vmax.f32 %v10406_v59, 0.0  ;;  %v10409_v12 = vmax.f32 %v10408_v58, 0.0  ;;  %v10411_v49 = vmax.f32 %v10410_v34, 0.0  ;;  %v10424_v43 = vld [vmem:[#allocation129_spill] sm:$0xff]  ;;  %v10428_v16 = vld [vmem:[#allocation31_spill] sm:$0xff] }
 0x7e9   :  { %v5092_v39 = vadd.f32 %v5091_v57, %v4915_v56  ;;  %vm4835_vm4 = vcmp.eq.s32.totalorder %v8583_v1, %v8783_v15  ;;  %v10413_v3 = vmax.f32 %v10412_v54, 0.0  ;;  %v10415_v13 = vmax.f32 %v10414_v5, 0.0  ;;  %v10440_v5 = vld [vmem:[#allocation131_spill] sm:$0xff] }
 0x7ea   :  { %v4916_v61 = vsel %vm4829_vm15, %v10407_v52, 0.0  ;;  %v4917_v60 = vsel %vm4829_vm15, %v10409_v12, 0.0  ;;  %v4918_v37 = vsel %vm4829_vm15, %v10411_v49, 0.0  ;;  %v10417_v48 = vmax.f32 %v10416_v38, 0.0  ;;  %v10432_v52 = vld [vmem:[#allocation130_spill] sm:$0xff]  ;;  %v10434_v12 = vld [vmem:[#allocation153_spill] sm:$0xff] }
 0x7eb   :  { %v4919_v35 = vsel %vm4829_vm15, %v10413_v3, 0.0  ;;  %v5003_v0 = vadd.f32 %v5002_v44, %v4916_v61  ;;  %v5033_v31 = vadd.f32 %v5032_v18, %v4917_v60  ;;  %v5063_v10 = vadd.f32 %v5062_v55, %v4918_v37  ;;  %v10430_v18 = vld [vmem:[#allocation103_spill] sm:$0xff]  ;;  %v10436_v49 = vld [vmem:[#allocation32_spill] sm:$0xff]  ;;  %v10442_v38 = vld [vmem:[#allocation154_spill] sm:$0xff] }
 0x7ec   :  { %v4920_v4 = vsel %vm4830_vm1, %v10415_v13, 0.0  ;;  %v4921_v29 = vsel %vm4830_vm1, %v10417_v48, 0.0  ;;  %v10419_v26 = vmax.f32 %v10418_v51, 0.0  ;;  %v5093_v32 = vadd.f32 %v5092_v39, %v4919_v35  ;;  %v5159_v51 = vld [vmem:[%s9419_s3 + $0x138] sm:$0xff] }
 0x7ed   :  { %vm4836_vm11 = vcmp.eq.s32.totalorder %v8586_v14, %v8783_v15  ;;  %v10421_v28 = vmax.f32 %v10420_v46, 0.0  ;;  %v5004_v23 = vadd.f32 %v5003_v0, %v4920_v4  ;;  %v5034_v8 = vadd.f32 %v5033_v31, %v4921_v29  ;;  %v10438_v0 = vld [vmem:[#allocation104_spill] sm:$0xff]  ;;  %5233 = vmatpush.msra.mxu2 %v5159_v51 }
 0x7ee   :  { %v4922_v63 = vsel %vm4830_vm1, %v10419_v26, 0.0  ;;  %v10423_v33 = vmax.f32 %v10422_v24, 0.0  ;;  %v10425_v17 = vmax.f32 %v10424_v43, 0.0  ;;  %v10427_v45 = vmax.f32 %v10426_v22, 0.0  ;;  %v5127_v26 = vld [vmem:[%s9419_s3 + $0x38] sm:$0xff]  ;;  %v10446_v24 = vld [vmem:[#allocation105_spill] sm:$0xff] }
 0x7ef   :  { %v4923_v6 = vsel %vm4830_vm1, %v10421_v28, 0.0  ;;  %v5064_v21 = vadd.f32 %v5063_v10, %v4922_v63  ;;  %vm4837_vm5 = vcmp.eq.s32.totalorder %v8589_v9, %v8783_v15  ;;  %v10429_v57 = vmax.f32 %v10428_v16, 0.0  ;;  %v5175_v63 = vld [vmem:[%s9419_s3 + $0x1b8] sm:$0xff]  ;;  %5193 = vmatpush.msra.mxu0 %v5127_v26  ;;  %v5126_v16 = vld [vmem:[%s9419_s3 + $0x30] sm:$0xff]  ;;  %v10466_v26 = vld [vmem:[#allocation157_spill] sm:$0xff] }
 0x7f0   :  { %v4924_v25 = vsel %vm4831_vm0, %v10423_v33, 0.0  ;;  %v4925_v7 = vsel %vm4831_vm0, %v10425_v17, 0.0  ;;  %v4926_v11 = vsel %vm4831_vm0, %v10427_v45, 0.0  ;;  %v5094_v50 = vadd.f32 %v5093_v32, %v4923_v6  ;;  %v10444_v32 = vld [vmem:[#allocation33_spill] sm:$0xff]  ;;  %v10448_v43 = vld [vmem:[#allocation132_spill] sm:$0xff]  ;;  %5253 = vmatpush.msra.mxu3 %v5175_v63 }
 0x7f1   :  { %v4927_v53 = vsel %vm4831_vm0, %v10429_v57, 0.0  ;;  %v5005_v20 = vadd.f32 %v5004_v23, %v4924_v25  ;;  %v5035_v56 = vadd.f32 %v5034_v8, %v4925_v7  ;;  %v5065_v44 = vadd.f32 %v5064_v21, %v4926_v11  ;;  %v5143_v21 = vld [vmem:[%s9419_s3 + $0xb8] sm:$0xff]  ;;  %v5174_v57 = vld [vmem:[%s9419_s3 + $0x1b0] sm:$0xff]  ;;  %5194 = vmatpush.msra.mxu0 %v5126_v16 }
 0x7f2   :  { %v10431_v55 = vmax.f32 %v10430_v18, 0.0  ;;  %v10433_v61 = vmax.f32 %v10432_v52, 0.0  ;;  %v10435_v60 = vmax.f32 %v10434_v12, 0.0  ;;  %v5095_v34 = vadd.f32 %v5094_v50, %v4927_v53  ;;  %v10450_v7 = vld [vmem:[#allocation155_spill] sm:$0xff]  ;;  %5213 = vmatpush.msra.mxu1 %v5143_v21  ;;  %v10452_v53 = vld [vmem:[#allocation34_spill] sm:$0xff]  ;;  %v10456_v12 = vld [vmem:[#allocation133_spill] sm:$0xff]  ;;  %5254 = vmatpush.msra.mxu3 %v5174_v57 }
 0x7f3   :  { %vm4838_vm6 = vcmp.eq.s32.totalorder %v8592_v19, %v8783_v15  ;;  %v10437_v37 = vmax.f32 %v10436_v49, 0.0  ;;  %v10439_v31 = vmax.f32 %v10438_v0, 0.0  ;;  %v10441_v13 = vmax.f32 %v10440_v5, 0.0  ;;  %v5158_v50 = vld [vmem:[%s9419_s3 + $0x130] sm:$0xff]  ;;  %v10469_v21 = vld [vmem:[#allocation36_spill] sm:$0xff] }
 0x7f4   :  { %v4928_v59 = vsel %vm4832_vm2, %v10431_v55, 0.0  ;;  %v4929_v58 = vsel %vm4832_vm2, %v10433_v61, 0.0  ;;  %v4930_v40 = vsel %vm4832_vm2, %v10435_v60, 0.0  ;;  %v10443_v48 = vmax.f32 %v10442_v38, 0.0  ;;  %5234 = vmatpush.msra.mxu2 %v5158_v50  ;;  %v10454_v52 = vld [vmem:[#allocation106_spill] sm:$0xff]  ;;  %v10462_v38 = vld [vmem:[#allocation107_spill] sm:$0xff] }
 0x7f5   :  { %v4931_v39 = vsel %vm4832_vm2, %v10437_v37, 0.0  ;;  %v5006_v54 = vadd.f32 %v5005_v20, %v4928_v59  ;;  %v5036_v3 = vadd.f32 %v5035_v56, %v4929_v58  ;;  %v5066_v35 = vadd.f32 %v5065_v44, %v4930_v40  ;;  %v5142_v59 = vld [vmem:[%s9419_s3 + $0xb0] sm:$0xff]  ;;  %v10458_v40 = vld [vmem:[#allocation156_spill] sm:$0xff] }
 0x7f6   :  { %v4932_v10 = vsel %vm4833_vm3, %v10439_v31, 0.0  ;;  %v4933_v4 = vsel %vm4833_vm3, %v10441_v13, 0.0  ;;  %v4934_v27 = vsel %vm4833_vm3, %v10443_v48, 0.0  ;;  %v5096_v29 = vadd.f32 %v5095_v34, %v4931_v39  ;;  %5214 = vmatpush.msra.mxu1 %v5142_v59  ;;  %v5157_v39 = vld [vmem:[%s9419_s3 + $0x128] sm:$0xff] }
 0x7f7   :  { %vm4839_vm9 = vcmp.eq.s32.totalorder %v8595_v36, %v8783_v15  ;;  %v10445_v46 = vmax.f32 %v10444_v32, 0.0  ;;  %v5007_v6 = vadd.f32 %v5006_v54, %v4932_v10  ;;  %v5037_v23 = vadd.f32 %v5036_v3, %v4933_v4  ;;  %v5125_v54 = vld [vmem:[%s9419_s3 + $0x28] sm:$0xff]  ;;  %5235 = vmatpush.msra.mxu2 %v5157_v39  ;;  %v10482_v39 = vld [vmem:[#allocation136_spill] sm:$0xff] }
 0x7f8   :  { %v5067_v8 = vadd.f32 %v5066_v35, %v4934_v27  ;;  %v10447_v33 = vmax.f32 %v10446_v24, 0.0  ;;  %v10449_v17 = vmax.f32 %v10448_v43, 0.0  ;;  %v10451_v22 = vmax.f32 %v10450_v7, 0.0  ;;  %v5173_v3 = vld [vmem:[%s9419_s3 + $0x1a8] sm:$0xff]  ;;  %v10460_v35 = vld [vmem:[#allocation35_spill] sm:$0xff]  ;;  %5195 = vmatpush.msra.mxu0 %v5125_v54  ;;  %v10471_v7 = vld [vmem:[#allocation108_spill] sm:$0xff] }
 0x7f9   :  { %v4935_v28 = vsel %vm4833_vm3, %v10445_v46, 0.0  ;;  %vm4840_vm12 = vcmp.eq.s32.totalorder %v8598_v41, %v8783_v15  ;;  %v10453_v20 = vmax.f32 %v10452_v53, 0.0  ;;  %v10455_v61 = vmax.f32 %v10454_v52, 0.0  ;;  %v5141_v4 = vld [vmem:[%s9419_s3 + $0xa8] sm:$0xff]  ;;  %5255 = vmatpush.msra.mxu3 %v5173_v3 }
 0x7fa   :  { %v4936_v25 = vsel %vm4834_vm10, %v10447_v33, 0.0  ;;  %v4937_v62 = vsel %vm4834_vm10, %v10449_v17, 0.0  ;;  %v4938_v45 = vsel %vm4834_vm10, %v10451_v22, 0.0  ;;  %v5097_v11 = vadd.f32 %v5096_v29, %v4935_v28  ;;  %v10464_v29 = vld [vmem:[#allocation134_spill] sm:$0xff]  ;;  %5215 = vmatpush.msra.mxu1 %v5141_v4  ;;  %v5156_v28 = vld [vmem:[%s9419_s3 + $0x120] sm:$0xff] }
 0x7fb   :  { %v4939_v56 = vsel %vm4834_vm10, %v10453_v20, 0.0  ;;  %v5008_v44 = vadd.f32 %v5007_v6, %v4936_v25  ;;  %v5038_v18 = vadd.f32 %v5037_v23, %v4937_v62  ;;  %v5068_v55 = vadd.f32 %v5067_v8, %v4938_v45  ;;  %v5124_v6 = vld [vmem:[%s9419_s3 + $0x20] sm:$0xff]  ;;  %v10468_v8 = vld [vmem:[#allocation50_spill] sm:$0xff]  ;;  %5236 = vmatpush.msra.mxu2 %v5156_v28 }
 0x7fc   :  { %v4940_v58 = vsel %vm4835_vm4, %v10455_v61, 0.0  ;;  %v10457_v60 = vmax.f32 %v10456_v12, 0.0  ;;  %v10459_v34 = vmax.f32 %v10458_v40, 0.0  ;;  %v5098_v37 = vadd.f32 %v5097_v11, %v4939_v56  ;;  %v5172_v23 = vld [vmem:[%s9419_s3 + $0x1a0] sm:$0xff]  ;;  %5196 = vmatpush.msra.mxu0 %v5124_v6  ;;  %v10473_v11 = vld [vmem:[#allocation135_spill] sm:$0xff]  ;;  %v10475_v16 = vld [vmem:[#allocation158_spill] sm:$0xff] }
 0x7fd   :  { %vm4841_vm13 = vcmp.eq.s32.totalorder %v8601_v2, %v8783_v15  ;;  %v10461_v0 = vmax.f32 %v10460_v35, 0.0  ;;  %v5009_v10 = vadd.f32 %v5008_v44, %v4940_v58  ;;  %v10463_v48 = vmax.f32 %v10462_v38, 0.0  ;;  %v5140_v62 = vld [vmem:[%s9419_s3 + $0xa0] sm:$0xff]  ;;  %5256 = vmatpush.msra.mxu3 %v5172_v23  ;;  %v5155_v56 = vld [vmem:[%s9419_s3 + $0x118] sm:$0xff]  ;;  %v5154_v40 = vld [vmem:[%s9419_s3 + $0x110] sm:$0xff] }
 0x7fe   :  { %v4941_v42 = vsel %vm4835_vm4, %v10457_v60, 0.0  ;;  %v4942_v49 = vsel %vm4835_vm4, %v10459_v34, 0.0  ;;  %v10465_v51 = vmax.f32 %v10464_v29, 0.0  ;;  %v10467_v63 = vmax.f32 %v10466_v26, 0.0  ;;  %5216 = vmatpush.msra.mxu1 %v5140_v62  ;;  %v5123_v44 = vld [vmem:[%s9419_s3 + $0x18] sm:$0xff]  ;;  %v10478_v59 = vld [vmem:[#allocation37_spill] sm:$0xff]  ;;  %5237 = vmatpush.msra.mxu2 %v5155_v56 }
 0x7ff   :  { %v4943_v31 = vsel %vm4835_vm4, %v10461_v0, 0.0  ;;  %v5039_v5 = vadd.f32 %v5038_v18, %v4941_v42  ;;  %v5069_v13 = vadd.f32 %v5068_v55, %v4942_v49  ;;  %v4944_v27 = vsel %vm4836_vm11, %v10463_v48, 0.0  ;;  %v5171_v18 = vld [vmem:[%s9419_s3 + $0x198] sm:$0xff]  ;;  %5197 = vmatpush.msra.mxu0 %v5123_v44  ;;  %v5122_v34 = vld [vmem:[%s9419_s3 + $0x10] sm:$0xff]  ;;  %v10480_v49 = vld [vmem:[#allocation109_spill] sm:$0xff] }
 0x800   :  { %v4945_v1 = vsel %vm4836_vm11, %v10465_v51, 0.0  ;;  %v4946_v32 = vsel %vm4836_vm11, %v10467_v63, 0.0  ;;  %v5099_v46 = vadd.f32 %v5098_v37, %v4943_v31  ;;  %vm4842_vm14 = vcmp.eq.s32.totalorder %v10468_v8, %v8783_v15  ;;  %v10477_v55 = vld [vmem:[#allocation51_spill] sm:$0xff]  ;;  %5257 = vmatpush.msra.mxu3 %v5171_v18  ;;  %v5153_v4 = vld [vmem:[%s9419_s3 + $0x108] sm:$0xff]  ;;  %v10486_v38 = vld [vmem:[#allocation52_spill] sm:$0xff]  ;;  %5238 = vmatpush.msra.mxu2 %v5154_v40 }
 0x801   :  { %v10470_v24 = vmax.f32 %v10469_v21, 0.0  ;;  %v5010_v25 = vadd.f32 %v5009_v10, %v4944_v27  ;;  %v5040_v43 = vadd.f32 %v5039_v5, %v4945_v1  ;;  %v5070_v17 = vadd.f32 %v5069_v13, %v4946_v32  ;;  %v5139_v42 = vld [vmem:[%s9419_s3 + $0x98] sm:$0xff]  ;;  %v5170_v5 = vld [vmem:[%s9419_s3 + $0x190] sm:$0xff]  ;;  %5198 = vmatpush.msra.mxu0 %v5122_v34  ;;  %v5121_v63 = vld [vmem:[%s9419_s3 + $0x8] sm:$0xff] }
 0x802   :  { %v10472_v22 = vmax.f32 %v10471_v7, 0.0  ;;  %v10474_v50 = vmax.f32 %v10473_v11, 0.0  ;;  %v10476_v57 = vmax.f32 %v10475_v16, 0.0  ;;  %vm4843_vm15 = vcmp.eq.s32.totalorder %v10477_v55, %v8783_v15  ;;  %v10484_v35 = vld [vmem:[#allocation159_spill] sm:$0xff]  ;;  %5217 = vmatpush.msra.mxu1 %v5139_v42  ;;  %v10487_v48 = vld [vmem:[#allocation38_spill] sm:$0xff]  ;;  %v10491_v23 = vld [vmem:[#allocation137_spill] sm:$0xff]  ;;  %5258 = vmatpush.msra.mxu3 %v5170_v5 }
 0x803   :  { %v4947_v33 = vsel %vm4836_vm11, %v10470_v24, 0.0  ;;  %v10479_v52 = vmax.f32 %v10478_v59, 0.0  ;;  %v10481_v9 = vmax.f32 %v10480_v49, 0.0  ;;  %v10483_v54 = vmax.f32 %v10482_v39, 0.0  ;;  %v5138_v13 = vld [vmem:[%s9419_s3 + $0x90] sm:$0xff]  ;;  %v5169_v32 = vld [vmem:[%s9419_s3 + $0x188] sm:$0xff]  ;;  %5239 = vmatpush.msra.mxu2 %v5153_v4  ;;  %5199 = vmatpush.msra.mxu0 %v5121_v63 }
 0x804   :  { %v4948_v45 = vsel %vm4837_vm5, %v10472_v22, 0.0  ;;  %v4949_v14 = vsel %vm4837_vm5, %v10474_v50, 0.0  ;;  %v4950_v53 = vsel %vm4837_vm5, %v10476_v57, 0.0  ;;  %v5100_v20 = vadd.f32 %v5099_v46, %v4947_v33  ;;  %v5137_v46 = vld [vmem:[%s9419_s3 + $0x88] sm:$0xff]  ;;  %5218 = vmatpush.msra.mxu1 %v5138_v13  ;;  %v5152_v62 = vld [vmem:[%s9419_s3 + $0x100] sm:$0xff]  ;;  %v10498_v56 = vld [vmem:[#allocation111_spill] sm:$0xff]  ;;  %5259 = vmatpush.msra.mxu3 %v5169_v32 }
 0x805   :  { %v4951_v61 = vsel %vm4837_vm5, %v10479_v52, 0.0  ;;  %v5011_v58 = vadd.f32 %v5010_v25, %v4948_v45  ;;  %v5041_v12 = vadd.f32 %v5040_v43, %v4949_v14  ;;  %v5071_v60 = vadd.f32 %v5070_v17, %v4950_v53  ;;  %v10489_v28 = vld [vmem:[#allocation110_spill] sm:$0xff]  ;;  %v5120_v7 = vld [vmem:[%s9419_s3] sm:$0xff]  ;;  %v10496_v45 = vld [vmem:[#allocation39_spill] sm:$0xff]  ;;  %5240 = vmatpush.msra.mxu2 %v5152_v62 }
 0x806   :  { %v4952_v37 = vsel %vm4838_vm6, %v10481_v9, 0.0  ;;  %v4953_v3 = vsel %vm4838_vm6, %v10483_v54, 0.0  ;;  %v10485_v0 = vmax.f32 %v10484_v35, 0.0  ;;  %v5101_v10 = vadd.f32 %v5100_v20, %v4951_v61  ;;  %v10493_v33 = vld [vmem:[#allocation142_spill] sm:$0xff]  ;;  %v10495_v22 = vld [vmem:[#allocation53_spill] sm:$0xff]  ;;  %v10502_v61 = vld [vmem:[#allocation143_spill] sm:$0xff]  ;;  %5219 = vmatpush.msra.mxu1 %v5137_v46  ;;  %5200 = vmatpush.msra.mxu0 %v5120_v7 }
 0x807   :  { %vm4844_vm1 = vcmp.eq.s32.totalorder %v10486_v38, %v8783_v15  ;;  %v10488_v27 = vmax.f32 %v10487_v48, 0.0  ;;  %v5012_v51 = vadd.f32 %v5011_v58, %v4952_v37  ;;  %v5042_v1 = vadd.f32 %v5041_v12, %v4953_v3  ;;  %v5168_v53 = vld [vmem:[%s9419_s3 + $0x180] sm:$0xff]  ;;  %v10504_v42 = vld [vmem:[#allocation54_spill] sm:$0xff]  ;;  %v10513_v48 = vld [vmem:[#allocation55_spill] sm:$0xff] }
 0x808   :  { %v4954_v31 = vsel %vm4838_vm6, %v10485_v0, 0.0  ;;  %v10490_v19 = vmax.f32 %v10489_v28, 0.0  ;;  %v10492_v21 = vmax.f32 %v10491_v23, 0.0  ;;  %v10494_v25 = vmax.f32 %v10493_v33, 0.0  ;;  %v5136_v20 = vld [vmem:[%s9419_s3 + $0x80] sm:$0xff]  ;;  %v10509_v0 = vld [vmem:[#allocation118_spill] sm:$0xff]  ;;  %5260 = vmatpush.msra.mxu3 %v5168_v53 }
 0x809   :  { %v4955_v29 = vsel %vm4838_vm6, %v10488_v27, 0.0  ;;  %v5072_v26 = vadd.f32 %v5071_v60, %v4954_v31  ;;  %vm4845_vm0 = vcmp.eq.s32.totalorder %v10495_v22, %v8783_v15  ;;  %v10497_v11 = vmax.f32 %v10496_v45, 0.0  ;;  %v10500_v18 = vld [vmem:[#allocation117_spill] sm:$0xff]  ;;  %v10505_v40 = vld [vmem:[#allocation40_spill] sm:$0xff]  ;;  %5220 = vmatpush.msra.mxu1 %v5136_v20  ;;  %v10528_v20 = vld [vmem:[#allocation15_spill] sm:$0xff] }
 0x80a   :  { %v4956_v6 = vsel %vm4839_vm9, %v10490_v19, 0.0  ;;  %v4957_v24 = vsel %vm4839_vm9, %v10492_v21, 0.0  ;;  %v4958_v43 = vsel %vm4839_vm9, %v10494_v25, 0.0  ;;  %v5102_v17 = vadd.f32 %v5101_v10, %v4955_v29  ;;  %v10507_v54 = vld [vmem:[#allocation112_spill] sm:$0xff]  ;;  %v10511_v5 = vld [vmem:[#allocation13_spill] sm:$0xff]  ;;  %v10518_v19 = vld [vmem:[#allocation119_spill] sm:$0xff] }
 0x80b   :  { %v4959_v50 = vsel %vm4839_vm9, %v10497_v11, 0.0  ;;  %v5013_v14 = vadd.f32 %v5012_v51, %v4956_v6  ;;  %v5043_v16 = vadd.f32 %v5042_v1, %v4957_v24  ;;  %v5073_v57 = vadd.f32 %v5072_v26, %v4958_v43  ;;  %v10514_v27 = vld [vmem:[#allocation41_spill] sm:$0xff]  ;;  %v10520_v21 = vld [vmem:[#allocation14_spill] sm:$0xff] }
 0x80c   :  { %v10499_v44 = vmax.f32 %v10498_v56, 0.0  ;;  %v10501_v59 = vmax.f32 %v10500_v18, 0.0  ;;  %v10503_v58 = vmax.f32 %v10502_v61, 0.0  ;;  %v5103_v60 = vadd.f32 %v5102_v17, %v4959_v50  ;;  %v10516_v32 = vld [vmem:[#allocation113_spill] sm:$0xff]  ;;  %v10522_v25 = vld [vmem:[#allocation42_spill] sm:$0xff] }
 0x80d   :  { %vm4846_vm2 = vcmp.eq.s32.totalorder %v10504_v42, %v8783_v15  ;;  %v10506_v34 = vmax.f32 %v10505_v40, 0.0  ;;  %v10508_v3 = vmax.f32 %v10507_v54, 0.0  ;;  %v10510_v31 = vmax.f32 %v10509_v0, 0.0  ;;  %v10524_v11 = vld [vmem:[#allocation77_spill] sm:$0xff] }
 0x80e   :  { %v4960_v36 = vsel %vm4840_vm12, %v10499_v44, 0.0  ;;  %v4961_v52 = vsel %vm4840_vm12, %v10501_v59, 0.0  ;;  %v4962_v12 = vsel %vm4840_vm12, %v10503_v58, 0.0  ;;  %v10512_v41 = vmax.f32 %v10511_v5, 0.0 }
 0x80f   :  { %v4963_v49 = vsel %vm4840_vm12, %v10506_v34, 0.0  ;;  %v5014_v9 = vadd.f32 %v5013_v14, %v4960_v36  ;;  %v5044_v37 = vadd.f32 %v5043_v16, %v4961_v52  ;;  %v5074_v39 = vadd.f32 %v5073_v57, %v4962_v12  ;;  %v10526_v16 = vld [vmem:[#allocation120_spill] sm:$0xff]  ;;  %v10530_v36 = vld [vmem:[#allocation43_spill] sm:$0xff]  ;;  %v10532_v12 = vld [vmem:[#allocation78_spill] sm:$0xff] }
 0x810   :  { %v4964_v35 = vsel %vm4841_vm13, %v10508_v3, 0.0  ;;  %v4965_v10 = vsel %vm4841_vm13, %v10510_v31, 0.0  ;;  %v4966_v13 = vsel %vm4841_vm13, %v10512_v41, 0.0  ;;  %v5104_v4 = vadd.f32 %v5103_v60, %v4963_v49  ;;  %v10534_v34 = vld [vmem:[#allocation121_spill] sm:$0xff]  ;;  %v10538_v3 = vld [vmem:[#allocation44_spill] sm:$0xff]  ;;  %v10540_v41 = vld [vmem:[#allocation83_spill] sm:$0xff] }
 0x811   :  { %vm4847_vm3 = vcmp.eq.s32.totalorder %v10513_v48, %v8783_v15  ;;  %v10515_v29 = vmax.f32 %v10514_v27, 0.0  ;;  %v5015_v1 = vadd.f32 %v5014_v9, %v4964_v35  ;;  %v5045_v26 = vadd.f32 %v5044_v37, %v4965_v10  ;;  %v10536_v37 = vld [vmem:[#allocation16_spill] sm:$0xff]  ;;  %v10542_v27 = vld [vmem:[#allocation122_spill] sm:$0xff] }
 0x812   :  { %v5075_v63 = vadd.f32 %v5074_v39, %v4966_v13  ;;  %v10517_v46 = vmax.f32 %v10516_v32, 0.0  ;;  %v10519_v6 = vmax.f32 %v10518_v19, 0.0  ;;  %v10521_v24 = vmax.f32 %v10520_v21, 0.0  ;;  %v10546_v32 = vld [vmem:[#allocation45_spill] sm:$0xff]  ;;  %v10548_v21 = vld [vmem:[#allocation84_spill] sm:$0xff] }
 0x813   :  { %v4967_v51 = vsel %vm4841_vm13, %v10515_v29, 0.0  ;;  %v10523_v43 = vmax.f32 %v10522_v25, 0.0  ;;  %v10525_v50 = vmax.f32 %v10524_v11, 0.0  ;;  %v10527_v57 = vmax.f32 %v10526_v16, 0.0 }
 0x814   :  { %v4968_v28 = vsel %vm4842_vm14, %v10517_v46, 0.0  ;;  %v4969_v23 = vsel %vm4842_vm14, %v10519_v6, 0.0  ;;  %v4970_v2 = vsel %vm4842_vm14, %v10521_v24, 0.0  ;;  %v5105_v33 = vadd.f32 %v5104_v4, %v4967_v51 }
 0x815   :  { %v4971_v17 = vsel %vm4842_vm14, %v10523_v43, 0.0  ;;  %v5016_v62 = vadd.f32 %v5015_v1, %v4968_v28  ;;  %v5046_v7 = vadd.f32 %v5045_v26, %v4969_v23  ;;  %v5076_v45 = vadd.f32 %v5075_v63, %v4970_v2  ;;  %v10544_v1 = vld [vmem:[#allocation144_spill] sm:$0xff] }
 0x816   :  { %v4972_v14 = vsel %vm4843_vm15, %v10525_v50, 0.0  ;;  %v4973_v53 = vsel %vm4843_vm15, %v10527_v57, 0.0  ;;  %v10529_v56 = vmax.f32 %v10528_v20, 0.0  ;;  %v5106_v44 = vadd.f32 %v5105_v33, %v4971_v17  ;;  %v10550_v33 = vld [vmem:[#allocation138_spill] sm:$0xff]  ;;  %v10552_v17 = vld [vmem:[#allocation145_spill] sm:$0xff] }
 0x817   :  { %v10531_v18 = vmax.f32 %v10530_v36, 0.0  ;;  %v5017_v52 = vadd.f32 %v5016_v62, %v4972_v14  ;;  %v5047_v61 = vadd.f32 %v5046_v7, %v4973_v53  ;;  %v10533_v60 = vmax.f32 %v10532_v12, 0.0  ;;  %v10556_v53 = vld [vmem:[#allocation114_spill] sm:$0xff] }
 0x818   :  { %v4974_v8 = vsel %vm4843_vm15, %v10529_v56, 0.0  ;;  %v10535_v49 = vmax.f32 %v10534_v34, 0.0  ;;  %v10537_v39 = vmax.f32 %v10536_v37, 0.0  ;;  %v10539_v35 = vmax.f32 %v10538_v3, 0.0  ;;  %v10568_v3 = vld [vmem:[#allocation18_spill] sm:$0xff] }
 0x819   :  { %v4975_v59 = vsel %vm4843_vm15, %v10531_v18, 0.0  ;;  %v5077_v58 = vadd.f32 %v5076_v45, %v4974_v8  ;;  %v4976_v40 = vsel %vm4844_vm1, %v10533_v60, 0.0  ;;  %v10541_v13 = vmax.f32 %v10540_v41, 0.0  ;;  %v10554_v45 = vld [vmem:[#allocation46_spill] sm:$0xff]  ;;  %v10558_v8 = vld [vmem:[#allocation139_spill] sm:$0xff]  ;;  %v10560_v18 = vld [vmem:[#allocation17_spill] sm:$0xff] }
 0x81a   :  { %v4977_v9 = vsel %vm4844_vm1, %v10535_v49, 0.0  ;;  %v4978_v55 = vsel %vm4844_vm1, %v10537_v39, 0.0  ;;  %v5107_v54 = vadd.f32 %v5106_v44, %v4975_v59  ;;  %v4979_v0 = vsel %vm4844_vm1, %v10539_v35, 0.0  ;;  %v10564_v49 = vld [vmem:[#allocation115_spill] sm:$0xff]  ;;  %v10566_v39 = vld [vmem:[#allocation140_spill] sm:$0xff] }
 0x81b   :  { %v5018_v31 = vadd.f32 %v5017_v52, %v4976_v40  ;;  %v5048_v10 = vadd.f32 %v5047_v61, %v4977_v9  ;;  %v5078_v5 = vadd.f32 %v5077_v58, %v4978_v55  ;;  %v4980_v4 = vsel %vm4845_vm0, %v10541_v13, 0.0  ;;  %v10562_v61 = vld [vmem:[#allocation47_spill] sm:$0xff] }
 0x81c   :  { %v10543_v29 = vmax.f32 %v10542_v27, 0.0  ;;  %v10545_v26 = vmax.f32 %v10544_v1, 0.0  ;;  %v5108_v63 = vadd.f32 %v5107_v54, %v4979_v0  ;;  %v10547_v46 = vmax.f32 %v10546_v32, 0.0  ;;  %v10572_v27 = vld [vmem:[#allocation116_spill] sm:$0xff]  ;;  %v10574_v1 = vld [vmem:[#allocation141_spill] sm:$0xff] }
 0x81d   :  { %v5019_v19 = vadd.f32 %v5018_v31, %v4980_v4  ;;  %v10549_v24 = vmax.f32 %v10548_v21, 0.0  ;;  %v10551_v25 = vmax.f32 %v10550_v33, 0.0  ;;  %v10553_v62 = vmax.f32 %v10552_v17, 0.0  ;;  %v10570_v31 = vld [vmem:[#allocation48_spill] sm:$0xff] }
 0x81e   :  { %v4981_v51 = vsel %vm4845_vm0, %v10543_v29, 0.0  ;;  %v4982_v38 = vsel %vm4845_vm0, %v10545_v26, 0.0  ;;  %v4983_v28 = vsel %vm4845_vm0, %v10547_v46, 0.0  ;;  %v10555_v11 = vmax.f32 %v10554_v45, 0.0 }
 0x81f   :  { %v5049_v6 = vadd.f32 %v5048_v10, %v4981_v51  ;;  %v5079_v23 = vadd.f32 %v5078_v5, %v4982_v38  ;;  %v4984_v2 = vsel %vm4846_vm2, %v10549_v24, 0.0  ;;  %v4985_v43 = vsel %vm4846_vm2, %v10551_v25, 0.0 }
 0x820   :  { %v4986_v22 = vsel %vm4846_vm2, %v10553_v62, 0.0  ;;  %v5109_v7 = vadd.f32 %v5108_v63, %v4983_v28  ;;  %v4987_v50 = vsel %vm4846_vm2, %v10555_v11, 0.0  ;;  %v5020_v14 = vadd.f32 %v5019_v19, %v4984_v2  ;;  %v10576_v63 = vld [vmem:[#allocation19_spill] sm:$0xff]  ;;  %v10578_v28 = vld [vmem:[#allocation49_spill] sm:$0xff] }
 0x821   :  { %v5050_v16 = vadd.f32 %v5049_v6, %v4985_v43  ;;  %v5080_v57 = vadd.f32 %v5079_v23, %v4986_v22  ;;  %v10557_v20 = vmax.f32 %v10556_v53, 0.0  ;;  %v10559_v44 = vmax.f32 %v10558_v8, 0.0 }
 0x822   :  { %v10561_v59 = vmax.f32 %v10560_v18, 0.0  ;;  %v5110_v52 = vadd.f32 %v5109_v7, %v4987_v50  ;;  %v10563_v58 = vmax.f32 %v10562_v61, 0.0  ;;  %v10565_v9 = vmax.f32 %v10564_v49, 0.0  ;;  %v5184_v61 = vld [vmem:[%s9420_s4] sm:$0x1]  ;;  %s5292_s4 = sshll.u32 %s9422_s6, 4  ;;  %s5293_s4 = int_to_ptr.hbm [resolvable:$true] %s5292_s4 }
 0x823   :  { %v4988_v56 = vsel %vm4847_vm3, %v10557_v20, 0.0  ;;  %v4989_v36 = vsel %vm4847_vm3, %v10559_v44, 0.0  ;;  %v10567_v55 = vmax.f32 %v10566_v39, 0.0  ;;  %v10569_v35 = vmax.f32 %v10568_v3, 0.0 }
 0x824   :  { %v4990_v42 = vsel %vm4847_vm3, %v10561_v59, 0.0  ;;  %v4991_v12 = vsel %vm4847_vm3, %v10563_v58, 0.0  ;;  %v5021_v60 = vadd.f32 %v5020_v14, %v4988_v56  ;;  %v5051_v40 = vadd.f32 %v5050_v16, %v4989_v36 }
 0x825   :  { %v5081_v34 = vadd.f32 %v5080_v57, %v4990_v42  ;;  %v4992_v37 = vsel %vm4848_vm7, %v10565_v9, 0.0  ;;  %v4993_v54 = vsel %vm4848_vm7, %v10567_v55, 0.0  ;;  %v4994_v48 = vsel %vm4848_vm7, %v10569_v35, 0.0 }
 0x826   :  { %v5111_v0 = vadd.f32 %v5110_v52, %v4991_v12  ;;  %v10571_v10 = vmax.f32 %v10570_v31, 0.0  ;;  %v5022_v41 = vadd.f32 %v5021_v60, %v4992_v37  ;;  %v5052_v13 = vadd.f32 %v5051_v40, %v4993_v54 }
 0x827   :  { %v5082_v4 = vadd.f32 %v5081_v34, %v4994_v48  ;;  %v10573_v29 = vmax.f32 %v10572_v27, 0.0  ;;  %v10575_v26 = vmax.f32 %v10574_v1, 0.0  ;;  %v10577_v32 = vmax.f32 %v10576_v63, 0.0 }
 0x828   :  { %v4995_v5 = vsel %vm4848_vm7, %v10571_v10, 0.0  ;;  %v10579_v19 = vmax.f32 %v10578_v28, 0.0  ;;  %vm62_vm7 = vcmask 8192   ;;  %v6684_v52 = vmov 0.0  }
 0x829   :  { %v4996_v51 = vsel %vm4849_vm8, %v10573_v29, 0.0  ;;  %v4997_v38 = vsel %vm4849_vm8, %v10575_v26, 0.0  ;;  %v4998_v30 = vsel %vm4849_vm8, %v10577_v32, 0.0  ;;  %v5112_v46 = vadd.f32 %v5111_v0, %v4995_v5  ;;  %63 = vst.msk [vmem:[#allocation3] sm:$0x1] %vm62_vm7, %v6684_v52 }
 0x82a   :  { %v4999_v6 = vsel %vm4849_vm8, %v10579_v19, 0.0  ;;  %v5023_v23 = vadd.f32 %v5022_v41, %v4996_v51  ;;  %v5053_v21 = vadd.f32 %v5052_v13, %v4997_v38  ;;  %v5083_v24 = vadd.f32 %v5082_v4, %v4998_v30 }
 0x82b   :  { %v5113_v2 = vadd.f32 %v5112_v46, %v4999_v6 }
 0x82c   :  { %v5024_v33 = vrot.slane %v5023_v23, 4  ;;  %v5054_v25 = vrot.slane %v5053_v21, 4  ;;  %v5084_v43 = vrot.slane %v5083_v24, 4 }
 0x82d   :  { %v5114_v17 = vrot.slane %v5113_v2, 4 }
 0x82e   :  { %v5025_v62 = vadd.f32 %v5024_v33, %v5023_v23  ;;  %v5055_v22 = vadd.f32 %v5054_v25, %v5053_v21  ;;  %v5085_v7 = vadd.f32 %v5084_v43, %v5083_v24 }
 0x82f   :  { %v5115_v45 = vadd.f32 %v5114_v17, %v5113_v2 }
 0x830   :  { %v5026_v11 = vrot.slane %v5025_v62, 2  ;;  %v5056_v50 = vrot.slane %v5055_v22, 2  ;;  %v5086_v14 = vrot.slane %v5085_v7, 2  ;;  %v5270_v55 = vld [vmem:[#allocation3] sm:$0x1] }
 0x831   :  { %v5116_v16 = vrot.slane %v5115_v45, 2 }
 0x832   :  { %v5027_v57 = vadd.f32 %v5026_v11, %v5025_v62  ;;  %v5057_v53 = vadd.f32 %v5056_v50, %v5055_v22  ;;  %v5087_v47 = vadd.f32 %v5086_v14, %v5085_v7 }
 0x833   :  { %v5117_v15 = vadd.f32 %v5116_v16, %v5115_v45 }
 0x834   :  { %v5028_v20 = vrot.slane %v5027_v57, 1  ;;  %v5058_v56 = vrot.slane %v5057_v53, 1  ;;  %v5088_v8 = vrot.slane %v5087_v47, 1 }
 0x835   :  { %v5118_v44 = vrot.slane %v5117_v15, 1 }
 0x836   :  { %v5029_v36 = vadd.f32 %v5028_v20, %v5027_v57  ;;  %v5059_v18 = vadd.f32 %v5058_v56, %v5057_v53  ;;  %v5089_v59 = vadd.f32 %v5088_v8, %v5087_v47 }
 0x837   :  { %v5119_v42 = vadd.f32 %v5118_v44, %v5117_v15 }
 0x838   :  { %5201 = vmatmul.f32.vlgmr.msra.gmra.mxu0 %v5029_v36  ;;  %5221 = vmatmul.f32.vlgmr.msra.gmra.mxu1 %v5059_v18 }
 0x839   :  { %5241 = vmatmul.f32.vlgmr.msra.gmra.mxu2 %v5089_v59  ;;  %5261 = vmatmul.f32.vlgmr.msra.gmra.mxu3 %v5119_v42 }
 0x841   :  { %v5274_v60 = vpop.permute.xlu1 %5273 }
 0x842   :  { %v5275_v49 = vperm.slane %v5274_v60, 0 }
 0x844   :  { %vm5276_vm8 = vcmp.eq.s32.totalorder %v5275_v49, 1 }
 0x8b5   :  { %v5202_v58 = vpop.f32.mrf.mxu0  ;;  %v5222_v40 = vpop.f32.mrf.mxu1 }
 0x8b6   :  { %v5203_v12 = vadd.f32 %v5202_v58, %v5184_v61 }
 0x8b8   :  { %v5223_v34 = vadd.f32 %v5222_v40, %v5203_v12 }
 0x8bc   :  { %v5242_v9 = vpop.f32.mrf.mxu2  ;;  %v5262_v39 = vpop.f32.mrf.mxu3 }
 0x8bd   :  { %v5243_v37 = vadd.f32 %v5242_v9, %v5223_v34 }
 0x8bf   :  { %v5263_v54 = vadd.f32 %v5262_v39, %v5243_v37 }
 0x8c1   :  { %v5277_v3 = vsel %vm5276_vm8, %v5263_v54, %v5270_v55 }
 0x8c2   :  { %5279 = vst.msk [vmem:[#allocation3] sm:$0x1] %vm62_vm7, %v5277_v3 }
 0x8c9   :  { %v5283_v35 = vld [vmem:[#allocation3] sm:$0x1] }
 0x8ca   :  { %5284 = vst.msk [vmem:[#allocation9] sm:$0x1] %vm62_vm7, %v5283_v35 }
 0x8cb   :  { %5295 = dma.vmem_to_hbm [thread:$0]  %s5291_s0, 16, %s5293_s4, [#allocation6]  }
 0x8cc   :  { %6674 = dma.done.wait [#allocation6], 16  }
 0x8cd   :  { %6675 = vsyncadd [#allocation6], 4294967280 }
 0x8ce   :  { %5300 = vsyncpa [#allocation5], 1 }
 0x8cf   :  { %5301 = vsyncpa [#allocation8], 1 }
 0x8d0   :  { %5302 = vsyncpa [#allocation6], 1 }

</bundles_post_ra>
